<compile_context>
chip_gen: v5e
topology: v5e:2x2
jax: 0.10.0
libtpu: 0.0.40
codegen_flags: <defaults>
</compile_context>

<pallas_src>
import functools

import jax
import jax.numpy as jnp
from jax.experimental import pallas as pl
from jax.experimental.pallas import tpu as pltpu


# Left padding (sublane axis) of the in-kernel activation scratch. 8 keeps the
# interior writes sublane-aligned while still providing the 1-px left halo.
_LEFT_PAD = 8


# -----------------------------------------------------------------------------
# Fused SFE kernel: one image per grid step, whole network in VMEM.
# -----------------------------------------------------------------------------
def _sfe_kernel(xcol_ref, wh_ref, bh_ref, wb_ref, bb_ref,   # inputs
                o_ref,                                      # output
                a_ref, h_ref,                               # VMEM scratch
                *, H, W, C, num_res_blocks, res_scale):
    """Per-grid-step shapes:
      xcol_ref : (1, 27, H*W)      head im2col patch (lane-dense)
      wh_ref   : (C, 27)   f32     head conv weights
      bh_ref   : (C, 1)    f32
      wb_ref   : (L, 9*C, C) bf16  body convs (im2col-packed), L = 2*nrb + 1
      bb_ref   : (L, 1, C) f32
      o_ref    : (1, C, H*W)       planar output (== NCHW flattened), f32
      a_ref    : (H+2, wbuf, C) f32   padded "current x" activation (zero halo)
      h_ref    : (H+2, wbuf, C) bf16  padded ResBlock intermediate
    """
    LP = _LEFT_PAD
    wbuf = a_ref.shape[1]

    # ---- zero ONLY the halo border that conv reads (never written) ----------
    def _zero_border(ref):
        z_row = jnp.zeros((1, wbuf, C), ref.dtype)
        z_col = jnp.zeros((H + 2, 1, C), ref.dtype)
        ref[0:1, :, :] = z_row
        ref[H + 1:H + 2, :, :] = z_row
        ref[:, LP - 1:LP, :] = z_col
        ref[:, LP + W:LP + W + 1, :] = z_col

    _zero_border(a_ref)
    _zero_border(h_ref)

    # ---- conv_head (3 -> C) + ReLU : one K=27 im2col matmul -----------------
    # Result is kept planar (C, H*W) so the x1 store into o_ref is a wide,
    # unmasked, lane-dense store (no x1 scratch buffer needed).
    y_pl = jnp.dot(wh_ref[...], xcol_ref[0],
                   preferred_element_type=jnp.float32)          # (C, H*W)
    y_pl = jnp.maximum(y_pl + bh_ref[...], 0.0)
    o_ref[0] = y_pl.astype(o_ref.dtype)                          # x1 residual
    a_ref[1:1 + H, LP:LP + W, :] = jnp.transpose(y_pl).reshape(H, W, C)

    # ---- C -> C conv as one im2col matmul (K = 9*C), bf16 in / f32 accum ----
    def body_conv(src_ref, layer):
        cols = []
        for ky in range(3):
            for kx in range(3):
                cols.append(
                    src_ref[ky:ky + H, LP - 1 + kx:LP - 1 + kx + W, :]
                    .reshape(H * W, C).astype(jnp.bfloat16))
        patch = jnp.concatenate(cols, axis=-1)                   # (H*W, 9C) bf16
        return (jnp.dot(patch, wb_ref[layer],
                        preferred_element_type=jnp.float32)
                + bb_ref[layer])                                  # f32

    # ---- ResBlocks: fori_loop over blocks (dynamic layer index) -------------
    def rb_body(i, carry):
        h = jnp.maximum(body_conv(a_ref, 2 * i), 0.0)            # relu(conv1(x))
        h_ref[1:1 + H, LP:LP + W, :] = h.reshape(H, W, C).astype(h_ref.dtype)
        res = a_ref[1:1 + H, LP:LP + W, :].reshape(H * W, C)     # x (residual, f32)
        y = body_conv(h_ref, 2 * i + 1) * res_scale + res        # conv2*s + x
        a_ref[1:1 + H, LP:LP + W, :] = y.reshape(H, W, C)
        return carry

    jax.lax.fori_loop(0, num_res_blocks, rb_body, 0)

    # ---- conv_tail + global residual (x1 lives in o_ref) --------------------
    tail = body_conv(a_ref, 2 * num_res_blocks)                   # (H*W, C) f32
    o_ref[0] = (jnp.transpose(tail) + o_ref[0]).astype(o_ref.dtype)


# -----------------------------------------------------------------------------
# Wrapper: NCHW in / NCHW out, single pallas_call for the whole SFE.
# -----------------------------------------------------------------------------
def sfe_forward(params, x_nchw, res_scale=1.0):
    N, Cin, H, W = x_nchw.shape
    C = params["w_head"].shape[0]
    L = params["w_body"].shape[0]
    num_res_blocks = (L - 1) // 2

    # Head im2col patch built by XLA (layout plumbing only; the conv compute
    # stays in the kernel). Shipped lane-dense: (N, 27, H*W).
    xpad = jnp.pad(x_nchw, ((0, 0), (0, 0), (1, 1), (1, 1)))     # (N, 3, H+2, W+2)
    taps = [xpad[:, :, ky:ky + H, kx:kx + W]
            for ky in range(3) for kx in range(3)]               # each (N, 3, H, W)
    xcol = jnp.concatenate(taps, axis=1).reshape(N, 9 * Cin, H * W)

    # Scratch width: left pad LP (aligned interior) + W + 1 right halo col.
    w_buf = _LEFT_PAD + ((W + 1 + 7) // 8) * 8

    kern = functools.partial(_sfe_kernel, H=H, W=W, C=C,
                             num_res_blocks=num_res_blocks,
                             res_scale=float(res_scale))

    out_flat = pl.pallas_call(
        kern,
        out_shape=jax.ShapeDtypeStruct((N, C, H * W), jnp.float32),
        grid_spec=pltpu.PrefetchScalarGridSpec(
            num_scalar_prefetch=0,
            grid=(N,),
            in_specs=[
                pl.BlockSpec((1, 9 * Cin, H * W), lambda n: (n, 0, 0)),
                pl.BlockSpec((C, 9 * Cin), lambda n: (0, 0)),
                pl.BlockSpec((C, 1), lambda n: (0, 0)),
                pl.BlockSpec((L, 9 * C, C), lambda n: (0, 0, 0)),
                pl.BlockSpec((L, 1, C), lambda n: (0, 0, 0)),
            ],
            out_specs=pl.BlockSpec((1, C, H * W), lambda n: (n, 0, 0)),
            scratch_shapes=[
                pltpu.VMEM((H + 2, w_buf, C), jnp.float32),    # a: current x
                pltpu.VMEM((H + 2, w_buf, C), jnp.bfloat16),   # h: intermediate
            ],
        ),
        compiler_params=pltpu.CompilerParams(
            dimension_semantics=("parallel",),
            vmem_limit_bytes=64 * 1024 * 1024),
    )(xcol, params["w_head"], params["b_head"], params["w_body"],
      params["b_body"])

    return out_flat.reshape(N, C, H, W)                           # already NCHW


# -----------------------------------------------------------------------------
# Parameters (deterministic, synthetic), stored in kernel layout.
# -----------------------------------------------------------------------------
def _init_conv(key, cin, cout):
    kw, kb = jax.random.split(key)
    w = 0.05 * jax.random.normal(kw, (3, 3, cin, cout), jnp.float32)  # HWIO
    b = 0.05 * jax.random.normal(kb, (1, cout), jnp.float32)
    return w, b


def init_sfe_params(key, num_res_blocks, n_feats):
    keys = jax.random.split(key, 2 + 2 * num_res_blocks)
    wh, bh = _init_conv(keys[0], 3, n_feats)
    wt, bt = _init_conv(keys[1], n_feats, n_feats)
    body_ws, body_bs = [], []
    for i in range(num_res_blocks):
        w1, b1 = _init_conv(keys[2 + 2 * i], n_feats, n_feats)
        w2, b2 = _init_conv(keys[3 + 2 * i], n_feats, n_feats)
        body_ws += [w1, w2]
        body_bs += [b1, b2]
    body_ws.append(wt)
    body_bs.append(bt)
    return {
        # head taps packed (ky,kx,ci) -> (C, 27) f32
        "w_head": wh.reshape(27, n_feats).T,
        "b_head": bh.reshape(n_feats, 1),                          # (C, 1) f32
        # body convs im2col-packed: (3,3,C,C) -> (9*C, C), stacked, bf16
        "w_body": jnp.stack([w.reshape(9 * n_feats, n_feats)
                             for w in body_ws]).astype(jnp.bfloat16),
        "b_body": jnp.stack([b.reshape(1, n_feats) for b in body_bs]),  # f32
    }


# -----------------------------------------------------------------------------
# Pure-JAX reference (correctness check)
# -----------------------------------------------------------------------------
def _conv_ref(x_nhwc, w_hwio, b):
    y = jax.lax.conv_general_dilated(
        x_nhwc, w_hwio, window_strides=(1, 1), padding="SAME",
        dimension_numbers=("NHWC", "HWIO", "NHWC"))
    return y + b.reshape(1, 1, 1, -1)


def sfe_ref(params, x_nchw, num_res_blocks, n_feats, res_scale=1.0):
    x = jnp.transpose(x_nchw, (0, 2, 3, 1))
    wh = params["w_head"].T.reshape(3, 3, 3, n_feats)
    x = jax.nn.relu(_conv_ref(x, wh, params["b_head"]))
    x1 = x
    wb = params["w_body"].astype(jnp.float32)
    bb = params["b_body"]
    for i in range(num_res_blocks):
        w1 = wb[2 * i].reshape(3, 3, n_feats, n_feats)
        w2 = wb[2 * i + 1].reshape(3, 3, n_feats, n_feats)
        h = jax.nn.relu(_conv_ref(x, w1, bb[2 * i]))
        x = _conv_ref(h, w2, bb[2 * i + 1]) * res_scale + x
    wt = wb[2 * num_res_blocks].reshape(3, 3, n_feats, n_feats)
    x = _conv_ref(x, wt, bb[2 * num_res_blocks]) + x1
    return jnp.transpose(x, (0, 3, 1, 2))


if __name__ == "__main__":
    key = jax.random.PRNGKey(0)
    k_param, k_x = jax.random.split(key)

    num_res_blocks = 2
    n_feats = 32
    res_scale = 1.0
    N, Cin, H, W = 2, 3, 16, 16          # conv_head fixes Cin=3 (per the module)

    params = init_sfe_params(k_param, num_res_blocks, n_feats)
    x = jax.random.normal(k_x, (N, Cin, H, W), jnp.float32)

    fwd = jax.jit(lambda p, xx: sfe_forward(p, xx, res_scale))
    out = jax.block_until_ready(fwd(params, x))

    ref = jax.block_until_ready(sfe_ref(params, x, num_res_blocks, n_feats,
                                        res_scale))
    assert out.shape == (N, n_feats, H, W)
    # bf16 matmul operands (f32 accumulation) vs f32 reference -> loosened tol.
    assert jnp.allclose(out, ref, atol=1e-2, rtol=1e-2), \
        float(jnp.max(jnp.abs(out - ref)))

    print("KERNEL_OK")
</pallas_src>

<mosaic_0001>
module attributes {stable_mosaic.version = 11 : i64} {
  func.func @_sfe_kernel(%arg0: i32, %arg1: memref<1x27x256xf32, #tpu.memory_space<vmem>>, %arg2: memref<32x27xf32, #tpu.memory_space<vmem>>, %arg3: memref<32x1xf32, #tpu.memory_space<vmem>>, %arg4: memref<5x288x32xbf16, #tpu.memory_space<vmem>>, %arg5: memref<5x1x32xf32, #tpu.memory_space<vmem>>, %arg6: memref<1x32x256xf32, #tpu.memory_space<vmem>>, %arg7: memref<18x32x32xf32, #tpu.memory_space<vmem>>, %arg8: memref<18x32x32xbf16, #tpu.memory_space<vmem>>) attributes {dimension_semantics = [#tpu.dimension_semantics<parallel>], iteration_bounds = array<i64: 2>, scalar_prefetch = 0 : i64, scratch_operands = 2 : i64, tpu.core_type = #tpu.core_type<tc>, window_params = [{transform_indices = @transform_0, window_bounds = array<i64: 1, 27, 256>}, {pipeline_mode = #tpu.pipeline_mode<synchronous>, transform_indices = @transform_1, window_bounds = array<i64: 32, 27>}, {pipeline_mode = #tpu.pipeline_mode<synchronous>, transform_indices = @transform_2, window_bounds = array<i64: 32, 1>}, {pipeline_mode = #tpu.pipeline_mode<synchronous>, transform_indices = @transform_3, window_bounds = array<i64: 5, 288, 32>}, {pipeline_mode = #tpu.pipeline_mode<synchronous>, transform_indices = @transform_4, window_bounds = array<i64: 5, 1, 32>}, {transform_indices = @transform_5, window_bounds = array<i64: 1, 32, 256>}]} {
    %cst = arith.constant 0.000000e+00 : f32
    %0 = vector.broadcast %cst : f32 to vector<1x32x32xf32>
    %cst_0 = arith.constant 0.000000e+00 : f32
    %1 = vector.broadcast %cst_0 : f32 to vector<18x1x32xf32>
    %c0 = arith.constant 0 : index
    %c0_1 = arith.constant 0 : index
    %c0_2 = arith.constant 0 : index
    %2 = vector.load %arg7[%c0, %c0_1, %c0_2] : memref<18x32x32xf32, #tpu.memory_space<vmem>>, vector<1x32x32xf32>
    tpu.vector_store %arg7[%c0, %c0_1, %c0_2], %0 {strides = array<i32>} : memref<18x32x32xf32, #tpu.memory_space<vmem>>, vector<1x32x32xf32>,
    %c17 = arith.constant 17 : index
    %c0_3 = arith.constant 0 : index
    %c0_4 = arith.constant 0 : index
    %3 = vector.load %arg7[%c17, %c0_3, %c0_4] : memref<18x32x32xf32, #tpu.memory_space<vmem>>, vector<1x32x32xf32>
    tpu.vector_store %arg7[%c17, %c0_3, %c0_4], %0 {strides = array<i32>} : memref<18x32x32xf32, #tpu.memory_space<vmem>>, vector<1x32x32xf32>,
    %c0_5 = arith.constant 0 : index
    %c7 = arith.constant 7 : index
    %c0_6 = arith.constant 0 : index
    %4 = vector.load %arg7[%c0_5, %c7, %c0_6] : memref<18x32x32xf32, #tpu.memory_space<vmem>>, vector<18x1x32xf32>
    tpu.vector_store %arg7[%c0_5, %c7, %c0_6], %1 {strides = array<i32>} : memref<18x32x32xf32, #tpu.memory_space<vmem>>, vector<18x1x32xf32>,
    %c0_7 = arith.constant 0 : index
    %c24 = arith.constant 24 : index
    %c0_8 = arith.constant 0 : index
    %5 = vector.load %arg7[%c0_7, %c24, %c0_8] : memref<18x32x32xf32, #tpu.memory_space<vmem>>, vector<18x1x32xf32>
    tpu.vector_store %arg7[%c0_7, %c24, %c0_8], %1 {strides = array<i32>} : memref<18x32x32xf32, #tpu.memory_space<vmem>>, vector<18x1x32xf32>,
    %cst_9 = arith.constant 0.000000e+00 : bf16
    %6 = vector.broadcast %cst_9 : bf16 to vector<1x32x32xbf16>
    %cst_10 = arith.constant 0.000000e+00 : bf16
    %7 = vector.broadcast %cst_10 : bf16 to vector<18x1x32xbf16>
    %c0_11 = arith.constant 0 : index
    %c0_12 = arith.constant 0 : index
    %c0_13 = arith.constant 0 : index
    %8 = vector.load %arg8[%c0_11, %c0_12, %c0_13] : memref<18x32x32xbf16, #tpu.memory_space<vmem>>, vector<1x32x32xbf16>
    tpu.vector_store %arg8[%c0_11, %c0_12, %c0_13], %6 {strides = array<i32>} : memref<18x32x32xbf16, #tpu.memory_space<vmem>>, vector<1x32x32xbf16>,
    %c17_14 = arith.constant 17 : index
    %c0_15 = arith.constant 0 : index
    %c0_16 = arith.constant 0 : index
    %9 = vector.load %arg8[%c17_14, %c0_15, %c0_16] : memref<18x32x32xbf16, #tpu.memory_space<vmem>>, vector<1x32x32xbf16>
    tpu.vector_store %arg8[%c17_14, %c0_15, %c0_16], %6 {strides = array<i32>} : memref<18x32x32xbf16, #tpu.memory_space<vmem>>, vector<1x32x32xbf16>,
    %c0_17 = arith.constant 0 : index
    %c7_18 = arith.constant 7 : index
    %c0_19 = arith.constant 0 : index
    %10 = vector.load %arg8[%c0_17, %c7_18, %c0_19] : memref<18x32x32xbf16, #tpu.memory_space<vmem>>, vector<18x1x32xbf16>
    tpu.vector_store %arg8[%c0_17, %c7_18, %c0_19], %7 {strides = array<i32>} : memref<18x32x32xbf16, #tpu.memory_space<vmem>>, vector<18x1x32xbf16>,
    %c0_20 = arith.constant 0 : index
    %c24_21 = arith.constant 24 : index
    %c0_22 = arith.constant 0 : index
    %11 = vector.load %arg8[%c0_20, %c24_21, %c0_22] : memref<18x32x32xbf16, #tpu.memory_space<vmem>>, vector<18x1x32xbf16>
    tpu.vector_store %arg8[%c0_20, %c24_21, %c0_22], %7 {strides = array<i32>} : memref<18x32x32xbf16, #tpu.memory_space<vmem>>, vector<18x1x32xbf16>,
    %c0_23 = arith.constant 0 : index
    %c0_24 = arith.constant 0 : index
    %12 = vector.load %arg2[%c0_23, %c0_24] : memref<32x27xf32, #tpu.memory_space<vmem>>, vector<32x27xf32>
    %c0_25 = arith.constant 0 : index
    %c0_26 = arith.constant 0 : index
    %c0_27 = arith.constant 0 : index
    %13 = vector.load %arg1[%c0_25, %c0_26, %c0_27] : memref<1x27x256xf32, #tpu.memory_space<vmem>>, vector<1x27x256xf32>
    %14 = vector.shape_cast %13 : vector<1x27x256xf32> to vector<27x256xf32>
    %cst_28 = arith.constant dense<0.000000e+00> : vector<32x256xf32>
    %15 = tpu.matmul %12, %14, %cst_28 {dimension_numbers = #tpu.dot_dimension_numbers<[1], [0], [0], [1], [0, 0, 1, 1], [], []>} : vector<32x27xf32>, vector<27x256xf32>, vector<32x256xf32> -> vector<32x256xf32>
    %c0_29 = arith.constant 0 : index
    %c0_30 = arith.constant 0 : index
    %16 = vector.load %arg3[%c0_29, %c0_30] : memref<32x1xf32, #tpu.memory_space<vmem>>, vector<32x1xf32>
    %17 = vector.broadcast %16 : vector<32x1xf32> to vector<32x256xf32>
    %18 = arith.addf %15, %17 : vector<32x256xf32>
    %cst_31 = arith.constant 0.000000e+00 : f32
    %19 = vector.broadcast %cst_31 : f32 to vector<32x256xf32>
    %20 = arith.maximumf %18, %19 : vector<32x256xf32>
    %c0_32 = arith.constant 0 : index
    %c0_33 = arith.constant 0 : index
    %c0_34 = arith.constant 0 : index
    %21 = vector.load %arg6[%c0_32, %c0_33, %c0_34] : memref<1x32x256xf32, #tpu.memory_space<vmem>>, vector<1x32x256xf32>
    %22 = vector.shape_cast %21 : vector<1x32x256xf32> to vector<32x256xf32>
    %23 = vector.shape_cast %20 : vector<32x256xf32> to vector<1x32x256xf32>
    tpu.vector_store %arg6[%c0_32, %c0_33, %c0_34], %23 {strides = array<i32>} : memref<1x32x256xf32, #tpu.memory_space<vmem>>, vector<1x32x256xf32>,
    %24 = tpu.transpose %20, [1, 0] : vector<32x256xf32> -> vector<256x32xf32>
    %25 = vector.shape_cast %24 : vector<256x32xf32> to vector<16x16x32xf32>
    %c1 = arith.constant 1 : index
    %c8 = arith.constant 8 : index
    %c0_35 = arith.constant 0 : index
    %26 = vector.load %arg7[%c1, %c8, %c0_35] : memref<18x32x32xf32, #tpu.memory_space<vmem>>, vector<16x16x32xf32>
    tpu.vector_store %arg7[%c1, %c8, %c0_35], %25 {strides = array<i32>} : memref<18x32x32xf32, #tpu.memory_space<vmem>>, vector<16x16x32xf32>,
    %c0_i32 = arith.constant 0 : i32
    %c2_i32 = arith.constant 2 : i32
    %27 = arith.addi %c0_i32, %c2_i32 : i32
    %c1_i32 = arith.constant 1 : i32
    scf.for %arg9 = %c0_i32 to %27 step %c1_i32  : i32 {
      %c2_i32_74 = arith.constant 2 : i32
      %70 = arith.muli %c2_i32_74, %arg9 : i32
      %c0_75 = arith.constant 0 : index
      %c7_76 = arith.constant 7 : index
      %c0_77 = arith.constant 0 : index
      %71 = vector.load %arg7[%c0_75, %c7_76, %c0_77] : memref<18x32x32xf32, #tpu.memory_space<vmem>>, vector<16x16x32xf32>
      %72 = vector.shape_cast %71 : vector<16x16x32xf32> to vector<256x32xf32>
      %73 = arith.truncf %72 : vector<256x32xf32> to vector<256x32xbf16>
      %c0_78 = arith.constant 0 : index
      %c8_79 = arith.constant 8 : index
      %c0_80 = arith.constant 0 : index
      %74 = vector.load %arg7[%c0_78, %c8_79, %c0_80] : memref<18x32x32xf32, #tpu.memory_space<vmem>>, vector<16x16x32xf32>
      %75 = vector.shape_cast %74 : vector<16x16x32xf32> to vector<256x32xf32>
      %76 = arith.truncf %75 : vector<256x32xf32> to vector<256x32xbf16>
      %c0_81 = arith.constant 0 : index
      %c9_82 = arith.constant 9 : index
      %c0_83 = arith.constant 0 : index
      %77 = vector.load %arg7[%c0_81, %c9_82, %c0_83] : memref<18x32x32xf32, #tpu.memory_space<vmem>>, vector<16x16x32xf32>
      %78 = vector.shape_cast %77 : vector<16x16x32xf32> to vector<256x32xf32>
      %79 = arith.truncf %78 : vector<256x32xf32> to vector<256x32xbf16>
      %c1_84 = arith.constant 1 : index
      %c7_85 = arith.constant 7 : index
      %c0_86 = arith.constant 0 : index
      %80 = vector.load %arg7[%c1_84, %c7_85, %c0_86] : memref<18x32x32xf32, #tpu.memory_space<vmem>>, vector<16x16x32xf32>
      %81 = vector.shape_cast %80 : vector<16x16x32xf32> to vector<256x32xf32>
      %82 = arith.truncf %81 : vector<256x32xf32> to vector<256x32xbf16>
      %c1_87 = arith.constant 1 : index
      %c8_88 = arith.constant 8 : index
      %c0_89 = arith.constant 0 : index
      %83 = vector.load %arg7[%c1_87, %c8_88, %c0_89] : memref<18x32x32xf32, #tpu.memory_space<vmem>>, vector<16x16x32xf32>
      %84 = vector.shape_cast %83 : vector<16x16x32xf32> to vector<256x32xf32>
      %85 = arith.truncf %84 : vector<256x32xf32> to vector<256x32xbf16>
      %c1_90 = arith.constant 1 : index
      %c9_91 = arith.constant 9 : index
      %c0_92 = arith.constant 0 : index
      %86 = vector.load %arg7[%c1_90, %c9_91, %c0_92] : memref<18x32x32xf32, #tpu.memory_space<vmem>>, vector<16x16x32xf32>
      %87 = vector.shape_cast %86 : vector<16x16x32xf32> to vector<256x32xf32>
      %88 = arith.truncf %87 : vector<256x32xf32> to vector<256x32xbf16>
      %c2_93 = arith.constant 2 : index
      %c7_94 = arith.constant 7 : index
      %c0_95 = arith.constant 0 : index
      %89 = vector.load %arg7[%c2_93, %c7_94, %c0_95] : memref<18x32x32xf32, #tpu.memory_space<vmem>>, vector<16x16x32xf32>
      %90 = vector.shape_cast %89 : vector<16x16x32xf32> to vector<256x32xf32>
      %91 = arith.truncf %90 : vector<256x32xf32> to vector<256x32xbf16>
      %c2_96 = arith.constant 2 : index
      %c8_97 = arith.constant 8 : index
      %c0_98 = arith.constant 0 : index
      %92 = vector.load %arg7[%c2_96, %c8_97, %c0_98] : memref<18x32x32xf32, #tpu.memory_space<vmem>>, vector<16x16x32xf32>
      %93 = vector.shape_cast %92 : vector<16x16x32xf32> to vector<256x32xf32>
      %94 = arith.truncf %93 : vector<256x32xf32> to vector<256x32xbf16>
      %c2_99 = arith.constant 2 : index
      %c9_100 = arith.constant 9 : index
      %c0_101 = arith.constant 0 : index
      %95 = vector.load %arg7[%c2_99, %c9_100, %c0_101] : memref<18x32x32xf32, #tpu.memory_space<vmem>>, vector<16x16x32xf32>
      %96 = vector.shape_cast %95 : vector<16x16x32xf32> to vector<256x32xf32>
      %97 = arith.truncf %96 : vector<256x32xf32> to vector<256x32xbf16>
      %98 = tpu.concatenate %73, %76, %79, %82, %85, %88, %91, %94, %97 in 1 : vector<256x32xbf16>, vector<256x32xbf16>, vector<256x32xbf16>, vector<256x32xbf16>, vector<256x32xbf16>, vector<256x32xbf16>, vector<256x32xbf16>, vector<256x32xbf16>, vector<256x32xbf16> -> vector<256x288xbf16>
      %99 = arith.index_cast %70 : i32 to index
      %c0_102 = arith.constant 0 : index
      %c0_103 = arith.constant 0 : index
      %100 = vector.load %arg4[%99, %c0_102, %c0_103] : memref<5x288x32xbf16, #tpu.memory_space<vmem>>, vector<1x288x32xbf16>
      %101 = vector.shape_cast %100 : vector<1x288x32xbf16> to vector<288x32xbf16>
      %cst_104 = arith.constant dense<0.000000e+00> : vector<256x32xf32>
      %102 = tpu.matmul %98, %101, %cst_104 {dimension_numbers = #tpu.dot_dimension_numbers<[1], [0], [0], [1], [0, 0, 1, 1], [], []>} : vector<256x288xbf16>, vector<288x32xbf16>, vector<256x32xf32> -> vector<256x32xf32>
      %103 = arith.index_cast %70 : i32 to index
      %c0_105 = arith.constant 0 : index
      %c0_106 = arith.constant 0 : index
      %104 = vector.load %arg5[%103, %c0_105, %c0_106] : memref<5x1x32xf32, #tpu.memory_space<vmem>>, vector<1x1x32xf32>
      %105 = vector.shape_cast %104 : vector<1x1x32xf32> to vector<1x32xf32>
      %106 = vector.broadcast %105 : vector<1x32xf32> to vector<256x32xf32>
      %107 = arith.addf %102, %106 : vector<256x32xf32>
      %cst_107 = arith.constant 0.000000e+00 : f32
      %108 = vector.broadcast %cst_107 : f32 to vector<256x32xf32>
      %109 = arith.maximumf %107, %108 : vector<256x32xf32>
      %110 = vector.shape_cast %109 : vector<256x32xf32> to vector<16x16x32xf32>
      %111 = arith.truncf %110 : vector<16x16x32xf32> to vector<16x16x32xbf16>
      %c1_108 = arith.constant 1 : index
      %c8_109 = arith.constant 8 : index
      %c0_110 = arith.constant 0 : index
      %112 = vector.load %arg8[%c1_108, %c8_109, %c0_110] : memref<18x32x32xbf16, #tpu.memory_space<vmem>>, vector<16x16x32xbf16>
      tpu.vector_store %arg8[%c1_108, %c8_109, %c0_110], %111 {strides = array<i32>} : memref<18x32x32xbf16, #tpu.memory_space<vmem>>, vector<16x16x32xbf16>,
      %c1_111 = arith.constant 1 : index
      %c8_112 = arith.constant 8 : index
      %c0_113 = arith.constant 0 : index
      %113 = vector.load %arg7[%c1_111, %c8_112, %c0_113] : memref<18x32x32xf32, #tpu.memory_space<vmem>>, vector<16x16x32xf32>
      %114 = vector.shape_cast %113 : vector<16x16x32xf32> to vector<256x32xf32>
      %c2_i32_114 = arith.constant 2 : i32
      %115 = arith.muli %c2_i32_114, %arg9 : i32
      %c1_i32_115 = arith.constant 1 : i32
      %116 = arith.addi %115, %c1_i32_115 : i32
      %c0_116 = arith.constant 0 : index
      %c7_117 = arith.constant 7 : index
      %c0_118 = arith.constant 0 : index
      %117 = vector.load %arg8[%c0_116, %c7_117, %c0_118] : memref<18x32x32xbf16, #tpu.memory_space<vmem>>, vector<16x16x32xbf16>
      %118 = vector.shape_cast %117 : vector<16x16x32xbf16> to vector<256x32xbf16>
      %c0_119 = arith.constant 0 : index
      %c8_120 = arith.constant 8 : index
      %c0_121 = arith.constant 0 : index
      %119 = vector.load %arg8[%c0_119, %c8_120, %c0_121] : memref<18x32x32xbf16, #tpu.memory_space<vmem>>, vector<16x16x32xbf16>
      %120 = vector.shape_cast %119 : vector<16x16x32xbf16> to vector<256x32xbf16>
      %c0_122 = arith.constant 0 : index
      %c9_123 = arith.constant 9 : index
      %c0_124 = arith.constant 0 : index
      %121 = vector.load %arg8[%c0_122, %c9_123, %c0_124] : memref<18x32x32xbf16, #tpu.memory_space<vmem>>, vector<16x16x32xbf16>
      %122 = vector.shape_cast %121 : vector<16x16x32xbf16> to vector<256x32xbf16>
      %c1_125 = arith.constant 1 : index
      %c7_126 = arith.constant 7 : index
      %c0_127 = arith.constant 0 : index
      %123 = vector.load %arg8[%c1_125, %c7_126, %c0_127] : memref<18x32x32xbf16, #tpu.memory_space<vmem>>, vector<16x16x32xbf16>
      %124 = vector.shape_cast %123 : vector<16x16x32xbf16> to vector<256x32xbf16>
      %c1_128 = arith.constant 1 : index
      %c8_129 = arith.constant 8 : index
      %c0_130 = arith.constant 0 : index
      %125 = vector.load %arg8[%c1_128, %c8_129, %c0_130] : memref<18x32x32xbf16, #tpu.memory_space<vmem>>, vector<16x16x32xbf16>
      %126 = vector.shape_cast %125 : vector<16x16x32xbf16> to vector<256x32xbf16>
      %c1_131 = arith.constant 1 : index
      %c9_132 = arith.constant 9 : index
      %c0_133 = arith.constant 0 : index
      %127 = vector.load %arg8[%c1_131, %c9_132, %c0_133] : memref<18x32x32xbf16, #tpu.memory_space<vmem>>, vector<16x16x32xbf16>
      %128 = vector.shape_cast %127 : vector<16x16x32xbf16> to vector<256x32xbf16>
      %c2_134 = arith.constant 2 : index
      %c7_135 = arith.constant 7 : index
      %c0_136 = arith.constant 0 : index
      %129 = vector.load %arg8[%c2_134, %c7_135, %c0_136] : memref<18x32x32xbf16, #tpu.memory_space<vmem>>, vector<16x16x32xbf16>
      %130 = vector.shape_cast %129 : vector<16x16x32xbf16> to vector<256x32xbf16>
      %c2_137 = arith.constant 2 : index
      %c8_138 = arith.constant 8 : index
      %c0_139 = arith.constant 0 : index
      %131 = vector.load %arg8[%c2_137, %c8_138, %c0_139] : memref<18x32x32xbf16, #tpu.memory_space<vmem>>, vector<16x16x32xbf16>
      %132 = vector.shape_cast %131 : vector<16x16x32xbf16> to vector<256x32xbf16>
      %c2_140 = arith.constant 2 : index
      %c9_141 = arith.constant 9 : index
      %c0_142 = arith.constant 0 : index
      %133 = vector.load %arg8[%c2_140, %c9_141, %c0_142] : memref<18x32x32xbf16, #tpu.memory_space<vmem>>, vector<16x16x32xbf16>
      %134 = vector.shape_cast %133 : vector<16x16x32xbf16> to vector<256x32xbf16>
      %135 = tpu.concatenate %118, %120, %122, %124, %126, %128, %130, %132, %134 in 1 : vector<256x32xbf16>, vector<256x32xbf16>, vector<256x32xbf16>, vector<256x32xbf16>, vector<256x32xbf16>, vector<256x32xbf16>, vector<256x32xbf16>, vector<256x32xbf16>, vector<256x32xbf16> -> vector<256x288xbf16>
      %136 = arith.index_cast %116 : i32 to index
      %c0_143 = arith.constant 0 : index
      %c0_144 = arith.constant 0 : index
      %137 = vector.load %arg4[%136, %c0_143, %c0_144] : memref<5x288x32xbf16, #tpu.memory_space<vmem>>, vector<1x288x32xbf16>
      %138 = vector.shape_cast %137 : vector<1x288x32xbf16> to vector<288x32xbf16>
      %cst_145 = arith.constant dense<0.000000e+00> : vector<256x32xf32>
      %139 = tpu.matmul %135, %138, %cst_145 {dimension_numbers = #tpu.dot_dimension_numbers<[1], [0], [0], [1], [0, 0, 1, 1], [], []>} : vector<256x288xbf16>, vector<288x32xbf16>, vector<256x32xf32> -> vector<256x32xf32>
      %140 = arith.index_cast %116 : i32 to index
      %c0_146 = arith.constant 0 : index
      %c0_147 = arith.constant 0 : index
      %141 = vector.load %arg5[%140, %c0_146, %c0_147] : memref<5x1x32xf32, #tpu.memory_space<vmem>>, vector<1x1x32xf32>
      %142 = vector.shape_cast %141 : vector<1x1x32xf32> to vector<1x32xf32>
      %143 = vector.broadcast %142 : vector<1x32xf32> to vector<256x32xf32>
      %144 = arith.addf %139, %143 : vector<256x32xf32>
      %cst_148 = arith.constant 1.000000e+00 : f32
      %145 = vector.broadcast %cst_148 : f32 to vector<256x32xf32>
      %146 = arith.mulf %144, %145 : vector<256x32xf32>
      %147 = arith.addf %146, %114 : vector<256x32xf32>
      %148 = vector.shape_cast %147 : vector<256x32xf32> to vector<16x16x32xf32>
      %c1_149 = arith.constant 1 : index
      %c8_150 = arith.constant 8 : index
      %c0_151 = arith.constant 0 : index
      %149 = vector.load %arg7[%c1_149, %c8_150, %c0_151] : memref<18x32x32xf32, #tpu.memory_space<vmem>>, vector<16x16x32xf32>
      tpu.vector_store %arg7[%c1_149, %c8_150, %c0_151], %148 {strides = array<i32>} : memref<18x32x32xf32, #tpu.memory_space<vmem>>, vector<16x16x32xf32>,
    }
    %c2_i32_36 = arith.constant 2 : i32
    %c0_37 = arith.constant 0 : index
    %c7_38 = arith.constant 7 : index
    %c0_39 = arith.constant 0 : index
    %28 = vector.load %arg7[%c0_37, %c7_38, %c0_39] : memref<18x32x32xf32, #tpu.memory_space<vmem>>, vector<16x16x32xf32>
    %29 = vector.shape_cast %28 : vector<16x16x32xf32> to vector<256x32xf32>
    %30 = arith.truncf %29 : vector<256x32xf32> to vector<256x32xbf16>
    %c0_40 = arith.constant 0 : index
    %c8_41 = arith.constant 8 : index
    %c0_42 = arith.constant 0 : index
    %31 = vector.load %arg7[%c0_40, %c8_41, %c0_42] : memref<18x32x32xf32, #tpu.memory_space<vmem>>, vector<16x16x32xf32>
    %32 = vector.shape_cast %31 : vector<16x16x32xf32> to vector<256x32xf32>
    %33 = arith.truncf %32 : vector<256x32xf32> to vector<256x32xbf16>
    %c0_43 = arith.constant 0 : index
    %c9 = arith.constant 9 : index
    %c0_44 = arith.constant 0 : index
    %34 = vector.load %arg7[%c0_43, %c9, %c0_44] : memref<18x32x32xf32, #tpu.memory_space<vmem>>, vector<16x16x32xf32>
    %35 = vector.shape_cast %34 : vector<16x16x32xf32> to vector<256x32xf32>
    %36 = arith.truncf %35 : vector<256x32xf32> to vector<256x32xbf16>
    %c1_45 = arith.constant 1 : index
    %c7_46 = arith.constant 7 : index
    %c0_47 = arith.constant 0 : index
    %37 = vector.load %arg7[%c1_45, %c7_46, %c0_47] : memref<18x32x32xf32, #tpu.memory_space<vmem>>, vector<16x16x32xf32>
    %38 = vector.shape_cast %37 : vector<16x16x32xf32> to vector<256x32xf32>
    %39 = arith.truncf %38 : vector<256x32xf32> to vector<256x32xbf16>
    %c1_48 = arith.constant 1 : index
    %c8_49 = arith.constant 8 : index
    %c0_50 = arith.constant 0 : index
    %40 = vector.load %arg7[%c1_48, %c8_49, %c0_50] : memref<18x32x32xf32, #tpu.memory_space<vmem>>, vector<16x16x32xf32>
    %41 = vector.shape_cast %40 : vector<16x16x32xf32> to vector<256x32xf32>
    %42 = arith.truncf %41 : vector<256x32xf32> to vector<256x32xbf16>
    %c1_51 = arith.constant 1 : index
    %c9_52 = arith.constant 9 : index
    %c0_53 = arith.constant 0 : index
    %43 = vector.load %arg7[%c1_51, %c9_52, %c0_53] : memref<18x32x32xf32, #tpu.memory_space<vmem>>, vector<16x16x32xf32>
    %44 = vector.shape_cast %43 : vector<16x16x32xf32> to vector<256x32xf32>
    %45 = arith.truncf %44 : vector<256x32xf32> to vector<256x32xbf16>
    %c2 = arith.constant 2 : index
    %c7_54 = arith.constant 7 : index
    %c0_55 = arith.constant 0 : index
    %46 = vector.load %arg7[%c2, %c7_54, %c0_55] : memref<18x32x32xf32, #tpu.memory_space<vmem>>, vector<16x16x32xf32>
    %47 = vector.shape_cast %46 : vector<16x16x32xf32> to vector<256x32xf32>
    %48 = arith.truncf %47 : vector<256x32xf32> to vector<256x32xbf16>
    %c2_56 = arith.constant 2 : index
    %c8_57 = arith.constant 8 : index
    %c0_58 = arith.constant 0 : index
    %49 = vector.load %arg7[%c2_56, %c8_57, %c0_58] : memref<18x32x32xf32, #tpu.memory_space<vmem>>, vector<16x16x32xf32>
    %50 = vector.shape_cast %49 : vector<16x16x32xf32> to vector<256x32xf32>
    %51 = arith.truncf %50 : vector<256x32xf32> to vector<256x32xbf16>
    %c2_59 = arith.constant 2 : index
    %c9_60 = arith.constant 9 : index
    %c0_61 = arith.constant 0 : index
    %52 = vector.load %arg7[%c2_59, %c9_60, %c0_61] : memref<18x32x32xf32, #tpu.memory_space<vmem>>, vector<16x16x32xf32>
    %53 = vector.shape_cast %52 : vector<16x16x32xf32> to vector<256x32xf32>
    %54 = arith.truncf %53 : vector<256x32xf32> to vector<256x32xbf16>
    %55 = tpu.concatenate %30, %33, %36, %39, %42, %45, %48, %51, %54 in 1 : vector<256x32xbf16>, vector<256x32xbf16>, vector<256x32xbf16>, vector<256x32xbf16>, vector<256x32xbf16>, vector<256x32xbf16>, vector<256x32xbf16>, vector<256x32xbf16>, vector<256x32xbf16> -> vector<256x288xbf16>
    %c4 = arith.constant 4 : index
    %c0_62 = arith.constant 0 : index
    %c0_63 = arith.constant 0 : index
    %56 = vector.load %arg4[%c4, %c0_62, %c0_63] : memref<5x288x32xbf16, #tpu.memory_space<vmem>>, vector<1x288x32xbf16>
    %57 = vector.shape_cast %56 : vector<1x288x32xbf16> to vector<288x32xbf16>
    %cst_64 = arith.constant dense<0.000000e+00> : vector<256x32xf32>
    %58 = tpu.matmul %55, %57, %cst_64 {dimension_numbers = #tpu.dot_dimension_numbers<[1], [0], [0], [1], [0, 0, 1, 1], [], []>} : vector<256x288xbf16>, vector<288x32xbf16>, vector<256x32xf32> -> vector<256x32xf32>
    %c4_65 = arith.constant 4 : index
    %c0_66 = arith.constant 0 : index
    %c0_67 = arith.constant 0 : index
    %59 = vector.load %arg5[%c4_65, %c0_66, %c0_67] : memref<5x1x32xf32, #tpu.memory_space<vmem>>, vector<1x1x32xf32>
    %60 = vector.shape_cast %59 : vector<1x1x32xf32> to vector<1x32xf32>
    %61 = vector.broadcast %60 : vector<1x32xf32> to vector<256x32xf32>
    %62 = arith.addf %58, %61 : vector<256x32xf32>
    %63 = tpu.transpose %62, [1, 0] : vector<256x32xf32> -> vector<32x256xf32>
    %c0_68 = arith.constant 0 : index
    %c0_69 = arith.constant 0 : index
    %c0_70 = arith.constant 0 : index
    %64 = vector.load %arg6[%c0_68, %c0_69, %c0_70] : memref<1x32x256xf32, #tpu.memory_space<vmem>>, vector<1x32x256xf32>
    %65 = vector.shape_cast %64 : vector<1x32x256xf32> to vector<32x256xf32>
    %66 = arith.addf %63, %65 : vector<32x256xf32>
    %c0_71 = arith.constant 0 : index
    %c0_72 = arith.constant 0 : index
    %c0_73 = arith.constant 0 : index
    %67 = vector.load %arg6[%c0_71, %c0_72, %c0_73] : memref<1x32x256xf32, #tpu.memory_space<vmem>>, vector<1x32x256xf32>
    %68 = vector.shape_cast %67 : vector<1x32x256xf32> to vector<32x256xf32>
    %69 = vector.shape_cast %66 : vector<32x256xf32> to vector<1x32x256xf32>
    tpu.vector_store %arg6[%c0_71, %c0_72, %c0_73], %69 {strides = array<i32>} : memref<1x32x256xf32, #tpu.memory_space<vmem>>, vector<1x32x256xf32>,
    return
  }
  func.func @transform_0(%arg0: i32) -> (i32, i32, i32) {
    %c0_i32 = arith.constant 0 : i32
    %c0_i32_0 = arith.constant 0 : i32
    %c0_i32_1 = arith.constant 0 : i32
    return %arg0, %c0_i32, %c0_i32_0 : i32, i32, i32
  }
  func.func @transform_1(%arg0: i32) -> (i32, i32) {
    %c0_i32 = arith.constant 0 : i32
    %c0_i32_0 = arith.constant 0 : i32
    %c0_i32_1 = arith.constant 0 : i32
    return %c0_i32, %c0_i32_0 : i32, i32
  }
  func.func @transform_2(%arg0: i32) -> (i32, i32) {
    %c0_i32 = arith.constant 0 : i32
    %c0_i32_0 = arith.constant 0 : i32
    %c0_i32_1 = arith.constant 0 : i32
    return %c0_i32, %c0_i32_0 : i32, i32
  }
  func.func @transform_3(%arg0: i32) -> (i32, i32, i32) {
    %c0_i32 = arith.constant 0 : i32
    %c0_i32_0 = arith.constant 0 : i32
    %c0_i32_1 = arith.constant 0 : i32
    %c0_i32_2 = arith.constant 0 : i32
    return %c0_i32, %c0_i32_0, %c0_i32_1 : i32, i32, i32
  }
  func.func @transform_4(%arg0: i32) -> (i32, i32, i32) {
    %c0_i32 = arith.constant 0 : i32
    %c0_i32_0 = arith.constant 0 : i32
    %c0_i32_1 = arith.constant 0 : i32
    %c0_i32_2 = arith.constant 0 : i32
    return %c0_i32, %c0_i32_0, %c0_i32_1 : i32, i32, i32
  }
  func.func @transform_5(%arg0: i32) -> (i32, i32, i32) {
    %c0_i32 = arith.constant 0 : i32
    %c0_i32_0 = arith.constant 0 : i32
    %c0_i32_1 = arith.constant 0 : i32
    return %arg0, %c0_i32, %c0_i32_0 : i32, i32, i32
  }
}

</mosaic_0001>

<bundles_post_ra>
// kernel: _lambda_.1
= control target key start
LH: loop header
LB: loop body
LE: loop exit
PB: predicated region body
PF: predicated region fallthrough
CT: control target
= control target key end

     0   :  { %s9611_s18 = smov 0   ;;  %s12638_s0 = inlined_call_operand.vmem [shape: f32[2,27,256], index: 0, kind: input, shape index: {}]   ;;  %s12639_s1 = inlined_call_operand.vmem [shape: f32[32,27], index: 1, kind: input, shape index: {}]   ;;  %s12640_s2 = inlined_call_operand.vmem [shape: f32[32,1], index: 2, kind: input, shape index: {}]   ;;  %s12641_s3 = inlined_call_operand.vmem [shape: bf16[5,288,32], index: 3, kind: input, shape index: {}]   ;;  %s12642_s4 = inlined_call_operand.vmem [shape: f32[5,1,32], index: 4, kind: input, shape index: {}]   ;;  %s12643_s5 = inlined_call_operand.vmem [shape: f32[2,32,256], index: 5, kind: output, shape index: {}]  }
   0x1 LB: > { %s8779_s19 = sadd.s32 4294967295, %s9567_s18   ;;  %p8783_p0 = scmp.ge.s32.totalorder %s9567_s18, 1  ;;  %s9567_s18 = sphi %s9611_s18, %s15_s18  }
   0x2   : > { %p187_p1 = scmp.lt.s32.totalorder %s9567_s18, 3 }
   0x4   : > { %p188_p2 = pnand %p8783_p0, %p187_p1 }
   0x5   : > { %p215_p3 = scmp.lt.s32.totalorder (!%p188_p2), %s8779_s19, 1 }
   0x6   : > { %191 = sbr.rel (%p188_p2) target bundleno = 2176 (0x880), region = 40 }
   0xb   : > { %vm283_vm0 = vcmask 257027   ;;  %vm284_vm1 = vsmask.f32 7950  ;;  %v289_v0 = vld [vmem:[#allocation3 + $0x10] sm:$0x8]  ;;  %v9573_v2 = vmov 0  }
   0xc   : > { %v292_v1 = vld [vmem:[#allocation3 + $0x20] sm:$0x8]  ;;  %9549 = vset.pattern.permute.xlu0 %v9573_v2  ;;  %9550 = vset.pattern.permute.xlu1 %v9573_v2  ;;  %s12746_s19 = smov (!%p215_p3, %s8779_s19), 1  ;;  %vm9623_vm2 = vmand %vm283_vm0, %vm284_vm1  ;;  %v295_v4 = vld [vmem:[#allocation3 + $0x30] sm:$0x8]  ;;  %vm446_vm3 = vcmask 1042432  }
   0xd   : > { %v298_v5 = vld [vmem:[#allocation3 + $0x40] sm:$0x8]  ;;  %v290_v6 = vsel %vm9623_vm2, 0, %v289_v0  ;;  %v293_v7 = vsel %vm9623_vm2, 0, %v292_v1  ;;  %v301_v8 = vld [vmem:[#allocation3 + $0x50] sm:$0x8] }
   0xe   : > { %s9384_s20 = sshll.u32 %s12746_s19, 6  ;;  %291 = vst [vmem:[#allocation3 + $0x10] sm:$0x8] %v290_v6  ;;  %v296_v9 = vsel %vm9623_vm2, 0, %v295_v4  ;;  %v304_v10 = vld [vmem:[#allocation3 + $0x60] sm:$0x8] }
   0xf   : > { %s219_s23 = scalar_lea.vmem %s12638_s0, %s9384_s20  ;;  %294 = vst [vmem:[#allocation3 + $0x20] sm:$0x8] %v293_v7  ;;  %v299_v11 = vsel %vm9623_vm2, 0, %v298_v5  ;;  %v307_v12 = vld [vmem:[#allocation3 + $0x70] sm:$0x8]  ;;  %v302_v16 = vsel %vm9623_vm2, 0, %v301_v8  ;;  %s9856_s17 = scalar_lea.vmem %s12643_s5, %s9384_s20 }
  0x10   : > { %v407_v13 = vld [vmem:[%s219_s23 + $0x30] sm:$0x7]  ;;  %v408_v14 = vld [vmem:[%s219_s23 + $0x38] sm:$0x7]  ;;  %v405_v15 = vld [vmem:[%s219_s23 + $0x20] sm:$0xff]  ;;  %v305_v18 = vsel %vm9623_vm2, 0, %v304_v10 }
  0x11   : > { %8788 = vmatpush.msk.msra.mxu0 %vm446_vm3, %v407_v13  ;;  %8793 = vmatpush.msk.msra.mxu1 %vm446_vm3, %v408_v14  ;;  %v406_v17 = vld [vmem:[%s219_s23 + $0x28] sm:$0xff]  ;;  %297 = vst [vmem:[#allocation3 + $0x30] sm:$0x8] %v296_v9  ;;  %v308_v19 = vsel %vm9623_vm2, 0, %v307_v12  ;;  %v403_v20 = vld [vmem:[%s219_s23 + $0x10] sm:$0xff]  ;;  %v404_v21 = vld [vmem:[%s219_s23 + $0x18] sm:$0xff] }
  0x12   : > { %9489 = vmatpush.msk.msra.mxu2 %vm446_vm3, %v407_v13  ;;  %9493 = vmatpush.msk.msra.mxu3 %vm446_vm3, %v408_v14  ;;  %300 = vst [vmem:[#allocation3 + $0x40] sm:$0x8] %v299_v11  ;;  %v310_v22 = vld [vmem:[#allocation3 + $0x80] sm:$0x8]  ;;  %v313_v26 = vld [vmem:[#allocation3 + $0x90] sm:$0x8] }
  0x13   : > { %466 = vmatpush.msra.mxu0 %v405_v15  ;;  %495 = vmatpush.msra.mxu1 %v406_v17  ;;  %v401_v23 = vld [vmem:[%s219_s23] sm:$0xff]  ;;  %303 = vst [vmem:[#allocation3 + $0x50] sm:$0x8] %v302_v16  ;;  %v311_v25 = vsel %vm9623_vm2, 0, %v310_v22  ;;  %v402_v27 = vld [vmem:[%s219_s23 + $0x8] sm:$0xff]  ;;  %v314_v28 = vsel %vm9623_vm2, 0, %v313_v26 }
  0x14   : > { %v397_v24 = vld [vmem:[%s12639_s1] sm:$0xff]  ;;  %9490 = vmatpush.msra.mxu2 %v405_v15  ;;  %9494 = vmatpush.msra.mxu3 %v406_v17  ;;  %306 = vst [vmem:[#allocation3 + $0x60] sm:$0x8] %v305_v18  ;;  %vm433_vm4 = vcmask 220160   ;;  %v319_v31 = vld [vmem:[#allocation3 + $0xb0] sm:$0x8] }
  0x15   : > { %v316_v29 = vld [vmem:[#allocation3 + $0xa0] sm:$0x8]  ;;  %467 = vmatpush.msra.mxu0 %v403_v20  ;;  %496 = vmatpush.msra.mxu1 %v404_v21  ;;  %309 = vst [vmem:[#allocation3 + $0x70] sm:$0x8] %v308_v19  ;;  %v320_v32 = vsel %vm9623_vm2, 0, %v319_v31  ;;  %v399_v34 = vld [vmem:[%s12639_s1 + $0x10] sm:$0xff] }
  0x16   : > { %v317_v30 = vsel %vm9623_vm2, 0, %v316_v29  ;;  %9491 = vmatpush.msra.mxu2 %v403_v20  ;;  %9495 = vmatpush.msra.mxu3 %v404_v21  ;;  %312 = vst [vmem:[#allocation3 + $0x80] sm:$0x8] %v311_v25  ;;  %v322_v33 = vld [vmem:[#allocation3 + $0xc0] sm:$0x8]  ;;  %v411_v40 = vld [vmem:[%s12640_s2 + $0x10] sm:$0xff] }
  0x17   : > { %468 = vmatpush.msra.mxu0 %v401_v23  ;;  %497 = vmatpush.msra.mxu1 %v402_v27  ;;  %315 = vst [vmem:[#allocation3 + $0x90] sm:$0x8] %v314_v28  ;;  %v323_v35 = vsel %vm9623_vm2, 0, %v322_v33  ;;  %v325_v36 = vld [vmem:[#allocation3 + $0xd0] sm:$0x8]  ;;  %v409_v37 = vld [vmem:[%s12640_s2] sm:$0xff] }
  0x18   : > { %8789 = vmatmul.msk.f32.vlgmr.msra.gmra.mxu0 %vm433_vm4, %v397_v24  ;;  %8794 = vmatmul.msk.f32.vlgmr.msra.gmra.mxu1 %vm433_vm4, %v397_v24  ;;  %318 = vst [vmem:[#allocation3 + $0xa0] sm:$0x8] %v317_v30  ;;  %v326_v38 = vsel %vm9623_vm2, 0, %v325_v36  ;;  %v328_v39 = vld [vmem:[#allocation3 + $0xe0] sm:$0x8]  ;;  %v398_v46 = vld [vmem:[%s12639_s1 + $0x8] sm:$0xff] }
  0x19   : > { %9492 = vmatpush.msra.mxu2 %v401_v23  ;;  %9496 = vmatpush.msra.mxu3 %v402_v27  ;;  %321 = vst [vmem:[#allocation3 + $0xb0] sm:$0x8] %v320_v32  ;;  %v329_v41 = vsel %vm9623_vm2, 0, %v328_v39  ;;  %v331_v42 = vld [vmem:[#allocation3 + $0xf0] sm:$0x8]  ;;  %v400_v47 = vld [vmem:[%s12639_s1 + $0x18] sm:$0xff] }
  0x1a   : > { %324 = vst [vmem:[#allocation3 + $0xc0] sm:$0x8] %v323_v35  ;;  %v332_v43 = vsel %vm9623_vm2, 0, %v331_v42  ;;  %v334_v44 = vld [vmem:[#allocation3 + $0x100] sm:$0x8]  ;;  %8791 = vmatmul.msk.f32.vlgmr.msra.gmra.mxu2 %vm433_vm4, %v399_v34  ;;  %8796 = vmatmul.msk.f32.vlgmr.msra.gmra.mxu3 %vm433_vm4, %v399_v34  ;;  %v410_v48 = vld [vmem:[%s12640_s2 + $0x8] sm:$0xff] }
  0x1b   : > { %327 = vst [vmem:[#allocation3 + $0xd0] sm:$0x8] %v326_v38  ;;  %v335_v45 = vsel %vm9623_vm2, 0, %v334_v44  ;;  %415 = vperm.xlu0 %9549, %v409_v37   ;;  %425 = vperm.xlu1 %9550, %v411_v40   ;;  %v412_v49 = vld [vmem:[%s12640_s2 + $0x18] sm:$0xff]  ;;  %vm226_vm5 = vcmask 261120   ;;  %v9574_v50 = vmov 0.0  }
  0x1c   : > { %330 = vst [vmem:[#allocation3 + $0xe0] sm:$0x8] %v329_v41  ;;  %vm236_vm6 = vcmask 253952   ;;  %vm273_vm7 = vcmask 257024   ;;  %vm341_vm8 = vsmask.f32 256 }
  0x1d   : > { %333 = vst [vmem:[#allocation3 + $0xf0] sm:$0x8] %v332_v43  ;;  %v346_v51 = vld [vmem:[#allocation3 + $0x1c] sm:$0x1]  ;;  %vm9789_vm9 = vmand %vm236_vm6, %vm341_vm8  ;;  %v349_v53 = vld [vmem:[#allocation3 + $0x2c] sm:$0x1] }
  0x1e   : > { %336 = vst [vmem:[#allocation3 + $0x100] sm:$0x8] %v335_v45  ;;  %v352_v54 = vld [vmem:[#allocation3 + $0x3c] sm:$0x1]  ;;  %v347_v55 = vsel %vm9789_vm9, 0, %v346_v51  ;;  %v350_v57 = vsel %vm9789_vm9, 0, %v349_v53 }
  0x1f   : > { %227 = vst.msk [vmem:[#allocation2] sm:$0xff] %vm226_vm5, %v9574_v50  ;;  %v355_v58 = vld [vmem:[#allocation3 + $0x4c] sm:$0x1]  ;;  %v353_v60 = vsel %vm9789_vm9, 0, %v352_v54  ;;  %v358_v61 = vld [vmem:[#allocation3 + $0x5c] sm:$0x1] }
  0x20   : > { %8790 = vmatmul.msk.f32.gmra.mxu0 %vm433_vm4, %v398_v46  ;;  %8795 = vmatmul.msk.f32.gmra.mxu1 %vm433_vm4, %v398_v46  ;;  %230 = vst.msk [vmem:[#allocation2 + $0x18] sm:$0xff] %vm226_vm5, %v9574_v50  ;;  %v361_v62 = vld [vmem:[#allocation3 + $0x6c] sm:$0x1]  ;;  %v364_v63 = vld [vmem:[#allocation3 + $0x7c] sm:$0x1]  ;;  %v356_v4 = vsel %vm9789_vm9, 0, %v355_v58 }
  0x21   : > { %232 = vst.msk [vmem:[#allocation2 + $0x220] sm:$0xff] %vm226_vm5, %v9574_v50  ;;  %v367_v5 = vld [vmem:[#allocation3 + $0x8c] sm:$0x1]  ;;  %v359_v7 = vsel %vm9789_vm9, 0, %v358_v61  ;;  %v370_v8 = vld [vmem:[#allocation3 + $0x9c] sm:$0x1] }
  0x22   : > { %8792 = vmatmul.msk.f32.gmra.mxu2 %vm433_vm4, %v400_v47  ;;  %8797 = vmatmul.msk.f32.gmra.mxu3 %vm433_vm4, %v400_v47  ;;  %235 = vst.msk [vmem:[#allocation2 + $0x238] sm:$0xff] %vm226_vm5, %v9574_v50  ;;  %v362_v9 = vsel %vm9789_vm9, 0, %v361_v62  ;;  %v373_v10 = vld [vmem:[#allocation3 + $0xac] sm:$0x1]  ;;  %v365_v11 = vsel %vm9789_vm9, 0, %v364_v63  ;;  %v368_v3 = vsel %vm9789_vm9, 0, %v367_v5 }
  0x23   : > { %420 = vperm.xlu0 %9549, %v410_v48   ;;  %430 = vperm.xlu1 %9550, %v412_v49   ;;  %237 = vst.msk [vmem:[#allocation2 + $0x7] sm:$0x1] %vm236_vm6, %v9574_v50  ;;  %v376_v12 = vld [vmem:[#allocation3 + $0xbc] sm:$0x1]  ;;  %v379_v13 = vld [vmem:[#allocation3 + $0xcc] sm:$0x1] }
  0x24   : > { %238 = vst.msk [vmem:[#allocation2 + $0x27] sm:$0x1] %vm236_vm6, %v9574_v50  ;;  %v371_v14 = vsel %vm9789_vm9, 0, %v370_v8  ;;  %v382_v15 = vld [vmem:[#allocation3 + $0xdc] sm:$0x1]  ;;  %v374_v16 = vsel %vm9789_vm9, 0, %v373_v10 }
  0x25   : > { %239 = vst.msk [vmem:[#allocation2 + $0x47] sm:$0x1] %vm236_vm6, %v9574_v50  ;;  %v385_v17 = vld [vmem:[#allocation3 + $0xec] sm:$0x1]  ;;  %v377_v18 = vsel %vm9789_vm9, 0, %v376_v12  ;;  %v380_v20 = vsel %vm9789_vm9, 0, %v379_v13 }
  0x26   : > { %240 = vst.msk [vmem:[#allocation2 + $0x67] sm:$0x1] %vm236_vm6, %v9574_v50  ;;  %v388_v19 = vld [vmem:[#allocation3 + $0xfc] sm:$0x1]  ;;  %v391_v21 = vld [vmem:[#allocation3 + $0x10c] sm:$0x1] }
  0x27   : > { %241 = vst.msk [vmem:[#allocation2 + $0x87] sm:$0x1] %vm236_vm6, %v9574_v50  ;;  %v383_v22 = vsel %vm9789_vm9, 0, %v382_v15  ;;  %v386_v23 = vsel %vm9789_vm9, 0, %v385_v17  ;;  %v389_v25 = vsel %vm9789_vm9, 0, %v388_v19  ;;  %v392_v26 = vsel %vm9789_vm9, 0, %v391_v21 }
  0x28   : > { %242 = vst.msk [vmem:[#allocation2 + $0xa7] sm:$0x1] %vm236_vm6, %v9574_v50  ;;  %s9898_s19 = smov 0  }
  0x29   : > { %243 = vst.msk [vmem:[#allocation2 + $0xc7] sm:$0x1] %vm236_vm6, %v9574_v50 }
  0x2a   : > { %244 = vst.msk [vmem:[#allocation2 + $0xe7] sm:$0x1] %vm236_vm6, %v9574_v50 }
  0x2b   : > { %245 = vst.msk [vmem:[#allocation2 + $0x107] sm:$0x1] %vm236_vm6, %v9574_v50 }
  0x2c   : > { %246 = vst.msk [vmem:[#allocation2 + $0x127] sm:$0x1] %vm236_vm6, %v9574_v50 }
  0x2d   : > { %247 = vst.msk [vmem:[#allocation2 + $0x147] sm:$0x1] %vm236_vm6, %v9574_v50 }
  0x2e   : > { %248 = vst.msk [vmem:[#allocation2 + $0x167] sm:$0x1] %vm236_vm6, %v9574_v50 }
  0x2f   : > { %249 = vst.msk [vmem:[#allocation2 + $0x187] sm:$0x1] %vm236_vm6, %v9574_v50 }
  0x30   : > { %250 = vst.msk [vmem:[#allocation2 + $0x1a7] sm:$0x1] %vm236_vm6, %v9574_v50 }
  0x31   : > { %251 = vst.msk [vmem:[#allocation2 + $0x1c7] sm:$0x1] %vm236_vm6, %v9574_v50 }
  0x32   : > { %252 = vst.msk [vmem:[#allocation2 + $0x1e7] sm:$0x1] %vm236_vm6, %v9574_v50 }
  0x33   : > { %253 = vst.msk [vmem:[#allocation2 + $0x207] sm:$0x1] %vm236_vm6, %v9574_v50 }
  0x34   : > { %254 = vst.msk [vmem:[#allocation2 + $0x227] sm:$0x1] %vm236_vm6, %v9574_v50 }
  0x35   : > { %255 = vst.msk [vmem:[#allocation2 + $0x18] sm:$0x1] %vm236_vm6, %v9574_v50 }
  0x36   : > { %256 = vst.msk [vmem:[#allocation2 + $0x38] sm:$0x1] %vm236_vm6, %v9574_v50 }
  0x37   : > { %257 = vst.msk [vmem:[#allocation2 + $0x58] sm:$0x1] %vm236_vm6, %v9574_v50 }
  0x38   : > { %258 = vst.msk [vmem:[#allocation2 + $0x78] sm:$0x1] %vm236_vm6, %v9574_v50 }
  0x39   : > { %259 = vst.msk [vmem:[#allocation2 + $0x98] sm:$0x1] %vm236_vm6, %v9574_v50 }
  0x3a   : > { %260 = vst.msk [vmem:[#allocation2 + $0xb8] sm:$0x1] %vm236_vm6, %v9574_v50 }
  0x3b   : > { %261 = vst.msk [vmem:[#allocation2 + $0xd8] sm:$0x1] %vm236_vm6, %v9574_v50 }
  0x3c   : > { %262 = vst.msk [vmem:[#allocation2 + $0xf8] sm:$0x1] %vm236_vm6, %v9574_v50 }
  0x3d   : > { %263 = vst.msk [vmem:[#allocation2 + $0x118] sm:$0x1] %vm236_vm6, %v9574_v50 }
  0x3e   : > { %264 = vst.msk [vmem:[#allocation2 + $0x138] sm:$0x1] %vm236_vm6, %v9574_v50 }
  0x3f   : > { %265 = vst.msk [vmem:[#allocation2 + $0x158] sm:$0x1] %vm236_vm6, %v9574_v50 }
  0x40   : > { %266 = vst.msk [vmem:[#allocation2 + $0x178] sm:$0x1] %vm236_vm6, %v9574_v50 }
  0x41   : > { %267 = vst.msk [vmem:[#allocation2 + $0x198] sm:$0x1] %vm236_vm6, %v9574_v50 }
  0x42   : > { %268 = vst.msk [vmem:[#allocation2 + $0x1b8] sm:$0x1] %vm236_vm6, %v9574_v50 }
  0x43   : > { %269 = vst.msk [vmem:[#allocation2 + $0x1d8] sm:$0x1] %vm236_vm6, %v9574_v50 }
  0x44   : > { %270 = vst.msk [vmem:[#allocation2 + $0x1f8] sm:$0x1] %vm236_vm6, %v9574_v50 }
  0x45   : > { %271 = vst.msk [vmem:[#allocation2 + $0x218] sm:$0x1] %vm236_vm6, %v9574_v50 }
  0x46   : > { %272 = vst.msk [vmem:[#allocation2 + $0x238] sm:$0x1] %vm236_vm6, %v9574_v50 }
  0x47   : > { %274 = vst.msk [vmem:[#allocation3] sm:$0xf] %vm273_vm7, %v9573_v2 }
  0x48   : > { %275 = vst.msk [vmem:[#allocation3 + $0x4] sm:$0xf] %vm273_vm7, %v9573_v2 }
  0x49   : > { %276 = vst.msk [vmem:[#allocation3 + $0x8] sm:$0xf] %vm273_vm7, %v9573_v2 }
  0x4a   : > { %277 = vst.msk [vmem:[#allocation3 + $0xc] sm:$0xf] %vm273_vm7, %v9573_v2 }
  0x4b   : > { %279 = vst.msk [vmem:[#allocation3 + $0x110] sm:$0xf] %vm273_vm7, %v9573_v2 }
  0x4c   : > { %280 = vst.msk [vmem:[#allocation3 + $0x114] sm:$0xf] %vm273_vm7, %v9573_v2 }
  0x4d   : > { %281 = vst.msk [vmem:[#allocation3 + $0x118] sm:$0xf] %vm273_vm7, %v9573_v2 }
  0x4e   : > { %282 = vst.msk [vmem:[#allocation3 + $0x11c] sm:$0xf] %vm273_vm7, %v9573_v2  ;;  %v286_v56 = vld [vmem:[#allocation3] sm:$0x8] }
  0x4f   : > { %v287_v59 = vsel %vm9623_vm2, 0, %v286_v56  ;;  %348 = vst [vmem:[#allocation3 + $0x1c] sm:$0x1] %v347_v55 }
  0x50   : > { %288 = vst [vmem:[#allocation3] sm:$0x8] %v287_v59 }
  0x51   : > { %v343_v0 = vld [vmem:[#allocation3 + $0xc] sm:$0x1]  ;;  %351 = vst [vmem:[#allocation3 + $0x2c] sm:$0x1] %v350_v57 }
  0x52   : > { %v337_v1 = vld [vmem:[#allocation3 + $0x110] sm:$0x8]  ;;  %v344_v2 = vsel %vm9789_vm9, 0, %v343_v0  ;;  %354 = vst [vmem:[#allocation3 + $0x3c] sm:$0x1] %v353_v60 }
  0x53   : > { %v338_v6 = vsel %vm9623_vm2, 0, %v337_v1  ;;  %345 = vst [vmem:[#allocation3 + $0xc] sm:$0x1] %v344_v2 }
  0x54   : > { %339 = vst [vmem:[#allocation3 + $0x110] sm:$0x8] %v338_v6 }
  0x55   : > { %357 = vst [vmem:[#allocation3 + $0x4c] sm:$0x1] %v356_v4  ;;  %v394_v24 = vld [vmem:[#allocation3 + $0x11c] sm:$0x1] }
  0x56   : > { %360 = vst [vmem:[#allocation3 + $0x5c] sm:$0x1] %v359_v7  ;;  %v395_v27 = vsel %vm9789_vm9, 0, %v394_v24 }
  0x57   : > { %363 = vst [vmem:[#allocation3 + $0x6c] sm:$0x1] %v362_v9 }
  0x58   : > { %366 = vst [vmem:[#allocation3 + $0x7c] sm:$0x1] %v365_v11 }
  0x59   : > { %369 = vst [vmem:[#allocation3 + $0x8c] sm:$0x1] %v368_v3 }
  0x5a   : > { %372 = vst [vmem:[#allocation3 + $0x9c] sm:$0x1] %v371_v14 }
  0x5b   : > { %375 = vst [vmem:[#allocation3 + $0xac] sm:$0x1] %v374_v16 }
  0x5c   : > { %378 = vst [vmem:[#allocation3 + $0xbc] sm:$0x1] %v377_v18 }
  0x5d   : > { %381 = vst [vmem:[#allocation3 + $0xcc] sm:$0x1] %v380_v20 }
  0x5e   : > { %384 = vst [vmem:[#allocation3 + $0xdc] sm:$0x1] %v383_v22 }
  0x5f   : > { %387 = vst [vmem:[#allocation3 + $0xec] sm:$0x1] %v386_v23 }
  0x60   : > { %390 = vst [vmem:[#allocation3 + $0xfc] sm:$0x1] %v389_v25 }
  0x61   : > { %393 = vst [vmem:[#allocation3 + $0x10c] sm:$0x1] %v392_v26 }
  0x62   : > { %396 = vst [vmem:[#allocation3 + $0x11c] sm:$0x1] %v395_v27 }
  0x63   : > { %228 = vst.msk [vmem:[#allocation2 + $0x8] sm:$0xff] %vm226_vm5, %v9574_v50 }
  0x64   : > { %229 = vst.msk [vmem:[#allocation2 + $0x10] sm:$0xff] %vm226_vm5, %v9574_v50 }
  0x65   : > { %233 = vst.msk [vmem:[#allocation2 + $0x228] sm:$0xff] %vm226_vm5, %v9574_v50 }
  0x66   : > { %234 = vst.msk [vmem:[#allocation2 + $0x230] sm:$0xff] %vm226_vm5, %v9574_v50 }
  0x8d   : > { %v416_v28 = vpop.permute.xlu0 %415  ;;  %v426_v35 = vpop.permute.xlu1 %425 }
  0x95   : > { %v470_v29 = vpop.f32.mrf.mxu0  ;;  %v499_v31 = vpop.f32.mrf.mxu1 }
  0x96   : > { %v471_v30 = vadd.f32 %v470_v29, %v416_v28  ;;  %v500_v32 = vadd.f32 %v499_v31, %v416_v28  ;;  %v421_v36 = vpop.permute.xlu0 %420  ;;  %v431_v49 = vpop.permute.xlu1 %430 }
  0x98   : > { %v511_v33 = vmax.f32 %v471_v30, 0.0  ;;  %v512_v34 = vmax.f32 %v500_v32, 0.0 }
  0x9a   : > { %519 = vst [vmem:[%s9856_s17] sm:$0xff] %v511_v33  ;;  %527 = vxpose.xlu2.b32.start [1/4] (short) %v511_v33, 128  ;;  %559 = vxpose.xlu0.b32.start [1/4] (short) %v512_v34, 128 }
  0x9b   : > { %520 = vst [vmem:[%s9856_s17 + $0x8] sm:$0xff] %v512_v34 }
  0x9d   : > { %v473_v37 = vpop.f32.mrf.mxu0  ;;  %v476_v38 = vpop.f32.mrf.mxu2 }
  0x9e   : > { %v474_v39 = vadd.f32 %v473_v37, %v421_v36  ;;  %v477_v40 = vadd.f32 %v476_v38, %v426_v35  ;;  %v502_v41 = vpop.f32.mrf.mxu1  ;;  %v505_v42 = vpop.f32.mrf.mxu3 }
  0x9f   : > { %v503_v43 = vadd.f32 %v502_v41, %v421_v36  ;;  %v506_v44 = vadd.f32 %v505_v42, %v426_v35 }
  0xa0   : > { %v513_v45 = vmax.f32 %v474_v39, 0.0  ;;  %v515_v46 = vmax.f32 %v477_v40, 0.0 }
  0xa1   : > { %v514_v47 = vmax.f32 %v503_v43, 0.0  ;;  %v516_v48 = vmax.f32 %v506_v44, 0.0 }
  0xa2   : > { %521 = vst [vmem:[%s9856_s17 + $0x10] sm:$0xff] %v513_v45  ;;  %528 = vxpose.xlu2.b32.cont [2/4] (short) %v513_v45, 128 }
  0xa3   : > { %523 = vst [vmem:[%s9856_s17 + $0x20] sm:$0xff] %v515_v46  ;;  %560 = vxpose.xlu0.b32.cont [2/4] (short) %v514_v47, 128 }
  0xa4   : > { %522 = vst [vmem:[%s9856_s17 + $0x18] sm:$0xff] %v514_v47 }
  0xa5   : > { %524 = vst [vmem:[%s9856_s17 + $0x28] sm:$0xff] %v516_v48  ;;  %v479_v50 = vpop.f32.mrf.mxu2 }
  0xa6   : > { %v480_v51 = vadd.f32 %v479_v50, %v431_v49  ;;  %v508_v52 = vpop.f32.mrf.mxu3 }
  0xa7   : > { %v509_v53 = vadd.f32 %v508_v52, %v431_v49 }
  0xa8   : > { %v517_v54 = vmax.f32 %v480_v51, 0.0 }
  0xa9   : > { %v518_v55 = vmax.f32 %v509_v53, 0.0 }
  0xaa   : > { %525 = vst [vmem:[%s9856_s17 + $0x30] sm:$0xff] %v517_v54  ;;  %529 = vxpose.xlu2.b32.cont [3/4] (short) %v515_v46, 128 }
  0xab   : > { %526 = vst [vmem:[%s9856_s17 + $0x38] sm:$0xff] %v518_v55  ;;  %561 = vxpose.xlu0.b32.cont [3/4] (short) %v516_v48, 128 }
  0xb2   : > { %530 = vxpose.xlu2.b32.end [4/4] (short) %v517_v54, 128 }
  0xb3   : > { %562 = vxpose.xlu0.b32.end [4/4] (short) %v518_v55, 128 }
 0x133   : > { %v543_v56 = vpop.trf.xlu2 }
 0x134   : > { %592 = vst.msk [vmem:[#allocation2 + $0x28] sm:$0xff] %vm226_vm5, %v543_v56 }
 0x13b   : > { %v544_v57 = vpop.trf.xlu2 }
 0x13c   : > { %593 = vst.msk [vmem:[#allocation2 + $0x30] sm:$0xff] %vm226_vm5, %v544_v57 }
 0x13f   : > { %v575_v58 = vpop.trf.xlu0 }
 0x140   : > { %608 = vst.msk [vmem:[#allocation2 + $0x128] sm:$0xff] %vm226_vm5, %v575_v58 }
 0x143   : > { %v545_v59 = vpop.trf.xlu2 }
 0x144   : > { %594 = vst.msk [vmem:[#allocation2 + $0x48] sm:$0xff] %vm226_vm5, %v545_v59 }
 0x147   : > { %v576_v60 = vpop.trf.xlu0 }
 0x148   : > { %609 = vst.msk [vmem:[#allocation2 + $0x130] sm:$0xff] %vm226_vm5, %v576_v60 }
 0x14b   : > { %v546_v61 = vpop.trf.xlu2 }
 0x14c   : > { %595 = vst.msk [vmem:[#allocation2 + $0x50] sm:$0xff] %vm226_vm5, %v546_v61 }
 0x14f   : > { %v577_v62 = vpop.trf.xlu0 }
 0x150   : > { %610 = vst.msk [vmem:[#allocation2 + $0x148] sm:$0xff] %vm226_vm5, %v577_v62 }
 0x153   : > { %v547_v63 = vpop.trf.xlu2 }
 0x154   : > { %596 = vst.msk [vmem:[#allocation2 + $0x68] sm:$0xff] %vm226_vm5, %v547_v63 }
 0x157   : > { %v578_v0 = vpop.trf.xlu0 }
 0x158   : > { %611 = vst.msk [vmem:[#allocation2 + $0x150] sm:$0xff] %vm226_vm5, %v578_v0 }
 0x15b   : > { %v548_v1 = vpop.trf.xlu2 }
 0x15c   : > { %597 = vst.msk [vmem:[#allocation2 + $0x70] sm:$0xff] %vm226_vm5, %v548_v1 }
 0x15f   : > { %v579_v2 = vpop.trf.xlu0 }
 0x160   : > { %612 = vst.msk [vmem:[#allocation2 + $0x168] sm:$0xff] %vm226_vm5, %v579_v2 }
 0x163   : > { %v549_v4 = vpop.trf.xlu2 }
 0x164   : > { %598 = vst.msk [vmem:[#allocation2 + $0x88] sm:$0xff] %vm226_vm5, %v549_v4 }
 0x167   : > { %v580_v5 = vpop.trf.xlu0 }
 0x168   : > { %613 = vst.msk [vmem:[#allocation2 + $0x170] sm:$0xff] %vm226_vm5, %v580_v5 }
 0x16b   : > { %v550_v6 = vpop.trf.xlu2 }
 0x16c   : > { %599 = vst.msk [vmem:[#allocation2 + $0x90] sm:$0xff] %vm226_vm5, %v550_v6 }
 0x16f   : > { %v581_v7 = vpop.trf.xlu0 }
 0x170   : > { %614 = vst.msk [vmem:[#allocation2 + $0x188] sm:$0xff] %vm226_vm5, %v581_v7 }
 0x173   : > { %v551_v8 = vpop.trf.xlu2 }
 0x174   : > { %600 = vst.msk [vmem:[#allocation2 + $0xa8] sm:$0xff] %vm226_vm5, %v551_v8 }
 0x177   : > { %v582_v9 = vpop.trf.xlu0 }
 0x178   : > { %615 = vst.msk [vmem:[#allocation2 + $0x190] sm:$0xff] %vm226_vm5, %v582_v9 }
 0x17b   : > { %v552_v10 = vpop.trf.xlu2 }
 0x17c   : > { %601 = vst.msk [vmem:[#allocation2 + $0xb0] sm:$0xff] %vm226_vm5, %v552_v10 }
 0x17f   : > { %v583_v11 = vpop.trf.xlu0 }
 0x180   : > { %616 = vst.msk [vmem:[#allocation2 + $0x1a8] sm:$0xff] %vm226_vm5, %v583_v11 }
 0x183   : > { %v553_v12 = vpop.trf.xlu2 }
 0x184   : > { %602 = vst.msk [vmem:[#allocation2 + $0xc8] sm:$0xff] %vm226_vm5, %v553_v12 }
 0x187   : > { %v584_v3 = vpop.trf.xlu0 }
 0x188   : > { %617 = vst.msk [vmem:[#allocation2 + $0x1b0] sm:$0xff] %vm226_vm5, %v584_v3 }
 0x18b   : > { %v554_v13 = vpop.trf.xlu2 }
 0x18c   : > { %603 = vst.msk [vmem:[#allocation2 + $0xd0] sm:$0xff] %vm226_vm5, %v554_v13 }
 0x18f   : > { %v585_v14 = vpop.trf.xlu0 }
 0x190   : > { %618 = vst.msk [vmem:[#allocation2 + $0x1c8] sm:$0xff] %vm226_vm5, %v585_v14 }
 0x193   : > { %v555_v15 = vpop.trf.xlu2 }
 0x194   : > { %604 = vst.msk [vmem:[#allocation2 + $0xe8] sm:$0xff] %vm226_vm5, %v555_v15 }
 0x197   : > { %v586_v16 = vpop.trf.xlu0 }
 0x198   : > { %619 = vst.msk [vmem:[#allocation2 + $0x1d0] sm:$0xff] %vm226_vm5, %v586_v16 }
 0x19b   : > { %v556_v17 = vpop.trf.xlu2 }
 0x19c   : > { %605 = vst.msk [vmem:[#allocation2 + $0xf0] sm:$0xff] %vm226_vm5, %v556_v17 }
 0x19f   : > { %v587_v18 = vpop.trf.xlu0 }
 0x1a0   : > { %620 = vst.msk [vmem:[#allocation2 + $0x1e8] sm:$0xff] %vm226_vm5, %v587_v18 }
 0x1a3   : > { %v557_v19 = vpop.trf.xlu2 }
 0x1a4   : > { %606 = vst.msk [vmem:[#allocation2 + $0x108] sm:$0xff] %vm226_vm5, %v557_v19 }
 0x1a7   : > { %v588_v20 = vpop.trf.xlu0 }
 0x1a8   : > { %621 = vst.msk [vmem:[#allocation2 + $0x1f0] sm:$0xff] %vm226_vm5, %v588_v20 }
 0x1ab   : > { %v558_v21 = vpop.trf.xlu2 }
 0x1ac   : > { %607 = vst.msk [vmem:[#allocation2 + $0x110] sm:$0xff] %vm226_vm5, %v558_v21 }
 0x1af   : > { %v589_v22 = vpop.trf.xlu0 }
 0x1b0   : > { %622 = vst.msk [vmem:[#allocation2 + $0x208] sm:$0xff] %vm226_vm5, %v589_v22 }
 0x1b7   : > { %v590_v23 = vpop.trf.xlu0 }
 0x1b8   : > { %623 = vst.msk [vmem:[#allocation2 + $0x210] sm:$0xff] %vm226_vm5, %v590_v23 }
 0x1b9 LB: >> { %v711_v24 = vld [vmem:[#allocation2 + $0x108] sm:$0xff]  ;;  %v712_v25 = vld [vmem:[#allocation2 + $0x110] sm:$0xff]  ;;  %s9575_s20 = smov 32   ;;  %s9576_s21 = smov 96   ;;  %vm2168_vm10 = vcmask 523264   ;;  %vm2201_vm11 = vcmask 785408   ;;  %s9571_s19 = sphi %s9898_s19, %s629_s19  }
 0x1ba   : >> { %v839_v26 = vld [vmem:[#allocation2 + $0x127] sm:$0xff]  ;;  %v743_v27 = vpack.c.bf16 %v711_v24, %v711_v24  ;;  %v744_v28 = vpack.c.bf16 %v712_v25, %v712_v25  ;;  %v840_v29 = vld [vmem:[#allocation2 + $0x12f] sm:$0xff]  ;;  %s9386_s22 = smul.u32 288, %s9571_s19  ;;  %s9577_s23 = smov 64   ;;  %vm3393_vm12 = vsmask.f32 3328 }
 0x1bb   : >> { %v871_v30 = vpack.c.bf16 %v839_v26, %v839_v26  ;;  %v775_v31 = vld [vmem:[#allocation2 + $0x109] sm:$0xff]  ;;  %v776_v32 = vld [vmem:[#allocation2 + $0x111] sm:$0xff]  ;;  %v872_v33 = vpack.c.bf16 %v840_v29, %v840_v29  ;;  %s8798_s27 = sshll.u32 %s9571_s19, 1  ;;  %vm3394_vm13 = vsmask.f32 7440  ;;  %s629_s19 = sadd.s32 1, %s9571_s19  }
 0x1bc   : >> { %v807_v34 = vpack.c.bf16 %v775_v31, %v775_v31  ;;  %v713_v35 = vld [vmem:[#allocation2 + $0x128] sm:$0xff]  ;;  %v714_v36 = vld [vmem:[#allocation2 + $0x130] sm:$0xff]  ;;  %v1336_v38 = vunpack.c.l.b16 %v743_v27  ;;  %v1337_v39 = vunpack.c.l.b16 %v744_v28  ;;  %v808_v41 = vpack.c.bf16 %v776_v32, %v776_v32  ;;  %s9913_s26 = scalar_lea.vmem %s12641_s3, %s9386_s22  ;;  %s9980_s30 = scalar_lea.vmem %s12642_s4, %s8798_s27  ;;  %vm10347_vm14 = vmor %vm3393_vm12, %vm3394_vm13 }
 0x1bd   : >> { %v777_v37 = vld [vmem:[#allocation2 + $0x129] sm:$0xff]  ;;  %v1560_v40 = vunpack.c.l.b16 %v871_v30  ;;  %v778_v42 = vld [vmem:[#allocation2 + $0x131] sm:$0xff]  ;;  %v1561_v43 = vunpack.c.l.b16 %v872_v33  ;;  %v745_v44 = vpack.c.bf16 %v713_v35, %v713_v35  ;;  %v746_v45 = vpack.c.bf16 %v714_v36, %v714_v36  ;;  %p626_p4 = scmp.ge.s32.totalorder %s629_s19, 2  }
 0x1be   : >> { %v1360_v46 = vpack.c.b16 %v1337_v39, %v1336_v38  ;;  %v809_v47 = vpack.c.bf16 %v777_v37, %v777_v37  ;;  %v810_v48 = vpack.c.bf16 %v778_v42, %v778_v42  ;;  %v841_v49 = vld [vmem:[#allocation2 + $0x147] sm:$0xff]  ;;  %v842_v51 = vld [vmem:[#allocation2 + $0x14f] sm:$0xff]  ;;  %v1448_v52 = vunpack.c.l.b16 %v807_v34  ;;  %v9394_v20 = vld [vmem:[%s9913_s26 + $0x38] sm:$0xff]  ;;  %s9578_s6 = smov (%p626_p4), 96   ;;  %s9579_s7 = smov (%p626_p4), 32  }
 0x1bf   : >> { %v9903_v50 = vpack.c.b16 %v1561_v43, %v1560_v40  ;;  %v1449_v53 = vunpack.c.l.b16 %v808_v41  ;;  %v715_v56 = vld [vmem:[#allocation2 + $0x148] sm:$0xff]  ;;  %v1338_v57 = vunpack.c.l.b16 %v745_v44  ;;  %v1339_v58 = vunpack.c.l.b16 %v746_v45  ;;  %v716_v59 = vld [vmem:[#allocation2 + $0x150] sm:$0xff]  ;;  %9497 = vmatpush.bf16.msra.mxu1 %v9394_v20  ;;  %2578 = vmatpush.bf16.msra.mxu0 %v9394_v20  ;;  %s9580_s8 = smov (%p626_p4), 64  }
 0x1c0   : >> { %1384 = vrot.lane.b32.xlu0 %v1360_v46, %s9575_s20  ;;  %v1450_v54 = vunpack.c.l.b16 %v809_v47  ;;  %v1451_v55 = vunpack.c.l.b16 %v810_v48  ;;  %v873_v60 = vpack.c.bf16 %v841_v49, %v841_v49  ;;  %v779_v62 = vld [vmem:[#allocation2 + $0x149] sm:$0xff]  ;;  %v780_v63 = vld [vmem:[#allocation2 + $0x151] sm:$0xff]  ;;  %v874_v0 = vpack.c.bf16 %v842_v51, %v842_v51  ;;  %v9391_v47 = vld [vmem:[%s9913_s26 + $0x20] sm:$0xff] }
 0x1c1   : >> { %1608 = vrot.lane.b32.xlu1 %v9903_v50, %s9576_s21  ;;  %v747_v1 = vpack.c.bf16 %v715_v56, %v715_v56  ;;  %v1472_v2 = vpack.c.b16 %v1449_v53, %v1448_v52  ;;  %v748_v4 = vpack.c.bf16 %v716_v59, %v716_v59  ;;  %v1361_v7 = vpack.c.b16 %v1339_v58, %v1338_v57  ;;  %v843_v10 = vld [vmem:[#allocation2 + $0x167] sm:$0xff]  ;;  %v844_v11 = vld [vmem:[#allocation2 + $0x16f] sm:$0xff]  ;;  %v9390_v59 = vld [vmem:[%s9913_s26 + $0x18] sm:$0xff] }
 0x1c2   : >> { %v1473_v61 = vpack.c.b16 %v1451_v55, %v1450_v54  ;;  %v1562_v5 = vunpack.c.l.b16 %v873_v60  ;;  %v1563_v6 = vunpack.c.l.b16 %v874_v0  ;;  %v811_v8 = vpack.c.bf16 %v779_v62, %v779_v62  ;;  %v717_v14 = vld [vmem:[#allocation2 + $0x168] sm:$0xff]  ;;  %v718_v19 = vld [vmem:[#allocation2 + $0x170] sm:$0xff] }
 0x1c3   : >> { %v812_v9 = vpack.c.bf16 %v780_v63, %v780_v63  ;;  %v1340_v12 = vunpack.c.l.b16 %v747_v1  ;;  %v1341_v3 = vunpack.c.l.b16 %v748_v4  ;;  %v875_v15 = vpack.c.bf16 %v843_v10, %v843_v10  ;;  %v781_v21 = vld [vmem:[#allocation2 + $0x169] sm:$0xff]  ;;  %v782_v22 = vld [vmem:[#allocation2 + $0x171] sm:$0xff] }
 0x1c4   : >> { %1498 = vrot.lane.b32.xlu2 %v1473_v61, %s9577_s23  ;;  %v9916_v13 = vpack.c.b16 %v1563_v6, %v1562_v5  ;;  %v876_v16 = vpack.c.bf16 %v844_v11, %v844_v11  ;;  %v1452_v17 = vunpack.c.l.b16 %v811_v8  ;;  %v749_v23 = vpack.c.bf16 %v717_v14, %v717_v14  ;;  %v9393_v24 = vld [vmem:[%s9913_s26 + $0x30] sm:$0xff]  ;;  %v845_v32 = vld [vmem:[#allocation2 + $0x187] sm:$0xff] }
 0x1c5   : >> { %v1453_v18 = vunpack.c.l.b16 %v812_v9  ;;  %v1362_v25 = vpack.c.b16 %v1341_v3, %v1340_v12  ;;  %v750_v26 = vpack.c.bf16 %v718_v19, %v718_v19  ;;  %v1564_v27 = vunpack.c.l.b16 %v875_v15  ;;  %v846_v33 = vld [vmem:[#allocation2 + $0x18f] sm:$0xff]  ;;  %9498 = vmatpush.bf16.msra.mxu1 %v9393_v24  ;;  %2579 = vmatpush.bf16.msra.mxu0 %v9393_v24  ;;  %v847_v56 = vld [vmem:[#allocation2 + $0x1a7] sm:$0xff] }
 0x1c6   : >> { %v1565_v28 = vunpack.c.l.b16 %v876_v16  ;;  %v813_v30 = vpack.c.bf16 %v781_v21, %v781_v21  ;;  %v814_v31 = vpack.c.bf16 %v782_v22, %v782_v22  ;;  %v1342_v34 = vunpack.c.l.b16 %v749_v23  ;;  %v9392_v35 = vld [vmem:[%s9913_s26 + $0x28] sm:$0xff]  ;;  %v720_v43 = vld [vmem:[#allocation2 + $0x190] sm:$0xff] }
 0x1c7   : >> { %v1474_v29 = vpack.c.b16 %v1453_v18, %v1452_v17  ;;  %v1343_v36 = vunpack.c.l.b16 %v750_v26  ;;  %v719_v38 = vld [vmem:[#allocation2 + $0x188] sm:$0xff]  ;;  %v877_v39 = vpack.c.bf16 %v845_v32, %v845_v32  ;;  %v878_v40 = vpack.c.bf16 %v846_v33, %v846_v33  ;;  %v784_v45 = vld [vmem:[#allocation2 + $0x191] sm:$0xff] }
 0x1c8   : >> { %1496 = vrot.lane.b32.xlu0 %v1472_v2, %s9577_s23  ;;  %v9925_v37 = vpack.c.b16 %v1565_v28, %v1564_v27  ;;  %v1454_v41 = vunpack.c.l.b16 %v813_v30  ;;  %v1455_v42 = vunpack.c.l.b16 %v814_v31  ;;  %v783_v44 = vld [vmem:[#allocation2 + $0x189] sm:$0xff]  ;;  %v751_v46 = vpack.c.bf16 %v719_v38, %v719_v38  ;;  %v786_v6 = vld [vmem:[#allocation2 + $0x1b1] sm:$0xff] }
 0x1c9   : >> { %1386 = vrot.lane.b32.xlu1 %v1361_v7, %s9575_s20  ;;  %9499 = vmatpush.bf16.msra.mxu1 %v9392_v35  ;;  %v1363_v48 = vpack.c.b16 %v1343_v36, %v1342_v34  ;;  %v752_v49 = vpack.c.bf16 %v720_v43, %v720_v43  ;;  %v1566_v51 = vunpack.c.l.b16 %v877_v39  ;;  %v1567_v52 = vunpack.c.l.b16 %v878_v40  ;;  %v848_v57 = vld [vmem:[#allocation2 + $0x1af] sm:$0xff]  ;;  %v849_v15 = vld [vmem:[#allocation2 + $0x1c7] sm:$0xff] }
 0x1ca   : >> { %2580 = vmatpush.bf16.msra.mxu0 %v9392_v35  ;;  %v1475_v53 = vpack.c.b16 %v1455_v42, %v1454_v41  ;;  %v815_v54 = vpack.c.bf16 %v783_v44, %v783_v44  ;;  %v816_v55 = vpack.c.bf16 %v784_v45, %v784_v45  ;;  %v1344_v58 = vunpack.c.l.b16 %v751_v46  ;;  %v721_v62 = vld [vmem:[#allocation2 + $0x1a8] sm:$0xff]  ;;  %v722_v4 = vld [vmem:[#allocation2 + $0x1b0] sm:$0xff] }
 0x1cb   : >> { %v1345_v60 = vunpack.c.l.b16 %v752_v49  ;;  %v9933_v61 = vpack.c.b16 %v1567_v52, %v1566_v51  ;;  %v879_v63 = vpack.c.bf16 %v847_v56, %v847_v56  ;;  %v880_v0 = vpack.c.bf16 %v848_v57, %v848_v57  ;;  %v785_v5 = vld [vmem:[#allocation2 + $0x1a9] sm:$0xff]  ;;  %v788_v27 = vld [vmem:[#allocation2 + $0x1d1] sm:$0xff] }
 0x1cc   : >> { %1610 = vrot.lane.b32.xlu2 %v9916_v13, %s9576_s21  ;;  %v1456_v1 = vunpack.c.l.b16 %v815_v54  ;;  %v1457_v2 = vunpack.c.l.b16 %v816_v55  ;;  %v753_v7 = vpack.c.bf16 %v721_v62, %v721_v62  ;;  %v754_v9 = vpack.c.bf16 %v722_v4, %v722_v4  ;;  %v850_v16 = vld [vmem:[#allocation2 + $0x1cf] sm:$0xff] }
 0x1cd   : >> { %9500 = vmatpush.bf16.msra.mxu1 %v9391_v47  ;;  %v1364_v8 = vpack.c.b16 %v1345_v60, %v1344_v58  ;;  %v1568_v10 = vunpack.c.l.b16 %v879_v63  ;;  %v1569_v11 = vunpack.c.l.b16 %v880_v0  ;;  %v817_v3 = vpack.c.bf16 %v785_v5, %v785_v5  ;;  %v723_v20 = vld [vmem:[#allocation2 + $0x1c8] sm:$0xff]  ;;  %v726_v43 = vld [vmem:[#allocation2 + $0x1f0] sm:$0xff] }
 0x1ce   : >> { %2581 = vmatpush.bf16.msra.mxu0 %v9391_v47  ;;  %v1476_v12 = vpack.c.b16 %v1457_v2, %v1456_v1  ;;  %v818_v14 = vpack.c.bf16 %v786_v6, %v786_v6  ;;  %v1346_v17 = vunpack.c.l.b16 %v753_v7  ;;  %v1347_v18 = vunpack.c.l.b16 %v754_v9  ;;  %v787_v26 = vld [vmem:[#allocation2 + $0x1c9] sm:$0xff]  ;;  %v790_v45 = vld [vmem:[#allocation2 + $0x1f1] sm:$0xff] }
 0x1cf   : >> { %v9939_v19 = vpack.c.b16 %v1569_v11, %v1568_v10  ;;  %v881_v21 = vpack.c.bf16 %v849_v15, %v849_v15  ;;  %v882_v22 = vpack.c.bf16 %v850_v16, %v850_v16  ;;  %v1458_v23 = vunpack.c.l.b16 %v817_v3  ;;  %v725_v42 = vld [vmem:[#allocation2 + $0x1e8] sm:$0xff]  ;;  %v696_v62 = vld [vmem:[#allocation2 + $0x10] sm:$0xff]  ;;  %v9387_v3 = vld [vmem:[%s9913_s26] sm:$0xff] }
 0x1d0   : >> { %1388 = vrot.lane.b32.xlu0 %v1362_v25, %s9575_s20  ;;  %v1459_v24 = vunpack.c.l.b16 %v818_v14  ;;  %v724_v25 = vld [vmem:[#allocation2 + $0x1d0] sm:$0xff]  ;;  %v755_v28 = vpack.c.bf16 %v723_v20, %v723_v20  ;;  %v819_v34 = vpack.c.bf16 %v787_v26, %v787_v26  ;;  %v820_v35 = vpack.c.bf16 %v788_v27, %v788_v27  ;;  %v695_v60 = vld [vmem:[#allocation2 + $0x8] sm:$0xff] }
 0x1d1   : >> { %1500 = vrot.lane.b32.xlu1 %v1474_v29, %s9577_s23  ;;  %9501 = vmatpush.bf16.msra.mxu1 %v9390_v59  ;;  %v1365_v29 = vpack.c.b16 %v1347_v18, %v1346_v17  ;;  %v756_v30 = vpack.c.bf16 %v724_v25, %v724_v25  ;;  %v1570_v31 = vunpack.c.l.b16 %v881_v21  ;;  %v1571_v32 = vunpack.c.l.b16 %v882_v22  ;;  %v789_v44 = vld [vmem:[#allocation2 + $0x1e9] sm:$0xff]  ;;  %v760_v2 = vld [vmem:[#allocation2 + $0x11] sm:$0xff] }
 0x1d2   : >> { %2582 = vmatpush.bf16.msra.mxu0 %v9390_v59  ;;  %v1477_v33 = vpack.c.b16 %v1459_v24, %v1458_v23  ;;  %v1348_v36 = vunpack.c.l.b16 %v755_v28  ;;  %v1460_v40 = vunpack.c.l.b16 %v819_v34  ;;  %v1461_v41 = vunpack.c.l.b16 %v820_v35  ;;  %v9389_v59 = vld [vmem:[%s9913_s26 + $0x10] sm:$0xff]  ;;  %v9388_v6 = vld [vmem:[%s9913_s26 + $0x8] sm:$0xff] }
 0x1d3   : >> { %v1349_v38 = vunpack.c.l.b16 %v756_v30  ;;  %v9945_v39 = vpack.c.b16 %v1571_v32, %v1570_v31  ;;  %v757_v47 = vpack.c.bf16 %v725_v42, %v725_v42  ;;  %v821_v51 = vpack.c.bf16 %v789_v44, %v789_v44  ;;  %v759_v1 = vld [vmem:[#allocation2 + $0x9] sm:$0xff]  ;;  %v952_v15 = vld [vmem:[#allocation2 + $0x31] sm:$0xff] }
 0x1d4   : >> { %1612 = vrot.lane.b32.xlu2 %v9925_v37, %s9576_s21  ;;  %v1478_v49 = vpack.c.b16 %v1461_v41, %v1460_v40  ;;  %v822_v52 = vpack.c.bf16 %v790_v45, %v790_v45  ;;  %v727_v63 = vpack.c.bf16 %v695_v60, %v695_v60  ;;  %v728_v0 = vpack.c.bf16 %v696_v62, %v696_v62  ;;  %v951_v14 = vld [vmem:[#allocation2 + $0x29] sm:$0xff]  ;;  %v9402_v31 = vld [vmem:[%s9913_s26 + $0x78] sm:$0xff] }
 0x1d5   : >> { %v1366_v46 = vpack.c.b16 %v1349_v38, %v1348_v36  ;;  %v1462_v55 = vunpack.c.l.b16 %v821_v51  ;;  %9502 = vmatpush.bf16.msra.mxu1 %v9389_v59  ;;  %v791_v4 = vpack.c.bf16 %v759_v1, %v759_v1  ;;  %v792_v5 = vpack.c.bf16 %v760_v2, %v760_v2  ;;  %v1016_v18 = vld [vmem:[#allocation2 + $0x47] sm:$0xff]  ;;  %v1017_v20 = vld [vmem:[#allocation2 + $0x4f] sm:$0xff] }
 0x1d6   : >> { %v1463_v56 = vunpack.c.l.b16 %v822_v52  ;;  %2583 = vmatpush.bf16.msra.mxu0 %v9389_v59  ;;  %v1320_v7 = vunpack.c.l.b16 %v727_v63  ;;  %v983_v16 = vpack.c.bf16 %v951_v14, %v951_v14  ;;  %v984_v17 = vpack.c.bf16 %v952_v15, %v952_v15  ;;  %v851_v23 = vld [vmem:[#allocation2 + $0x1e7] sm:$0xff]  ;;  %v852_v24 = vld [vmem:[#allocation2 + $0x1ef] sm:$0xff] }
 0x1d7   : >> { %v1432_v9 = vunpack.c.l.b16 %v791_v4  ;;  %v1433_v10 = vunpack.c.l.b16 %v792_v5  ;;  %v1048_v21 = vpack.c.bf16 %v1016_v18, %v1016_v18  ;;  %v1049_v22 = vpack.c.bf16 %v1017_v20, %v1017_v20  ;;  %v697_v34 = vld [vmem:[#allocation2 + $0x28] sm:$0xff]  ;;  %v698_v35 = vld [vmem:[#allocation2 + $0x30] sm:$0xff] }
 0x1d8   : >> { %1390 = vrot.lane.b32.xlu0 %v1363_v48, %s9575_s20  ;;  %v758_v48 = vpack.c.bf16 %v726_v43, %v726_v43  ;;  %v1479_v58 = vpack.c.b16 %v1463_v56, %v1462_v55  ;;  %v1736_v25 = vunpack.c.l.b16 %v983_v16  ;;  %v1737_v26 = vunpack.c.l.b16 %v984_v17  ;;  %v853_v42 = vld [vmem:[#allocation2 + $0x207] sm:$0xff]  ;;  %v854_v43 = vld [vmem:[#allocation2 + $0x20f] sm:$0xff] }
 0x1d9   : >> { %1502 = vrot.lane.b32.xlu1 %v1475_v53, %s9577_s23  ;;  %v1350_v53 = vunpack.c.l.b16 %v757_v47  ;;  %9503 = vmatpush.bf16.msra.mxu1 %v9388_v6  ;;  %v883_v27 = vpack.c.bf16 %v851_v23, %v851_v23  ;;  %v1848_v28 = vunpack.c.l.b16 %v1048_v21  ;;  %v884_v30 = vpack.c.bf16 %v852_v24, %v852_v24  ;;  %v823_v55 = vld [vmem:[#allocation2 + $0x27] sm:$0xff]  ;;  %v824_v56 = vld [vmem:[#allocation2 + $0x2f] sm:$0xff] }
 0x1da   : >> { %v1351_v54 = vunpack.c.l.b16 %v758_v48  ;;  %2584 = vmatpush.bf16.msra.mxu0 %v9388_v6  ;;  %v1768_v32 = vpack.c.b16 %v1737_v26, %v1736_v25  ;;  %v729_v40 = vpack.c.bf16 %v697_v34, %v697_v34  ;;  %v730_v41 = vpack.c.bf16 %v698_v35, %v698_v35  ;;  %v9401_v62 = vld [vmem:[%s9913_s26 + $0x70] sm:$0xff]  ;;  %v9400_v35 = vld [vmem:[%s9913_s26 + $0x68] sm:$0xff] }
 0x1db   : >> { %v1573_v38 = vunpack.c.l.b16 %v884_v30  ;;  %v885_v44 = vpack.c.bf16 %v853_v42, %v853_v42  ;;  %v886_v45 = vpack.c.bf16 %v854_v43, %v854_v43  ;;  %v856_v59 = vpack.c.bf16 %v824_v56, %v824_v56  ;;  %v953_v1 = vld [vmem:[#allocation2 + $0x49] sm:$0xff]  ;;  %v954_v2 = vld [vmem:[#allocation2 + $0x51] sm:$0xff] }
 0x1dc   : >> { %1614 = vrot.lane.b32.xlu2 %v9933_v61, %s9576_s21  ;;  %v1367_v57 = vpack.c.b16 %v1351_v54, %v1350_v53  ;;  %v1322_v47 = vunpack.c.l.b16 %v729_v40  ;;  %v1323_v48 = vunpack.c.l.b16 %v730_v41  ;;  %v647_v54 = vld [vmem:[#allocation2 + $0x107] sm:$0xff]  ;;  %v985_v5 = vpack.c.bf16 %v953_v1, %v953_v1  ;;  %v956_v40 = vld [vmem:[#allocation2 + $0x71] sm:$0xff] }
 0x1dd   : >> { %9504 = vmatpush.bf16.msra.mxu1 %v9387_v3  ;;  %v1575_v51 = vunpack.c.l.b16 %v886_v45  ;;  %v679_v60 = vpack.c.bf16 %v647_v54, %v647_v54  ;;  %v986_v6 = vpack.c.bf16 %v954_v2, %v954_v2  ;;  %v988_v42 = vpack.c.bf16 %v956_v40, %v956_v40  ;;  %v1020_v43 = vld [vmem:[#allocation2 + $0x87] sm:$0xff] }
 0x1de   : >> { %2585 = vmatpush.bf16.msra.mxu0 %v9387_v3  ;;  %v9969_v52 = vpack.c.b16 %v1323_v48, %v1322_v47  ;;  %v1081_v3 = vld [vmem:[#allocation2 + $0x50] sm:$0xff]  ;;  %v1738_v15 = vunpack.c.l.b16 %v985_v5  ;;  %v1052_v47 = vpack.c.bf16 %v1020_v43, %v1020_v43  ;;  %v9399_v5 = vld [vmem:[%s9913_s26 + $0x60] sm:$0xff]  ;;  %vm3023_vm15 = vsmask.f32 4368 }
 0x1df   : >> { %v1739_v16 = vunpack.c.l.b16 %v986_v6  ;;  %v1113_v17 = vpack.c.bf16 %v1081_v3, %v1081_v3  ;;  %v1256_v18 = vunpack.c.l.b16 %v679_v60  ;;  %v702_v60 = vld [vmem:[#allocation2 + $0x70] sm:$0xff]  ;;  %vm10513_vm0 = vmor %vm341_vm8, %vm3023_vm15 }
 0x1e0   : >> { %1392 = vrot.lane.b32.xlu0 %v1364_v8, %s9575_s20  ;;  %v1321_v8 = vunpack.c.l.b16 %v728_v0  ;;  %v1545_v0 = vunpack.c.l.b16 %v856_v59  ;;  %v701_v59 = vld [vmem:[#allocation2 + $0x68] sm:$0xff] }
 0x1e1   : >> { %1504 = vrot.lane.b32.xlu1 %v1476_v12, %s9577_s23  ;;  %v1464_v12 = vpack.c.b16 %v1433_v10, %v1432_v9  ;;  %2667 = vmatpush.bf16.msrb.mxu1 %v9402_v31  ;;  %v1080_v9 = vld [vmem:[#allocation2 + $0x48] sm:$0xff]  ;;  %v9986_v24 = vpack.c.b16 %v1739_v16, %v1738_v15  ;;  %v1961_v26 = vunpack.c.l.b16 %v1113_v17 }
 0x1e2   : >> { %v1352_v11 = vpack.c.b16 %v1321_v8, %v1320_v7  ;;  %v1018_v7 = vld [vmem:[#allocation2 + $0x67] sm:$0xff]  ;;  %v1019_v8 = vld [vmem:[#allocation2 + $0x6f] sm:$0xff]  ;;  %v1112_v14 = vpack.c.bf16 %v1080_v9, %v1080_v9 }
 0x1e3   : >> { %v959_v43 = vld [vmem:[#allocation2 + $0xa9] sm:$0xff] }
 0x1e4   : >> { %1616 = vrot.lane.b32.xlu2 %v9939_v19, %s9576_s21  ;;  %v1960_v25 = vunpack.c.l.b16 %v1112_v14 }
 0x1e5   : >> { %2668 = vmatpush.bf16.msrb.mxu1 %v9401_v62 }
 0x1e8   : >> { %1394 = vrot.lane.b32.xlu0 %v1365_v29, %s9575_s20  ;;  %v1849_v29 = vunpack.c.l.b16 %v1049_v22 }
 0x1e9   : >> { %1506 = vrot.lane.b32.xlu1 %v1477_v33, %s9577_s23  ;;  %v1572_v33 = vunpack.c.l.b16 %v883_v27  ;;  %2669 = vmatpush.bf16.msrb.mxu1 %v9400_v35 }
 0x1ea   : >> { %v9960_v36 = vpack.c.b16 %v1849_v29, %v1848_v28  ;;  %v9996_v29 = vpack.c.b16 %v1961_v26, %v1960_v25 }
 0x1ec   : >> { %1618 = vrot.lane.b32.xlu2 %v9945_v39, %s9576_s21 }
 0x1ed   : >> { %2670 = vmatpush.bf16.msrb.mxu1 %v9399_v5  ;;  %v706_v5 = vld [vmem:[#allocation2 + $0xb0] sm:$0xff] }
 0x1f0   : >> { %1396 = vrot.lane.b32.xlu0 %v1366_v46, %s9575_s20  ;;  %v9965_v46 = vpack.c.b16 %v1573_v38, %v1572_v33  ;;  %v955_v38 = vld [vmem:[#allocation2 + $0x69] sm:$0xff] }
 0x1f1   : >> { %1508 = vrot.lane.b32.xlu1 %v1478_v49, %s9577_s23  ;;  %v1574_v49 = vunpack.c.l.b16 %v885_v44  ;;  %v987_v41 = vpack.c.bf16 %v955_v38, %v955_v38  ;;  %v1021_v44 = vld [vmem:[#allocation2 + $0x8f] sm:$0xff] }
 0x1f2   : >> { %v1053_v48 = vpack.c.bf16 %v1021_v44, %v1021_v44  ;;  %v960_v44 = vld [vmem:[#allocation2 + $0xb1] sm:$0xff] }
 0x1f3   : >> { %v1591_v53 = vpack.c.b16 %v1575_v51, %v1574_v49  ;;  %v1740_v49 = vunpack.c.l.b16 %v987_v41  ;;  %v1741_v51 = vunpack.c.l.b16 %v988_v42  ;;  %v9398_v41 = vld [vmem:[%s9913_s26 + $0x58] sm:$0xff] }
 0x1f4   : >> { %1620 = vrot.lane.b32.xlu2 %v9965_v46, %s9576_s21  ;;  %v1853_v54 = vunpack.c.l.b16 %v1053_v48  ;;  %v1024_v48 = vld [vmem:[#allocation2 + $0xc7] sm:$0xff]  ;;  %2671 = vmatpush.bf16.msrb.mxu1 %v9398_v41 }
 0x1f8   : >> { %1398 = vrot.lane.b32.xlu0 %v1367_v57, %s9575_s20  ;;  %v648_v57 = vld [vmem:[#allocation2 + $0x10f] sm:$0xff] }
 0x1f9   : >> { %1510 = vrot.lane.b32.xlu1 %v1479_v58, %s9577_s23  ;;  %v855_v58 = vpack.c.bf16 %v823_v55, %v823_v55  ;;  %v680_v4 = vpack.c.bf16 %v648_v57, %v648_v57  ;;  %v10011_v55 = vpack.c.b16 %v1741_v51, %v1740_v49  ;;  %v1025_v49 = vld [vmem:[#allocation2 + $0xcf] sm:$0xff]  ;;  %v1056_v51 = vpack.c.bf16 %v1024_v48, %v1024_v48 }
 0x1fb   : >> { %v1544_v63 = vunpack.c.l.b16 %v855_v58  ;;  %v1257_v23 = vunpack.c.l.b16 %v680_v4 }
 0x1fc   : >> { %1622 = vrot.lane.b32.xlu2 %v1591_v53, %s9576_s21  ;;  %v1852_v53 = vunpack.c.l.b16 %v1052_v47  ;;  %v992_v47 = vpack.c.bf16 %v960_v44, %v960_v44  ;;  %v707_v44 = vld [vmem:[#allocation2 + $0xc8] sm:$0xff] }
 0x1fd   : >> { %v9982_v10 = vpack.c.b16 %v1545_v0, %v1544_v63  ;;  %v9994_v28 = vpack.c.b16 %v1257_v23, %v1256_v18  ;;  %v733_v63 = vpack.c.bf16 %v701_v59, %v701_v59  ;;  %v734_v0 = vpack.c.bf16 %v702_v60, %v702_v60 }
 0x1fe   : >> { %v10013_v57 = vpack.c.b16 %v1853_v54, %v1852_v53  ;;  %v1057_v53 = vpack.c.bf16 %v1025_v49, %v1025_v49 }
 0x1ff   : >> { %v1326_v1 = vunpack.c.l.b16 %v733_v63  ;;  %v1327_v2 = vunpack.c.l.b16 %v734_v0 }
 0x200   : >> { %1368 = vrot.lane.b32.xlu0 %v1352_v11, %s9575_s20  ;;  %v1050_v11 = vpack.c.bf16 %v1018_v7, %v1018_v7  ;;  %v957_v7 = vld [vmem:[#allocation2 + $0x89] sm:$0xff]  ;;  %v1857_v59 = vunpack.c.l.b16 %v1057_v53 }
 0x201   : >> { %1480 = vrot.lane.b32.xlu1 %v1464_v12, %s9577_s23  ;;  %v1051_v12 = vpack.c.bf16 %v1019_v8, %v1019_v8  ;;  %v10024_v6 = vpack.c.b16 %v1327_v2, %v1326_v1  ;;  %v989_v8 = vpack.c.bf16 %v957_v7, %v957_v7  ;;  %v9396_v53 = vld [vmem:[%s9913_s26 + $0x48] sm:$0xff] }
 0x202   : >> { %v1850_v20 = vunpack.c.l.b16 %v1050_v11  ;;  %v1022_v11 = vld [vmem:[#allocation2 + $0xa7] sm:$0xff] }
 0x203   : >> { %v1851_v21 = vunpack.c.l.b16 %v1051_v12  ;;  %v1023_v12 = vld [vmem:[#allocation2 + $0xaf] sm:$0xff]  ;;  %v1054_v3 = vpack.c.bf16 %v1022_v11, %v1022_v11  ;;  %v1742_v15 = vunpack.c.l.b16 %v989_v8 }
 0x204   : >> { %1592 = vrot.lane.b32.xlu2 %v9982_v10, %s9576_s21  ;;  %v1055_v14 = vpack.c.bf16 %v1023_v12, %v1023_v12 }
 0x205   : >> { %v9988_v27 = vpack.c.b16 %v1851_v21, %v1850_v20  ;;  %v1854_v18 = vunpack.c.l.b16 %v1054_v3  ;;  %v9397_v3 = vld [vmem:[%s9913_s26 + $0x50] sm:$0xff] }
 0x206   : >> { %v1855_v20 = vunpack.c.l.b16 %v1055_v14  ;;  %2672 = vmatpush.bf16.msrb.mxu1 %v9397_v3 }
 0x208   : >> { %1784 = vrot.lane.b32.xlu0 %v1768_v32, %s9575_s20 }
 0x209   : >> { %1896 = vrot.lane.b32.xlu1 %v9960_v36, %s9577_s23 }
 0x20a   : >> { %2673 = vmatpush.bf16.msrb.mxu1 %v9396_v53 }
 0x20c   : >> { %2008 = vrot.lane.b32.xlu2 %v9996_v29, %s9576_s21 }
 0x210   : >> { %1370 = vrot.lane.b32.xlu0 %v9969_v52, %s9575_s20 }
 0x211   : >> { %1482 = vrot.lane.b32.xlu1 %v1768_v32, %s9577_s23 }
 0x214   : >> { %1594 = vrot.lane.b32.xlu2 %v9960_v36, %s9576_s21 }
 0x218   : >> { %1786 = vrot.lane.b32.xlu0 %v9986_v24, %s9575_s20 }
 0x219   : >> { %1898 = vrot.lane.b32.xlu1 %v9988_v27, %s9577_s23 }
 0x21c   : >> { %2010 = vrot.lane.b32.xlu2 %v10024_v6, %s9576_s21 }
 0x21e   : >> { %v1499_v45 = vpop.permute.xlu2 %1498 }
 0x220   : >> { %1372 = vrot.lane.b32.xlu0 %v9996_v29, %s9575_s20 }
 0x221   : >> { %1484 = vrot.lane.b32.xlu1 %v9986_v24, %s9577_s23 }
 0x224   : >> { %1596 = vrot.lane.b32.xlu2 %v9988_v27, %s9576_s21  ;;  %v991_v27 = vpack.c.bf16 %v959_v43, %v959_v43 }
 0x226   : >> { %v1611_v62 = vpop.permute.xlu2 %1610  ;;  %v1744_v54 = vunpack.c.l.b16 %v991_v27 }
 0x228   : >> { %1788 = vrot.lane.b32.xlu0 %v10011_v55, %s9575_s20 }
 0x229   : >> { %1900 = vrot.lane.b32.xlu1 %v10013_v57, %s9577_s23 }
 0x230   : >> { %1374 = vrot.lane.b32.xlu0 %v10024_v6, %s9575_s20 }
 0x231   : >> { %1486 = vrot.lane.b32.xlu1 %v10011_v55, %s9577_s23 }
 0x232   : >> { %v1385_v22 = vpop.permute.xlu0 %1384 }
 0x233   : >> { %v1609_v30 = vpop.permute.xlu1 %1608  ;;  %v2146_v31 = vsel %vm226_vm5, %v9994_v28, %v1385_v22  ;;  %v10034_v22 = vpack.c.b16 %v1855_v20, %v1854_v18  ;;  %v1026_v20 = vld [vmem:[#allocation2 + $0xe7] sm:$0xff] }
 0x239   : >> { %1902 = vrot.lane.b32.xlu1 %v10034_v22, %s9577_s23 }
 0x23a   : >> { %v1497_v32 = vpop.permute.xlu0 %1496 }
 0x23b   : >> { %v2186_v33 = vsel %vm2168_vm10, %v2146_v31, %v1497_v32  ;;  %v1387_v56 = vpop.permute.xlu1 %1386  ;;  %v703_v31 = vld [vmem:[#allocation2 + $0x88] sm:$0xff]  ;;  %v704_v32 = vld [vmem:[#allocation2 + $0x90] sm:$0xff] }
 0x23c   : >> { %v2227_v34 = vsel %vm2201_vm11, %v2186_v33, %v1609_v30  ;;  %v2149_v58 = vsel %vm226_vm5, %v9903_v50, %v1387_v56  ;;  %v958_v50 = vld [vmem:[#allocation2 + $0x91] sm:$0xff]  ;;  %v1613_v30 = vpop.permute.xlu2 %1612  ;;  %v735_v33 = vpack.c.bf16 %v703_v31, %v703_v31  ;;  %v1745_v56 = vunpack.c.l.b16 %v992_v47 }
 0x23d   : >> { %2626 = vmatmul.bf16.vlgmr.msra.gmra.mxu1 %v2227_v34  ;;  %v2188_v36 = vsel %vm2168_vm10, %v2149_v58, %v1499_v45  ;;  %v990_v9 = vpack.c.bf16 %v958_v50, %v958_v50  ;;  %v736_v34 = vpack.c.bf16 %v704_v32, %v704_v32  ;;  %v1856_v58 = vunpack.c.l.b16 %v1056_v51 }
 0x23e   : >> { %v2230_v4 = vsel %vm2201_vm11, %v2188_v36, %v1611_v62  ;;  %v1328_v35 = vunpack.c.l.b16 %v735_v33  ;;  %v10055_v60 = vpack.c.b16 %v1745_v56, %v1744_v54  ;;  %v738_v50 = vpack.c.bf16 %v706_v5, %v706_v5  ;;  %v963_v56 = vld [vmem:[#allocation2 + $0xe9] sm:$0xff] }
 0x23f   : >> { %v1743_v16 = vunpack.c.l.b16 %v990_v9  ;;  %v1329_v38 = vunpack.c.l.b16 %v736_v34  ;;  %v10057_v62 = vpack.c.b16 %v1857_v59, %v1856_v58  ;;  %v995_v58 = vpack.c.bf16 %v963_v56, %v963_v56 }
 0x240   : >> { %v1331_v9 = vunpack.c.l.b16 %v738_v50 }
 0x241   : >> { %v10032_v21 = vpack.c.b16 %v1743_v16, %v1742_v15  ;;  %v10047_v42 = vpack.c.b16 %v1329_v38, %v1328_v35  ;;  %v961_v15 = vld [vmem:[#allocation2 + $0xc9] sm:$0xff] }
 0x242   : >> { %v1389_v17 = vpop.permute.xlu0 %1388 }
 0x243   : >> { %v2152_v23 = vsel %vm226_vm5, %v9916_v13, %v1389_v17  ;;  %v1501_v25 = vpop.permute.xlu1 %1500  ;;  %1790 = vrot.lane.b32.xlu0 %v10032_v21, %s9575_s20  ;;  %1488 = vrot.lane.b32.xlu1 %v10032_v21, %s9577_s23  ;;  %v993_v17 = vpack.c.bf16 %v961_v15, %v961_v15 }
 0x244   : >> { %v2190_v26 = vsel %vm2168_vm10, %v2152_v23, %v1501_v25  ;;  %2012 = vrot.lane.b32.xlu2 %v10047_v42, %s9576_s21  ;;  %v1615_v63 = vpop.permute.xlu2 %1614  ;;  %v1027_v23 = vld [vmem:[#allocation2 + $0xef] sm:$0xff]  ;;  %v1058_v25 = vpack.c.bf16 %v1026_v20, %v1026_v20 }
 0x245   : >> { %v2233_v13 = vsel %vm2201_vm11, %v2190_v26, %v1613_v30  ;;  %v1059_v26 = vpack.c.bf16 %v1027_v23, %v1027_v23  ;;  %v1746_v30 = vunpack.c.l.b16 %v993_v17  ;;  %v709_v17 = vld [vmem:[#allocation2 + $0xe8] sm:$0xff] }
 0x246   : >> { %v1858_v32 = vunpack.c.l.b16 %v1058_v25 }
 0x247   : >> { %v1859_v33 = vunpack.c.l.b16 %v1059_v26 }
 0x24a   : >> { %v1391_v40 = vpop.permute.xlu0 %1390 }
 0x24b   : >> { %v1503_v45 = vpop.permute.xlu1 %1502  ;;  %1376 = vrot.lane.b32.xlu0 %v10047_v42, %s9575_s20  ;;  %v2155_v36 = vsel %vm226_vm5, %v9925_v37, %v1391_v40  ;;  %1904 = vrot.lane.b32.xlu1 %v10057_v62, %s9577_s23 }
 0x24c   : >> { %v2192_v2 = vsel %vm2168_vm10, %v2155_v36, %v1503_v45  ;;  %1598 = vrot.lane.b32.xlu2 %v10013_v57, %s9576_s21  ;;  %v1617_v11 = vpop.permute.xlu2 %1616  ;;  %v962_v57 = vld [vmem:[#allocation2 + $0xd1] sm:$0xff]  ;;  %v631_v36 = vld [vmem:[#allocation2 + $0x7] sm:$0xff] }
 0x24d   : >> { %2631 = vmatmul.bf16.gmra.mxu1 %v2230_v4  ;;  %v705_v4 = vld [vmem:[#allocation2 + $0xa8] sm:$0xff]  ;;  %v2236_v37 = vsel %vm2201_vm11, %v2192_v2, %v1615_v63  ;;  %v994_v18 = vpack.c.bf16 %v962_v57, %v962_v57  ;;  %v708_v45 = vld [vmem:[#allocation2 + $0xd0] sm:$0xff]  ;;  %v663_v2 = vpack.c.bf16 %v631_v36, %v631_v36 }
 0x24e   : >> { %v737_v7 = vpack.c.bf16 %v705_v4, %v705_v4  ;;  %v740_v27 = vpack.c.bf16 %v708_v45, %v708_v45  ;;  %v632_v63 = vld [vmem:[#allocation2 + $0xf] sm:$0xff] }
 0x24f   : >> { %v1747_v31 = vunpack.c.l.b16 %v994_v18  ;;  %v664_v4 = vpack.c.bf16 %v632_v63, %v632_v63  ;;  %v710_v18 = vld [vmem:[#allocation2 + $0xf0] sm:$0xff] }
 0x250   : >> { %v1330_v8 = vunpack.c.l.b16 %v737_v7  ;;  %v1333_v49 = vunpack.c.l.b16 %v740_v27  ;;  %v1748_v7 = vunpack.c.l.b16 %v995_v58  ;;  %v1031_v27 = vld [vmem:[#allocation2 + $0x12f] sm:$0xff] }
 0x251   : >> { %v10080_v34 = vpack.c.b16 %v1747_v31, %v1746_v30 }
 0x252   : >> { %v1393_v0 = vpop.permute.xlu0 %1392  ;;  %v10072_v14 = vpack.c.b16 %v1331_v9, %v1330_v8  ;;  %v1241_v8 = vunpack.c.l.b16 %v664_v4 }
 0x253   : >> { %v1505_v1 = vpop.permute.xlu1 %1504  ;;  %1792 = vrot.lane.b32.xlu0 %v10055_v60, %s9575_s20  ;;  %1490 = vrot.lane.b32.xlu1 %v10055_v60, %s9577_s23  ;;  %v2158_v35 = vsel %vm226_vm5, %v9933_v61, %v1393_v0  ;;  %v739_v61 = vpack.c.bf16 %v707_v44, %v707_v44  ;;  %v9404_v0 = vld [vmem:[%s9913_s26 + $0x88] sm:$0xff] }
 0x254   : >> { %2014 = vrot.lane.b32.xlu2 %v10072_v14, %s9576_s21  ;;  %v1619_v38 = vpop.permute.xlu2 %1618  ;;  %v2194_v43 = vsel %vm2168_vm10, %v2158_v35, %v1505_v1  ;;  %2762 = vmatpush.bf16.msra.mxu2 %v9404_v0 }
 0x255   : >> { %v2239_v47 = vsel %vm2201_vm11, %v2194_v43, %v1617_v11  ;;  %v1332_v48 = vunpack.c.l.b16 %v739_v61  ;;  %9505 = vmatpush.bf16.msra.mxu3 %v9404_v0  ;;  %v965_v43 = vld [vmem:[#allocation2 + $0x109] sm:$0xff] }
 0x256   : >> { %v997_v44 = vpack.c.bf16 %v965_v43, %v965_v43  ;;  %v1030_v61 = vld [vmem:[#allocation2 + $0x127] sm:$0xff] }
 0x257   : >> { %v10101_v54 = vpack.c.b16 %v1333_v49, %v1332_v48  ;;  %v1063_v48 = vpack.c.bf16 %v1031_v27, %v1031_v27 }
 0x258   : >> { %v1750_v49 = vunpack.c.l.b16 %v997_v44 }
 0x259   : >> { %v1863_v58 = vunpack.c.l.b16 %v1063_v48 }
 0x25a   : >> { %v10069_v12 = vpop.permute.xlu0 %1394 }
 0x25b   : >> { %v1507_v16 = vpop.permute.xlu1 %1506  ;;  %1378 = vrot.lane.b32.xlu0 %v10072_v14, %s9575_s20  ;;  %v2161_v11 = vsel %vm226_vm5, %v9939_v19, %v10069_v12  ;;  %v741_v19 = vpack.c.bf16 %v709_v17, %v709_v17  ;;  %v742_v12 = vpack.c.bf16 %v710_v18, %v710_v18 }
 0x25c   : >> { %1600 = vrot.lane.b32.xlu2 %v10034_v22, %s9576_s21  ;;  %v10098_v51 = vpop.permute.xlu2 %1620  ;;  %v964_v22 = vld [vmem:[#allocation2 + $0xf1] sm:$0xff]  ;;  %v2196_v57 = vsel %vm2168_vm10, %v2161_v11, %v1507_v16 }
 0x25d   : >> { %2636 = vmatmul.bf16.gmra.mxu1 %v2233_v13  ;;  %v10082_v13 = vpack.c.b16 %v1859_v33, %v1858_v32  ;;  %v996_v59 = vpack.c.bf16 %v964_v22, %v964_v22  ;;  %v2242_v23 = vsel %vm2201_vm11, %v2196_v57, %v1619_v38  ;;  %v1334_v16 = vunpack.c.l.b16 %v741_v19  ;;  %v9403_v32 = vld [vmem:[%s9913_s26 + $0x80] sm:$0xff]  ;;  %v966_v38 = vld [vmem:[#allocation2 + $0x111] sm:$0xff] }
 0x25e   : >> { %v1335_v30 = vunpack.c.l.b16 %v742_v12  ;;  %v9395_v33 = vld [vmem:[%s9913_s26 + $0x40] sm:$0xff]  ;;  %2763 = vmatpush.bf16.msra.mxu2 %v9403_v32  ;;  %v998_v45 = vpack.c.bf16 %v966_v38, %v966_v38  ;;  %9506 = vmatpush.bf16.msra.mxu3 %v9403_v32 }
 0x25f   : >> { %1906 = vrot.lane.b32.xlu1 %v10082_v13, %s9577_s23  ;;  %v1749_v50 = vunpack.c.l.b16 %v996_v59  ;;  %2674 = vmatpush.bf16.msrb.mxu1 %v9395_v33  ;;  %v1032_v12 = vld [vmem:[#allocation2 + $0x147] sm:$0xff] }
 0x260   : >> { %v10134_v35 = vpack.c.b16 %v1335_v30, %v1334_v16  ;;  %v1751_v53 = vunpack.c.l.b16 %v998_v45  ;;  %v838_v16 = vld [vmem:[#allocation2 + $0x10f] sm:$0xff] }
 0x261   : >> { %v10114_v9 = vpack.c.b16 %v1749_v50, %v1748_v7  ;;  %8873 = vmatmul.msk.bf16.vlgmr.msra.gmra.mxu2 %vm226_vm5, %v9986_v24  ;;  %v1092_v50 = vld [vmem:[#allocation2 + $0x108] sm:$0xff] }
 0x262   : >> { %v10088_v40 = vpop.permute.xlu0 %1396  ;;  %v10148_v36 = vpack.c.b16 %v1751_v53, %v1750_v49  ;;  %v1124_v11 = vpack.c.bf16 %v1092_v50, %v1092_v50  ;;  %v1095_v53 = vld [vmem:[#allocation2 + $0x130] sm:$0xff] }
 0x263   : >> { %v10090_v41 = vpop.permute.xlu1 %1508  ;;  %1794 = vrot.lane.b32.xlu0 %v10080_v34, %s9575_s20  ;;  %v2164_v0 = vsel %vm226_vm5, %v9945_v39, %v10088_v40 }
 0x264   : >> { %2016 = vrot.lane.b32.xlu2 %v10101_v54, %s9576_s21  ;;  %v10119_v3 = vpop.permute.xlu2 %1622  ;;  %v2198_v4 = vsel %vm2168_vm10, %v2164_v0, %v10090_v41  ;;  %v1972_v17 = vunpack.c.l.b16 %v1124_v11 }
 0x265   : >> { %v2245_v7 = vsel %vm2201_vm11, %v2198_v4, %v10098_v51  ;;  %v967_v51 = vld [vmem:[#allocation2 + $0x129] sm:$0xff] }
 0x266   : >> { %v635_v4 = vld [vmem:[#allocation2 + $0x47] sm:$0xff] }
 0x267   : >> { %1492 = vrot.lane.b32.xlu1 %v10080_v34, %s9577_s23 }
 0x26a   : >> { %v10108_v1 = vpop.permute.xlu0 %1398 }
 0x26b   : >> { %1380 = vrot.lane.b32.xlu0 %v10101_v54, %s9575_s20  ;;  %v10112_v5 = vpop.permute.xlu1 %1510  ;;  %v2167_v33 = vsel %vm226_vm5, %v9965_v46, %v10108_v1  ;;  %v1094_v1 = vld [vmem:[#allocation2 + $0x128] sm:$0xff] }
 0x26c   : >> { %1602 = vrot.lane.b32.xlu2 %v10057_v62, %s9576_s21  ;;  %v1593_v31 = vpop.permute.xlu2 %1592 }
 0x26d   : >> { %2641 = vmatmul.bf16.gmra.mxu1 %v2236_v37  ;;  %v1240_v37 = vunpack.c.l.b16 %v663_v2 }
 0x26f   : >> { %1908 = vrot.lane.b32.xlu1 %v9994_v28, %s9577_s23  ;;  %v1272_v15 = vpack.c.b16 %v1241_v8, %v1240_v37  ;;  %v1093_v37 = vld [vmem:[#allocation2 + $0x110] sm:$0xff] }
 0x270   : >> { %v1125_v41 = vpack.c.bf16 %v1093_v37, %v1093_v37 }
 0x271   : >> { %8874 = vmatmul.msk.bf16.gmra.mxu2 %vm226_vm5, %v10011_v55 }
 0x272   : >> { %v1369_v20 = vpop.permute.xlu0 %1368 }
 0x273   : >> { %1796 = vrot.lane.b32.xlu0 %v10114_v9, %s9575_s20  ;;  %v2122_v28 = vsel %vm226_vm5, %v1272_v15, %v1369_v20  ;;  %v1481_v25 = vpop.permute.xlu1 %1480  ;;  %v968_v20 = vld [vmem:[#allocation2 + $0x131] sm:$0xff] }
 0x274   : >> { %v2170_v26 = vsel %vm2168_vm10, %v2122_v28, %v1481_v25  ;;  %2018 = vrot.lane.b32.xlu2 %v10134_v35, %s9576_s21  ;;  %v10153_v2 = vpop.permute.xlu2 %2008  ;;  %v1000_v19 = vpack.c.bf16 %v968_v20, %v968_v20  ;;  %v1064_v28 = vpack.c.bf16 %v1032_v12, %v1032_v12 }
 0x275   : >> { %v2203_v62 = vsel %vm2201_vm11, %v2170_v26, %v1593_v31  ;;  %v837_v26 = vld [vmem:[#allocation2 + $0x107] sm:$0xff] }
 0x276   : >> { %2586 = vmatmul.bf16.vlgmr.msra.gmra.mxu0 %v2203_v62  ;;  %v1753_v31 = vunpack.c.l.b16 %v1000_v19  ;;  %v869_v32 = vpack.c.bf16 %v837_v26, %v837_v26  ;;  %v870_v62 = vpack.c.bf16 %v838_v16, %v838_v16  ;;  %v1864_v43 = vunpack.c.l.b16 %v1064_v28 }
 0x277   : >> { %1494 = vrot.lane.b32.xlu1 %v10114_v9, %s9577_s23 }
 0x278   : >> { %v1558_v55 = vunpack.c.l.b16 %v869_v32  ;;  %v1559_v45 = vunpack.c.l.b16 %v870_v62 }
 0x27a   : >> { %v10142_v56 = vpop.permute.xlu0 %1784  ;;  %v1583_v48 = vpack.c.b16 %v1559_v45, %v1558_v55 }
 0x27b   : >> { %1382 = vrot.lane.b32.xlu0 %v10134_v35, %s9575_s20  ;;  %v10146_v59 = vpop.permute.xlu1 %1896  ;;  %v2252_v28 = vsel %vm226_vm5, %v9969_v52, %v10142_v56 }
 0x27c   : >> { %1604 = vrot.lane.b32.xlu2 %v10082_v13, %s9576_s21  ;;  %v1595_v15 = vpop.permute.xlu2 %1594  ;;  %v1973_v13 = vunpack.c.l.b16 %v1125_v41  ;;  %v970_v41 = vld [vmem:[#allocation2 + $0x151] sm:$0xff] }
 0x27d   : >> { %2646 = vmatmul.bf16.gmra.mxu1 %v2239_v47  ;;  %v1062_v47 = vpack.c.bf16 %v1030_v61, %v1030_v61 }
 0x27e   : >> { %v10168_v18 = vpack.c.b16 %v1973_v13, %v1972_v17  ;;  %v1034_v17 = vld [vmem:[#allocation2 + $0x167] sm:$0xff]  ;;  %v1035_v13 = vld [vmem:[#allocation2 + $0x16f] sm:$0xff] }
 0x27f   : >> { %v1862_v22 = vunpack.c.l.b16 %v1062_v47  ;;  %v2200_v47 = vsel %vm2168_vm10, %v2167_v33, %v10112_v5  ;;  %v1066_v20 = vpack.c.bf16 %v1034_v17, %v1034_v17 }
 0x280   : >> { %v2248_v46 = vsel %vm2201_vm11, %v2200_v47, %v10119_v3  ;;  %v969_v3 = vld [vmem:[#allocation2 + $0x149] sm:$0xff] }
 0x281   : >> { %v1887_v63 = vpack.c.b16 %v1863_v58, %v1862_v22  ;;  %v1126_v58 = vpack.c.bf16 %v1094_v1, %v1094_v1  ;;  %8875 = vmatmul.msk.bf16.gmra.mxu2 %vm226_vm5, %v10032_v21  ;;  %v1866_v26 = vunpack.c.l.b16 %v1066_v20  ;;  %v2299_v21 = vsel %vm2168_vm10, %v2252_v28, %v10146_v59  ;;  %v1097_v59 = vld [vmem:[#allocation2 + $0x150] sm:$0xff] }
 0x282   : >> { %v1371_v24 = vpop.permute.xlu0 %1370  ;;  %v2331_v56 = vsel %vm2201_vm11, %v2299_v21, %v10153_v2  ;;  %v638_v1 = vld [vmem:[#allocation2 + $0x6f] sm:$0xff] }
 0x283   : >> { %1910 = vrot.lane.b32.xlu1 %v1887_v63, %s9577_s23  ;;  %1798 = vrot.lane.b32.xlu0 %v10148_v36, %s9575_s20  ;;  %v2125_v39 = vsel %vm226_vm5, %v9982_v10, %v1371_v24  ;;  %v1483_v40 = vpop.permute.xlu1 %1482  ;;  %v999_v10 = vpack.c.bf16 %v967_v51, %v967_v51  ;;  %v1127_v63 = vpack.c.bf16 %v1095_v53, %v1095_v53  ;;  %v1974_v5 = vunpack.c.l.b16 %v1126_v58  ;;  %v636_v24 = vld [vmem:[#allocation2 + $0x4f] sm:$0xff] }
 0x284   : >> { %v2172_v8 = vsel %vm2168_vm10, %v2125_v39, %v1483_v40  ;;  %2020 = vrot.lane.b32.xlu2 %v10168_v18, %s9576_s21  ;;  %v10191_v22 = vpop.permute.xlu2 %2010  ;;  %v667_v39 = vpack.c.bf16 %v635_v4, %v635_v4  ;;  %v668_v40 = vpack.c.bf16 %v636_v24, %v636_v24  ;;  %v670_v58 = vpack.c.bf16 %v638_v1, %v638_v1  ;;  %v971_v4 = vld [vmem:[#allocation2 + $0x169] sm:$0xff]  ;;  %v972_v24 = vld [vmem:[#allocation2 + $0x171] sm:$0xff] }
 0x285   : >> { %v2206_v57 = vsel %vm2201_vm11, %v2172_v8, %v1595_v15  ;;  %v1752_v30 = vunpack.c.l.b16 %v999_v10  ;;  %v1975_v0 = vunpack.c.l.b16 %v1127_v63  ;;  %v1001_v15 = vpack.c.bf16 %v969_v3, %v969_v3 }
 0x286   : >> { %2591 = vmatmul.bf16.gmra.mxu0 %v2206_v57  ;;  %v1244_v8 = vunpack.c.l.b16 %v667_v39  ;;  %v1245_v11 = vunpack.c.l.b16 %v668_v40  ;;  %v1002_v57 = vpack.c.bf16 %v970_v41, %v970_v41  ;;  %v1067_v10 = vpack.c.bf16 %v1035_v13, %v1035_v13 }
 0x287   : >> { %v10177_v44 = vpack.c.b16 %v1753_v31, %v1752_v30  ;;  %v10193_v50 = vpack.c.b16 %v1975_v0, %v1974_v5  ;;  %v1754_v12 = vunpack.c.l.b16 %v1001_v15  ;;  %v1247_v0 = vunpack.c.l.b16 %v670_v58  ;;  %v974_v58 = vld [vmem:[#allocation2 + $0x191] sm:$0xff] }
 0x288   : >> { %v1274_v51 = vpack.c.b16 %v1245_v11, %v1244_v8  ;;  %v1867_v16 = vunpack.c.l.b16 %v1067_v10  ;;  %v1003_v39 = vpack.c.bf16 %v971_v4, %v971_v4  ;;  %v1004_v40 = vpack.c.bf16 %v972_v24, %v972_v24  ;;  %v1037_v8 = vld [vmem:[#allocation2 + $0x18f] sm:$0xff]  ;;  %v1038_v4 = vld [vmem:[#allocation2 + $0x1a7] sm:$0xff] }
 0x289   : >> { %v1069_v15 = vpack.c.bf16 %v1037_v8, %v1037_v8  ;;  %v1039_v24 = vld [vmem:[#allocation2 + $0x1af] sm:$0xff] }
 0x28a   : >> { %v10179_v27 = vpop.permute.xlu0 %1786  ;;  %v1889_v31 = vpack.c.b16 %v1867_v16, %v1866_v26  ;;  %v1756_v17 = vunpack.c.l.b16 %v1003_v39  ;;  %v1757_v13 = vunpack.c.l.b16 %v1004_v40  ;;  %v1070_v40 = vpack.c.bf16 %v1038_v4, %v1038_v4 }
 0x28b   : >> { %1800 = vrot.lane.b32.xlu0 %v10177_v44, %s9575_s20  ;;  %v10185_v49 = vpop.permute.xlu1 %1898 }
 0x28c   : >> { %1606 = vrot.lane.b32.xlu2 %v1583_v48, %s9576_s21  ;;  %v1597_v19 = vpop.permute.xlu2 %1596 }
 0x28d   : >> { %2651 = vmatmul.bf16.gmra.mxu1 %v2242_v23  ;;  %v1033_v23 = vld [vmem:[#allocation2 + $0x14f] sm:$0xff] }
 0x28e   : >> { %v1065_v25 = vpack.c.bf16 %v1033_v23, %v1033_v23  ;;  %v1755_v23 = vunpack.c.l.b16 %v1002_v57 }
 0x290   : >> { %v1865_v38 = vunpack.c.l.b16 %v1065_v25  ;;  %v10203_v30 = vpack.c.b16 %v1755_v23, %v1754_v12  ;;  %v1778_v12 = vpack.c.b16 %v1757_v13, %v1756_v17  ;;  %v1870_v17 = vunpack.c.l.b16 %v1070_v40 }
 0x291   : >> { %8876 = vmatmul.msk.bf16.gmra.mxu2 %vm226_vm5, %v10055_v60 }
 0x292   : >> { %v1888_v61 = vpack.c.b16 %v1865_v38, %v1864_v43  ;;  %v1096_v38 = vld [vmem:[#allocation2 + $0x148] sm:$0xff]  ;;  %8882 = vmatmul.msk.bf16.vlgmr.msra.gmra.mxu3 %vm226_vm5, %v1778_v12 }
 0x293   : >> { %v1485_v37 = vpop.permute.xlu1 %1484  ;;  %1802 = vrot.lane.b32.xlu0 %v10203_v30, %s9575_s20  ;;  %v1128_v45 = vpack.c.bf16 %v1096_v38, %v1096_v38 }
 0x294   : >> { %1912 = vrot.lane.b32.xlu1 %v1888_v61, %s9577_s23  ;;  %2022 = vrot.lane.b32.xlu2 %v10193_v50, %s9576_s21  ;;  %v1129_v61 = vpack.c.bf16 %v1097_v59, %v1097_v59  ;;  %v639_v59 = vld [vmem:[#allocation2 + $0x87] sm:$0xff] }
 0x295   : >> { %v1976_v47 = vunpack.c.l.b16 %v1128_v45  ;;  %v640_v45 = vld [vmem:[#allocation2 + $0x8f] sm:$0xff] }
 0x296   : >> { %v1977_v48 = vunpack.c.l.b16 %v1129_v61  ;;  %v671_v61 = vpack.c.bf16 %v639_v59, %v639_v59 }
 0x298   : >> { %v10222_v63 = vpack.c.b16 %v1977_v48, %v1976_v47  ;;  %v672_v47 = vpack.c.bf16 %v640_v45, %v640_v45 }
 0x29a   : >> { %v1249_v1 = vunpack.c.l.b16 %v672_v47  ;;  %v975_v47 = vld [vmem:[#allocation2 + $0x1a9] sm:$0xff] }
 0x29b   : >> { %v10212_v33 = vpop.permute.xlu1 %1900  ;;  %1804 = vrot.lane.b32.xlu0 %v1778_v12, %s9575_s20 }
 0x29c   : >> { %1914 = vrot.lane.b32.xlu1 %v1889_v31, %s9577_s23  ;;  %2024 = vrot.lane.b32.xlu2 %v10222_v63, %s9576_s21  ;;  %v1099_v31 = vld [vmem:[#allocation2 + $0x170] sm:$0xff] }
 0x29d   : >> { %2656 = vmatmul.bf16.gmra.mxu1 %v2245_v7  ;;  %v1373_v7 = vpop.permute.xlu0 %1372 }
 0x29e   : >> { %v2128_v25 = vsel %vm226_vm5, %v1274_v51, %v1373_v7  ;;  %v10220_v55 = vpop.permute.xlu2 %2012  ;;  %v2255_v51 = vsel %vm226_vm5, %v9996_v29, %v10179_v27 }
 0x29f   : >> { %v2174_v32 = vsel %vm2168_vm10, %v2128_v25, %v1485_v37  ;;  %v1036_v37 = vld [vmem:[#allocation2 + $0x187] sm:$0xff]  ;;  %v2301_v60 = vsel %vm2168_vm10, %v2255_v51, %v10185_v49 }
 0x2a0   : >> { %v2209_v43 = vsel %vm2201_vm11, %v2174_v32, %v1597_v19  ;;  %v1068_v41 = vpack.c.bf16 %v1036_v37, %v1036_v37  ;;  %v1869_v19 = vunpack.c.l.b16 %v1069_v15  ;;  %v2334_v26 = vsel %vm2201_vm11, %v2301_v60, %v10191_v22  ;;  %v1098_v49 = vld [vmem:[#allocation2 + $0x168] sm:$0xff]  ;;  %v1101_v60 = vld [vmem:[#allocation2 + $0x190] sm:$0xff] }
 0x2a1   : >> { %2596 = vmatmul.bf16.gmra.mxu0 %v2209_v43  ;;  %v1130_v32 = vpack.c.bf16 %v1098_v49, %v1098_v49  ;;  %v1248_v22 = vunpack.c.l.b16 %v671_v61  ;;  %8877 = vmatmul.msk.bf16.gmra.mxu2 %vm226_vm5, %v10080_v34  ;;  %v1071_v37 = vpack.c.bf16 %v1039_v24, %v1039_v24 }
 0x2a2   : >> { %v1868_v10 = vunpack.c.l.b16 %v1068_v41 }
 0x2a3   : >> { %v1487_v5 = vpop.permute.xlu1 %1486  ;;  %v1978_v43 = vunpack.c.l.b16 %v1130_v32  ;;  %v1276_v39 = vpack.c.b16 %v1249_v1, %v1248_v22  ;;  %v1871_v13 = vunpack.c.l.b16 %v1071_v37  ;;  %v641_v32 = vld [vmem:[#allocation2 + $0xa7] sm:$0xff]  ;;  %v1007_v1 = vpack.c.bf16 %v975_v47, %v975_v47 }
 0x2a4   : >> { %v1890_v23 = vpack.c.b16 %v1869_v19, %v1868_v10 }
 0x2a5   : >> { %v10210_v62 = vpop.permute.xlu0 %1788  ;;  %v1760_v40 = vunpack.c.l.b16 %v1007_v1 }
 0x2a6   : >> { %v1599_v57 = vpop.permute.xlu2 %1598  ;;  %1916 = vrot.lane.b32.xlu1 %v1890_v23, %s9577_s23  ;;  %v2258_v15 = vsel %vm226_vm5, %v10024_v6, %v10210_v62 }
 0x2a7   : >> { %v2303_v34 = vsel %vm2168_vm10, %v2258_v15, %v10212_v33  ;;  %v1100_v33 = vld [vmem:[#allocation2 + $0x188] sm:$0xff] }
 0x2a8   : >> { %v2337_v12 = vsel %vm2201_vm11, %v2303_v34, %v10220_v55 }
 0x2ab   : >> { %v10238_v25 = vpop.permute.xlu1 %1902 }
 0x2ad   : >> { %2661 = vmatmul.bf16.gmra.mxu1 %v2248_v46  ;;  %v637_v46 = vld [vmem:[#allocation2 + $0x67] sm:$0xff]  ;;  %v1375_v7 = vpop.permute.xlu0 %1374 }
 0x2ae   : >> { %v669_v53 = vpack.c.bf16 %v637_v46, %v637_v46  ;;  %v10249_v21 = vpop.permute.xlu2 %2014 }
 0x2b0   : >> { %v1246_v2 = vunpack.c.l.b16 %v669_v53  ;;  %v973_v53 = vld [vmem:[#allocation2 + $0x189] sm:$0xff] }
 0x2b1   : >> { %8878 = vmatmul.msk.bf16.gmra.mxu2 %vm226_vm5, %v10114_v9 }
 0x2b2   : >> { %v1275_v3 = vpack.c.b16 %v1247_v0, %v1246_v2  ;;  %v1005_v2 = vpack.c.bf16 %v973_v53, %v973_v53  ;;  %v1006_v0 = vpack.c.bf16 %v974_v58, %v974_v58  ;;  %v1040_v58 = vld [vmem:[#allocation2 + $0x1c7] sm:$0xff] }
 0x2b3   : >> { %v1072_v4 = vpack.c.bf16 %v1040_v58, %v1040_v58 }
 0x2b4   : >> { %v2131_v20 = vsel %vm226_vm5, %v1275_v3, %v1375_v7  ;;  %v1758_v3 = vunpack.c.l.b16 %v1005_v2  ;;  %v1759_v41 = vunpack.c.l.b16 %v1006_v0 }
 0x2b5   : >> { %v2176_v28 = vsel %vm2168_vm10, %v2131_v20, %v1487_v5  ;;  %v10242_v29 = vpop.permute.xlu0 %1790  ;;  %v1489_v46 = vpop.permute.xlu1 %1488  ;;  %v1891_v20 = vpack.c.b16 %v1871_v13, %v1870_v17 }
 0x2b6   : >> { %v2212_v16 = vsel %vm2201_vm11, %v2176_v28, %v1599_v57  ;;  %v1601_v8 = vpop.permute.xlu2 %1600  ;;  %v1779_v51 = vpack.c.b16 %v1759_v41, %v1758_v3  ;;  %v1872_v41 = vunpack.c.l.b16 %v1072_v4  ;;  %v10314_v4 = vld [vmem:[#allocation3 + $0x4] sm:$0xf] }
 0x2b7   : >> { %2601 = vmatmul.bf16.gmra.mxu0 %v2212_v16  ;;  %1918 = vrot.lane.b32.xlu1 %v1891_v20, %s9577_s23  ;;  %v1133_v16 = vpack.c.bf16 %v1101_v60, %v1101_v60 }
 0x2b8   : >> { %1806 = vrot.lane.b32.xlu0 %v1779_v51, %s9575_s20  ;;  %8883 = vmatmul.msk.bf16.gmra.mxu3 %vm226_vm5, %v1779_v51 }
 0x2ba   : >> { %v10215_v52 = vpop.f32.mrf.mxu1 }
 0x2bd   : >> { %2675 = vmatmul.bf16.vlgmr.msrb.gmra.mxu1 %v2331_v56  ;;  %v1131_v56 = vpack.c.bf16 %v1099_v31, %v1099_v31  ;;  %v1377_v5 = vpop.permute.xlu0 %1376  ;;  %v10267_v19 = vpop.permute.xlu1 %1904  ;;  %v1981_v31 = vunpack.c.l.b16 %v1133_v16  ;;  %v643_v16 = vld [vmem:[#allocation2 + $0xc7] sm:$0xff] }
 0x2be   : >> { %v2134_v57 = vsel %vm226_vm5, %v1276_v39, %v1377_v5  ;;  %v10278_v28 = vpop.permute.xlu2 %2016  ;;  %v1041_v5 = vld [vmem:[#allocation2 + $0x1cf] sm:$0xff] }
 0x2bf   : >> { %v1979_v38 = vunpack.c.l.b16 %v1131_v56  ;;  %v2178_v10 = vsel %vm2168_vm10, %v2134_v57, %v1489_v46  ;;  %v642_v56 = vld [vmem:[#allocation2 + $0xaf] sm:$0xff]  ;;  %v1073_v24 = vpack.c.bf16 %v1041_v5, %v1041_v5 }
 0x2c0   : >> { %v2215_v23 = vsel %vm2201_vm11, %v2178_v10, %v1601_v8  ;;  %v976_v46 = vld [vmem:[#allocation2 + $0x1b1] sm:$0xff]  ;;  %v2261_v8 = vsel %vm226_vm5, %v10047_v42, %v10242_v29 }
 0x2c1   : >> { %v10251_v48 = vpack.c.b16 %v1979_v38, %v1978_v43  ;;  %v673_v43 = vpack.c.bf16 %v641_v32, %v641_v32  ;;  %v674_v38 = vpack.c.bf16 %v642_v56, %v642_v56  ;;  %v1008_v53 = vpack.c.bf16 %v976_v46, %v976_v46  ;;  %v1103_v10 = vld [vmem:[#allocation2 + $0x1b0] sm:$0xff]  ;;  %v1042_v46 = vld [vmem:[#allocation2 + $0x1e7] sm:$0xff]  ;;  %8879 = vmatmul.msk.bf16.gmra.mxu2 %vm226_vm5, %v10148_v36 }
 0x2c2   : >> { %v10228_v11 = vpop.f32.mrf.mxu1  ;;  %v1873_v15 = vunpack.c.l.b16 %v1073_v24  ;;  %v2305_v9 = vsel %vm2168_vm10, %v2261_v8, %v10238_v25  ;;  %v1102_v25 = vld [vmem:[#allocation2 + $0x1a8] sm:$0xff]  ;;  %v1074_v5 = vpack.c.bf16 %v1042_v46, %v1042_v46  ;;  %v12649_v8 = vshrl.u32 %v10314_v4, 16 }
 0x2c3   : >> { %2026 = vrot.lane.b32.xlu2 %v10251_v48, %s9576_s21  ;;  %v1250_v55 = vunpack.c.l.b16 %v673_v43  ;;  %v1251_v61 = vunpack.c.l.b16 %v674_v38  ;;  %v1761_v37 = vunpack.c.l.b16 %v1008_v53  ;;  %v2340_v20 = vsel %vm2201_vm11, %v2305_v9, %v10249_v21  ;;  %v977_v21 = vld [vmem:[#allocation2 + $0x1c9] sm:$0xff] }
 0x2c4   : >> { %v1892_v17 = vpack.c.b16 %v1873_v15, %v1872_v41  ;;  %v10316_v24 = vld [vmem:[#allocation3 + $0x8] sm:$0xf]  ;;  %v12647_v15 = vshll.u32 %v10314_v4, 16 }
 0x2c5   : >> { %v10271_v6 = vpop.permute.xlu0 %1792  ;;  %v1491_v45 = vpop.permute.xlu1 %1490  ;;  %v1277_v0 = vpack.c.b16 %v1251_v61, %v1250_v55  ;;  %v1780_v57 = vpack.c.b16 %v1761_v37, %v1760_v40  ;;  %v1009_v61 = vpack.c.bf16 %v977_v21, %v977_v21  ;;  %v12648_v9 = vshrl.u32 %v10316_v24, 16  ;;  %v1104_v21 = vld [vmem:[#allocation2 + $0x1c8] sm:$0xff] }
 0x2c6   : >> { %v1603_v39 = vpop.permute.xlu2 %1602  ;;  %1920 = vrot.lane.b32.xlu1 %v1892_v17, %s9577_s23 }
 0x2c7   : >> { %2606 = vmatmul.bf16.gmra.mxu0 %v2215_v23  ;;  %1808 = vrot.lane.b32.xlu0 %v1780_v57, %s9575_s20  ;;  %v1134_v23 = vpack.c.bf16 %v1102_v25, %v1102_v25  ;;  %v1762_v40 = vunpack.c.l.b16 %v1009_v61  ;;  %v3397_v25 = vrot.slane %v12647_v15, 5  ;;  %v1136_v61 = vpack.c.bf16 %v1104_v21, %v1104_v21 }
 0x2c8   : >> { %8884 = vmatmul.msk.bf16.gmra.mxu3 %vm226_vm5, %v1780_v57 }
 0x2c9   : >> { %v1982_v60 = vunpack.c.l.b16 %v1134_v23 }
 0x2ca   : >> { %v10244_v27 = vpop.f32.mrf.mxu1 }
 0x2cd   : >> { %2680 = vmatmul.bf16.gmra.mxu1 %v2334_v26  ;;  %v1132_v26 = vpack.c.bf16 %v1100_v33, %v1100_v33  ;;  %v1379_v22 = vpop.permute.xlu0 %1378  ;;  %v1135_v33 = vpack.c.bf16 %v1103_v10, %v1103_v10 }
 0x2ce   : >> { %v2137_v3 = vsel %vm226_vm5, %v1277_v0, %v1379_v22  ;;  %v1043_v22 = vld [vmem:[#allocation2 + $0x1ef] sm:$0xff] }
 0x2cf   : >> { %v1980_v49 = vunpack.c.l.b16 %v1132_v26  ;;  %v2180_v13 = vsel %vm2168_vm10, %v2137_v3, %v1491_v45  ;;  %v1983_v26 = vunpack.c.l.b16 %v1135_v33  ;;  %v978_v45 = vld [vmem:[#allocation2 + $0x1d1] sm:$0xff]  ;;  %v1075_v0 = vpack.c.bf16 %v1043_v22, %v1043_v22 }
 0x2d0   : >> { %v2218_v34 = vsel %vm2201_vm11, %v2180_v13, %v1603_v39  ;;  %v1010_v47 = vpack.c.bf16 %v978_v45, %v978_v45  ;;  %v2264_v39 = vsel %vm226_vm5, %v10072_v14, %v10271_v6  ;;  %v1874_v3 = vunpack.c.l.b16 %v1074_v5  ;;  %v3377_v6 = vld [vmem:[#allocation3 + $0xc] sm:$0x1]  ;;  %v1105_v45 = vld [vmem:[#allocation2 + $0x1d0] sm:$0xff] }
 0x2d1   : >> { %v10280_v59 = vpack.c.b16 %v1981_v31, %v1980_v49  ;;  %v10298_v51 = vpop.permute.xlu1 %1906  ;;  %v644_v49 = vld [vmem:[#allocation2 + $0xcf] sm:$0xff]  ;;  %v675_v31 = vpack.c.bf16 %v643_v16, %v643_v16  ;;  %v2003_v56 = vpack.c.b16 %v1983_v26, %v1982_v60  ;;  %v1875_v41 = vunpack.c.l.b16 %v1075_v0  ;;  %v645_v0 = vld [vmem:[#allocation2 + $0xe7] sm:$0xff]  ;;  %8880 = vmatmul.msk.bf16.gmra.mxu2 %vm226_vm5, %v10177_v44 }
 0x2d2   : >> { %v10257_v7 = vpop.f32.mrf.mxu1  ;;  %v676_v32 = vpack.c.bf16 %v644_v49, %v644_v49  ;;  %v1763_v37 = vunpack.c.l.b16 %v1010_v47  ;;  %v12644_v13 = vshll.u32 %v10316_v24, 16  ;;  %v3402_v33 = vrot.slane %v12648_v9, 4 }
 0x2d3   : >> { %2028 = vrot.lane.b32.xlu2 %v10280_v59, %s9576_s21  ;;  %v1252_v43 = vunpack.c.l.b16 %v675_v31  ;;  %v1893_v14 = vpack.c.b16 %v1875_v41, %v1874_v3  ;;  %v3406_v60 = vshll.u32 %v3377_v6, 16  ;;  %v1137_v22 = vpack.c.bf16 %v1105_v45, %v1105_v45  ;;  %v979_v6 = vld [vmem:[#allocation2 + $0x1e9] sm:$0xff] }
 0x2d4   : >> { %v1253_v38 = vunpack.c.l.b16 %v676_v32  ;;  %v1781_v17 = vpack.c.b16 %v1763_v37, %v1762_v40  ;;  %v3400_v23 = vrot.slane %v12644_v13, 5  ;;  %v1984_v5 = vunpack.c.l.b16 %v1136_v61 }
 0x2d5   : >> { %v10300_v42 = vpop.permute.xlu0 %1794  ;;  %1922 = vrot.lane.b32.xlu1 %v1893_v14, %s9577_s23  ;;  %v3408_v49 = vrot.slane %v3406_v60, 5  ;;  %v1985_v37 = vunpack.c.l.b16 %v1137_v22 }
 0x2d6   : >> { %v1278_v53 = vpack.c.b16 %v1253_v38, %v1252_v43  ;;  %1810 = vrot.lane.b32.xlu0 %v1781_v17, %s9575_s20  ;;  %v3403_v16 = vor.u32 %v3402_v33, %v3400_v23  ;;  %v1045_v33 = vld [vmem:[#allocation2 + $0x20f] sm:$0xff]  ;;  %v2267_v21 = vsel %vm226_vm5, %v10101_v54, %v10300_v42 }
 0x2d7   : >> { %2611 = vmatmul.bf16.gmra.mxu0 %v2218_v34  ;;  %v3396_v34 = vrot.slane %v12649_v8, 4 }
 0x2d8   : >> { %8885 = vmatmul.msk.bf16.gmra.mxu3 %vm226_vm5, %v1781_v17  ;;  %v2004_v17 = vpack.c.b16 %v1985_v37, %v1984_v5 }
 0x2d9   : >> { %v1493_v58 = vpop.permute.xlu1 %1492 }
 0x2da   : >> { %v10273_v62 = vpop.f32.mrf.mxu1 }
 0x2db   : >> { %2030 = vrot.lane.b32.xlu2 %v2003_v56, %s9576_s21 }
 0x2dd   : >> { %2685 = vmatmul.bf16.gmra.mxu1 %v2337_v12  ;;  %v10307_v12 = vpop.permute.xlu2 %2018  ;;  %v1381_v55 = vpop.permute.xlu0 %1380 }
 0x2de   : >> { %v2140_v36 = vsel %vm226_vm5, %v1278_v53, %v1381_v55  ;;  %v3404_v55 = vrot.slane %v3403_v16, 4 }
 0x2df   : >> { %v2182_v10 = vsel %vm2168_vm10, %v2140_v36, %v1493_v58  ;;  %v677_v36 = vpack.c.bf16 %v645_v0, %v645_v0  ;;  %v1106_v0 = vld [vmem:[#allocation2 + $0x1e8] sm:$0xff] }
 0x2e0   : >> { %v3409_v53 = vsel %vm10347_vm14, %v3404_v55, %v3408_v49  ;;  %v1077_v49 = vpack.c.bf16 %v1045_v33, %v1045_v33 }
 0x2e1   : >> { %v10351_v47 = vpop.permute.xlu1 %1908  ;;  %v5062_v40 = vunpack.c.l.b16 %v3409_v53  ;;  %8881 = vmatmul.msk.bf16.gmra.mxu2 %vm226_vm5, %v10203_v30 }
 0x2e2   : >> { %v10286_v2 = vpop.f32.mrf.mxu1  ;;  %v1877_v44 = vunpack.c.l.b16 %v1077_v49 }
 0x2e3   : >> { %2032 = vrot.lane.b32.xlu2 %v2004_v17, %s9576_s21 }
 0x2e5   : >> { %v1605_v57 = vpop.permute.xlu2 %1604  ;;  %v10340_v26 = vpop.permute.xlu0 %1796 }
 0x2e6   : >> { %v2221_v56 = vsel %vm2201_vm11, %v2182_v10, %v1605_v57  ;;  %v2270_v17 = vsel %vm226_vm5, %v10134_v35, %v10340_v26 }
 0x2e7   : >> { %2616 = vmatmul.bf16.gmra.mxu0 %v2221_v56 }
 0x2ea   : >> { %v10302_v29 = vpop.f32.mrf.mxu1 }
 0x2ed   : >> { %2690 = vmatmul.bf16.gmra.mxu1 %v2340_v20  ;;  %v2307_v20 = vsel %vm2168_vm10, %v2264_v39, %v10267_v19  ;;  %v3398_v19 = vor.u32 %v3397_v25, %v3396_v34  ;;  %v646_v39 = vld [vmem:[#allocation2 + $0xef] sm:$0xff]  ;;  %v2021_v41 = vpop.permute.xlu2 %2020  ;;  %v1011_v25 = vpack.c.bf16 %v979_v6, %v979_v6 }
 0x2ee   : >> { %v2343_v32 = vsel %vm2201_vm11, %v2307_v20, %v10278_v28  ;;  %v9405_v28 = vld [vmem:[#allocation3 + $0x4] sm:$0xff]  ;;  %v678_v3 = vpack.c.bf16 %v646_v39, %v646_v39  ;;  %v1254_v20 = vunpack.c.l.b16 %v677_v36  ;;  %v980_v34 = vld [vmem:[#allocation2 + $0x1f1] sm:$0xff] }
 0x2ef   : >> { %v3399_v38 = vrot.slane %v3398_v19, 4  ;;  %5029 = vrot.lane.b32.xlu0 %v9405_v28, %s9575_s20  ;;  %v1012_v10 = vpack.c.bf16 %v980_v34, %v980_v34  ;;  %v1764_v56 = vunpack.c.l.b16 %v1011_v25  ;;  %v2309_v28 = vsel %vm2168_vm10, %v2267_v21, %v10298_v51  ;;  %v1107_v39 = vld [vmem:[#allocation2 + $0x1f0] sm:$0xff]  ;;  %v1108_v34 = vld [vmem:[#allocation2 + $0x208] sm:$0xff] }
 0x2f0   : >> { %v1255_v14 = vunpack.c.l.b16 %v678_v3  ;;  %v2346_v54 = vsel %vm2201_vm11, %v2309_v28, %v10307_v12  ;;  %v1139_v37 = vpack.c.bf16 %v1107_v39, %v1107_v39  ;;  %v1109_v25 = vld [vmem:[#allocation2 + $0x210] sm:$0xff] }
 0x2f1   : >> { %v3401_v46 = vsel %vm10347_vm14, %v3399_v38, %v3400_v23  ;;  %v1044_v23 = vld [vmem:[#allocation2 + $0x207] sm:$0xff]  ;;  %v1765_v38 = vunpack.c.l.b16 %v1012_v10  ;;  %v1140_v10 = vpack.c.bf16 %v1108_v34, %v1108_v34 }
 0x2f2   : >> { %v10312_v1 = vpop.f32.mrf.mxu1  ;;  %v5061_v58 = vunpack.c.l.b16 %v3401_v46  ;;  %v1279_v19 = vpack.c.b16 %v1255_v14, %v1254_v20  ;;  %v1076_v16 = vpack.c.bf16 %v1044_v23, %v1044_v23  ;;  %v1495_v46 = vpop.permute.xlu1 %1494  ;;  %v1987_v36 = vunpack.c.l.b16 %v1139_v37 }
 0x2f3   : >> { %v1782_v61 = vpack.c.b16 %v1765_v38, %v1764_v56  ;;  %v2587_v12 = vpop.f32.mrf.mxu0  ;;  %v2311_v20 = vsel %vm2168_vm10, %v2270_v17, %v10351_v47  ;;  %v1141_v23 = vpack.c.bf16 %v1109_v25, %v1109_v25  ;;  %v1988_v30 = vunpack.c.l.b16 %v1140_v10 }
 0x2f4   : >> { %v5093_v57 = vpack.c.b16 %v5062_v40, %v5061_v58  ;;  %v1876_v55 = vunpack.c.l.b16 %v1076_v16  ;;  %v1138_v40 = vpack.c.bf16 %v1106_v0, %v1106_v0  ;;  %v2349_v6 = vsel %vm2201_vm11, %v2311_v20, %v2021_v41 }
 0x2f5   : >> { %v1607_v58 = vpop.permute.xlu2 %1606 }
 0x2f6   : >> { %5109 = vrot.lane.b32.xlu1 %v5093_v57, %s9577_s23  ;;  %v1894_v22 = vpack.c.b16 %v1877_v44, %v1876_v55  ;;  %v1986_v51 = vunpack.c.l.b16 %v1138_v40 }
 0x2f7   : >> { %1812 = vrot.lane.b32.xlu0 %v1782_v61, %s9575_s20 }
 0x2f8   : >> { %v2005_v3 = vpack.c.b16 %v1987_v36, %v1986_v51 }
 0x2fa   : >> { %v10342_v31 = vpop.f32.mrf.mxu1  ;;  %2034 = vrot.lane.b32.xlu2 %v2005_v3, %s9576_s21  ;;  %v1911_v47 = vpop.permute.xlu1 %1910 }
 0x2fb   : >> { %v2589_v33 = vpop.f32.mrf.mxu0 }
 0x2fd   : >> { %2695 = vmatmul.bf16.gmra.mxu1 %v2343_v32  ;;  %v1383_v32 = vpop.permute.xlu0 %1382  ;;  %v2023_v56 = vpop.permute.xlu2 %2022 }
 0x2fe   : >> { %v2143_v45 = vsel %vm226_vm5, %v1279_v19, %v1383_v32  ;;  %1924 = vrot.lane.b32.xlu1 %v1894_v22, %s9577_s23  ;;  %v1989_v19 = vunpack.c.l.b16 %v1141_v23 }
 0x2ff   : >> { %v2184_v53 = vsel %vm2168_vm10, %v2143_v45, %v1495_v46  ;;  %v2765_v45 = vpop.f32.mrf.mxu2 }
 0x300   : >> { %v2224_v42 = vsel %vm2201_vm11, %v2184_v53, %v1607_v58  ;;  %v2006_v16 = vpack.c.b16 %v1989_v19, %v1988_v30  ;;  %v10407_v53 = vld [vmem:[%s9980_s30] ss:$0 sm:$0xff] }
 0x301   : >> { %2621 = vmatmul.bf16.gmra.mxu0 %v2224_v42  ;;  %v2588_v0 = vadd.f32 %v10407_v53, %v2587_v12  ;;  %v10420_v34 = vadd.f32 %v10407_v53, %v10228_v11  ;;  %v10424_v12 = vadd.f32 %v10407_v53, %v10244_v27  ;;  %v10428_v25 = vadd.f32 %v10407_v53, %v10257_v7 }
 0x302   : >> { %v10360_v60 = vpop.f32.mrf.mxu1  ;;  %2036 = vrot.lane.b32.xlu2 %v2006_v16, %s9576_s21  ;;  %v10432_v10 = vadd.f32 %v10407_v53, %v10273_v62  ;;  %v10436_v30 = vadd.f32 %v10407_v53, %v10286_v2  ;;  %v2590_v11 = vadd.f32 %v10407_v53, %v2589_v33  ;;  %v4020_v16 = vld [vmem:[#allocation3 + $0x1c] sm:$0x1]  ;;  %v10443_v7 = vadd.f32 %v10407_v53, %v10302_v29 }
 0x303   : >> { %v10396_v41 = vpop.f32.mrf.mxu0  ;;  %v10447_v62 = vadd.f32 %v10407_v53, %v10312_v1  ;;  %v10451_v2 = vadd.f32 %v10407_v53, %v10342_v31  ;;  %v981_v31 = vld [vmem:[#allocation2 + $0x209] sm:$0xff] }
 0x305   : >> { %v1799_v49 = vpop.permute.xlu0 %1798  ;;  %v2025_v28 = vpop.permute.xlu2 %2024 }
 0x306   : >> { %v2273_v26 = vsel %vm226_vm5, %v10168_v18, %v1799_v49  ;;  %v1913_v46 = vpop.permute.xlu1 %1912  ;;  %v3378_v49 = vld [vmem:[#allocation3 + $0x1c] sm:$0x1] }
 0x307   : >> { %v2313_v32 = vsel %vm2168_vm10, %v2273_v26, %v1911_v47  ;;  %v2767_v22 = vpop.f32.mrf.mxu2 }
 0x308   : >> { %v2352_v21 = vsel %vm2201_vm11, %v2313_v32, %v2023_v56  ;;  %v10457_v32 = vadd.f32 %v10407_v53, %v10360_v60 }
 0x30a   : >> { %v10372_v5 = vpop.f32.mrf.mxu1 }
 0x30b   : >> { %v2594_v44 = vpop.f32.mrf.mxu0  ;;  %v10461_v29 = vadd.f32 %v10407_v53, %v10372_v5 }
 0x30d   : >> { %2700 = vmatmul.bf16.gmra.mxu1 %v2346_v54  ;;  %v1801_v55 = vpop.permute.xlu0 %1800 }
 0x30e   : >> { %v2276_v18 = vsel %vm226_vm5, %v10193_v50, %v1801_v55  ;;  %v1915_v37 = vpop.permute.xlu1 %1914  ;;  %v10416_v50 = vadd.f32 %v10407_v53, %v10215_v52  ;;  %v3620_v52 = vld [vmem:[#allocation3 + $0x10] sm:$0x8]  ;;  %v4046_v55 = vshll.u32 %v4020_v16, 16 }
 0x30f   : >> { %v2315_v58 = vsel %vm2168_vm10, %v2276_v18, %v1913_v46  ;;  %v10412_v17 = vpop.f32.mrf.mxu2  ;;  %v3669_v56 = vshrl.u32 %v3620_v52, 16  ;;  %v3420_v46 = vshll.u32 %v3378_v49, 16  ;;  %v1110_v52 = vld [vmem:[#allocation2 + $0x228] sm:$0xff] }
 0x310   : >> { %v2355_v40 = vsel %vm2201_vm11, %v2315_v58, %v2025_v28  ;;  %v4661_v49 = vld [vmem:[#allocation3 + $0x2c] sm:$0x1] }
 0x312   : >> { %v10381_v57 = vpop.f32.mrf.mxu1 }
 0x315   : >> { %v1803_v54 = vpop.permute.xlu0 %1802 }
 0x316   : >> { %v2279_v27 = vsel %vm226_vm5, %v10222_v63, %v1803_v54  ;;  %v4261_v63 = vld [vmem:[#allocation3 + $0x20] sm:$0x8]  ;;  %v2593_v54 = vadd.f32 %v10407_v53, %v10396_v41  ;;  %v10490_v41 = vrot.slane %v4046_v55, 5 }
 0x317   : >> { %v4310_v58 = vshrl.u32 %v4261_v63, 16 }
 0x318   : >> { %v1917_v47 = vpop.permute.xlu1 %1916 }
 0x319   : >> { %v10498_v16 = vrot.slane %v4310_v58, 11 }
 0x31a   : >> { %v10388_v14 = vpop.f32.mrf.mxu1 }
 0x31b   : >> { %v10471_v60 = vadd.f32 %v10407_v53, %v10388_v14  ;;  %v10480_v14 = vrot.slane %v3669_v56, 11 }
 0x31d   : >> { %2705 = vmatmul.bf16.gmra.mxu1 %v2349_v6  ;;  %v2027_v3 = vpop.permute.xlu2 %2026  ;;  %v1805_v6 = vpop.permute.xlu0 %1804 }
 0x31e   : >> { %v2597_v42 = vpop.f32.mrf.mxu0  ;;  %v2282_v33 = vsel %vm226_vm5, %v10251_v48, %v1805_v6  ;;  %v2317_v48 = vsel %vm2168_vm10, %v2279_v27, %v1915_v37  ;;  %v9470_v6 = vld [vmem:[%s9913_s26 + $0x118] sm:$0xff] }
 0x31f   : >> { %v2319_v18 = vsel %vm2168_vm10, %v2282_v33, %v1917_v47  ;;  %6261 = vmatpush.bf16.msrb.mxu0 %v9470_v6 }
 0x322   : >> { %v10392_v35 = vpop.f32.mrf.mxu1 }
 0x326   : >> { %v2599_v23 = vpop.f32.mrf.mxu0 }
 0x329   : >> { %v1919_v58 = vpop.permute.xlu1 %1918 }
 0x32a   : >> { %v10399_v38 = vpop.f32.mrf.mxu1 }
 0x32b   : >> { %12693 = vst [vmem:[#allocation4_spill] sm:$0xff] %v10399_v38 }
 0x32d   : >> { %2710 = vmatmul.bf16.gmra.mxu1 %v2352_v21  ;;  %v982_v21 = vld [vmem:[#allocation2 + $0x211] sm:$0xff]  ;;  %v2029_v28 = vpop.permute.xlu2 %2028 }
 0x332   : >> { %v10402_v61 = vpop.f32.mrf.mxu1 }
 0x333   : >> { %12694 = vst [vmem:[#allocation5_spill] sm:$0xff] %v10402_v61  ;;  %v10570_v61 = vld [vmem:[#allocation2 + $0x1a8] sm:$0xff] }
 0x334   : >> { %v2602_v27 = vpop.f32.mrf.mxu0 }
 0x33a   : >> { %v2676_v39 = vpop.f32.mrf.mxu1 }
 0x33b   : >> { %v2677_v51 = vadd.f32 %v2676_v39, %v2588_v0  ;;  %v1013_v0 = vpack.c.bf16 %v981_v31, %v981_v31  ;;  %v1014_v39 = vpack.c.bf16 %v982_v21, %v982_v21  ;;  %v1807_v31 = vpop.permute.xlu0 %1806  ;;  %v1142_v21 = vpack.c.bf16 %v1110_v52, %v1110_v52 }
 0x33d   : >> { %v2766_v36 = vadd.f32 %v2765_v45, %v2677_v51  ;;  %2715 = vmatmul.bf16.gmra.mxu1 %v2355_v40  ;;  %v10466_v45 = vadd.f32 %v10407_v53, %v10381_v57  ;;  %v10477_v57 = vadd.f32 %v10407_v53, %v2594_v44  ;;  %v3623_v40 = vld [vmem:[#allocation3 + $0x20] sm:$0x8]  ;;  %v2358_v51 = vsel %vm2201_vm11, %v2317_v48, %v2027_v3 }
 0x33e   : >> { %v10492_v44 = vrot.slane %v3420_v46, 5  ;;  %v10496_v3 = vadd.f32 %v10407_v53, %v2599_v23  ;;  %v1767_v56 = vunpack.c.l.b16 %v1014_v39 }
 0x33f   : >> { %v2845_v20 = vmax.f32 %v2766_v36, 0.0  ;;  %v10485_v36 = vadd.f32 %v10407_v53, %v2597_v42  ;;  %v4021_v42 = vld [vmem:[#allocation3 + $0x2c] sm:$0x1] }
 0x340   : >> { %v4060_v39 = vshll.u32 %v4021_v42, 16 }
 0x341   : >> { %v2877_v19 = vpack.c.bf16 %v2845_v20, %v2845_v20  ;;  %v10488_v20 = vsel %vm2201_vm11, %v2319_v18, %v2029_v28  ;;  %v2285_v28 = vsel %vm226_vm5, %v10280_v59, %v1807_v31  ;;  %v2031_v31 = vpop.permute.xlu2 %2030 }
 0x342   : >> { %v2678_v26 = vpop.f32.mrf.mxu1 }
 0x343   : >> { %2910 = vst.msk [vmem:[#allocation3 + $0x14] sm:$0xf] %vm273_vm7, %v2877_v19  ;;  %v2679_v1 = vadd.f32 %v2678_v26, %v2590_v11  ;;  %v1111_v11 = vld [vmem:[#allocation2 + $0x230] sm:$0xff]  ;;  %v3691_v26 = vshrl.u32 %v3623_v40, 16 }
 0x344   : >> { %v1143_v48 = vpack.c.bf16 %v1111_v11, %v1111_v11  ;;  %v9469_v40 = vld [vmem:[%s9913_s26 + $0x110] sm:$0xff]  ;;  %v2954_v11 = vld [vmem:[#allocation2 + $0xe8] sm:$0xff] }
 0x345   : >> { %v2768_v5 = vadd.f32 %v2767_v22, %v2679_v1  ;;  %v10482_v22 = vpop.f32.mrf.mxu2  ;;  %v1766_v1 = vunpack.c.l.b16 %v1013_v0  ;;  %v4687_v0 = vshll.u32 %v4661_v49, 16  ;;  %6262 = vmatpush.bf16.msrb.mxu0 %v9469_v40  ;;  %v10521_v49 = vunpack.c.l.b16 %v1142_v21  ;;  %v2604_v40 = vpop.f32.mrf.mxu0 }
 0x347   : >> { %v2846_v37 = vmax.f32 %v2768_v5, 0.0  ;;  %v10529_v13 = vpack.c.b16 %v1767_v56, %v1766_v1  ;;  %v10544_v56 = vadd.f32 %v10407_v53, %v2602_v27 }
 0x349   : >> { %v2878_v19 = vpack.c.bf16 %v2846_v37, %v2846_v37 }
 0x34a   : >> { %v2681_v33 = vpop.f32.mrf.mxu1  ;;  %v3621_v47 = vld [vmem:[#allocation3 + $0x14] sm:$0xf] }
 0x34b   : >> { %v10500_v63 = vld [vmem:[#allocation3 + $0x14] sm:$0xf]  ;;  %2911 = vst.msk [vmem:[#allocation3 + $0x18] sm:$0xf] %vm273_vm7, %v2878_v19  ;;  %v2682_v23 = vadd.f32 %v2681_v33, %v2593_v54  ;;  %v3674_v55 = vshrl.u32 %v3621_v47, 16  ;;  %v3677_v46 = vshll.u32 %v3621_v47, 16  ;;  %v2321_v47 = vsel %vm2168_vm10, %v2285_v28, %v1919_v58 }
 0x34c   : >> { %v12645_v5 = vshrl.u32 %v10500_v63, 16  ;;  %v12646_v18 = vshll.u32 %v10500_v63, 16 }
 0x34d   : >> { %v2771_v37 = vadd.f32 %v10412_v17, %v2682_v23  ;;  %2720 = vmatmul.bf16.gmra.mxu1 %v2358_v51  ;;  %v10509_v6 = vrot.slane %v3674_v55, 7  ;;  %v4036_v52 = vrot.slane %v3674_v55, 4  ;;  %v4037_v54 = vrot.slane %v3677_v46, 5  ;;  %v10527_v23 = vpop.f32.mrf.mxu2 }
 0x34e   : >> { %v3410_v59 = vrot.slane %v12645_v5, 4  ;;  %v3411_v19 = vrot.slane %v12646_v18, 5  ;;  %v10523_v17 = vunpack.c.l.b16 %v1143_v48  ;;  %v10531_v5 = vrot.slane %v4687_v0, 5 }
 0x34f   : >> { %v2847_v51 = vmax.f32 %v2771_v37, 0.0  ;;  %v3679_v42 = vor.u32 %v3677_v46, %v10509_v6  ;;  %v4038_v33 = vor.u32 %v4037_v54, %v4036_v52  ;;  %v10533_v18 = vrot.slane %v3691_v26, 11 }
 0x350   : >> { %v3412_v55 = vor.u32 %v3411_v19, %v3410_v59  ;;  %v3681_v46 = vrot.slane %v10509_v6, 4  ;;  %v10539_v37 = vrot.slane %v4060_v39, 5  ;;  %v10547_v26 = vsel %vm2201_vm11, %v2321_v47, %v2031_v31  ;;  %v1047_v47 = vld [vmem:[#allocation2 + $0x22f] sm:$0xff] }
 0x351   : >> { %v2879_v21 = vpack.c.bf16 %v2847_v51, %v2847_v51  ;;  %v3680_v48 = vsel %vm10513_vm0, %v10480_v14, %v3679_v42  ;;  %v4039_v54 = vrot.slane %v4038_v33, 4  ;;  %v10557_v42 = vadd.f32 %v10407_v53, %v2604_v40  ;;  %v1046_v33 = vld [vmem:[#allocation2 + $0x227] sm:$0xff] }
 0x352   : >> { %v2683_v28 = vpop.f32.mrf.mxu1  ;;  %v9406_v58 = vld [vmem:[#allocation3 + $0x14] sm:$0xff]  ;;  %v5141_v19 = vunpack.c.l.b16 %v3680_v48  ;;  %v3413_v51 = vrot.slane %v3412_v55, 4  ;;  %v1078_v48 = vpack.c.bf16 %v1046_v33, %v1046_v33 }
 0x353   : >> { %v3622_v52 = vld [vmem:[#allocation3 + $0x18] sm:$0xf]  ;;  %2912 = vst.msk [vmem:[#allocation3 + $0x24] sm:$0xf] %vm273_vm7, %v2879_v21  ;;  %v2684_v0 = vadd.f32 %v2683_v28, %v10477_v57  ;;  %5031 = vrot.lane.b32.xlu0 %v9406_v58, %s9575_s20 }
 0x354   : >> { %v10541_v1 = vld [vmem:[#allocation3 + $0x18] sm:$0xf]  ;;  %v3683_v39 = vshrl.u32 %v3622_v52, 16  ;;  %v3686_v6 = vshll.u32 %v3622_v52, 16  ;;  %v1079_v52 = vpack.c.bf16 %v1047_v47, %v1047_v47 }
 0x355   : >> { %v12651_v59 = vshrl.u32 %v10541_v1, 16  ;;  %v12650_v27 = vshll.u32 %v10541_v1, 16  ;;  %v2773_v31 = vadd.f32 %v10482_v22, %v2684_v0 }
 0x356   : >> { %v3685_v21 = vrot.slane %v3683_v39, 7  ;;  %v4040_v15 = vrot.slane %v3686_v6, 5  ;;  %v4042_v57 = vrot.slane %v3683_v39, 4  ;;  %v10568_v39 = vunpack.c.l.b16 %v1078_v48 }
 0x357   : >> { %v3414_v28 = vrot.slane %v12650_v27, 5  ;;  %v3416_v58 = vrot.slane %v12651_v59, 4  ;;  %v2848_v9 = vmax.f32 %v2773_v31, 0.0 }
 0x358   : >> { %v3688_v55 = vor.u32 %v3686_v6, %v3685_v21  ;;  %v4041_v40 = vsel %vm10347_vm14, %v4039_v54, %v4040_v15  ;;  %v4043_v8 = vor.u32 %v4042_v57, %v4040_v15  ;;  %v2777_v54 = vpop.f32.mrf.mxu2 }
 0x359   : >> { %v5301_v14 = vunpack.c.l.b16 %v4041_v40  ;;  %v3415_v22 = vsel %vm10347_vm14, %v3413_v51, %v3414_v28  ;;  %v3417_v0 = vor.u32 %v3416_v58, %v3414_v28  ;;  %v2880_v27 = vpack.c.bf16 %v2848_v9, %v2848_v9 }
 0x35a   : >> { %v3689_v33 = vsel %vm10513_vm0, %v3681_v46, %v3688_v55  ;;  %v4044_v47 = vrot.slane %v4043_v8, 4  ;;  %v5063_v31 = vunpack.c.l.b16 %v3415_v22  ;;  %v2686_v6 = vpop.f32.mrf.mxu1  ;;  %v4262_v15 = vld [vmem:[#allocation3 + $0x24] sm:$0xf]  ;;  %v10574_v40 = vunpack.c.l.b16 %v1079_v52 }
 0x35b   : >> { %v5142_v21 = vunpack.c.l.b16 %v3689_v33  ;;  %v3418_v59 = vrot.slane %v3417_v0, 4  ;;  %v3624_v57 = vld [vmem:[#allocation3 + $0x24] sm:$0xf]  ;;  %2913 = vst.msk [vmem:[#allocation3 + $0x28] sm:$0xf] %vm273_vm7, %v2880_v27  ;;  %v2687_v9 = vadd.f32 %v2686_v6, %v10485_v36  ;;  %v4315_v46 = vshrl.u32 %v4262_v15, 16  ;;  %v2607_v33 = vpop.f32.mrf.mxu0 }
 0x35c   : >> { %v4049_v8 = vsel %vm10347_vm14, %v4044_v47, %v10490_v41  ;;  %v4318_v28 = vshll.u32 %v4262_v15, 16  ;;  %v3696_v55 = vshrl.u32 %v3624_v57, 16 }
 0x35d   : >> { %v5173_v58 = vpack.c.b16 %v5142_v21, %v5141_v19  ;;  %v5302_v48 = vunpack.c.l.b16 %v4049_v8  ;;  %v3423_v52 = vsel %vm10347_vm14, %v3418_v59, %v10492_v44  ;;  %v2776_v22 = vadd.f32 %v10527_v23, %v2687_v9  ;;  %2725 = vmatmul.bf16.gmra.mxu1 %v10488_v20  ;;  %v10591_v21 = vld [vmem:[#allocation2 + $0x1b0] sm:$0xff] }
 0x35e   : >> { %v5064_v27 = vunpack.c.l.b16 %v3423_v52  ;;  %v10588_v0 = vrot.slane %v4315_v46, 7  ;;  %v4677_v36 = vrot.slane %v4315_v46, 4  ;;  %v4678_v47 = vrot.slane %v4318_v28, 5 }
 0x35f   : >> { %5189 = vrot.lane.b32.xlu2 %v5173_v58, %s9576_s21  ;;  %v5333_v41 = vpack.c.b16 %v5302_v48, %v5301_v14  ;;  %v3699_v19 = vshll.u32 %v3624_v57, 16  ;;  %v4050_v6 = vrot.slane %v3696_v55, 4  ;;  %v2849_v15 = vmax.f32 %v2776_v22, 0.0 }
 0x360   : >> { %v5094_v44 = vpack.c.b16 %v5064_v27, %v5063_v31  ;;  %v4320_v59 = vor.u32 %v4318_v28, %v10588_v0  ;;  %v4322_v23 = vrot.slane %v10588_v0, 4  ;;  %v4679_v20 = vor.u32 %v4678_v47, %v4677_v36 }
 0x361   : >> { %5349 = vrot.lane.b32.xlu0 %v5333_v41, %s9575_s20  ;;  %v4051_v9 = vrot.slane %v3699_v19, 5  ;;  %v3698_v8 = vrot.slane %v3696_v55, 7  ;;  %v2881_v14 = vpack.c.bf16 %v2849_v15, %v2849_v15  ;;  %v10603_v31 = vadd.f32 %v10407_v53, %v2607_v33  ;;  %v2780_v33 = vpop.f32.mrf.mxu2 }
 0x362   : >> { %5111 = vrot.lane.b32.xlu1 %v5094_v44, %s9577_s23  ;;  %v4321_v57 = vsel %vm10513_vm0, %v10498_v16, %v4320_v59  ;;  %v944_v28 = vpack.c.bf16 %v10591_v21, %v10591_v21  ;;  %v2688_v58 = vpop.f32.mrf.mxu1  ;;  %v4263_v48 = vld [vmem:[#allocation3 + $0x28] sm:$0xf]  ;;  %v4680_v55 = vrot.slane %v4679_v20, 4 }
 0x363   : >> { %v5381_v52 = vunpack.c.l.b16 %v4321_v57  ;;  %v3625_v22 = vld [vmem:[#allocation3 + $0x28] sm:$0xf]  ;;  %v4052_v27 = vor.u32 %v4051_v9, %v4050_v6  ;;  %v3701_v0 = vor.u32 %v3699_v19, %v3698_v8  ;;  %2914 = vst.msk [vmem:[#allocation3 + $0x34] sm:$0xf] %vm273_vm7, %v2881_v14  ;;  %v2689_v36 = vadd.f32 %v2688_v58, %v10496_v3  ;;  %v2609_v38 = vpop.f32.mrf.mxu0 }
 0x364   : >> { %v4324_v41 = vshrl.u32 %v4263_v48, 16  ;;  %v4327_v47 = vshll.u32 %v4263_v48, 16  ;;  %v3705_v16 = vshrl.u32 %v3625_v22, 16  ;;  %v9437_v15 = vld [vmem:[#allocation3 + $0x24] sm:$0xff]  ;;  %v3708_v44 = vshll.u32 %v3625_v22, 16 }
 0x365   : >> { %v4053_v59 = vrot.slane %v4052_v27, 4  ;;  %v3702_v21 = vsel %vm10513_vm0, %v10533_v18, %v3701_v0  ;;  %v3703_v57 = vrot.slane %v3698_v8, 4  ;;  %v2778_v20 = vadd.f32 %v2777_v54, %v2689_v36 }
 0x366   : >> { %v4326_v46 = vrot.slane %v4324_v41, 7  ;;  %v4681_v6 = vrot.slane %v4327_v47, 5  ;;  %v4683_v19 = vrot.slane %v4324_v41, 4  ;;  %v4054_v9 = vrot.slane %v3708_v44, 5 }
 0x367   : >> { %5541 = vrot.lane.b32.xlu2 %v9437_v15, %s9576_s21  ;;  %v4056_v3 = vrot.slane %v3705_v16, 4  ;;  %v3707_v14 = vrot.slane %v3705_v16, 7  ;;  %v5143_v58 = vunpack.c.l.b16 %v3702_v21  ;;  %v2850_v48 = vmax.f32 %v2778_v20, 0.0 }
 0x368   : >> { %v4329_v51 = vor.u32 %v4327_v47, %v4326_v46  ;;  %v4682_v22 = vsel %vm10347_vm14, %v4680_v55, %v4681_v6  ;;  %v4684_v27 = vor.u32 %v4683_v19, %v4681_v6  ;;  %v4055_v54 = vsel %vm10347_vm14, %v4053_v59, %v4054_v9  ;;  %v4264_v47 = vld [vmem:[#allocation3 + $0x30] sm:$0x8] }
 0x369   : >> { %1814 = vrot.lane.b32.xlu0 %v10529_v13, %s9575_s20  ;;  %v5573_v18 = vunpack.c.l.b16 %v4682_v22  ;;  %v4057_v8 = vor.u32 %v4056_v3, %v4054_v9  ;;  %v3710_v0 = vor.u32 %v3708_v44, %v3707_v14  ;;  %v2882_v36 = vpack.c.bf16 %v2850_v48, %v2850_v48  ;;  %v1809_v48 = vpop.permute.xlu0 %1808 }
 0x36a   : >> { %v4330_v41 = vsel %vm10513_vm0, %v4322_v23, %v4329_v51  ;;  %v4685_v16 = vrot.slane %v4684_v27, 4  ;;  %v5303_v46 = vunpack.c.l.b16 %v4055_v54  ;;  %v2691_v15 = vpop.f32.mrf.mxu1  ;;  %v12697_v6 = vpack.c.bf16 %v10570_v61, %v10570_v61  ;;  %v4265_v9 = vld [vmem:[#allocation3 + $0x34] sm:$0xf] }
 0x36b   : >> { %v5382_v55 = vunpack.c.l.b16 %v4330_v41  ;;  %v4058_v21 = vrot.slane %v4057_v8, 4  ;;  %v3711_v20 = vsel %vm10513_vm0, %v3703_v57, %v3710_v0  ;;  %2915 = vst.msk [vmem:[#allocation3 + $0x38] sm:$0xf] %vm273_vm7, %v2882_v36  ;;  %v2692_v44 = vadd.f32 %v2691_v15, %v10544_v56  ;;  %v1921_v8 = vpop.permute.xlu1 %1920  ;;  %v4662_v0 = vld [vmem:[#allocation3 + $0x3c] sm:$0x1] }
 0x36c   : >> { %v1680_v19 = vunpack.c.l.b16 %v12697_v6  ;;  %v4690_v51 = vsel %vm10347_vm14, %v4685_v16, %v10531_v5  ;;  %v5144_v23 = vunpack.c.l.b16 %v3711_v20  ;;  %v1681_v59 = vunpack.c.l.b16 %v944_v28  ;;  %v10640_v16 = vld [vmem:[#allocation3 + $0x34] sm:$0xf] }
 0x36d   : >> { %v5413_v3 = vpack.c.b16 %v5382_v55, %v5381_v52  ;;  %v5574_v14 = vunpack.c.l.b16 %v4690_v51  ;;  %v4063_v57 = vsel %vm10347_vm14, %v4058_v21, %v10539_v37  ;;  %v4332_v61 = vshrl.u32 %v4264_v47, 16  ;;  %2730 = vmatmul.bf16.gmra.mxu1 %v10547_v26  ;;  %v2782_v52 = vpop.f32.mrf.mxu2  ;;  %v2033_v37 = vpop.permute.xlu2 %2032 }
 0x36e   : >> { %v2781_v22 = vadd.f32 %v2780_v33, %v2692_v44  ;;  %v5304_v27 = vunpack.c.l.b16 %v4063_v57  ;;  %v5174_v56 = vpack.c.b16 %v5144_v23, %v5143_v58  ;;  %v1700_v54 = vpack.c.b16 %v1681_v59, %v1680_v19  ;;  %v2612_v19 = vpop.f32.mrf.mxu0 }
 0x36f   : >> { %v12698_v5 = vpack.c.b16 %v10523_v17, %v10521_v49  ;;  %5429 = vrot.lane.b32.xlu1 %v5413_v3, %s9577_s23  ;;  %v5605_v28 = vpack.c.b16 %v5574_v14, %v5573_v18  ;;  %v8922_v36 = vrot.slane %v4332_v61, 11  ;;  %v4337_v41 = vshrl.u32 %v4265_v9, 16 }
 0x370   : >> { %v4340_v33 = vshll.u32 %v4265_v9, 16  ;;  %v2851_v26 = vmax.f32 %v2781_v22, 0.0  ;;  %v5334_v58 = vpack.c.b16 %v5304_v27, %v5303_v46  ;;  %v2288_v47 = vsel %vm226_vm5, %v1700_v54, %v1809_v48 }
 0x371   : >> { %2038 = vrot.lane.b32.xlu2 %v12698_v5, %s9576_s21  ;;  %v10644_v15 = vadd.f32 %v10407_v53, %v2609_v38  ;;  %9241 = vmatmul.msk.bf16.vlgmr.msrb.gmra.mxu0 %vm226_vm5, %v5605_v28  ;;  %v2323_v49 = vsel %vm2168_vm10, %v2288_v47, %v1921_v8  ;;  %v4339_v17 = vrot.slane %v4337_v41, 7  ;;  %v4691_v18 = vrot.slane %v4337_v41, 4  ;;  %v4022_v41 = vld [vmem:[#allocation3 + $0x3c] sm:$0x1] }
 0x372   : >> { %v4692_v55 = vrot.slane %v4340_v33, 5  ;;  %v2883_v21 = vpack.c.bf16 %v2851_v26, %v2851_v26  ;;  %5351 = vrot.lane.b32.xlu0 %v5334_v58, %s9575_s20  ;;  %v10650_v20 = vsel %vm2201_vm11, %v2323_v49, %v2033_v37  ;;  %v4701_v6 = vshll.u32 %v4662_v0, 16  ;;  %v2693_v44 = vpop.f32.mrf.mxu1  ;;  %v4266_v38 = vld [vmem:[#allocation3 + $0x38] sm:$0xf]  ;;  %v9407_v49 = vld [vmem:[#allocation3 + $0x24] sm:$0xff] }
 0x373   : >> { %v3718_v46 = vshrl.u32 %v10640_v16, 16  ;;  %v4342_v51 = vor.u32 %v4340_v33, %v4339_v17  ;;  %v4344_v23 = vrot.slane %v4339_v17, 4  ;;  %v10653_v9 = vld [vmem:[#allocation3 + $0x38] sm:$0xf]  ;;  %v10656_v3 = vadd.f32 %v10407_v53, %v2612_v19 }
 0x374   : >> { %v4693_v59 = vor.u32 %v4692_v55, %v4691_v18  ;;  %2916 = vst.msk [vmem:[#allocation3 + $0x44] sm:$0xf] %vm273_vm7, %v2883_v21  ;;  %v2694_v14 = vadd.f32 %v2693_v44, %v10557_v42  ;;  %v4346_v57 = vshrl.u32 %v4266_v38, 16  ;;  %v4349_v48 = vshll.u32 %v4266_v38, 16 }
 0x375   : >> { %v4703_v61 = vrot.slane %v4701_v6, 5  ;;  %v4343_v22 = vsel %vm10513_vm0, %v8922_v36, %v4342_v51  ;;  %v3721_v54 = vshll.u32 %v10640_v16, 16  ;;  %v3727_v8 = vshrl.u32 %v10653_v9, 16  ;;  %v3626_v16 = vld [vmem:[#allocation3 + $0x30] sm:$0x8]  ;;  %v2785_v55 = vpop.f32.mrf.mxu2 }
 0x376   : >> { %v4694_v27 = vrot.slane %v4693_v59, 4  ;;  %v2783_v0 = vadd.f32 %v2782_v52, %v2694_v14  ;;  %v4348_v5 = vrot.slane %v4346_v57, 7  ;;  %v5383_v28 = vunpack.c.l.b16 %v4343_v22  ;;  %v9438_v59 = vld [vmem:[#allocation3 + $0x34] sm:$0xff]  ;;  %v10675_v22 = vld [vmem:[#allocation3 + $0x24] sm:$0xf] }
 0x377   : >> { %v4695_v37 = vrot.slane %v4349_v48, 5  ;;  %v12699_v42 = vpack.c.b16 %v10574_v40, %v10568_v39  ;;  %v4697_v33 = vrot.slane %v4346_v57, 4  ;;  %v3730_v36 = vshll.u32 %v10653_v9, 16 }
 0x378   : >> { %v4064_v26 = vrot.slane %v3718_v46, 4  ;;  %v4065_v58 = vrot.slane %v3721_v54, 5  ;;  %v2852_v47 = vmax.f32 %v2783_v0, 0.0  ;;  %v4351_v52 = vor.u32 %v4349_v48, %v4348_v5 }
 0x379   : >> { %5191 = vrot.lane.b32.xlu2 %v5174_v56, %s9576_s21  ;;  %1926 = vrot.lane.b32.xlu1 %v12699_v42, %s9577_s23  ;;  %v4696_v17 = vsel %vm10347_vm14, %v4694_v27, %v4695_v37  ;;  %v4070_v18 = vrot.slane %v3727_v8, 4  ;;  %v4698_v56 = vor.u32 %v4697_v33, %v4695_v37  ;;  %v4068_v19 = vrot.slane %v3730_v36, 5 }
 0x37a   : >> { %v5575_v21 = vunpack.c.l.b16 %v4696_v17  ;;  %v4066_v6 = vor.u32 %v4065_v58, %v4064_v26  ;;  %v2884_v39 = vpack.c.bf16 %v2852_v47, %v2852_v47  ;;  %5033 = vrot.lane.b32.xlu0 %v9407_v49, %s9575_s20  ;;  %v4352_v40 = vsel %vm10513_vm0, %v4344_v23, %v4351_v52  ;;  %v2696_v51 = vpop.f32.mrf.mxu1  ;;  %v10684_v49 = vld [vmem:[#allocation3 + $0x28] sm:$0xf] }
 0x37b   : >> { %v4074_v44 = vshll.u32 %v4022_v41, 16  ;;  %v3713_v38 = vshrl.u32 %v3626_v16, 16  ;;  %v5384_v9 = vunpack.c.l.b16 %v4352_v40  ;;  %v4699_v14 = vrot.slane %v4698_v56, 4  ;;  %v9468_v40 = vld [vmem:[%s9913_s26 + $0x108] sm:$0xff] }
 0x37c   : >> { %v4067_v57 = vrot.slane %v4066_v6, 4  ;;  %v4071_v48 = vor.u32 %v4070_v18, %v4068_v19  ;;  %2917 = vst.msk [vmem:[#allocation3 + $0x48] sm:$0xf] %vm273_vm7, %v2884_v39  ;;  %v2697_v27 = vadd.f32 %v2696_v51, %v10603_v31  ;;  %v3720_v37 = vrot.slane %v3718_v46, 7  ;;  %v3379_v18 = vld [vmem:[#allocation3 + $0x2c] sm:$0x1]  ;;  %6166 = vmatpush.bf16.msrb.mxu2 %v9468_v40  ;;  %v1811_v40 = vpop.permute.xlu0 %1810 }
 0x37d   : >> { %v4076_v0 = vrot.slane %v4074_v44, 5  ;;  %v8907_v5 = vrot.slane %v3713_v38, 11  ;;  %v5414_v42 = vpack.c.b16 %v5384_v9, %v5383_v28  ;;  %v4704_v23 = vsel %vm10347_vm14, %v4699_v14, %v4703_v61  ;;  %2735 = vmatmul.bf16.gmra.mxu1 %v10650_v20  ;;  %v913_v39 = vld [vmem:[#allocation2 + $0x1c8] sm:$0xff]  ;;  %v914_v51 = vld [vmem:[#allocation2 + $0x1d0] sm:$0xff] }
 0x37e   : >> { %v4069_v41 = vsel %vm10347_vm14, %v4067_v57, %v4068_v19  ;;  %v4072_v33 = vrot.slane %v4071_v48, 4  ;;  %v2786_v26 = vadd.f32 %v2785_v55, %v2697_v27  ;;  %v5576_v58 = vunpack.c.l.b16 %v4704_v23  ;;  %v1171_v23 = vld [vmem:[#allocation2 + $0x1f1] sm:$0xff] }
 0x37f   : >> { %v5305_v16 = vunpack.c.l.b16 %v4069_v41  ;;  %v3723_v47 = vor.u32 %v3721_v54, %v3720_v37  ;;  %v3725_v46 = vrot.slane %v3720_v37, 4  ;;  %v3729_v61 = vrot.slane %v3727_v8, 7 }
 0x380   : >> { %v4077_v31 = vsel %vm10347_vm14, %v4072_v33, %v4076_v0  ;;  %v3075_v28 = vshrl.u32 %v10675_v22, 16  ;;  %v2853_v52 = vmax.f32 %v2786_v26, 0.0  ;;  %v5606_v17 = vpack.c.b16 %v5576_v58, %v5575_v21 }
 0x381   : >> { %5543 = vrot.lane.b32.xlu2 %v9438_v59, %s9576_s21  ;;  %5431 = vrot.lane.b32.xlu1 %v5414_v42, %s9577_s23  ;;  %v5306_v20 = vunpack.c.l.b16 %v4077_v31  ;;  %v3724_v54 = vsel %vm10513_vm0, %v8907_v5, %v3723_v47  ;;  %v3732_v55 = vor.u32 %v3730_v36, %v3729_v61  ;;  %v3078_v6 = vshll.u32 %v10675_v22, 16  ;;  %v1170_v59 = vld [vmem:[#allocation2 + $0x1e9] sm:$0xff]  ;;  %v2787_v36 = vpop.f32.mrf.mxu2  ;;  %v4268_v47 = vld [vmem:[#allocation3 + $0x44] sm:$0xf] }
 0x382   : >> { %v5145_v56 = vunpack.c.l.b16 %v3724_v54  ;;  %v3084_v19 = vshrl.u32 %v10684_v49, 16  ;;  %v2885_v44 = vpack.c.bf16 %v2853_v52, %v2853_v52  ;;  %9242 = vmatmul.msk.bf16.gmra.mxu0 %vm226_vm5, %v5606_v17  ;;  %v3087_v38 = vshll.u32 %v10684_v49, 16  ;;  %v2698_v9 = vpop.f32.mrf.mxu1 }
 0x383   : >> { %v5335_v8 = vpack.c.b16 %v5306_v20, %v5305_v16  ;;  %v3424_v21 = vrot.slane %v3075_v28, 4  ;;  %v3733_v14 = vsel %vm10513_vm0, %v3725_v46, %v3732_v55  ;;  %v3425_v57 = vrot.slane %v3078_v6, 5  ;;  %v4267_v16 = vld [vmem:[#allocation3 + $0x40] sm:$0x8] }
 0x384   : >> { %v3430_v48 = vrot.slane %v3084_v19, 4  ;;  %v3434_v27 = vshll.u32 %v3379_v18, 16  ;;  %2918 = vst.msk [vmem:[#allocation3 + $0x54] sm:$0xf] %vm273_vm7, %v2885_v44  ;;  %v2699_v0 = vadd.f32 %v2698_v9, %v10644_v15  ;;  %v5146_v5 = vunpack.c.l.b16 %v3733_v14  ;;  %v4269_v9 = vld [vmem:[#allocation3 + $0x48] sm:$0xf] }
 0x385   : >> { %5353 = vrot.lane.b32.xlu0 %v5335_v8, %s9575_s20  ;;  %v3428_v37 = vrot.slane %v3087_v38, 5  ;;  %v945_v42 = vpack.c.bf16 %v913_v39, %v913_v39  ;;  %v3426_v41 = vor.u32 %v3425_v57, %v3424_v21  ;;  %v946_v26 = vpack.c.bf16 %v914_v51, %v914_v51  ;;  %v9408_v39 = vld [vmem:[#allocation3 + $0x34] sm:$0xff] }
 0x386   : >> { %v3436_v33 = vrot.slane %v3434_v27, 5  ;;  %v1202_v58 = vpack.c.bf16 %v1170_v59, %v1170_v59  ;;  %v2788_v31 = vadd.f32 %v2787_v36, %v2699_v0  ;;  %v5175_v46 = vpack.c.b16 %v5146_v5, %v5145_v56  ;;  %v1923_v56 = vpop.permute.xlu1 %1922  ;;  %v2035_v27 = vpop.permute.xlu2 %2034 }
 0x387   : >> { %v3431_v61 = vor.u32 %v3430_v48, %v3428_v37  ;;  %v1682_v52 = vunpack.c.l.b16 %v945_v42  ;;  %v3427_v17 = vrot.slane %v3426_v41, 4  ;;  %v1683_v20 = vunpack.c.l.b16 %v946_v26 }
 0x388   : >> { %v1203_v54 = vpack.c.bf16 %v1171_v23, %v1171_v23  ;;  %v2098_v15 = vunpack.c.l.b16 %v1202_v58  ;;  %v2854_v18 = vmax.f32 %v2788_v31, 0.0  ;;  %v4354_v44 = vshrl.u32 %v4267_v16, 16  ;;  %v2614_v58 = vpop.f32.mrf.mxu0 }
 0x389   : >> { %5193 = vrot.lane.b32.xlu2 %v5175_v46, %s9576_s21  ;;  %v3432_v55 = vrot.slane %v3431_v61, 4  ;;  %v4359_v8 = vshrl.u32 %v4268_v47, 16  ;;  %v3429_v21 = vsel %vm10347_vm14, %v3427_v17, %v3428_v37  ;;  %v1701_v51 = vpack.c.b16 %v1683_v20, %v1682_v52  ;;  %v2790_v61 = vpop.f32.mrf.mxu2 }
 0x38a   : >> { %v2099_v59 = vunpack.c.l.b16 %v1203_v54  ;;  %v4362_v36 = vshll.u32 %v4268_v47, 16  ;;  %v2886_v14 = vpack.c.bf16 %v2854_v18, %v2854_v18  ;;  %v5065_v48 = vunpack.c.l.b16 %v3429_v21  ;;  %v2701_v41 = vpop.f32.mrf.mxu1  ;;  %v9439_v47 = vld [vmem:[#allocation3 + $0x44] sm:$0xff]  ;;  %v4663_v54 = vld [vmem:[#allocation3 + $0x4c] sm:$0x1] }
 0x38b   : >> { %v3437_v57 = vsel %vm10347_vm14, %v3432_v55, %v3436_v33  ;;  %v8923_v0 = vrot.slane %v4354_v44, 11  ;;  %v2291_v42 = vsel %vm226_vm5, %v1701_v51, %v1811_v40  ;;  %v4361_v26 = vrot.slane %v4359_v8, 7  ;;  %v9460_v40 = vld [vmem:[%s9913_s26 + $0xc8] sm:$0xff] }
 0x38c   : >> { %v5066_v5 = vunpack.c.l.b16 %v3437_v57  ;;  %v2117_v23 = vpack.c.b16 %v2099_v59, %v2098_v15  ;;  %2919 = vst.msk [vmem:[#allocation3 + $0x58] sm:$0xf] %vm273_vm7, %v2886_v14  ;;  %v2325_v37 = vsel %vm2168_vm10, %v2291_v42, %v1923_v56  ;;  %v2702_v16 = vadd.f32 %v2701_v41, %v10656_v3  ;;  %v10724_v3 = vld [vmem:[#allocation3 + $0x44] sm:$0xf]  ;;  %v10730_v56 = vld [vmem:[#allocation3 + $0x48] sm:$0xf]  ;;  %6077 = vmatpush.bf16.msrb.mxu3 %v9460_v40 }
 0x38d   : >> { %5035 = vrot.lane.b32.xlu0 %v9408_v39, %s9575_s20  ;;  %v4368_v33 = vshrl.u32 %v4269_v9, 16  ;;  %v4371_v31 = vshll.u32 %v4269_v9, 16  ;;  %v2370_v52 = vsel %vm2201_vm11, %v2325_v37, %v2035_v27  ;;  %v4364_v17 = vor.u32 %v4362_v36, %v4361_v26  ;;  %v4023_v42 = vld [vmem:[#allocation3 + $0x4c] sm:$0x1] }
 0x38e   : >> { %v5095_v46 = vpack.c.b16 %v5066_v5, %v5065_v48  ;;  %8886 = vmatmul.msk.bf16.gmra.mxu3 %vm226_vm5, %v2117_v23  ;;  %v4366_v20 = vrot.slane %v4361_v26, 4  ;;  %v2791_v15 = vadd.f32 %v2790_v61, %v2702_v16  ;;  %2740 = vmatmul.bf16.gmra.mxu1 %v2370_v52  ;;  %v2615_v55 = vadd.f32 %v10407_v53, %v2614_v58 }
 0x38f   : >> { %v4370_v18 = vrot.slane %v4368_v33, 7  ;;  %v4705_v39 = vrot.slane %v4359_v8, 4  ;;  %v4365_v44 = vsel %vm10513_vm0, %v8923_v0, %v4364_v17  ;;  %v4706_v21 = vrot.slane %v4362_v36, 5 }
 0x390   : >> { %5113 = vrot.lane.b32.xlu1 %v5095_v46, %s9577_s23  ;;  %v4709_v51 = vrot.slane %v4371_v31, 5  ;;  %v4711_v59 = vrot.slane %v4368_v33, 4  ;;  %v2855_v9 = vmax.f32 %v2791_v15, 0.0  ;;  %v5385_v57 = vunpack.c.l.b16 %v4365_v44 }
 0x391   : >> { %5545 = vrot.lane.b32.xlu2 %v9439_v47, %s9576_s21  ;;  %v4373_v14 = vor.u32 %v4371_v31, %v4370_v18  ;;  %v4715_v53 = vshll.u32 %v4663_v54, 16  ;;  %v4707_v8 = vor.u32 %v4706_v21, %v4705_v39  ;;  %v3740_v27 = vshrl.u32 %v10724_v3, 16  ;;  %v2975_v47 = vld [vmem:[#allocation3] sm:$0x8] }
 0x392   : >> { %v4712_v48 = vor.u32 %v4711_v59, %v4709_v51  ;;  %v3743_v5 = vshll.u32 %v10724_v3, 16  ;;  %v2887_v0 = vpack.c.bf16 %v2855_v9, %v2855_v9  ;;  %v3749_v41 = vshrl.u32 %v10730_v56, 16  ;;  %v2703_v15 = vpop.f32.mrf.mxu1  ;;  %v3629_v18 = vld [vmem:[#allocation3 + $0x40] sm:$0x8] }
 0x393   : >> { %v4374_v36 = vsel %vm10513_vm0, %v4366_v20, %v4373_v14  ;;  %v4717_v23 = vrot.slane %v4715_v53, 5  ;;  %v4708_v58 = vrot.slane %v4707_v8, 4  ;;  %v3752_v16 = vshll.u32 %v10730_v56, 16  ;;  %v9459_v39 = vld [vmem:[%s9913_s26 + $0xc0] sm:$0xff] }
 0x394   : >> { %v5386_v26 = vunpack.c.l.b16 %v4374_v36  ;;  %v4713_v37 = vrot.slane %v4712_v48, 4  ;;  %2920 = vst.msk [vmem:[#allocation3 + $0x64] sm:$0xf] %vm273_vm7, %v2887_v0  ;;  %v4078_v33 = vrot.slane %v3740_v27, 4  ;;  %v4079_v31 = vrot.slane %v3743_v5, 5  ;;  %v2792_v48 = vpop.f32.mrf.mxu2  ;;  %6078 = vmatpush.bf16.msrb.mxu3 %v9459_v39  ;;  %v2617_v39 = vpop.f32.mrf.mxu0 }
 0x395   : >> { %v4084_v46 = vrot.slane %v3749_v41, 4  ;;  %v4088_v61 = vshll.u32 %v4023_v42, 16  ;;  %v4710_v17 = vsel %vm10347_vm14, %v4708_v58, %v4709_v51  ;;  %v4082_v54 = vrot.slane %v3752_v16, 5 }
 0x396   : >> { %v5415_v52 = vpack.c.b16 %v5386_v26, %v5385_v57  ;;  %v4718_v20 = vsel %vm10347_vm14, %v4713_v37, %v4717_v23  ;;  %v5577_v40 = vunpack.c.l.b16 %v4710_v17  ;;  %v4080_v21 = vor.u32 %v4079_v31, %v4078_v33 }
 0x397   : >> { %v5578_v44 = vunpack.c.l.b16 %v4718_v20  ;;  %v4090_v59 = vrot.slane %v4088_v61, 5  ;;  %v4085_v9 = vor.u32 %v4084_v46, %v4082_v54  ;;  %v3026_v14 = vshrl.u32 %v2975_v47, 16 }
 0x398   : >> { %5433 = vrot.lane.b32.xlu1 %v5415_v52, %s9577_s23  ;;  %v12700_v57 = vshrl.u32 %v10314_v4, 16  ;;  %v12701_v53 = vshrl.u32 %v10316_v24, 16  ;;  %v4081_v0 = vrot.slane %v4080_v21, 4  ;;  %v2704_v36 = vadd.f32 %v2703_v15, %v2615_v55 }
 0x399   : >> { %v5607_v42 = vpack.c.b16 %v5578_v44, %v5577_v40  ;;  %v3735_v23 = vshrl.u32 %v3629_v18, 16  ;;  %v4086_v26 = vrot.slane %v4085_v9, 4  ;;  %v8889_v58 = vrot.slane %v3026_v14, 11  ;;  %v10765_v18 = vld [vmem:[#allocation3 + $0x34] sm:$0xf]  ;;  %v9458_v40 = vld [vmem:[%s9913_s26 + $0xb8] sm:$0xff]  ;;  %v5030_v9 = vpop.permute.xlu0 %5029 }
 0x39a   : >> { %v3033_v51 = vrot.slane %v12700_v57, 7  ;;  %v3042_v8 = vrot.slane %v12701_v53, 7  ;;  %v12702_v37 = vshll.u32 %v10314_v4, 16  ;;  %v4083_v31 = vsel %vm10347_vm14, %v4081_v0, %v4082_v54  ;;  %v9467_v44 = vld [vmem:[%s9913_s26 + $0x100] sm:$0xff]  ;;  %v10771_v57 = vld [vmem:[#allocation3 + $0x38] sm:$0xf]  ;;  %6079 = vmatpush.bf16.msrb.mxu3 %v9458_v40 }
 0x39b   : >> { %9243 = vmatmul.msk.bf16.gmra.mxu0 %vm226_vm5, %v5607_v42  ;;  %v12703_v46 = vshll.u32 %v10316_v24, 16  ;;  %v2793_v52 = vadd.f32 %v2792_v48, %v2704_v36  ;;  %v8908_v17 = vrot.slane %v3735_v23, 11  ;;  %v4091_v55 = vsel %vm10347_vm14, %v4086_v26, %v4090_v59  ;;  %6167 = vmatpush.bf16.msrb.mxu2 %v9467_v44  ;;  %v3380_v23 = vld [vmem:[#allocation3 + $0x3c] sm:$0x1]  ;;  %v10802_v44 = vld [vmem:[%s9980_s30] ss:$0 sm:$0xff] }
 0x39c   : >> { %v3036_v33 = vor.u32 %v12702_v37, %v3033_v51  ;;  %v3038_v47 = vrot.slane %v3033_v51, 4  ;;  %v5307_v20 = vunpack.c.l.b16 %v4083_v31  ;;  %v3742_v4 = vrot.slane %v3740_v27, 7  ;;  %v5110_v51 = vpop.permute.xlu1 %5109  ;;  %v916_v31 = vld [vmem:[#allocation2 + $0x1f0] sm:$0xff] }
 0x39d   : >> { %v3045_v61 = vor.u32 %v12703_v46, %v3042_v8  ;;  %v5308_v21 = vunpack.c.l.b16 %v4091_v55  ;;  %v2856_v14 = vmax.f32 %v2793_v52, 0.0  ;;  %v3751_v8 = vrot.slane %v3749_v41, 7  ;;  %v915_v41 = vld [vmem:[#allocation2 + $0x1e8] sm:$0xff]  ;;  %v4270_v52 = vld [vmem:[#allocation3 + $0x50] sm:$0x8] }
 0x39e   : >> { %v3037_v15 = vsel %vm10513_vm0, %v8889_v58, %v3036_v33  ;;  %v3745_v53 = vor.u32 %v3743_v5, %v3742_v4  ;;  %v3747_v27 = vrot.slane %v3742_v4, 4  ;;  %8887 = vmatmul.msk.bf16.gmra.mxu3 %vm226_vm5, %v10529_v13  ;;  %v12659_v0 = vshrl.u32 %v10765_v18, 16  ;;  %v4271_v4 = vld [vmem:[#allocation3 + $0x54] sm:$0xf] }
 0x39f   : >> { %v3046_v24 = vsel %vm10513_vm0, %v3038_v47, %v3045_v61  ;;  %v4901_v54 = vunpack.c.l.b16 %v3037_v15  ;;  %v5336_v48 = vpack.c.b16 %v5308_v21, %v5307_v20  ;;  %v2888_v42 = vpack.c.bf16 %v2856_v14, %v2856_v14 }
 0x3a0   : >> { %v4902_v59 = vunpack.c.l.b16 %v3046_v24  ;;  %v12657_v36 = vshll.u32 %v10765_v18, 16  ;;  %v3746_v58 = vsel %vm10513_vm0, %v8908_v17, %v3745_v53  ;;  %v3754_v3 = vor.u32 %v3752_v16, %v3751_v8  ;;  %v9409_v53 = vld [vmem:[#allocation3 + $0x44] sm:$0xff] }
 0x3a1   : >> { %v12658_v5 = vshrl.u32 %v10771_v57, 16  ;;  %5355 = vrot.lane.b32.xlu0 %v5336_v48, %s9575_s20  ;;  %2921 = vst.msk [vmem:[#allocation3 + $0x68] sm:$0xf] %vm273_vm7, %v2888_v42  ;;  %v5147_v13 = vunpack.c.l.b16 %v3746_v58  ;;  %v12652_v37 = vshll.u32 %v10771_v57, 16  ;;  %v3438_v33 = vrot.slane %v12659_v0, 4  ;;  %v2619_v58 = vpop.f32.mrf.mxu0 }
 0x3a2   : >> { %v4933_v26 = vpack.c.b16 %v4902_v59, %v4901_v54  ;;  %v3439_v47 = vrot.slane %v12657_v36, 5  ;;  %v3755_v16 = vsel %vm10513_vm0, %v3747_v27, %v3754_v3  ;;  %v3448_v61 = vshll.u32 %v3380_v23, 16  ;;  %v4272_v23 = vld [vmem:[#allocation3 + $0x58] sm:$0xf]  ;;  %v9457_v3 = vld [vmem:[%s9913_s26 + $0xb0] sm:$0xff] }
 0x3a3   : >> { %v3444_v46 = vrot.slane %v12658_v5, 4  ;;  %v5148_v55 = vunpack.c.l.b16 %v3755_v16  ;;  %v3442_v15 = vrot.slane %v12652_v37, 5  ;;  %v2618_v21 = vadd.f32 %v10802_v44, %v2617_v39  ;;  %6080 = vmatpush.bf16.msrb.mxu3 %v9457_v3  ;;  %v9454_v37 = vld [vmem:[%s9913_s26 + $0x98] sm:$0xff]  ;;  %v10892_v5 = vld [vmem:[#allocation3 + $0x54] sm:$0xf] }
 0x3a4   : >> { %v5623_v56 = vsel %vm226_vm5, %v4933_v26, %v5030_v9  ;;  %v3440_v20 = vor.u32 %v3439_v47, %v3438_v33  ;;  %v3450_v40 = vrot.slane %v3448_v61, 5  ;;  %v947_v24 = vpack.c.bf16 %v915_v41, %v915_v41  ;;  %v2795_v33 = vpop.f32.mrf.mxu2 }
 0x3a5   : >> { %v10797_v17 = vsel %vm2168_vm10, %v5623_v56, %v5110_v51  ;;  %v948_v54 = vpack.c.bf16 %v916_v31, %v916_v31  ;;  %v5176_v9 = vpack.c.b16 %v5148_v55, %v5147_v13  ;;  %v3445_v59 = vor.u32 %v3444_v46, %v3442_v15  ;;  %v2706_v51 = vpop.f32.mrf.mxu1  ;;  %v1813_v13 = vpop.permute.xlu0 %1812  ;;  %v9456_v55 = vld [vmem:[%s9913_s26 + $0xa8] sm:$0xff] }
 0x3a6   : >> { %v3441_v14 = vrot.slane %v3440_v20, 4  ;;  %v4376_v27 = vshrl.u32 %v4270_v52, 16  ;;  %v1684_v8 = vunpack.c.l.b16 %v947_v24  ;;  %v2707_v42 = vadd.f32 %v2706_v51, %v2618_v21  ;;  %v1925_v46 = vpop.permute.xlu1 %1924  ;;  %v2037_v21 = vpop.permute.xlu2 %2036  ;;  %v4664_v51 = vld [vmem:[#allocation3 + $0x5c] sm:$0x1] }
 0x3a7   : >> { %v1685_v48 = vunpack.c.l.b16 %v948_v54  ;;  %v4381_v26 = vshrl.u32 %v4271_v4, 16  ;;  %5195 = vrot.lane.b32.xlu2 %v5176_v9, %s9576_s21  ;;  %v3446_v41 = vrot.slane %v3445_v59, 4  ;;  %v4384_v31 = vshll.u32 %v4271_v4, 16  ;;  %6081 = vmatpush.bf16.msrb.mxu3 %v9456_v55 }
 0x3a8   : >> { %v3443_v39 = vsel %vm10347_vm14, %v3441_v14, %v3442_v15  ;;  %v8924_v47 = vrot.slane %v4376_v27, 11  ;;  %v2796_v61 = vadd.f32 %v2795_v33, %v2707_v42  ;;  %v4390_v24 = vshrl.u32 %v4272_v23, 16 }
 0x3a9   : >> { %v5067_v56 = vunpack.c.l.b16 %v3443_v39  ;;  %v1702_v16 = vpack.c.b16 %v1685_v48, %v1684_v8  ;;  %v4383_v52 = vrot.slane %v4381_v26, 7  ;;  %v3451_v20 = vsel %vm10347_vm14, %v3446_v41, %v3450_v40  ;;  %5037 = vrot.lane.b32.xlu0 %v9409_v53, %s9575_s20  ;;  %v9440_v8 = vld [vmem:[#allocation3 + $0x54] sm:$0xff] }
 0x3aa   : >> { %v4393_v15 = vshll.u32 %v4272_v23, 16  ;;  %v2620_v54 = vadd.f32 %v10802_v44, %v2619_v58  ;;  %v5068_v9 = vunpack.c.l.b16 %v3451_v20  ;;  %v2857_v14 = vmax.f32 %v2796_v61, 0.0  ;;  %v10816_v40 = vld [vmem:[#allocation3 + $0x54] sm:$0xf]  ;;  %v10821_v41 = vld [vmem:[#allocation3 + $0x58] sm:$0xf] }
 0x3ab   : >> { %v2294_v4 = vsel %vm226_vm5, %v1702_v16, %v1813_v13  ;;  %v4386_v59 = vor.u32 %v4384_v31, %v4383_v52  ;;  %v4388_v48 = vrot.slane %v4383_v52, 4  ;;  %v4392_v42 = vrot.slane %v4390_v24, 7 }
 0x3ac   : >> { %v2327_v27 = vsel %vm2168_vm10, %v2294_v4, %v1925_v46  ;;  %v4719_v3 = vrot.slane %v4381_v26, 4  ;;  %v5096_v53 = vpack.c.b16 %v5068_v9, %v5067_v56  ;;  %v2889_v39 = vpack.c.bf16 %v2857_v14, %v2857_v14  ;;  %v9455_v9 = vld [vmem:[%s9913_s26 + $0xa0] sm:$0xff] }
 0x3ad   : >> { %v2373_v23 = vsel %vm2201_vm11, %v2327_v27, %v2037_v21  ;;  %v4387_v58 = vsel %vm10513_vm0, %v8924_v47, %v4386_v59  ;;  %v4395_v13 = vor.u32 %v4393_v15, %v4392_v42  ;;  %v4720_v16 = vrot.slane %v4384_v31, 5  ;;  %v4024_v21 = vld [vmem:[#allocation3 + $0x5c] sm:$0x1]  ;;  %6082 = vmatpush.bf16.msrb.mxu3 %v9455_v9 }
 0x3ae   : >> { %2745 = vmatmul.bf16.gmra.mxu1 %v2373_v23  ;;  %v5387_v33 = vunpack.c.l.b16 %v4387_v58  ;;  %v4723_v46 = vrot.slane %v4393_v15, 5  ;;  %5115 = vrot.lane.b32.xlu1 %v5096_v53, %s9577_s23  ;;  %2922 = vst.msk [vmem:[#allocation3 + $0x74] sm:$0xf] %vm273_vm7, %v2889_v39  ;;  %v4725_v26 = vrot.slane %v4390_v24, 4  ;;  %v4729_v56 = vshll.u32 %v4664_v51, 16  ;;  %v2708_v15 = vpop.f32.mrf.mxu1  ;;  %v2797_v53 = vpop.f32.mrf.mxu2 }
 0x3af   : >> { %v3762_v61 = vshrl.u32 %v10816_v40, 16  ;;  %v3765_v52 = vshll.u32 %v10816_v40, 16  ;;  %5547 = vrot.lane.b32.xlu2 %v9440_v8, %s9576_s21  ;;  %v4396_v47 = vsel %vm10513_vm0, %v4388_v48, %v4395_v13  ;;  %v4721_v55 = vor.u32 %v4720_v16, %v4719_v3  ;;  %v3632_v51 = vld [vmem:[#allocation3 + $0x50] sm:$0x8] }
 0x3b0   : >> { %v3771_v20 = vshrl.u32 %v10821_v41, 16  ;;  %v3774_v31 = vshll.u32 %v10821_v41, 16  ;;  %v5388_v4 = vunpack.c.l.b16 %v4396_v47  ;;  %v4726_v24 = vor.u32 %v4725_v26, %v4723_v46  ;;  %v10835_v26 = vld [vmem:[#allocation3 + $0x44] sm:$0xf] }
 0x3b1   : >> { %v4731_v14 = vrot.slane %v4729_v56, 5  ;;  %v4092_v59 = vrot.slane %v3762_v61, 4  ;;  %v4722_v27 = vrot.slane %v4721_v55, 4  ;;  %v4093_v42 = vrot.slane %v3765_v52, 5  ;;  %6083 = vmatpush.bf16.msrb.mxu3 %v9454_v37 }
 0x3b2   : >> { %v4096_v40 = vrot.slane %v3774_v31, 5  ;;  %v4098_v8 = vrot.slane %v3771_v20, 4  ;;  %v5416_v48 = vpack.c.b16 %v5388_v4, %v5387_v33  ;;  %v4727_v3 = vrot.slane %v4726_v24, 4 }
 0x3b3   : >> { %v4102_v39 = vshll.u32 %v4024_v21, 16  ;;  %v2709_v23 = vadd.f32 %v2708_v15, %v2620_v54  ;;  %v4724_v58 = vsel %vm10347_vm14, %v4722_v27, %v4723_v46  ;;  %v4094_v41 = vor.u32 %v4093_v42, %v4092_v59  ;;  %v9466_v54 = vld [vmem:[%s9913_s26 + $0xf8] sm:$0xff]  ;;  %v2622_v42 = vpop.f32.mrf.mxu0 }
 0x3b4   : >> { %v4099_v13 = vor.u32 %v4098_v8, %v4096_v40  ;;  %v3757_v16 = vshrl.u32 %v3632_v51, 16  ;;  %v4732_v56 = vsel %vm10347_vm14, %v4727_v3, %v4731_v14  ;;  %v5579_v47 = vunpack.c.l.b16 %v4724_v58  ;;  %v10842_v51 = vld [vmem:[#allocation3 + $0x48] sm:$0xf]  ;;  %6168 = vmatpush.bf16.msrb.mxu2 %v9466_v54 }
 0x3b5   : >> { %v4104_v55 = vrot.slane %v4102_v39, 5  ;;  %v2798_v9 = vadd.f32 %v2797_v53, %v2709_v23  ;;  %v5580_v33 = vunpack.c.l.b16 %v4732_v56  ;;  %v4095_v4 = vrot.slane %v4094_v41, 4  ;;  %v3381_v23 = vld [vmem:[#allocation3 + $0x4c] sm:$0x1]  ;;  %v1175_v56 = vld [vmem:[#allocation2 + $0x231] sm:$0xff] }
 0x3b6   : >> { %v4100_v24 = vrot.slane %v4099_v13, 4  ;;  %v8909_v21 = vrot.slane %v3757_v16, 11  ;;  %5435 = vrot.lane.b32.xlu1 %v5416_v48, %s9577_s23  ;;  %v3764_v15 = vrot.slane %v3762_v61, 7  ;;  %v3773_v59 = vrot.slane %v3771_v20, 7  ;;  %v1174_v16 = vld [vmem:[#allocation2 + $0x229] sm:$0xff] }
 0x3b7   : >> { %v2858_v46 = vmax.f32 %v2798_v9, 0.0  ;;  %v12656_v27 = vshrl.u32 %v10835_v26, 16  ;;  %v5608_v14 = vpack.c.b16 %v5580_v33, %v5579_v47  ;;  %v4097_v8 = vsel %vm10347_vm14, %v4095_v4, %v4096_v40  ;;  %v4273_v9 = vld [vmem:[#allocation3 + $0x60] sm:$0x8] }
 0x3b8   : >> { %v4105_v53 = vsel %vm10347_vm14, %v4100_v24, %v4104_v55  ;;  %v12654_v3 = vshll.u32 %v10835_v26, 16  ;;  %v5309_v48 = vunpack.c.l.b16 %v4097_v8  ;;  %v3767_v20 = vor.u32 %v3765_v52, %v3764_v15 }
 0x3b9   : >> { %v5310_v39 = vunpack.c.l.b16 %v4105_v53  ;;  %v2890_v61 = vpack.c.bf16 %v2858_v46, %v2858_v46  ;;  %9244 = vmatmul.msk.bf16.gmra.mxu0 %vm226_vm5, %v5608_v14  ;;  %v3769_v58 = vrot.slane %v3764_v15, 4  ;;  %v3776_v41 = vor.u32 %v3774_v31, %v3773_v59  ;;  %v2711_v59 = vpop.f32.mrf.mxu1 }
 0x3ba   : >> { %v12655_v13 = vshrl.u32 %v10842_v51, 16  ;;  %v12653_v40 = vshll.u32 %v10842_v51, 16  ;;  %v3768_v37 = vsel %vm10513_vm0, %v8909_v21, %v3767_v20  ;;  %v3452_v52 = vrot.slane %v12656_v27, 4 }
 0x3bb   : >> { %v5337_v47 = vpack.c.b16 %v5310_v39, %v5309_v48  ;;  %2923 = vst.msk [vmem:[#allocation3 + $0x78] sm:$0xf] %vm273_vm7, %v2890_v61  ;;  %v3453_v55 = vrot.slane %v12654_v3, 5  ;;  %v3777_v31 = vsel %vm10513_vm0, %v3769_v58, %v3776_v41  ;;  %v5149_v33 = vunpack.c.l.b16 %v3768_v37  ;;  %v4274_v48 = vld [vmem:[#allocation3 + $0x64] sm:$0xf]  ;;  %v2800_v37 = vpop.f32.mrf.mxu2  ;;  %v9453_v3 = vld [vmem:[%s9913_s26 + $0x90] sm:$0xff] }
 0x3bc   : >> { %v3456_v4 = vrot.slane %v12653_v40, 5  ;;  %v3458_v24 = vrot.slane %v12655_v13, 4  ;;  %v5150_v21 = vunpack.c.l.b16 %v3777_v31  ;;  %v3462_v46 = vshll.u32 %v3381_v23, 16  ;;  %v4275_v40 = vld [vmem:[#allocation3 + $0x68] sm:$0xf]  ;;  %v9410_v23 = vld [vmem:[#allocation3 + $0x54] sm:$0xff]  ;;  %6084 = vmatpush.bf16.msrb.mxu3 %v9453_v3 }
 0x3bd   : >> { %5357 = vrot.lane.b32.xlu0 %v5337_v47, %s9575_s20  ;;  %v3454_v54 = vor.u32 %v3453_v55, %v3452_v52  ;;  %v2623_v15 = vadd.f32 %v10802_v44, %v2622_v42  ;;  %v1206_v8 = vpack.c.bf16 %v1174_v16, %v1174_v16  ;;  %v1207_v53 = vpack.c.bf16 %v1175_v56, %v1175_v56 }
 0x3be   : >> { %v3459_v14 = vor.u32 %v3458_v24, %v3456_v4  ;;  %v4398_v39 = vshrl.u32 %v4273_v9, 16  ;;  %v5177_v61 = vpack.c.b16 %v5150_v21, %v5149_v33  ;;  %v3464_v58 = vrot.slane %v3462_v46, 5  ;;  %v2624_v9 = vpop.f32.mrf.mxu0 }
 0x3bf   : >> { %v3455_v20 = vrot.slane %v3454_v54, 4  ;;  %v2712_v41 = vadd.f32 %v2711_v59, %v2623_v15  ;;  %v2102_v31 = vunpack.c.l.b16 %v1206_v8  ;;  %v2103_v13 = vunpack.c.l.b16 %v1207_v53  ;;  %v10874_v8 = vld [vmem:[#allocation3 + $0x64] sm:$0xf] }
 0x3c0   : >> { %v3460_v47 = vrot.slane %v3459_v14, 4  ;;  %v8925_v52 = vrot.slane %v4398_v39, 11  ;;  %5197 = vrot.lane.b32.xlu2 %v5177_v61, %s9576_s21  ;;  %v4403_v56 = vshrl.u32 %v4274_v48, 16  ;;  %v4406_v55 = vshll.u32 %v4274_v48, 16  ;;  %v4665_v48 = vld [vmem:[#allocation3 + $0x6c] sm:$0x1] }
 0x3c1   : >> { %v3457_v42 = vsel %vm10347_vm14, %v3455_v20, %v3456_v4  ;;  %v2801_v16 = vadd.f32 %v2800_v37, %v2712_v41  ;;  %v2119_v21 = vpack.c.b16 %v2103_v13, %v2102_v31  ;;  %v4412_v54 = vshrl.u32 %v4275_v40, 16  ;;  %v9441_v13 = vld [vmem:[#allocation3 + $0x64] sm:$0xff] }
 0x3c2   : >> { %v3465_v33 = vsel %vm10347_vm14, %v3460_v47, %v3464_v58  ;;  %v5069_v24 = vunpack.c.l.b16 %v3457_v42  ;;  %v4405_v59 = vrot.slane %v4403_v56, 7  ;;  %v4415_v14 = vshll.u32 %v4275_v40, 16  ;;  %v3637_v42 = vld [vmem:[#allocation3 + $0x68] sm:$0xf] }
 0x3c3   : >> { %v5070_v46 = vunpack.c.l.b16 %v3465_v33  ;;  %v2859_v15 = vmax.f32 %v2801_v16, 0.0  ;;  %8888 = vmatmul.msk.bf16.gmra.mxu3 %vm226_vm5, %v2119_v21  ;;  %v4414_v4 = vrot.slane %v4412_v54, 7  ;;  %v2625_v53 = vadd.f32 %v10802_v44, %v2624_v9  ;;  %v2713_v33 = vpop.f32.mrf.mxu1 }
 0x3c4   : >> { %v4733_v39 = vrot.slane %v4403_v56, 4  ;;  %v4734_v3 = vrot.slane %v4406_v55, 5  ;;  %v4408_v58 = vor.u32 %v4406_v55, %v4405_v59  ;;  %v4410_v41 = vrot.slane %v4405_v59, 4 }
 0x3c5   : >> { %v5097_v61 = vpack.c.b16 %v5070_v46, %v5069_v24  ;;  %5039 = vrot.lane.b32.xlu0 %v9410_v23, %s9575_s20  ;;  %v2891_v20 = vpack.c.bf16 %v2859_v15, %v2859_v15  ;;  %v4417_v37 = vor.u32 %v4415_v14, %v4414_v4  ;;  %v4737_v40 = vrot.slane %v4415_v14, 5  ;;  %v4025_v4 = vld [vmem:[#allocation3 + $0x6c] sm:$0x1] }
 0x3c6   : >> { %v4735_v47 = vor.u32 %v4734_v3, %v4733_v39  ;;  %v4739_v31 = vrot.slane %v4412_v54, 4  ;;  %v4409_v16 = vsel %vm10513_vm0, %v8925_v52, %v4408_v58  ;;  %v4743_v56 = vshll.u32 %v4665_v48, 16  ;;  %v2802_v52 = vpop.f32.mrf.mxu2 }
 0x3c7   : >> { %5117 = vrot.lane.b32.xlu1 %v5097_v61, %s9577_s23  ;;  %2924 = vst.msk [vmem:[#allocation3 + $0x84] sm:$0xf] %vm273_vm7, %v2891_v20  ;;  %v3784_v9 = vshrl.u32 %v10874_v8, 16  ;;  %v3787_v23 = vshll.u32 %v10874_v8, 16  ;;  %v4418_v55 = vsel %vm10513_vm0, %v4410_v41, %v4417_v37  ;;  %v5389_v24 = vunpack.c.l.b16 %v4409_v16  ;;  %v3635_v61 = vld [vmem:[#allocation3 + $0x60] sm:$0x8] }
 0x3c8   : >> { %v4736_v21 = vrot.slane %v4735_v47, 4  ;;  %v4740_v54 = vor.u32 %v4739_v31, %v4737_v40  ;;  %5549 = vrot.lane.b32.xlu2 %v9441_v13, %s9576_s21  ;;  %v5390_v46 = vunpack.c.l.b16 %v4418_v55  ;;  %v4745_v15 = vrot.slane %v4743_v56, 5 }
 0x3c9   : >> { %v3793_v59 = vshrl.u32 %v3637_v42, 16  ;;  %v3796_v14 = vshll.u32 %v3637_v42, 16  ;;  %v4106_v8 = vrot.slane %v3784_v9, 4  ;;  %v4107_v3 = vrot.slane %v3787_v23, 5 }
 0x3ca   : >> { %v4738_v48 = vsel %vm10347_vm14, %v4736_v21, %v4737_v40  ;;  %v4741_v39 = vrot.slane %v4740_v54, 4  ;;  %v5417_v20 = vpack.c.b16 %v5390_v46, %v5389_v24  ;;  %v4116_v31 = vshll.u32 %v4025_v4, 16 }
 0x3cb   : >> { %v5581_v58 = vunpack.c.l.b16 %v4738_v48  ;;  %v4110_v41 = vrot.slane %v3796_v14, 5  ;;  %v4112_v37 = vrot.slane %v3793_v59, 4  ;;  %v4108_v47 = vor.u32 %v4107_v3, %v4106_v8  ;;  %v2716_v3 = vpop.f32.mrf.mxu1 }
 0x3cc   : >> { %v4746_v13 = vsel %vm10347_vm14, %v4741_v39, %v4745_v15  ;;  %v2714_v16 = vadd.f32 %v2713_v33, %v2625_v53  ;;  %v3779_v55 = vshrl.u32 %v3635_v61, 16  ;;  %v3786_v27 = vrot.slane %v3784_v9, 7  ;;  %v10897_v39 = vld [vmem:[#allocation3 + $0x58] sm:$0xf] }
 0x3cd   : >> { %v5582_v42 = vunpack.c.l.b16 %v4746_v13  ;;  %v4113_v56 = vor.u32 %v4112_v37, %v4110_v41  ;;  %v4109_v36 = vrot.slane %v4108_v47, 4  ;;  %v4118_v40 = vrot.slane %v4116_v31, 5  ;;  %v5190_v13 = vpop.permute.xlu2 %5189 }
 0x3ce   : >> { %v2803_v21 = vadd.f32 %v2802_v52, %v2714_v16  ;;  %v3795_v54 = vrot.slane %v3793_v59, 7  ;;  %v8910_v48 = vrot.slane %v3779_v55, 11  ;;  %v3789_v0 = vor.u32 %v3787_v23, %v3786_v27  ;;  %v3382_v23 = vld [vmem:[#allocation3 + $0x5c] sm:$0x1]  ;;  %v2805_v47 = vpop.f32.mrf.mxu2  ;;  %v4277_v55 = vld [vmem:[#allocation3 + $0x74] sm:$0xf] }
 0x3cf   : >> { %5437 = vrot.lane.b32.xlu1 %v5417_v20, %s9577_s23  ;;  %v5609_v24 = vpack.c.b16 %v5582_v42, %v5581_v58  ;;  %v4114_v46 = vrot.slane %v4113_v56, 4  ;;  %v4111_v15 = vsel %vm10347_vm14, %v4109_v36, %v4110_v41  ;;  %v3791_v33 = vrot.slane %v3786_v27, 4 }
 0x3d0   : >> { %v2860_v53 = vmax.f32 %v2803_v21, 0.0  ;;  %v3798_v4 = vor.u32 %v3796_v14, %v3795_v54  ;;  %v5311_v59 = vunpack.c.l.b16 %v4111_v15  ;;  %v3790_v52 = vsel %vm10513_vm0, %v8910_v48, %v3789_v0  ;;  %v4276_v0 = vld [vmem:[#allocation3 + $0x70] sm:$0x8] }
 0x3d1   : >> { %9245 = vmatmul.msk.bf16.gmra.mxu0 %vm226_vm5, %v5609_v24  ;;  %v4119_v9 = vsel %vm10347_vm14, %v4114_v46, %v4118_v40  ;;  %v3141_v8 = vshrl.u32 %v10892_v5, 16  ;;  %v5151_v14 = vunpack.c.l.b16 %v3790_v52  ;;  %v12661_v58 = vshll.u32 %v10892_v5, 16  ;;  %v4278_v46 = vld [vmem:[#allocation3 + $0x78] sm:$0xf] }
 0x3d2   : >> { %v5312_v61 = vunpack.c.l.b16 %v4119_v9  ;;  %v2892_v36 = vpack.c.bf16 %v2860_v53, %v2860_v53  ;;  %v3799_v27 = vsel %vm10513_vm0, %v3791_v33, %v3798_v4  ;;  %v12662_v41 = vshrl.u32 %v10897_v39, 16  ;;  %v9465_v33 = vld [vmem:[%s9913_s26 + $0xf0] sm:$0xff] }
 0x3d3   : >> { %v5152_v20 = vunpack.c.l.b16 %v3799_v27  ;;  %v12660_v37 = vshll.u32 %v10897_v39, 16  ;;  %v3466_v16 = vrot.slane %v3141_v8, 4  ;;  %v3476_v42 = vshll.u32 %v3382_v23, 16  ;;  %6169 = vmatpush.bf16.msrb.mxu2 %v9465_v33 }
 0x3d4   : >> { %v5338_v31 = vpack.c.b16 %v5312_v61, %v5311_v59  ;;  %2925 = vst.msk [vmem:[#allocation3 + $0x88] sm:$0xf] %vm273_vm7, %v2892_v36  ;;  %v2717_v56 = vadd.f32 %v2716_v3, %v10416_v50  ;;  %v3467_v21 = vrot.slane %v12661_v58, 5  ;;  %v3472_v24 = vrot.slane %v12662_v41, 4  ;;  %v10944_v41 = vld [vmem:[#allocation3 + $0x68] sm:$0xf] }
 0x3d5   : >> { %v5178_v40 = vpack.c.b16 %v5152_v20, %v5151_v14  ;;  %v3470_v54 = vrot.slane %v12660_v37, 5  ;;  %v3478_v48 = vrot.slane %v3476_v42, 5  ;;  %v5702_v15 = vsel %vm2201_vm11, %v10797_v17, %v5190_v13  ;;  %v3639_v17 = vld [vmem:[#allocation3 + $0x74] sm:$0xf]  ;;  %v9411_v13 = vld [vmem:[#allocation3 + $0x64] sm:$0xff] }
 0x3d6   : >> { %5359 = vrot.lane.b32.xlu0 %v5338_v31, %s9575_s20  ;;  %v2806_v53 = vadd.f32 %v2805_v47, %v2717_v56  ;;  %v4420_v50 = vshrl.u32 %v4276_v0, 16  ;;  %v3468_v4 = vor.u32 %v3467_v21, %v3466_v16  ;;  %6085 = vmatmul.bf16.vlgmr.msrb.gmra.mxu3 %v5702_v15  ;;  %v4425_v59 = vshrl.u32 %v4277_v55, 16  ;;  %v4666_v42 = vld [vmem:[#allocation3 + $0x7c] sm:$0x1]  ;;  %v9442_v21 = vld [vmem:[#allocation3 + $0x74] sm:$0xff] }
 0x3d7   : >> { %5199 = vrot.lane.b32.xlu2 %v5178_v40, %s9576_s21  ;;  %v3473_v9 = vor.u32 %v3472_v24, %v3470_v54  ;;  %v4428_v52 = vshll.u32 %v4277_v55, 16  ;;  %v4434_v61 = vshrl.u32 %v4278_v46, 16  ;;  %v4437_v36 = vshll.u32 %v4278_v46, 16 }
 0x3d8   : >> { %v2861_v23 = vmax.f32 %v2806_v53, 0.0  ;;  %v8926_v3 = vrot.slane %v4420_v50, 11  ;;  %v3469_v27 = vrot.slane %v3468_v4, 4  ;;  %v4427_v20 = vrot.slane %v4425_v59, 7 }
 0x3d9   : >> { %v3474_v14 = vrot.slane %v3473_v9, 4  ;;  %v4747_v31 = vrot.slane %v4425_v59, 4  ;;  %v4436_v0 = vrot.slane %v4434_v61, 7  ;;  %v4748_v56 = vrot.slane %v4428_v52, 5 }
 0x3da   : >> { %v2893_v47 = vpack.c.bf16 %v2861_v23, %v2861_v23  ;;  %v4751_v16 = vrot.slane %v4437_v36, 5  ;;  %v3471_v40 = vsel %vm10347_vm14, %v3469_v27, %v3470_v54  ;;  %v4430_v24 = vor.u32 %v4428_v52, %v4427_v20  ;;  %v3640_v23 = vld [vmem:[#allocation3 + $0x78] sm:$0xf] }
 0x3db   : >> { %v3479_v55 = vsel %vm10347_vm14, %v3474_v14, %v3478_v48  ;;  %v4432_v46 = vrot.slane %v4427_v20, 4  ;;  %v5071_v15 = vunpack.c.l.b16 %v3471_v40  ;;  %v4439_v50 = vor.u32 %v4437_v36, %v4436_v0 }
 0x3dc   : >> { %v5072_v53 = vunpack.c.l.b16 %v3479_v55  ;;  %2926 = vst.msk [vmem:[#allocation3 + $0x94] sm:$0xf] %vm273_vm7, %v2893_v47  ;;  %v4749_v33 = vor.u32 %v4748_v56, %v4747_v31  ;;  %v4431_v4 = vsel %vm10513_vm0, %v8926_v3, %v4430_v24  ;;  %v4753_v9 = vrot.slane %v4434_v61, 4  ;;  %v4026_v47 = vld [vmem:[#allocation3 + $0x7c] sm:$0x1]  ;;  %v2718_v3 = vpop.f32.mrf.mxu1 }
 0x3dd   : >> { %v4757_v59 = vshll.u32 %v4666_v42, 16  ;;  %v3806_v37 = vshrl.u32 %v3639_v17, 16  ;;  %v4440_v48 = vsel %vm10513_vm0, %v4432_v46, %v4439_v50  ;;  %v5391_v52 = vunpack.c.l.b16 %v4431_v4  ;;  %v3638_v56 = vld [vmem:[#allocation3 + $0x70] sm:$0x8] }
 0x3de   : >> { %v5098_v54 = vpack.c.b16 %v5072_v53, %v5071_v15  ;;  %5041 = vrot.lane.b32.xlu0 %v9411_v13, %s9575_s20  ;;  %v4750_v27 = vrot.slane %v4749_v33, 4  ;;  %v5392_v14 = vunpack.c.l.b16 %v4440_v48  ;;  %v4754_v36 = vor.u32 %v4753_v9, %v4751_v16 }
 0x3df   : >> { %5551 = vrot.lane.b32.xlu2 %v9442_v21, %s9576_s21  ;;  %v4759_v20 = vrot.slane %v4757_v59, 5  ;;  %v3809_v31 = vshll.u32 %v3639_v17, 16  ;;  %v3815_v0 = vshrl.u32 %v3640_v23, 16  ;;  %v3818_v13 = vshll.u32 %v3640_v23, 16  ;;  %v2807_v21 = vpop.f32.mrf.mxu2 }
 0x3e0   : >> { %5119 = vrot.lane.b32.xlu1 %v5098_v54, %s9577_s23  ;;  %v4752_v61 = vsel %vm10347_vm14, %v4750_v27, %v4751_v16  ;;  %v4120_v42 = vrot.slane %v3806_v37, 4  ;;  %v5418_v40 = vpack.c.b16 %v5392_v14, %v5391_v52  ;;  %v4755_v55 = vrot.slane %v4754_v36, 4  ;;  %v10942_v52 = vld [vmem:[#allocation3 + $0x64] sm:$0xf] }
 0x3e1   : >> { %v5583_v24 = vunpack.c.l.b16 %v4752_v61  ;;  %v4121_v46 = vrot.slane %v3809_v31, 5  ;;  %v4124_v15 = vrot.slane %v3818_v13, 5  ;;  %v4126_v53 = vrot.slane %v3815_v0, 4 }
 0x3e2   : >> { %v4130_v50 = vshll.u32 %v4026_v47, 16  ;;  %v2719_v17 = vadd.f32 %v2718_v3, %v10420_v34  ;;  %v4760_v33 = vsel %vm10347_vm14, %v4755_v55, %v4759_v20  ;;  %v3801_v9 = vshrl.u32 %v3638_v56, 16  ;;  %v9464_v20 = vld [vmem:[%s9913_s26 + $0xe8] sm:$0xff] }
 0x3e3   : >> { %v4122_v4 = vor.u32 %v4121_v46, %v4120_v42  ;;  %v3808_v16 = vrot.slane %v3806_v37, 7  ;;  %v5584_v59 = vunpack.c.l.b16 %v4760_v33  ;;  %v4127_v23 = vor.u32 %v4126_v53, %v4124_v15  ;;  %v3383_v46 = vld [vmem:[#allocation3 + $0x6c] sm:$0x1]  ;;  %v2978_v33 = vld [vmem:[#allocation3 + $0x10] sm:$0x8]  ;;  %6170 = vmatpush.bf16.msrb.mxu2 %v9464_v20 }
 0x3e4   : >> { %v4132_v54 = vrot.slane %v4130_v50, 5  ;;  %v2808_v48 = vadd.f32 %v2807_v21, %v2719_v17  ;;  %v8911_v14 = vrot.slane %v3801_v9, 11  ;;  %v3817_v3 = vrot.slane %v3815_v0, 7 }
 0x3e5   : >> { %v4123_v27 = vrot.slane %v4122_v4, 4  ;;  %v3811_v36 = vor.u32 %v3809_v31, %v3808_v16  ;;  %v3813_v61 = vrot.slane %v3808_v16, 4  ;;  %v5610_v47 = vpack.c.b16 %v5584_v59, %v5583_v24  ;;  %v10959_v4 = vpop.permute.xlu2 %5541  ;;  %v2721_v16 = vpop.f32.mrf.mxu1 }
 0x3e6   : >> { %v4128_v58 = vrot.slane %v4127_v23, 4  ;;  %v2862_v34 = vmax.f32 %v2808_v48, 0.0  ;;  %v3163_v56 = vshrl.u32 %v10942_v52, 16  ;;  %v12664_v55 = vshll.u32 %v10942_v52, 16 }
 0x3e7   : >> { %v4125_v37 = vsel %vm10347_vm14, %v4123_v27, %v4124_v15  ;;  %v3812_v42 = vsel %vm10513_vm0, %v8911_v14, %v3811_v36  ;;  %9246 = vmatmul.msk.bf16.gmra.mxu0 %vm226_vm5, %v5610_v47  ;;  %v3820_v21 = vor.u32 %v3818_v13, %v3817_v3  ;;  %v12665_v50 = vshrl.u32 %v10944_v41, 16  ;;  %v4279_v27 = vld [vmem:[#allocation3 + $0x80] sm:$0x8]  ;;  %v2810_v3 = vpop.f32.mrf.mxu3 }
 0x3e8   : >> { %5439 = vrot.lane.b32.xlu1 %v5418_v40, %s9577_s23  ;;  %v4133_v31 = vsel %vm10347_vm14, %v4128_v58, %v4132_v54  ;;  %v5313_v0 = vunpack.c.l.b16 %v4125_v37  ;;  %v2894_v24 = vpack.c.bf16 %v2862_v34, %v2862_v34  ;;  %v5153_v15 = vunpack.c.l.b16 %v3812_v42 }
 0x3e9   : >> { %v5314_v53 = vunpack.c.l.b16 %v4133_v31  ;;  %v12663_v17 = vshll.u32 %v10944_v41, 16  ;;  %v3821_v40 = vsel %vm10513_vm0, %v3813_v61, %v3820_v21  ;;  %v3480_v58 = vrot.slane %v3163_v56, 4 }
 0x3ea   : >> { %2927 = vst.msk [vmem:[#allocation3 + $0x98] sm:$0xf] %vm273_vm7, %v2894_v24  ;;  %v3481_v13 = vrot.slane %v12664_v55, 5  ;;  %v3490_v9 = vshll.u32 %v3383_v46, 16  ;;  %v5154_v23 = vunpack.c.l.b16 %v3821_v40  ;;  %v3486_v48 = vrot.slane %v12665_v50, 4 }
 0x3eb   : >> { %v5339_v59 = vpack.c.b16 %v5314_v53, %v5313_v0  ;;  %v3484_v54 = vrot.slane %v12663_v17, 5  ;;  %v3048_v61 = vshrl.u32 %v2978_v33, 16  ;;  %v12704_v47 = vshrl.u32 %v10541_v1, 16  ;;  %v4280_v0 = vld [vmem:[#allocation3 + $0x84] sm:$0xf] }
 0x3ec   : >> { %v3482_v14 = vor.u32 %v3481_v13, %v3480_v58  ;;  %v3492_v36 = vrot.slane %v3490_v9, 5  ;;  %v5179_v20 = vpack.c.b16 %v5154_v23, %v5153_v15  ;;  %v12705_v42 = vshrl.u32 %v10500_v63, 16 }
 0x3ed   : >> { %v3064_v34 = vrot.slane %v12704_v47, 7  ;;  %5361 = vrot.lane.b32.xlu0 %v5339_v59, %s9575_s20  ;;  %v3487_v37 = vor.u32 %v3486_v48, %v3484_v54  ;;  %v2722_v31 = vadd.f32 %v2721_v16, %v10424_v12  ;;  %v8890_v21 = vrot.slane %v3048_v61, 11  ;;  %v4281_v16 = vld [vmem:[#allocation3 + $0x88] sm:$0xf] }
 0x3ee   : >> { %v3055_v46 = vrot.slane %v12705_v42, 7  ;;  %v3483_v24 = vrot.slane %v3482_v14, 4  ;;  %v12706_v53 = vshll.u32 %v10541_v1, 16  ;;  %v4442_v40 = vshrl.u32 %v4279_v27, 16  ;;  %5201 = vrot.lane.b32.xlu2 %v5179_v20, %s9576_s21  ;;  %v9463_v27 = vld [vmem:[%s9913_s26 + $0xe0] sm:$0xff] }
 0x3ef   : >> { %v3488_v58 = vrot.slane %v3487_v37, 4  ;;  %v12707_v13 = vshll.u32 %v10500_v63, 16  ;;  %v2811_v59 = vadd.f32 %v2810_v3, %v2722_v31  ;;  %v10985_v23 = vadd.f32 %v10802_v44, %v10392_v35  ;;  %v9412_v35 = vld [vmem:[#allocation3 + $0x74] sm:$0xff]  ;;  %6171 = vmatpush.bf16.msrb.mxu2 %v9463_v27 }
 0x3f0   : >> { %v3067_v33 = vor.u32 %v12706_v53, %v3064_v34  ;;  %v3060_v9 = vrot.slane %v3055_v46, 4  ;;  %v3485_v12 = vsel %vm10347_vm14, %v3483_v24, %v3484_v54  ;;  %v4447_v1 = vshrl.u32 %v4280_v0, 16  ;;  %v9443_v54 = vld [vmem:[#allocation3 + $0x84] sm:$0xff]  ;;  %v9462_v37 = vld [vmem:[%s9913_s26 + $0xd8] sm:$0xff] }
 0x3f1   : >> { %v3058_v15 = vor.u32 %v12707_v13, %v3055_v46  ;;  %v4450_v48 = vshll.u32 %v4280_v0, 16  ;;  %v3493_v14 = vsel %vm10347_vm14, %v3488_v58, %v3492_v36  ;;  %v5073_v61 = vunpack.c.l.b16 %v3485_v12  ;;  %v4667_v0 = vld [vmem:[#allocation3 + $0x8c] sm:$0x1]  ;;  %v10997_v58 = vpop.permute.xlu2 %2038 }
 0x3f2   : >> { %v3068_v47 = vsel %vm10513_vm0, %v3060_v9, %v3067_v33  ;;  %v5074_v44 = vunpack.c.l.b16 %v3493_v14  ;;  %v2863_v3 = vmax.f32 %v2811_v59, 0.0  ;;  %v8927_v20 = vrot.slane %v4442_v40, 11  ;;  %v10999_v33 = vld [vmem:[#allocation3 + $0x84] sm:$0xf]  ;;  %v11004_v14 = vld [vmem:[#allocation3 + $0x88] sm:$0xf] }
 0x3f3   : >> { %v3059_v63 = vsel %vm10513_vm0, %v8890_v21, %v3058_v15  ;;  %v4904_v34 = vunpack.c.l.b16 %v3068_v47  ;;  %v4449_v42 = vrot.slane %v4447_v1, 7  ;;  %v4456_v46 = vshrl.u32 %v4281_v16, 16  ;;  %6172 = vmatpush.bf16.msrb.mxu2 %v9462_v37 }
 0x3f4   : >> { %v4459_v31 = vshll.u32 %v4281_v16, 16  ;;  %v4761_v36 = vrot.slane %v4447_v1, 4  ;;  %v5099_v24 = vpack.c.b16 %v5074_v44, %v5073_v61  ;;  %v4903_v53 = vunpack.c.l.b16 %v3059_v63 }
 0x3f5   : >> { %v2895_v21 = vpack.c.bf16 %v2863_v3, %v2863_v3  ;;  %v4762_v13 = vrot.slane %v4450_v48, 5  ;;  %5043 = vrot.lane.b32.xlu0 %v9412_v35, %s9575_s20  ;;  %v4452_v15 = vor.u32 %v4450_v48, %v4449_v42  ;;  %v4454_v9 = vrot.slane %v4449_v42, 4  ;;  %v4027_v42 = vld [vmem:[#allocation3 + $0x8c] sm:$0x1] }
 0x3f6   : >> { %v4458_v40 = vrot.slane %v4456_v46, 7  ;;  %v4765_v59 = vrot.slane %v4459_v31, 5  ;;  %5121 = vrot.lane.b32.xlu1 %v5099_v24, %s9577_s23  ;;  %v4934_v12 = vpack.c.b16 %v4904_v34, %v4903_v53  ;;  %v4767_v1 = vrot.slane %v4456_v46, 4  ;;  %5553 = vrot.lane.b32.xlu2 %v9443_v54, %s9576_s21  ;;  %v9461_v46 = vld [vmem:[%s9913_s26 + $0xd0] sm:$0xff] }
 0x3f7   : >> { %2928 = vst.msk [vmem:[#allocation3 + $0xa4] sm:$0xf] %vm273_vm7, %v2895_v21  ;;  %v4763_v16 = vor.u32 %v4762_v13, %v4761_v36  ;;  %v4771_v27 = vshll.u32 %v4667_v0, 16  ;;  %v4453_v48 = vsel %vm10513_vm0, %v8927_v20, %v4452_v15  ;;  %v3828_v63 = vshrl.u32 %v10999_v33, 16  ;;  %v2723_v20 = vpop.f32.mrf.mxu1  ;;  %6173 = vmatpush.bf16.msrb.mxu2 %v9461_v46 }
 0x3f8   : >> { %v4461_v61 = vor.u32 %v4459_v31, %v4458_v40  ;;  %v3831_v47 = vshll.u32 %v10999_v33, 16  ;;  %v5393_v35 = vunpack.c.l.b16 %v4453_v48  ;;  %v4768_v34 = vor.u32 %v4767_v1, %v4765_v59  ;;  %v5032_v31 = vpop.permute.xlu0 %5031  ;;  %v5112_v1 = vpop.permute.xlu1 %5111 }
 0x3f9   : >> { %v4764_v44 = vrot.slane %v4763_v16, 4  ;;  %v4773_v3 = vrot.slane %v4771_v27, 5  ;;  %v3837_v37 = vshrl.u32 %v11004_v14, 16  ;;  %v3840_v54 = vshll.u32 %v11004_v14, 16  ;;  %v3641_v27 = vld [vmem:[#allocation3 + $0x80] sm:$0x8]  ;;  %v5192_v46 = vpop.permute.xlu2 %5191 }
 0x3fa   : >> { %v4462_v0 = vsel %vm10513_vm0, %v4454_v9, %v4461_v61  ;;  %v4134_v36 = vrot.slane %v3828_v63, 4  ;;  %v4769_v21 = vrot.slane %v4768_v34, 4  ;;  %v4135_v13 = vrot.slane %v3831_v47, 5  ;;  %v2812_v9 = vpop.f32.mrf.mxu3 }
 0x3fb   : >> { %v5394_v24 = vunpack.c.l.b16 %v4462_v0  ;;  %v4766_v53 = vsel %vm10347_vm14, %v4764_v44, %v4765_v59  ;;  %v4138_v15 = vrot.slane %v3840_v54, 5  ;;  %v4140_v40 = vrot.slane %v3837_v37, 4 }
 0x3fc   : >> { %v5585_v33 = vunpack.c.l.b16 %v4766_v53  ;;  %v4144_v16 = vshll.u32 %v4027_v42, 16  ;;  %v4774_v14 = vsel %vm10347_vm14, %v4769_v21, %v4773_v3  ;;  %v4136_v61 = vor.u32 %v4135_v13, %v4134_v36  ;;  %v11025_v21 = vld [vmem:[#allocation3 + $0x74] sm:$0xf]  ;;  %v11029_v13 = vld [vmem:[#allocation3 + $0x78] sm:$0xf] }
 0x3fd   : >> { %v5419_v48 = vpack.c.b16 %v5394_v24, %v5393_v35  ;;  %v2724_v0 = vadd.f32 %v2723_v20, %v10428_v25  ;;  %v5626_v17 = vsel %vm226_vm5, %v4934_v12, %v5032_v31  ;;  %v5586_v59 = vunpack.c.l.b16 %v4774_v14 }
 0x3fe   : >> { %v4141_v44 = vor.u32 %v4140_v40, %v4138_v15  ;;  %v4146_v34 = vrot.slane %v4144_v16, 5  ;;  %v4137_v53 = vrot.slane %v4136_v61, 4  ;;  %v5672_v42 = vsel %vm2168_vm10, %v5626_v17, %v5112_v1  ;;  %v917_v61 = vld [vmem:[#allocation2 + $0x208] sm:$0xff] }
 0x3ff   : >> { %5441 = vrot.lane.b32.xlu1 %v5419_v48, %s9577_s23  ;;  %v2813_v55 = vadd.f32 %v2812_v9, %v2724_v0  ;;  %v3823_v50 = vshrl.u32 %v3641_v27, 16  ;;  %v5611_v35 = vpack.c.b16 %v5586_v59, %v5585_v33  ;;  %v5705_v3 = vsel %vm2201_vm11, %v5672_v42, %v5192_v46  ;;  %v2726_v14 = vpop.f32.mrf.mxu1  ;;  %v918_v0 = vld [vmem:[#allocation2 + $0x210] sm:$0xff] }
 0x400   : >> { %v4142_v24 = vrot.slane %v4141_v44, 4  ;;  %v3830_v36 = vrot.slane %v3828_v63, 7  ;;  %v4139_v25 = vsel %vm10347_vm14, %v4137_v53, %v4138_v15  ;;  %6090 = vmatmul.bf16.gmra.mxu3 %v5705_v3  ;;  %v3839_v31 = vrot.slane %v3837_v37, 7  ;;  %v3384_v15 = vld [vmem:[#allocation3 + $0x7c] sm:$0x1]  ;;  %v5350_v3 = vpop.permute.xlu0 %5349 }
 0x401   : >> { %v2864_v12 = vmax.f32 %v2813_v55, 0.0  ;;  %v8912_v20 = vrot.slane %v3823_v50, 11  ;;  %9247 = vmatmul.msk.bf16.gmra.mxu0 %vm226_vm5, %v5611_v35  ;;  %v5315_v33 = vunpack.c.l.b16 %v4139_v25  ;;  %v3185_v27 = vshrl.u32 %v11025_v21, 16 }
 0x402   : >> { %v4147_v17 = vsel %vm10347_vm14, %v4142_v24, %v4146_v34  ;;  %v3833_v40 = vor.u32 %v3831_v47, %v3830_v36  ;;  %v3835_v16 = vrot.slane %v3830_v36, 4  ;;  %v3842_v9 = vor.u32 %v3840_v54, %v3839_v31  ;;  %v4282_v34 = vld [vmem:[#allocation3 + $0x90] sm:$0x8]  ;;  %v2815_v24 = vpop.f32.mrf.mxu3  ;;  %v4283_v31 = vld [vmem:[#allocation3 + $0x94] sm:$0xf] }
 0x403   : >> { %v5316_v63 = vunpack.c.l.b16 %v4147_v17  ;;  %v2896_v1 = vpack.c.bf16 %v2864_v12, %v2864_v12  ;;  %v12667_v50 = vshll.u32 %v11025_v21, 16  ;;  %v12668_v37 = vshrl.u32 %v11029_v13, 16  ;;  %v9421_v17 = vld [vmem:[#allocation3 + $0x14] sm:$0xff] }
 0x404   : >> { %v3834_v55 = vsel %vm10513_vm0, %v8912_v20, %v3833_v40  ;;  %v12666_v48 = vshll.u32 %v11029_v13, 16  ;;  %v3843_v54 = vsel %vm10513_vm0, %v3835_v16, %v3842_v9  ;;  %v3494_v44 = vrot.slane %v3185_v27, 4 }
 0x405   : >> { %v5340_v47 = vpack.c.b16 %v5316_v63, %v5315_v33  ;;  %2929 = vst.msk [vmem:[#allocation3 + $0xa8] sm:$0xf] %vm273_vm7, %v2896_v1  ;;  %v5155_v59 = vunpack.c.l.b16 %v3834_v55  ;;  %v5156_v46 = vunpack.c.l.b16 %v3843_v54  ;;  %v3495_v53 = vrot.slane %v12667_v50, 5  ;;  %v4284_v63 = vld [vmem:[#allocation3 + $0x98] sm:$0xf] }
 0x406   : >> { %v3498_v42 = vrot.slane %v12666_v48, 5  ;;  %v3500_v35 = vrot.slane %v12668_v37, 4  ;;  %v3504_v36 = vshll.u32 %v3384_v15, 16  ;;  %v2727_v25 = vadd.f32 %v2726_v14, %v10432_v10  ;;  %v11086_v37 = vld [vmem:[#allocation3 + $0x84] sm:$0xf] }
 0x407   : >> { %5363 = vrot.lane.b32.xlu0 %v5340_v47, %s9575_s20  ;;  %v949_v12 = vpack.c.bf16 %v917_v61, %v917_v61  ;;  %v950_v20 = vpack.c.bf16 %v918_v0, %v918_v0  ;;  %v5180_v33 = vpack.c.b16 %v5156_v46, %v5155_v59  ;;  %v3496_v40 = vor.u32 %v3495_v53, %v3494_v44  ;;  %v9413_v61 = vld [vmem:[#allocation3 + $0x84] sm:$0xff] }
 0x408   : >> { %v3501_v16 = vor.u32 %v3500_v35, %v3498_v42  ;;  %v4464_v1 = vshrl.u32 %v4282_v34, 16  ;;  %v3506_v9 = vrot.slane %v3504_v36, 5  ;;  %v2816_v48 = vadd.f32 %v2815_v24, %v2727_v25 }
 0x409   : >> { %v11053_v55 = vunpack.c.l.b16 %v949_v12  ;;  %v11055_v54 = vunpack.c.l.b16 %v950_v20  ;;  %v5751_v47 = vsel %vm226_vm5, %v9421_v17, %v5350_v3  ;;  %5203 = vrot.lane.b32.xlu2 %v5180_v33, %s9576_s21  ;;  %v3497_v10 = vrot.slane %v3496_v40, 4  ;;  %v4668_v20 = vld [vmem:[#allocation3 + $0x9c] sm:$0x1]  ;;  %v11065_v17 = vld [vmem:[#allocation3 + $0x94] sm:$0xf] }
 0x40a   : >> { %v3502_v15 = vrot.slane %v3501_v16, 4  ;;  %v4469_v14 = vshrl.u32 %v4283_v31, 16  ;;  %v2865_v0 = vmax.f32 %v2816_v48, 0.0  ;;  %v8928_v59 = vrot.slane %v4464_v1, 11  ;;  %v11067_v16 = vld [vmem:[#allocation3 + $0x98] sm:$0xf]  ;;  %v2817_v50 = vpop.f32.mrf.mxu3 }
 0x40b   : >> { %v4472_v44 = vshll.u32 %v4283_v31, 16  ;;  %v4478_v46 = vshrl.u32 %v4284_v63, 16  ;;  %v3499_v34 = vsel %vm10347_vm14, %v3497_v10, %v3498_v42  ;;  %v4481_v24 = vshll.u32 %v4284_v63, 16  ;;  %v9444_v10 = vld [vmem:[#allocation3 + $0x94] sm:$0xff] }
 0x40c   : >> { %v3507_v53 = vsel %vm10347_vm14, %v3502_v15, %v3506_v9  ;;  %v4471_v35 = vrot.slane %v4469_v14, 7  ;;  %v5075_v36 = vunpack.c.l.b16 %v3499_v34  ;;  %v1703_v25 = vpack.c.b16 %v11055_v54, %v11053_v55  ;;  %v4287_v22 = vld [vmem:[#allocation3 + $0xa8] sm:$0xf] }
 0x40d   : >> { %v5076_v3 = vunpack.c.l.b16 %v3507_v53  ;;  %v2897_v12 = vpack.c.bf16 %v2865_v0, %v2865_v0  ;;  %v4480_v33 = vrot.slane %v4478_v46, 7  ;;  %v4775_v40 = vrot.slane %v4469_v14, 4 }
 0x40e   : >> { %v4474_v48 = vor.u32 %v4472_v44, %v4471_v35  ;;  %v4476_v31 = vrot.slane %v4471_v35, 4  ;;  %v4776_v63 = vrot.slane %v4472_v44, 5  ;;  %v4779_v1 = vrot.slane %v4481_v24, 5  ;;  %v4028_v35 = vld [vmem:[#allocation3 + $0x9c] sm:$0x1] }
 0x40f   : >> { %v5100_v42 = vpack.c.b16 %v5076_v3, %v5075_v36  ;;  %5045 = vrot.lane.b32.xlu0 %v9413_v61, %s9575_s20  ;;  %2930 = vst.msk [vmem:[#allocation3 + $0xb4] sm:$0xf] %vm273_vm7, %v2897_v12  ;;  %v4781_v9 = vrot.slane %v4478_v46, 4  ;;  %v4483_v54 = vor.u32 %v4481_v24, %v4480_v33  ;;  %v4785_v15 = vshll.u32 %v4668_v20, 16  ;;  %v5430_v36 = vpop.permute.xlu1 %5429  ;;  %v2728_v33 = vpop.f32.mrf.mxu1 }
 0x410   : >> { %v4475_v55 = vsel %vm10513_vm0, %v8928_v59, %v4474_v48  ;;  %v3850_v0 = vshrl.u32 %v11065_v17, 16  ;;  %v4777_v34 = vor.u32 %v4776_v63, %v4775_v40  ;;  %v3853_v61 = vshll.u32 %v11065_v17, 16 }
 0x411   : >> { %5123 = vrot.lane.b32.xlu1 %v5100_v42, %s9577_s23  ;;  %v5395_v14 = vunpack.c.l.b16 %v4475_v55  ;;  %v4782_v53 = vor.u32 %v4781_v9, %v4779_v1  ;;  %5555 = vrot.lane.b32.xlu2 %v9444_v10, %s9576_s21  ;;  %v4484_v44 = vsel %vm10513_vm0, %v4476_v31, %v4483_v54  ;;  %v4787_v46 = vrot.slane %v4785_v15, 5  ;;  %v1815_v54 = vpop.permute.xlu0 %1814 }
 0x412   : >> { %v3859_v59 = vshrl.u32 %v11067_v16, 16  ;;  %v3862_v24 = vshll.u32 %v11067_v16, 16  ;;  %v5396_v3 = vunpack.c.l.b16 %v4484_v44  ;;  %v4778_v12 = vrot.slane %v4777_v34, 4  ;;  %v3644_v16 = vld [vmem:[#allocation3 + $0x90] sm:$0x8] }
 0x413   : >> { %v4783_v20 = vrot.slane %v4782_v53, 4  ;;  %v4148_v48 = vrot.slane %v3850_v0, 4  ;;  %v4149_v40 = vrot.slane %v3853_v61, 5  ;;  %v4158_v63 = vshll.u32 %v4028_v35, 16 }
 0x414   : >> { %v4152_v42 = vrot.slane %v3862_v24, 5  ;;  %v4154_v17 = vrot.slane %v3859_v59, 4  ;;  %v5420_v9 = vpack.c.b16 %v5396_v3, %v5395_v14  ;;  %v4780_v10 = vsel %vm10347_vm14, %v4778_v12, %v4779_v1 }
 0x415   : >> { %v4788_v31 = vsel %vm10347_vm14, %v4783_v20, %v4787_v46  ;;  %v5798_v55 = vsel %vm2168_vm10, %v5751_v47, %v5430_v36  ;;  %v5587_v15 = vunpack.c.l.b16 %v4780_v10  ;;  %v4150_v53 = vor.u32 %v4149_v40, %v4148_v48 }
 0x416   : >> { %v5588_v34 = vunpack.c.l.b16 %v4788_v31  ;;  %v4155_v44 = vor.u32 %v4154_v17, %v4152_v42  ;;  %v2297_v35 = vsel %vm226_vm5, %v1703_v25, %v1815_v54  ;;  %v4160_v14 = vrot.slane %v4158_v63, 5  ;;  %v11093_v17 = vld [vmem:[#allocation3 + $0x88] sm:$0xf]  ;;  %v3385_v54 = vld [vmem:[#allocation3 + $0x8c] sm:$0x1] }
 0x417   : >> { %v2729_v3 = vadd.f32 %v2728_v33, %v10436_v30  ;;  %v5830_v1 = vsel %vm2201_vm11, %v5798_v55, %v10959_v4  ;;  %v4151_v12 = vrot.slane %v4150_v53, 4  ;;  %v3845_v36 = vshrl.u32 %v3644_v16, 16 }
 0x418   : >> { %v5612_v46 = vpack.c.b16 %v5588_v34, %v5587_v15  ;;  %v4156_v47 = vrot.slane %v4155_v44, 4  ;;  %6174 = vmatmul.bf16.vlgmr.msrb.gmra.mxu2 %v5830_v1  ;;  %v3852_v48 = vrot.slane %v3850_v0, 7  ;;  %v3861_v40 = vrot.slane %v3859_v59, 7  ;;  %v1927_v15 = vpop.permute.xlu1 %1926 }
 0x419   : >> { %5443 = vrot.lane.b32.xlu1 %v5420_v9, %s9577_s23  ;;  %v2818_v20 = vadd.f32 %v2817_v50, %v2729_v3  ;;  %v3207_v25 = vshrl.u32 %v11086_v37, 16  ;;  %v4153_v30 = vsel %vm10347_vm14, %v4151_v12, %v4152_v42  ;;  %v8913_v33 = vrot.slane %v3845_v36, 11  ;;  %v2981_v3 = vld [vmem:[#allocation3 + $0x20] sm:$0x8] }
 0x41a   : >> { %9248 = vmatmul.msk.bf16.gmra.mxu0 %vm226_vm5, %v5612_v46  ;;  %v4161_v4 = vsel %vm10347_vm14, %v4156_v47, %v4160_v14  ;;  %v3210_v63 = vshll.u32 %v11086_v37, 16  ;;  %v5317_v10 = vunpack.c.l.b16 %v4153_v30  ;;  %v3855_v0 = vor.u32 %v3853_v61, %v3852_v48  ;;  %v2731_v14 = vpop.f32.mrf.mxu1 }
 0x41b   : >> { %v5318_v9 = vunpack.c.l.b16 %v4161_v4  ;;  %v2866_v50 = vmax.f32 %v2818_v20, 0.0  ;;  %v3857_v59 = vrot.slane %v3852_v48, 4  ;;  %v3864_v31 = vor.u32 %v3862_v24, %v3861_v40 }
 0x41c   : >> { %v3216_v55 = vshrl.u32 %v11093_v17, 16  ;;  %v3219_v16 = vshll.u32 %v11093_v17, 16  ;;  %v3856_v53 = vsel %vm10513_vm0, %v8913_v33, %v3855_v0  ;;  %v3508_v44 = vrot.slane %v3207_v25, 4  ;;  %v2820_v33 = vpop.f32.mrf.mxu3 }
 0x41d   : >> { %v5341_v34 = vpack.c.b16 %v5318_v9, %v5317_v10  ;;  %v2898_v42 = vpack.c.bf16 %v2866_v50, %v2866_v50  ;;  %v3865_v61 = vsel %vm10513_vm0, %v3857_v59, %v3864_v31  ;;  %v5157_v24 = vunpack.c.l.b16 %v3856_v53  ;;  %v4285_v59 = vld [vmem:[#allocation3 + $0xa0] sm:$0x8]  ;;  %v4286_v31 = vld [vmem:[#allocation3 + $0xa4] sm:$0xf] }
 0x41e   : >> { %v3509_v1 = vrot.slane %v3210_v63, 5  ;;  %v3512_v46 = vrot.slane %v3219_v16, 5  ;;  %v5158_v12 = vunpack.c.l.b16 %v3865_v61  ;;  %v3514_v47 = vrot.slane %v3216_v55, 4 }
 0x41f   : >> { %5365 = vrot.lane.b32.xlu0 %v5341_v34, %s9575_s20  ;;  %2931 = vst.msk [vmem:[#allocation3 + $0xb8] sm:$0xf] %vm273_vm7, %v2898_v42  ;;  %v3518_v36 = vshll.u32 %v3385_v54, 16  ;;  %v2329_v20 = vsel %vm2168_vm10, %v2297_v35, %v1927_v15  ;;  %v2732_v40 = vadd.f32 %v2731_v14, %v10443_v7  ;;  %v3070_v30 = vshrl.u32 %v2981_v3, 16  ;;  %v5352_v3 = vpop.permute.xlu0 %5351 }
 0x420   : >> { %v3510_v48 = vor.u32 %v3509_v1, %v3508_v44  ;;  %v3077_v4 = vrot.slane %v3075_v28, 7  ;;  %v5181_v10 = vpack.c.b16 %v5158_v12, %v5157_v24  ;;  %v3515_v9 = vor.u32 %v3514_v47, %v3512_v46  ;;  %v9422_v1 = vld [vmem:[#allocation3 + $0x24] sm:$0xff] }
 0x421   : >> { %v3520_v50 = vrot.slane %v3518_v36, 5  ;;  %v3086_v0 = vrot.slane %v3084_v19, 7  ;;  %v8891_v54 = vrot.slane %v3070_v30, 11  ;;  %v2376_v42 = vsel %vm2201_vm11, %v2329_v20, %v10997_v58 }
 0x422   : >> { %v3511_v34 = vrot.slane %v3510_v48, 4  ;;  %v3080_v35 = vor.u32 %v3078_v6, %v3077_v4  ;;  %v3082_v15 = vrot.slane %v3077_v4, 4  ;;  %5205 = vrot.lane.b32.xlu2 %v5181_v10, %s9576_s21  ;;  %v3516_v7 = vrot.slane %v3515_v9, 4  ;;  %2750 = vmatmul.bf16.gmra.mxu1 %v2376_v42  ;;  %v4669_v4 = vld [vmem:[#allocation3 + $0xac] sm:$0x1] }
 0x423   : >> { %v3089_v28 = vor.u32 %v3087_v38, %v3086_v0  ;;  %v2821_v53 = vadd.f32 %v2820_v33, %v2732_v40  ;;  %v4486_v6 = vshrl.u32 %v4285_v59, 16  ;;  %v4491_v14 = vshrl.u32 %v4286_v31, 16  ;;  %v9414_v38 = vld [vmem:[#allocation3 + $0x94] sm:$0xff]  ;;  %v11141_v0 = vld [vmem:[#allocation3 + $0xa4] sm:$0xf] }
 0x424   : >> { %v3513_v19 = vsel %vm10347_vm14, %v3511_v34, %v3512_v46  ;;  %v3081_v44 = vsel %vm10513_vm0, %v8891_v54, %v3080_v35  ;;  %v3521_v61 = vsel %vm10347_vm14, %v3516_v7, %v3520_v50  ;;  %v4494_v48 = vshll.u32 %v4286_v31, 16  ;;  %v9445_v34 = vld [vmem:[#allocation3 + $0xa4] sm:$0xff] }
 0x425   : >> { %v5077_v49 = vunpack.c.l.b16 %v3513_v19  ;;  %v3090_v58 = vsel %vm10513_vm0, %v3082_v15, %v3089_v28  ;;  %v4905_v24 = vunpack.c.l.b16 %v3081_v44  ;;  %v5078_v12 = vunpack.c.l.b16 %v3521_v61  ;;  %v11143_v7 = vld [vmem:[#allocation3 + $0xa8] sm:$0xf] }
 0x426   : >> { %v4906_v46 = vunpack.c.l.b16 %v3090_v58  ;;  %v2867_v47 = vmax.f32 %v2821_v53, 0.0  ;;  %v8929_v36 = vrot.slane %v4486_v6, 11  ;;  %v4493_v20 = vrot.slane %v4491_v14, 7 }
 0x427   : >> { %5047 = vrot.lane.b32.xlu0 %v9414_v38, %s9575_s20  ;;  %v4500_v40 = vshrl.u32 %v4287_v22, 16  ;;  %v4503_v30 = vshll.u32 %v4287_v22, 16  ;;  %v5754_v33 = vsel %vm226_vm5, %v9422_v1, %v5352_v3  ;;  %v5101_v10 = vpack.c.b16 %v5078_v12, %v5077_v49  ;;  %v4029_v38 = vld [vmem:[#allocation3 + $0xac] sm:$0x1] }
 0x428   : >> { %v2899_v9 = vpack.c.bf16 %v2867_v47, %v2867_v47  ;;  %v4789_v50 = vrot.slane %v4491_v14, 4  ;;  %v4935_v59 = vpack.c.b16 %v4906_v46, %v4905_v24  ;;  %v4496_v54 = vor.u32 %v4494_v48, %v4493_v20  ;;  %v5432_v46 = vpop.permute.xlu1 %5431  ;;  %v2733_v47 = vpop.f32.mrf.mxu1 }
 0x429   : >> { %v4502_v35 = vrot.slane %v4500_v40, 7  ;;  %v4790_v15 = vrot.slane %v4494_v48, 5  ;;  %5125 = vrot.lane.b32.xlu1 %v5101_v10, %s9577_s23  ;;  %v4498_v31 = vrot.slane %v4493_v20, 4  ;;  %v4793_v28 = vrot.slane %v4503_v30, 5 }
 0x42a   : >> { %2932 = vst.msk [vmem:[#allocation3 + $0xc4] sm:$0xf] %vm273_vm7, %v2899_v9  ;;  %v4795_v42 = vrot.slane %v4500_v40, 4  ;;  %v4799_v53 = vshll.u32 %v4669_v4, 16  ;;  %5557 = vrot.lane.b32.xlu2 %v9445_v34, %s9576_s21  ;;  %v4497_v19 = vsel %vm10513_vm0, %v8929_v36, %v4496_v54  ;;  %v3872_v6 = vshrl.u32 %v11141_v0, 16 }
 0x42b   : >> { %v4505_v44 = vor.u32 %v4503_v30, %v4502_v35  ;;  %v4791_v22 = vor.u32 %v4790_v15, %v4789_v50  ;;  %v5397_v14 = vunpack.c.l.b16 %v4497_v19  ;;  %v3875_v49 = vshll.u32 %v11141_v0, 16  ;;  %v5034_v30 = vpop.permute.xlu0 %5033  ;;  %v3647_v15 = vld [vmem:[#allocation3 + $0xa0] sm:$0x8] }
 0x42c   : >> { %v4796_v3 = vor.u32 %v4795_v42, %v4793_v28  ;;  %v4801_v61 = vrot.slane %v4799_v53, 5  ;;  %v3881_v1 = vshrl.u32 %v11143_v7, 16  ;;  %v3884_v12 = vshll.u32 %v11143_v7, 16  ;;  %v5544_v7 = vpop.permute.xlu2 %5543 }
 0x42d   : >> { %v4506_v58 = vsel %vm10513_vm0, %v4498_v31, %v4505_v44  ;;  %v4792_v24 = vrot.slane %v4791_v22, 4  ;;  %v4162_v48 = vrot.slane %v3872_v6, 4  ;;  %v4163_v40 = vrot.slane %v3875_v49, 5  ;;  %v2822_v44 = vpop.f32.mrf.mxu3  ;;  %v11161_v22 = vld [vmem:[#allocation3 + $0x94] sm:$0xf] }
 0x42e   : >> { %v5398_v36 = vunpack.c.l.b16 %v4506_v58  ;;  %v4797_v20 = vrot.slane %v4796_v3, 4  ;;  %v4166_v10 = vrot.slane %v3884_v12, 5  ;;  %v4168_v9 = vrot.slane %v3881_v1, 4 }
 0x42f   : >> { %v4794_v4 = vsel %vm10347_vm14, %v4792_v24, %v4793_v28  ;;  %v4172_v50 = vshll.u32 %v4029_v38, 16  ;;  %v4164_v35 = vor.u32 %v4163_v40, %v4162_v48  ;;  %v5800_v19 = vsel %vm2168_vm10, %v5754_v33, %v5432_v46  ;;  %v11169_v48 = vld [vmem:[#allocation3 + $0x98] sm:$0xf] }
 0x430   : >> { %v5421_v0 = vpack.c.b16 %v5398_v36, %v5397_v14  ;;  %v4802_v34 = vsel %vm10347_vm14, %v4797_v20, %v4801_v61  ;;  %v5589_v54 = vunpack.c.l.b16 %v4794_v4  ;;  %v4169_v42 = vor.u32 %v4168_v9, %v4166_v10 }
 0x431   : >> { %v5590_v31 = vunpack.c.l.b16 %v4802_v34  ;;  %v4174_v53 = vrot.slane %v4172_v50, 5  ;;  %v5629_v28 = vsel %vm226_vm5, %v4935_v59, %v5034_v30  ;;  %v4165_v14 = vrot.slane %v4164_v35, 4  ;;  %v5114_v35 = vpop.permute.xlu1 %5113 }
 0x432   : >> { %5445 = vrot.lane.b32.xlu1 %v5421_v0, %s9577_s23  ;;  %v2734_v3 = vadd.f32 %v2733_v47, %v10447_v62  ;;  %v5833_v61 = vsel %vm2201_vm11, %v5800_v19, %v5544_v7  ;;  %v4170_v58 = vrot.slane %v4169_v42, 4  ;;  %v3867_v24 = vshrl.u32 %v3647_v15, 16  ;;  %v2736_v15 = vpop.f32.mrf.mxu1 }
 0x433   : >> { %v5613_v38 = vpack.c.b16 %v5590_v31, %v5589_v54  ;;  %6179 = vmatmul.bf16.gmra.mxu2 %v5833_v61  ;;  %v3874_v36 = vrot.slane %v3872_v6, 7  ;;  %v4167_v33 = vsel %vm10347_vm14, %v4165_v14, %v4166_v10  ;;  %v3883_v20 = vrot.slane %v3881_v1, 7  ;;  %v3386_v54 = vld [vmem:[#allocation3 + $0x9c] sm:$0x1] }
 0x434   : >> { %v2823_v46 = vadd.f32 %v2822_v44, %v2734_v3  ;;  %v3229_v59 = vshrl.u32 %v11161_v22, 16  ;;  %v4175_v62 = vsel %vm10347_vm14, %v4170_v58, %v4174_v53  ;;  %v5319_v47 = vunpack.c.l.b16 %v4167_v33  ;;  %v2984_v53 = vld [vmem:[#allocation3 + $0x30] sm:$0x8] }
 0x435   : >> { %9249 = vmatmul.msk.bf16.gmra.mxu0 %vm226_vm5, %v5613_v38  ;;  %v8914_v40 = vrot.slane %v3867_v24, 11  ;;  %v3877_v30 = vor.u32 %v3875_v49, %v3874_v36  ;;  %v5320_v4 = vunpack.c.l.b16 %v4175_v62  ;;  %v3879_v6 = vrot.slane %v3874_v36, 4  ;;  %v5194_v24 = vpop.permute.xlu2 %5193 }
 0x436   : >> { %v2868_v9 = vmax.f32 %v2823_v46, 0.0  ;;  %v3886_v50 = vor.u32 %v3884_v12, %v3883_v20  ;;  %v12684_v1 = vshll.u32 %v11161_v22, 16  ;;  %v3238_v0 = vshrl.u32 %v11169_v48, 16 }
 0x437   : >> { %v3878_v10 = vsel %vm10513_vm0, %v8914_v40, %v3877_v30  ;;  %v3241_v34 = vshll.u32 %v11169_v48, 16  ;;  %v5342_v7 = vpack.c.b16 %v5320_v4, %v5319_v47  ;;  %v3522_v19 = vrot.slane %v3229_v59, 4  ;;  %v2825_v47 = vpop.f32.mrf.mxu3  ;;  %v4288_v40 = vld [vmem:[#allocation3 + $0xb0] sm:$0x8] }
 0x438   : >> { %v2900_v31 = vpack.c.bf16 %v2868_v9, %v2868_v9  ;;  %v3887_v49 = vsel %vm10513_vm0, %v3879_v6, %v3886_v50  ;;  %v5159_v42 = vunpack.c.l.b16 %v3878_v10  ;;  %v3523_v44 = vrot.slane %v12684_v1, 5  ;;  %v4289_v10 = vld [vmem:[#allocation3 + $0xb4] sm:$0xf] }
 0x439   : >> { %v5160_v12 = vunpack.c.l.b16 %v3887_v49  ;;  %v3526_v14 = vrot.slane %v3241_v34, 5  ;;  %5367 = vrot.lane.b32.xlu0 %v5342_v7, %s9575_s20  ;;  %v3528_v3 = vrot.slane %v3238_v0, 4  ;;  %v3532_v61 = vshll.u32 %v3386_v54, 16 }
 0x43a   : >> { %2933 = vst.msk [vmem:[#allocation3 + $0xc8] sm:$0xf] %vm273_vm7, %v2900_v31  ;;  %v5674_v38 = vsel %vm2168_vm10, %v5629_v28, %v5114_v35  ;;  %v2737_v58 = vadd.f32 %v2736_v15, %v10451_v2  ;;  %v3524_v33 = vor.u32 %v3523_v44, %v3522_v19  ;;  %v3092_v46 = vshrl.u32 %v2984_v53, 16  ;;  %v5354_v28 = vpop.permute.xlu0 %5353 }
 0x43b   : >> { %v5182_v36 = vpack.c.b16 %v5160_v12, %v5159_v42  ;;  %v12708_v20 = vshrl.u32 %v10765_v18, 16  ;;  %v3529_v30 = vor.u32 %v3528_v3, %v3526_v14  ;;  %v3534_v4 = vrot.slane %v3532_v61, 5  ;;  %v4290_v3 = vld [vmem:[#allocation3 + $0xb8] sm:$0xf] }
 0x43c   : >> { %v12709_v9 = vshrl.u32 %v10771_v57, 16  ;;  %v5708_v50 = vsel %vm2201_vm11, %v5674_v38, %v5194_v24  ;;  %v3525_v2 = vrot.slane %v3524_v33, 4  ;;  %v8892_v54 = vrot.slane %v3092_v46, 11 }
 0x43d   : >> { %v3099_v62 = vrot.slane %v12708_v20, 7  ;;  %5207 = vrot.lane.b32.xlu2 %v5182_v36, %s9576_s21  ;;  %v12710_v35 = vshll.u32 %v10765_v18, 16  ;;  %6095 = vmatmul.bf16.gmra.mxu3 %v5708_v50  ;;  %v3530_v31 = vrot.slane %v3529_v30, 4  ;;  %v12711_v49 = vshll.u32 %v10771_v57, 16  ;;  %v9415_v36 = vld [vmem:[#allocation3 + $0xa4] sm:$0xff] }
 0x43e   : >> { %v3108_v6 = vrot.slane %v12709_v9, 7  ;;  %v2826_v53 = vadd.f32 %v2825_v47, %v2737_v58  ;;  %v4508_v12 = vshrl.u32 %v4288_v40, 16  ;;  %v3527_v19 = vsel %vm10347_vm14, %v3525_v2, %v3526_v14  ;;  %v9423_v58 = vld [vmem:[#allocation3 + $0x34] sm:$0xff]  ;;  %v4670_v9 = vld [vmem:[#allocation3 + $0xbc] sm:$0x1] }
 0x43f   : >> { %v3102_v15 = vor.u32 %v12710_v35, %v3099_v62  ;;  %v3104_v7 = vrot.slane %v3099_v62, 4  ;;  %v4513_v61 = vshrl.u32 %v4289_v10, 16  ;;  %v4516_v38 = vshll.u32 %v4289_v10, 16  ;;  %v9446_v2 = vld [vmem:[#allocation3 + $0xb4] sm:$0xff] }
 0x440   : >> { %v3111_v42 = vor.u32 %v12711_v49, %v3108_v6  ;;  %v3535_v18 = vsel %vm10347_vm14, %v3530_v31, %v3534_v4  ;;  %v5079_v24 = vunpack.c.l.b16 %v3527_v19  ;;  %v2869_v62 = vmax.f32 %v2826_v53, 0.0  ;;  %v11214_v35 = vld [vmem:[#allocation3 + $0xb4] sm:$0xf] }
 0x441   : >> { %v3103_v44 = vsel %vm10513_vm0, %v8892_v54, %v3102_v15  ;;  %v5080_v46 = vunpack.c.l.b16 %v3535_v18  ;;  %v8930_v14 = vrot.slane %v4508_v12, 11  ;;  %5049 = vrot.lane.b32.xlu0 %v9415_v36, %s9575_s20  ;;  %v4515_v47 = vrot.slane %v4513_v61, 7 }
 0x442   : >> { %v3112_v57 = vsel %vm10513_vm0, %v3104_v7, %v3111_v42  ;;  %v4907_v33 = vunpack.c.l.b16 %v3103_v44  ;;  %v4522_v40 = vshrl.u32 %v4290_v3, 16  ;;  %v4525_v30 = vshll.u32 %v4290_v3, 16  ;;  %v11216_v42 = vld [vmem:[#allocation3 + $0xb8] sm:$0xf]  ;;  %v5036_v18 = vpop.permute.xlu0 %5035 }
 0x443   : >> { %v4908_v20 = vunpack.c.l.b16 %v3112_v57  ;;  %v4803_v6 = vrot.slane %v4513_v61, 4  ;;  %v5757_v4 = vsel %vm226_vm5, %v9423_v58, %v5354_v28  ;;  %v5102_v50 = vpack.c.b16 %v5080_v46, %v5079_v24  ;;  %v4030_v58 = vld [vmem:[#allocation3 + $0xbc] sm:$0x1] }
 0x444   : >> { %v2901_v10 = vpack.c.bf16 %v2869_v62, %v2869_v62  ;;  %v4804_v54 = vrot.slane %v4516_v38, 5  ;;  %v4518_v7 = vor.u32 %v4516_v38, %v4515_v47  ;;  %v4524_v31 = vrot.slane %v4522_v40, 7 }
 0x445   : >> { %v4936_v15 = vpack.c.b16 %v4908_v20, %v4907_v33  ;;  %v4807_v49 = vrot.slane %v4525_v30, 5  ;;  %5127 = vrot.lane.b32.xlu1 %v5102_v50, %s9577_s23  ;;  %5559 = vrot.lane.b32.xlu2 %v9446_v2, %s9576_s21  ;;  %v4520_v53 = vrot.slane %v4515_v47, 4  ;;  %v4809_v12 = vrot.slane %v4522_v40, 4  ;;  %v2738_v40 = vpop.f32.mrf.mxu1 }
 0x446   : >> { %2934 = vst.msk [vmem:[#allocation3 + $0xd4] sm:$0xf] %vm273_vm7, %v2901_v10  ;;  %v4805_v28 = vor.u32 %v4804_v54, %v4803_v6  ;;  %v4813_v19 = vshll.u32 %v4670_v9, 16  ;;  %v4519_v44 = vsel %vm10513_vm0, %v8930_v14, %v4518_v7  ;;  %v4527_v3 = vor.u32 %v4525_v30, %v4524_v31  ;;  %v5434_v14 = vpop.permute.xlu1 %5433  ;;  %v5546_v10 = vpop.permute.xlu2 %5545  ;;  %v3650_v31 = vld [vmem:[#allocation3 + $0xb0] sm:$0x8] }
 0x447   : >> { %v3894_v61 = vshrl.u32 %v11214_v35, 16  ;;  %v3897_v38 = vshll.u32 %v11214_v35, 16  ;;  %v5399_v24 = vunpack.c.l.b16 %v4519_v44  ;;  %v4810_v57 = vor.u32 %v4809_v12, %v4807_v49 }
 0x448   : >> { %v4806_v36 = vrot.slane %v4805_v28, 4  ;;  %v4815_v33 = vrot.slane %v4813_v19, 5  ;;  %v4528_v46 = vsel %vm10513_vm0, %v4520_v53, %v4527_v3  ;;  %v3903_v20 = vshrl.u32 %v11216_v42, 16  ;;  %v2827_v19 = vpop.f32.mrf.mxu3 }
 0x449   : >> { %v3906_v62 = vshll.u32 %v11216_v42, 16  ;;  %v4176_v47 = vrot.slane %v3894_v61, 4  ;;  %v5400_v30 = vunpack.c.l.b16 %v4528_v46  ;;  %v4811_v6 = vrot.slane %v4810_v57, 4 }
 0x44a   : >> { %v4808_v9 = vsel %vm10347_vm14, %v4806_v36, %v4807_v49  ;;  %v4177_v50 = vrot.slane %v3897_v38, 5  ;;  %v4182_v35 = vrot.slane %v3903_v20, 4  ;;  %v4186_v7 = vshll.u32 %v4030_v58, 16  ;;  %v11235_v36 = vld [vmem:[#allocation3 + $0xa4] sm:$0xf] }
 0x44b   : >> { %v5591_v2 = vunpack.c.l.b16 %v4808_v9  ;;  %v4180_v54 = vrot.slane %v3906_v62, 5  ;;  %v5422_v53 = vpack.c.b16 %v5400_v30, %v5399_v24  ;;  %v4816_v28 = vsel %vm10347_vm14, %v4811_v6, %v4815_v33 }
 0x44c   : >> { %v4178_v42 = vor.u32 %v4177_v50, %v4176_v47  ;;  %v5802_v12 = vsel %vm2168_vm10, %v5757_v4, %v5434_v14  ;;  %v5592_v44 = vunpack.c.l.b16 %v4816_v28  ;;  %v4188_v46 = vrot.slane %v4186_v7, 5  ;;  %v11248_v7 = vpop.permute.xlu0 %5355 }
 0x44d   : >> { %v4183_v3 = vor.u32 %v4182_v35, %v4180_v54  ;;  %v2739_v49 = vadd.f32 %v2738_v40, %v10457_v32  ;;  %v5632_v57 = vsel %vm226_vm5, %v4936_v15, %v5036_v18  ;;  %5447 = vrot.lane.b32.xlu1 %v5422_v53, %s9577_s23  ;;  %v5836_v24 = vsel %vm2201_vm11, %v5802_v12, %v5546_v10  ;;  %v11242_v40 = vld [vmem:[#allocation3 + $0xa8] sm:$0xf]  ;;  %v3387_v12 = vld [vmem:[#allocation3 + $0xac] sm:$0x1] }
 0x44e   : >> { %v4179_v58 = vrot.slane %v4178_v42, 4  ;;  %v3889_v30 = vshrl.u32 %v3650_v31, 16  ;;  %v5614_v33 = vpack.c.b16 %v5592_v44, %v5591_v2  ;;  %6184 = vmatmul.bf16.gmra.mxu2 %v5836_v24  ;;  %v3896_v14 = vrot.slane %v3894_v61, 7  ;;  %v2741_v44 = vpop.f32.mrf.mxu1 }
 0x44f   : >> { %v4184_v47 = vrot.slane %v4183_v3, 4  ;;  %v2828_v4 = vadd.f32 %v2827_v19, %v2739_v49  ;;  %v3905_v32 = vrot.slane %v3903_v20, 7  ;;  %v12671_v15 = vshrl.u32 %v11235_v36, 16  ;;  %v5116_v19 = vpop.permute.xlu1 %5115  ;;  %v2987_v3 = vld [vmem:[#allocation3 + $0x40] sm:$0x8] }
 0x450   : >> { %v4181_v9 = vsel %vm10347_vm14, %v4179_v58, %v4180_v54  ;;  %v8915_v6 = vrot.slane %v3889_v30, 11  ;;  %9250 = vmatmul.msk.bf16.gmra.mxu0 %vm226_vm5, %v5614_v33  ;;  %v3899_v2 = vor.u32 %v3897_v38, %v3896_v14  ;;  %v3901_v61 = vrot.slane %v3896_v14, 4  ;;  %v5196_v58 = vpop.permute.xlu2 %5195 }
 0x451   : >> { %v4189_v18 = vsel %vm10347_vm14, %v4184_v47, %v4188_v46  ;;  %v5321_v50 = vunpack.c.l.b16 %v4181_v9  ;;  %v2870_v10 = vmax.f32 %v2828_v4, 0.0  ;;  %v3908_v31 = vor.u32 %v3906_v62, %v3905_v32 }
 0x452   : >> { %v5322_v35 = vunpack.c.l.b16 %v4189_v18  ;;  %v12669_v54 = vshll.u32 %v11235_v36, 16  ;;  %v3900_v53 = vsel %vm10513_vm0, %v8915_v6, %v3899_v2  ;;  %v12685_v28 = vshrl.u32 %v11242_v40, 16 }
 0x453   : >> { %v2902_v20 = vpack.c.bf16 %v2870_v10, %v2870_v10  ;;  %v12670_v42 = vshll.u32 %v11242_v40, 16  ;;  %v3909_v46 = vsel %vm10513_vm0, %v3901_v61, %v3908_v31  ;;  %v5161_v49 = vunpack.c.l.b16 %v3900_v53  ;;  %v4291_v61 = vld [vmem:[#allocation3 + $0xc0] sm:$0x8]  ;;  %v4292_v31 = vld [vmem:[#allocation3 + $0xc4] sm:$0xf] }
 0x454   : >> { %v5343_v38 = vpack.c.b16 %v5322_v35, %v5321_v50  ;;  %v3536_v62 = vrot.slane %v12671_v15, 4  ;;  %v5162_v24 = vunpack.c.l.b16 %v3909_v46  ;;  %v3537_v30 = vrot.slane %v12669_v54, 5  ;;  %v2830_v35 = vpop.f32.mrf.mxu3 }
 0x455   : >> { %2935 = vst.msk [vmem:[#allocation3 + $0xd8] sm:$0xf] %vm273_vm7, %v2902_v20  ;;  %v3540_v33 = vrot.slane %v12670_v42, 5  ;;  %v3542_v47 = vrot.slane %v12685_v28, 4  ;;  %v3546_v4 = vshll.u32 %v3387_v12, 16  ;;  %v5676_v14 = vsel %vm2168_vm10, %v5632_v57, %v5116_v19 }
 0x456   : >> { %5369 = vrot.lane.b32.xlu0 %v5343_v38, %s9575_s20  ;;  %v2742_v9 = vadd.f32 %v2741_v44, %v10461_v29  ;;  %v3114_v6 = vshrl.u32 %v2987_v3, 16  ;;  %v5183_v32 = vpack.c.b16 %v5162_v24, %v5161_v49  ;;  %v3538_v18 = vor.u32 %v3537_v30, %v3536_v62 }
 0x457   : >> { %v3543_v50 = vor.u32 %v3542_v47, %v3540_v33  ;;  %v12712_v10 = vshrl.u32 %v10835_v26, 16  ;;  %v3548_v20 = vrot.slane %v3546_v4, 5  ;;  %v12713_v46 = vshrl.u32 %v10842_v51, 16 }
 0x458   : >> { %v8893_v53 = vrot.slane %v3114_v6, 11  ;;  %v5711_v12 = vsel %vm2201_vm11, %v5676_v14, %v5196_v58  ;;  %5209 = vrot.lane.b32.xlu2 %v5183_v32, %s9576_s21  ;;  %v3539_v29 = vrot.slane %v3538_v18, 4  ;;  %v12714_v19 = vshll.u32 %v10835_v26, 16  ;;  %v4293_v6 = vld [vmem:[#allocation3 + $0xc8] sm:$0xf] }
 0x459   : >> { %v3121_v2 = vrot.slane %v12712_v10, 7  ;;  %v3130_v38 = vrot.slane %v12713_v46, 7  ;;  %v3544_v57 = vrot.slane %v3543_v50, 4  ;;  %6100 = vmatmul.bf16.gmra.mxu3 %v5711_v12  ;;  %v12715_v49 = vshll.u32 %v10842_v51, 16  ;;  %v9416_v50 = vld [vmem:[#allocation3 + $0xb4] sm:$0xff]  ;;  %v9424_v10 = vld [vmem:[#allocation3 + $0x44] sm:$0xff] }
 0x45a   : >> { %v2831_v24 = vadd.f32 %v2830_v35, %v2742_v9  ;;  %v4530_v30 = vshrl.u32 %v4291_v61, 16  ;;  %v4535_v47 = vshrl.u32 %v4292_v31, 16  ;;  %v3541_v4 = vsel %vm10347_vm14, %v3539_v29, %v3540_v33  ;;  %v5038_v35 = vpop.permute.xlu0 %5037  ;;  %v11288_v29 = vld [vmem:[#allocation3 + $0xc4] sm:$0xf] }
 0x45b   : >> { %v3124_v44 = vor.u32 %v12714_v19, %v3121_v2  ;;  %v3126_v3 = vrot.slane %v3121_v2, 4  ;;  %v3133_v62 = vor.u32 %v12715_v49, %v3130_v38  ;;  %v3549_v58 = vsel %vm10347_vm14, %v3544_v57, %v3548_v20  ;;  %v4671_v38 = vld [vmem:[#allocation3 + $0xcc] sm:$0x1]  ;;  %v5548_v57 = vpop.permute.xlu2 %5547  ;;  %v9447_v49 = vld [vmem:[#allocation3 + $0xc4] sm:$0xff] }
 0x45c   : >> { %v4538_v26 = vshll.u32 %v4292_v31, 16  ;;  %v5081_v32 = vunpack.c.l.b16 %v3541_v4  ;;  %v5082_v18 = vunpack.c.l.b16 %v3549_v58  ;;  %v2871_v61 = vmax.f32 %v2831_v24, 0.0 }
 0x45d   : >> { %v3125_v14 = vsel %vm10513_vm0, %v8893_v53, %v3124_v44  ;;  %v3134_v51 = vsel %vm10513_vm0, %v3126_v3, %v3133_v62  ;;  %v8931_v33 = vrot.slane %v4530_v30, 11  ;;  %v4537_v46 = vrot.slane %v4535_v47, 7 }
 0x45e   : >> { %v4909_v9 = vunpack.c.l.b16 %v3125_v14  ;;  %v4910_v2 = vunpack.c.l.b16 %v3134_v51  ;;  %v5103_v20 = vpack.c.b16 %v5082_v18, %v5081_v32  ;;  %5051 = vrot.lane.b32.xlu0 %v9416_v50, %s9575_s20  ;;  %v4544_v53 = vshrl.u32 %v4293_v6, 16  ;;  %v11293_v14 = vld [vmem:[#allocation3 + $0xc8] sm:$0xf] }
 0x45f   : >> { %v4547_v12 = vshll.u32 %v4293_v6, 16  ;;  %v4817_v31 = vrot.slane %v4535_v47, 4  ;;  %v5760_v19 = vsel %vm226_vm5, %v9424_v10, %v11248_v7  ;;  %v2903_v3 = vpack.c.bf16 %v2871_v61, %v2871_v61 }
 0x460   : >> { %v4937_v44 = vpack.c.b16 %v4910_v2, %v4909_v9  ;;  %v4540_v62 = vor.u32 %v4538_v26, %v4537_v46  ;;  %5129 = vrot.lane.b32.xlu1 %v5103_v20, %s9577_s23  ;;  %v4546_v24 = vrot.slane %v4544_v53, 7  ;;  %v4818_v30 = vrot.slane %v4538_v26, 5  ;;  %5561 = vrot.lane.b32.xlu2 %v9447_v49, %s9576_s21  ;;  %v5436_v26 = vpop.permute.xlu1 %5435  ;;  %v2743_v49 = vpop.f32.mrf.mxu1 }
 0x461   : >> { %v4821_v4 = vrot.slane %v4547_v12, 5  ;;  %v4823_v58 = vrot.slane %v4544_v53, 4  ;;  %2936 = vst.msk [vmem:[#allocation3 + $0xe4] sm:$0xf] %vm273_vm7, %v2903_v3  ;;  %v4542_v7 = vrot.slane %v4537_v46, 4  ;;  %v4827_v6 = vshll.u32 %v4671_v38, 16 }
 0x462   : >> { %v4541_v47 = vsel %vm10513_vm0, %v8931_v33, %v4540_v62  ;;  %v3916_v32 = vshrl.u32 %v11288_v29, 16  ;;  %v4549_v18 = vor.u32 %v4547_v12, %v4546_v24  ;;  %v4819_v51 = vor.u32 %v4818_v30, %v4817_v31  ;;  %v4031_v53 = vld [vmem:[#allocation3 + $0xcc] sm:$0x1] }
 0x463   : >> { %v5401_v50 = vunpack.c.l.b16 %v4541_v47  ;;  %v4824_v9 = vor.u32 %v4823_v58, %v4821_v4  ;;  %v4829_v10 = vrot.slane %v4827_v6, 5  ;;  %v3919_v2 = vshll.u32 %v11288_v29, 16  ;;  %v3653_v47 = vld [vmem:[#allocation3 + $0xc0] sm:$0x8] }
 0x464   : >> { %v3925_v61 = vshrl.u32 %v11293_v14, 16  ;;  %v3928_v20 = vshll.u32 %v11293_v14, 16  ;;  %v4550_v33 = vsel %vm10513_vm0, %v4542_v7, %v4549_v18  ;;  %v4820_v46 = vrot.slane %v4819_v51, 4 }
 0x465   : >> { %v4825_v38 = vrot.slane %v4824_v9, 4  ;;  %v4190_v3 = vrot.slane %v3916_v32, 4  ;;  %v5402_v12 = vunpack.c.l.b16 %v4550_v33  ;;  %v4191_v62 = vrot.slane %v3919_v2, 5  ;;  %v11310_v9 = vpop.permute.xlu0 %5357  ;;  %v2832_v33 = vpop.f32.mrf.mxu3 }
 0x466   : >> { %v4194_v31 = vrot.slane %v3928_v20, 5  ;;  %v4196_v24 = vrot.slane %v3925_v61, 4  ;;  %v4822_v30 = vsel %vm10347_vm14, %v4820_v46, %v4821_v4  ;;  %v4200_v58 = vshll.u32 %v4031_v53, 16  ;;  %v11314_v46 = vld [vmem:[#allocation3 + $0xb4] sm:$0xf] }
 0x467   : >> { %v4830_v29 = vsel %vm10347_vm14, %v4825_v38, %v4829_v10  ;;  %v5804_v14 = vsel %vm2168_vm10, %v5760_v19, %v5436_v26  ;;  %v5423_v6 = vpack.c.b16 %v5402_v12, %v5401_v50  ;;  %v5593_v7 = vunpack.c.l.b16 %v4822_v30  ;;  %v5198_v10 = vpop.permute.xlu2 %5197 }
 0x468   : >> { %v5594_v18 = vunpack.c.l.b16 %v4830_v29  ;;  %v4192_v51 = vor.u32 %v4191_v62, %v4190_v3  ;;  %v5635_v54 = vsel %vm226_vm5, %v4937_v44, %v5038_v35  ;;  %v4197_v42 = vor.u32 %v4196_v24, %v4194_v31  ;;  %v11318_v35 = vld [vmem:[#allocation3 + $0xb8] sm:$0xf]  ;;  %v11588_v28 = vld [vmem:[#allocation3 + $0xe4] sm:$0xf] }
 0x469   : >> { %v4202_v15 = vrot.slane %v4200_v58, 5  ;;  %v2744_v4 = vadd.f32 %v2743_v49, %v10466_v45  ;;  %5449 = vrot.lane.b32.xlu1 %v5423_v6, %s9577_s23  ;;  %v5839_v50 = vsel %vm2201_vm11, %v5804_v14, %v5548_v57  ;;  %v3911_v53 = vshrl.u32 %v3653_v47, 16  ;;  %v3388_v6 = vld [vmem:[#allocation3 + $0xbc] sm:$0x1] }
 0x46a   : >> { %v5615_v19 = vpack.c.b16 %v5594_v18, %v5593_v7  ;;  %v4193_v26 = vrot.slane %v4192_v51, 4  ;;  %v4198_v38 = vrot.slane %v4197_v42, 4  ;;  %6189 = vmatmul.bf16.gmra.mxu2 %v5839_v50  ;;  %v3918_v12 = vrot.slane %v3916_v32, 7  ;;  %v5118_v32 = vpop.permute.xlu1 %5117 }
 0x46b   : >> { %v2833_v3 = vadd.f32 %v2832_v33, %v2744_v4  ;;  %v3927_v62 = vrot.slane %v3925_v61, 7  ;;  %v8916_v44 = vrot.slane %v3911_v53, 11  ;;  %v12682_v49 = vshrl.u32 %v11314_v46, 16  ;;  %v2990_v33 = vld [vmem:[#allocation3 + $0x50] sm:$0x8] }
 0x46c   : >> { %9251 = vmatmul.msk.bf16.gmra.mxu0 %vm226_vm5, %v5615_v19  ;;  %v4195_v45 = vsel %vm10347_vm14, %v4193_v26, %v4194_v31  ;;  %v12672_v24 = vshll.u32 %v11314_v46, 16  ;;  %v4203_v57 = vsel %vm10347_vm14, %v4198_v38, %v4202_v15  ;;  %v3921_v29 = vor.u32 %v3919_v2, %v3918_v12  ;;  %v2746_v15 = vpop.f32.mrf.mxu1 }
 0x46d   : >> { %v5323_v42 = vunpack.c.l.b16 %v4195_v45  ;;  %v2872_v30 = vmax.f32 %v2833_v3, 0.0  ;;  %v5324_v61 = vunpack.c.l.b16 %v4203_v57  ;;  %v3923_v58 = vrot.slane %v3918_v12, 4  ;;  %v2835_v57 = vpop.f32.mrf.mxu3 }
 0x46e   : >> { %v3930_v14 = vor.u32 %v3928_v20, %v3927_v62  ;;  %v12683_v47 = vshrl.u32 %v11318_v35, 16  ;;  %v3922_v31 = vsel %vm10513_vm0, %v8916_v44, %v3921_v29  ;;  %v12673_v18 = vshll.u32 %v11318_v35, 16  ;;  %v11345_v44 = vpop.permute.xlu0 %5039 }
 0x46f   : >> { %v2904_v7 = vpack.c.bf16 %v2872_v30, %v2872_v30  ;;  %v3550_v51 = vrot.slane %v12682_v49, 4  ;;  %v5344_v4 = vpack.c.b16 %v5324_v61, %v5323_v42  ;;  %v5163_v19 = vunpack.c.l.b16 %v3922_v31 }
 0x470   : >> { %v3931_v2 = vsel %vm10513_vm0, %v3923_v58, %v3930_v14  ;;  %v3551_v20 = vrot.slane %v12672_v24, 5  ;;  %v3554_v50 = vrot.slane %v12673_v18, 5  ;;  %v3556_v53 = vrot.slane %v12683_v47, 4  ;;  %v4294_v58 = vld [vmem:[#allocation3 + $0xd0] sm:$0x8]  ;;  %v9428_v47 = vld [vmem:[#allocation3 + $0x84] sm:$0xff] }
 0x471   : >> { %2937 = vst.msk [vmem:[#allocation3 + $0xe8] sm:$0xf] %vm273_vm7, %v2904_v7  ;;  %v5164_v26 = vunpack.c.l.b16 %v3931_v2  ;;  %v3560_v38 = vshll.u32 %v3388_v6, 16  ;;  %5371 = vrot.lane.b32.xlu0 %v5344_v4, %s9575_s20  ;;  %v5678_v12 = vsel %vm2168_vm10, %v5635_v54, %v5118_v32  ;;  %v2747_v62 = vadd.f32 %v2746_v15, %v10471_v60  ;;  %v4295_v14 = vld [vmem:[#allocation3 + $0xd4] sm:$0xf]  ;;  %v11349_v6 = vpop.permute.xlu2 %5549 }
 0x472   : >> { %v3552_v3 = vor.u32 %v3551_v20, %v3550_v51  ;;  %v3136_v45 = vshrl.u32 %v2990_v33, 16  ;;  %v3557_v30 = vor.u32 %v3556_v53, %v3554_v50  ;;  %v3143_v61 = vrot.slane %v3141_v8, 7 }
 0x473   : >> { %v5184_v42 = vpack.c.b16 %v5164_v26, %v5163_v19  ;;  %v3562_v29 = vrot.slane %v3560_v38, 5  ;;  %v12716_v54 = vshrl.u32 %v10897_v39, 16  ;;  %v5714_v60 = vsel %vm2201_vm11, %v5678_v12, %v5198_v10  ;;  %v4296_v12 = vld [vmem:[#allocation3 + $0xd8] sm:$0xf] }
 0x474   : >> { %v3553_v7 = vrot.slane %v3552_v3, 4  ;;  %v8894_v31 = vrot.slane %v3136_v45, 11  ;;  %v3558_v51 = vrot.slane %v3557_v30, 4  ;;  %v12717_v15 = vshll.u32 %v10892_v5, 16  ;;  %6105 = vmatmul.bf16.gmra.mxu3 %v5714_v60  ;;  %v11365_v45 = vpop.permute.xlu1 %5437  ;;  %v9425_v30 = vld [vmem:[#allocation3 + $0x54] sm:$0xff] }
 0x475   : >> { %v3152_v32 = vrot.slane %v12716_v54, 7  ;;  %5211 = vrot.lane.b32.xlu2 %v5184_v42, %s9576_s21  ;;  %v3148_v4 = vrot.slane %v3143_v61, 4  ;;  %v2836_v8 = vadd.f32 %v2835_v57, %v2747_v62  ;;  %v12718_v19 = vshll.u32 %v10897_v39, 16  ;;  %v9417_v57 = vld [vmem:[#allocation3 + $0xc4] sm:$0xff]  ;;  %v4672_v54 = vld [vmem:[#allocation3 + $0xdc] sm:$0x1] }
 0x476   : >> { %v3146_v33 = vor.u32 %v12717_v15, %v3143_v61  ;;  %v3555_v2 = vsel %vm10347_vm14, %v3553_v7, %v3554_v50  ;;  %v4552_v26 = vshrl.u32 %v4294_v58, 16  ;;  %v4557_v53 = vshrl.u32 %v4295_v14, 16  ;;  %v11370_v15 = vld [vmem:[#allocation3 + $0xd4] sm:$0xf] }
 0x477   : >> { %v3155_v20 = vor.u32 %v12718_v19, %v3152_v32  ;;  %v3563_v10 = vsel %vm10347_vm14, %v3558_v51, %v3562_v29  ;;  %v5083_v38 = vunpack.c.l.b16 %v3555_v2  ;;  %v2873_v5 = vmax.f32 %v2836_v8, 0.0  ;;  %v9448_v8 = vld [vmem:[#allocation3 + $0xd4] sm:$0xff] }
 0x478   : >> { %v3147_v3 = vsel %vm10513_vm0, %v8894_v31, %v3146_v33  ;;  %v5084_v62 = vunpack.c.l.b16 %v3563_v10  ;;  %v8932_v42 = vrot.slane %v4552_v26, 11  ;;  %v4559_v7 = vrot.slane %v4557_v53, 7 }
 0x479   : >> { %v3156_v50 = vsel %vm10513_vm0, %v3148_v4, %v3155_v20  ;;  %v4911_v39 = vunpack.c.l.b16 %v3147_v3  ;;  %v2905_v58 = vpack.c.bf16 %v2873_v5, %v2873_v5  ;;  %v4560_v29 = vshll.u32 %v4295_v14, 16  ;;  %5053 = vrot.lane.b32.xlu0 %v9417_v57, %s9575_s20  ;;  %v11384_v57 = vpop.permute.xlu2 %5199 }
 0x47a   : >> { %v4912_v61 = vunpack.c.l.b16 %v3156_v50  ;;  %v5104_v32 = vpack.c.b16 %v5084_v62, %v5083_v38  ;;  %v4566_v31 = vshrl.u32 %v4296_v12, 16  ;;  %v4569_v60 = vshll.u32 %v4296_v12, 16  ;;  %v11376_v38 = vld [vmem:[#allocation3 + $0xd8] sm:$0xf]  ;;  %v4032_v62 = vld [vmem:[#allocation3 + $0xdc] sm:$0x1] }
 0x47b   : >> { %v4831_v51 = vrot.slane %v4557_v53, 4  ;;  %v5763_v33 = vsel %vm226_vm5, %v9425_v30, %v11310_v9  ;;  %2938 = vst.msk [vmem:[#allocation3 + $0xf4] sm:$0xf] %vm273_vm7, %v2905_v58  ;;  %v4562_v2 = vor.u32 %v4560_v29, %v4559_v7  ;;  %v4832_v19 = vrot.slane %v4560_v29, 5  ;;  %v11378_v53 = vpop.permute.xlu0 %5359 }
 0x47c   : >> { %v4938_v4 = vpack.c.b16 %v4912_v61, %v4911_v39  ;;  %5131 = vrot.lane.b32.xlu1 %v5104_v32, %s9577_s23  ;;  %v4568_v14 = vrot.slane %v4566_v31, 7  ;;  %v4835_v20 = vrot.slane %v4569_v60, 5  ;;  %v4837_v26 = vrot.slane %v4566_v31, 4 }
 0x47d   : >> { %v4841_v10 = vshll.u32 %v4672_v54, 16  ;;  %5563 = vrot.lane.b32.xlu2 %v9448_v8, %s9576_s21  ;;  %v4563_v9 = vsel %vm10513_vm0, %v8932_v42, %v4562_v2  ;;  %v4564_v3 = vrot.slane %v4559_v7, 4  ;;  %v4833_v5 = vor.u32 %v4832_v19, %v4831_v51 }
 0x47e   : >> { %v3938_v12 = vshrl.u32 %v11370_v15, 16  ;;  %v4571_v50 = vor.u32 %v4569_v60, %v4568_v14  ;;  %v5403_v39 = vunpack.c.l.b16 %v4563_v9  ;;  %v4838_v30 = vor.u32 %v4837_v26, %v4835_v20  ;;  %v2748_v14 = vpop.f32.mrf.mxu1  ;;  %v5120_v26 = vpop.permute.xlu1 %5119 }
 0x47f   : >> { %v4843_v61 = vrot.slane %v4841_v10, 5  ;;  %v4834_v58 = vrot.slane %v4833_v5, 4  ;;  %v3941_v29 = vshll.u32 %v11370_v15, 16  ;;  %v3947_v54 = vshrl.u32 %v11376_v38, 16 }
 0x480   : >> { %v3950_v32 = vshll.u32 %v11376_v38, 16  ;;  %v4572_v42 = vsel %vm10513_vm0, %v4564_v3, %v4571_v50  ;;  %v4839_v7 = vrot.slane %v4838_v30, 4  ;;  %v4204_v31 = vrot.slane %v3938_v12, 4  ;;  %v3656_v3 = vld [vmem:[#allocation3 + $0xd0] sm:$0x8] }
 0x481   : >> { %v4214_v51 = vshll.u32 %v4032_v62, 16  ;;  %v5404_v8 = vunpack.c.l.b16 %v4572_v42  ;;  %v4836_v60 = vsel %vm10347_vm14, %v4834_v58, %v4835_v20  ;;  %v4205_v2 = vrot.slane %v3941_v29, 5  ;;  %v2837_v20 = vpop.f32.mrf.mxu3  ;;  %v11399_v58 = vld [vmem:[#allocation3 + $0xc4] sm:$0xf] }
 0x482   : >> { %v4208_v19 = vrot.slane %v3950_v32, 5  ;;  %v5638_v15 = vsel %vm226_vm5, %v4938_v4, %v11345_v44  ;;  %v4844_v10 = vsel %vm10347_vm14, %v4839_v7, %v4843_v61  ;;  %v5595_v38 = vunpack.c.l.b16 %v4836_v60 }
 0x483   : >> { %v4210_v9 = vrot.slane %v3947_v54, 4  ;;  %v5424_v5 = vpack.c.b16 %v5404_v8, %v5403_v39  ;;  %v5596_v50 = vunpack.c.l.b16 %v4844_v10  ;;  %v4206_v62 = vor.u32 %v4205_v2, %v4204_v31  ;;  %v11413_v10 = vpop.permute.xlu2 %5551 }
 0x484   : >> { %v5806_v30 = vsel %vm2168_vm10, %v5763_v33, %v11365_v45  ;;  %v4216_v24 = vrot.slane %v4214_v51, 5  ;;  %v2749_v18 = vadd.f32 %v2748_v14, %v10985_v23  ;;  %v3933_v39 = vshrl.u32 %v3656_v3, 16  ;;  %v11405_v33 = vld [vmem:[#allocation3 + $0xc8] sm:$0xf]  ;;  %v11408_v51 = vpop.permute.xlu0 %5041 }
 0x485   : >> { %v4211_v42 = vor.u32 %v4210_v9, %v4208_v19  ;;  %v5842_v44 = vsel %vm2201_vm11, %v5806_v30, %v11349_v6  ;;  %5451 = vrot.lane.b32.xlu1 %v5424_v5, %s9577_s23  ;;  %v5616_v4 = vpack.c.b16 %v5596_v50, %v5595_v38  ;;  %v4207_v61 = vrot.slane %v4206_v62, 4 }
 0x486   : >> { %6194 = vmatmul.bf16.gmra.mxu2 %v5842_v44  ;;  %v3940_v7 = vrot.slane %v3938_v12, 7  ;;  %v2838_v8 = vadd.f32 %v2837_v20, %v2749_v18  ;;  %v3949_v45 = vrot.slane %v3947_v54, 7  ;;  %v12681_v60 = vshrl.u32 %v11399_v58, 16 }
 0x487   : >> { %v4212_v31 = vrot.slane %v4211_v42, 4  ;;  %9252 = vmatmul.msk.bf16.gmra.mxu0 %vm226_vm5, %v5616_v4  ;;  %v4209_v23 = vsel %vm10347_vm14, %v4207_v61, %v4208_v19  ;;  %v8917_v6 = vrot.slane %v3933_v39, 11  ;;  %v12675_v5 = vshll.u32 %v11399_v58, 16  ;;  %v3389_v19 = vld [vmem:[#allocation3 + $0xcc] sm:$0x1]  ;;  %v11428_v61 = vpop.permute.xlu1 %5439 }
 0x488   : >> { %v3943_v2 = vor.u32 %v3941_v29, %v3940_v7  ;;  %v3945_v14 = vrot.slane %v3940_v7, 4  ;;  %v5325_v12 = vunpack.c.l.b16 %v4209_v23  ;;  %v2874_v54 = vmax.f32 %v2838_v8, 0.0 }
 0x489   : >> { %v4217_v18 = vsel %vm10347_vm14, %v4212_v31, %v4216_v24  ;;  %v3952_v38 = vor.u32 %v3950_v32, %v3949_v45  ;;  %v12676_v50 = vshrl.u32 %v11405_v33, 16  ;;  %v12674_v20 = vshll.u32 %v11405_v33, 16  ;;  %v2993_v24 = vld [vmem:[#allocation3 + $0x60] sm:$0x8] }
 0x48a   : >> { %v5326_v9 = vunpack.c.l.b16 %v4217_v18  ;;  %v3944_v3 = vsel %vm10513_vm0, %v8917_v6, %v3943_v2  ;;  %v2906_v62 = vpack.c.bf16 %v2874_v54, %v2874_v54  ;;  %v3564_v32 = vrot.slane %v12681_v60, 4  ;;  %v4298_v18 = vld [vmem:[#allocation3 + $0xe4] sm:$0xf]  ;;  %v11553_v60 = vld [vmem:[#allocation3 + $0xf4] sm:$0xf] }
 0x48b   : >> { %v3953_v29 = vsel %vm10513_vm0, %v3945_v14, %v3952_v38  ;;  %v5165_v30 = vunpack.c.l.b16 %v3944_v3  ;;  %v3565_v4 = vrot.slane %v12675_v5, 5  ;;  %v3568_v39 = vrot.slane %v12674_v20, 5  ;;  %v4297_v14 = vld [vmem:[#allocation3 + $0xe0] sm:$0x8] }
 0x48c   : >> { %v5345_v42 = vpack.c.b16 %v5326_v9, %v5325_v12  ;;  %v5166_v44 = vunpack.c.l.b16 %v3953_v29  ;;  %2939 = vst.msk [vmem:[#allocation3 + $0xf8] sm:$0xf] %vm273_vm7, %v2906_v62  ;;  %v3570_v7 = vrot.slane %v12676_v50, 4  ;;  %v3574_v31 = vshll.u32 %v3389_v19, 16  ;;  %v4299_v19 = vld [vmem:[#allocation3 + $0xe8] sm:$0xf] }
 0x48d   : >> { %v5680_v8 = vsel %vm2168_vm10, %v5638_v15, %v5120_v26  ;;  %v3566_v23 = vor.u32 %v3565_v4, %v3564_v32  ;;  %v3158_v6 = vshrl.u32 %v2993_v24, 16  ;;  %v3165_v2 = vrot.slane %v3163_v56, 7  ;;  %v11448_v4 = vpop.permute.xlu0 %5361  ;;  %v11493_v50 = vld [vmem:[#allocation3 + $0xd8] sm:$0xf] }
 0x48e   : >> { %5373 = vrot.lane.b32.xlu0 %v5345_v42, %s9575_s20  ;;  %v5185_v45 = vpack.c.b16 %v5166_v44, %v5165_v30  ;;  %v3571_v12 = vor.u32 %v3570_v7, %v3568_v39  ;;  %v3576_v54 = vrot.slane %v3574_v31, 5  ;;  %v12719_v38 = vshrl.u32 %v10944_v41, 16 }
 0x48f   : >> { %v5717_v3 = vsel %vm2201_vm11, %v5680_v8, %v11384_v57  ;;  %v3567_v26 = vrot.slane %v3566_v23, 4  ;;  %v8895_v15 = vrot.slane %v3158_v6, 11  ;;  %v12720_v62 = vshll.u32 %v10942_v52, 16  ;;  %v11454_v52 = vpop.permute.xlu2 %5201 }
 0x490   : >> { %v3174_v9 = vrot.slane %v12719_v38, 7  ;;  %5213 = vrot.lane.b32.xlu2 %v5185_v45, %s9576_s21  ;;  %v3170_v30 = vrot.slane %v3165_v2, 4  ;;  %6110 = vmatmul.bf16.gmra.mxu3 %v5717_v3  ;;  %v3572_v56 = vrot.slane %v3571_v12, 4  ;;  %v12721_v24 = vshll.u32 %v10944_v41, 16  ;;  %v9418_v12 = vld [vmem:[#allocation3 + $0xd4] sm:$0xff] }
 0x491   : >> { %v3168_v29 = vor.u32 %v12720_v62, %v3165_v2  ;;  %v4574_v44 = vshrl.u32 %v4297_v14, 16  ;;  %v4579_v32 = vshrl.u32 %v4298_v18, 16  ;;  %v3569_v57 = vsel %vm10347_vm14, %v3567_v26, %v3568_v39  ;;  %v9426_v2 = vld [vmem:[#allocation3 + $0x64] sm:$0xff]  ;;  %v4673_v3 = vld [vmem:[#allocation3 + $0xec] sm:$0x1] }
 0x492   : >> { %v3177_v42 = vor.u32 %v12721_v24, %v3174_v9  ;;  %v4582_v31 = vshll.u32 %v4298_v18, 16  ;;  %v4588_v8 = vshrl.u32 %v4299_v19, 16  ;;  %v3577_v45 = vsel %vm10347_vm14, %v3572_v56, %v3576_v54 }
 0x493   : >> { %v3169_v7 = vsel %vm10513_vm0, %v8895_v15, %v3168_v29  ;;  %v5085_v23 = vunpack.c.l.b16 %v3569_v57  ;;  %v5086_v14 = vunpack.c.l.b16 %v3577_v45  ;;  %v8933_v39 = vrot.slane %v4574_v44, 11  ;;  %v11460_v29 = vld [vmem:[#allocation3 + $0xe4] sm:$0xf]  ;;  %v11465_v57 = vpop.permute.xlu1 %5121 }
 0x494   : >> { %v3178_v41 = vsel %vm10513_vm0, %v3170_v30, %v3177_v42  ;;  %v4913_v6 = vunpack.c.l.b16 %v3169_v7  ;;  %v4581_v9 = vrot.slane %v4579_v32, 7  ;;  %v4590_v26 = vrot.slane %v4588_v8, 7  ;;  %v9449_v30 = vld [vmem:[#allocation3 + $0xe4] sm:$0xff] }
 0x495   : >> { %v4914_v38 = vunpack.c.l.b16 %v3178_v41  ;;  %v4591_v18 = vshll.u32 %v4299_v19, 16  ;;  %v4845_v15 = vrot.slane %v4579_v32, 4  ;;  %v4846_v62 = vrot.slane %v4582_v31, 5  ;;  %v3661_v19 = vld [vmem:[#allocation3 + $0xe8] sm:$0xf]  ;;  %v11467_v32 = vpop.f32.mrf.mxu0 }
 0x496   : >> { %v5766_v54 = vsel %vm226_vm5, %v9426_v2, %v11378_v53  ;;  %v5105_v56 = vpack.c.b16 %v5086_v14, %v5085_v23  ;;  %5055 = vrot.lane.b32.xlu0 %v9418_v12, %s9575_s20  ;;  %v4584_v24 = vor.u32 %v4582_v31, %v4581_v9  ;;  %v4586_v42 = vrot.slane %v4581_v9, 4 }
 0x497   : >> { %v4593_v44 = vor.u32 %v4591_v18, %v4590_v26  ;;  %v4847_v7 = vor.u32 %v4846_v62, %v4845_v15  ;;  %v4849_v45 = vrot.slane %v4591_v18, 5  ;;  %v4851_v41 = vrot.slane %v4588_v8, 4 }
 0x498   : >> { %5133 = vrot.lane.b32.xlu1 %v5105_v56, %s9577_s23  ;;  %v4939_v20 = vpack.c.b16 %v4914_v38, %v4913_v6  ;;  %5565 = vrot.lane.b32.xlu2 %v9449_v30, %s9576_s21  ;;  %v4585_v53 = vsel %vm10513_vm0, %v8933_v39, %v4584_v24  ;;  %v4855_v23 = vshll.u32 %v4673_v3, 16  ;;  %v3960_v31 = vshrl.u32 %v11460_v29, 16  ;;  %v4033_v6 = vld [vmem:[#allocation3 + $0xec] sm:$0x1]  ;;  %v11479_v56 = vpop.permute.xlu0 %5043 }
 0x499   : >> { %v4594_v2 = vsel %vm10513_vm0, %v4586_v42, %v4593_v44  ;;  %v5405_v14 = vunpack.c.l.b16 %v4585_v53  ;;  %v4848_v12 = vrot.slane %v4847_v7, 4  ;;  %v4852_v8 = vor.u32 %v4851_v41, %v4849_v45  ;;  %v3659_v7 = vld [vmem:[#allocation3 + $0xe0] sm:$0x8]  ;;  %v11483_v41 = vpop.permute.xlu2 %5553 }
 0x49a   : >> { %v5406_v9 = vunpack.c.l.b16 %v4594_v2  ;;  %v4857_v26 = vrot.slane %v4855_v23, 5  ;;  %v3963_v18 = vshll.u32 %v11460_v29, 16  ;;  %v3969_v15 = vshrl.u32 %v3661_v19, 16 }
 0x49b   : >> { %v4850_v38 = vsel %vm10347_vm14, %v4848_v12, %v4849_v45  ;;  %v4853_v62 = vrot.slane %v4852_v8, 4  ;;  %v3972_v39 = vshll.u32 %v3661_v19, 16  ;;  %v4218_v3 = vrot.slane %v3960_v31, 4  ;;  %v11489_v19 = vld [vmem:[#allocation3 + $0xd4] sm:$0xf] }
 0x49c   : >> { %v5641_v30 = vsel %vm226_vm5, %v4939_v20, %v11408_v51  ;;  %v5425_v24 = vpack.c.b16 %v5406_v9, %v5405_v14  ;;  %v4219_v42 = vrot.slane %v3963_v18, 5  ;;  %v4224_v44 = vrot.slane %v3969_v15, 4 }
 0x49d   : >> { %v4858_v29 = vsel %vm10347_vm14, %v4853_v62, %v4857_v26  ;;  %v4222_v53 = vrot.slane %v3972_v39, 5  ;;  %v4228_v23 = vshll.u32 %v4033_v6, 16  ;;  %v5808_v45 = vsel %vm2168_vm10, %v5766_v54, %v11428_v61  ;;  %v11495_v26 = vpop.f32.mrf.mxu3  ;;  %v11499_v62 = vpop.permute.xlu1 %5441 }
 0x49e   : >> { %v5597_v2 = vunpack.c.l.b16 %v4850_v38  ;;  %v5598_v12 = vunpack.c.l.b16 %v4858_v29  ;;  %v4220_v8 = vor.u32 %v4219_v42, %v4218_v3  ;;  %v5845_v51 = vsel %vm2201_vm11, %v5808_v45, %v11413_v10  ;;  %v11501_v29 = vpop.f32.mrf.mxu0 }
 0x49f   : >> { %v4225_v20 = vor.u32 %v4224_v44, %v4222_v53  ;;  %v4230_v14 = vrot.slane %v4228_v23, 5  ;;  %6199 = vmatmul.bf16.gmra.mxu2 %v5845_v51  ;;  %v3955_v9 = vshrl.u32 %v3659_v7, 16  ;;  %v3962_v5 = vrot.slane %v3960_v31, 7 }
 0x4a0   : >> { %5453 = vrot.lane.b32.xlu1 %v5425_v24, %s9577_s23  ;;  %v5617_v61 = vpack.c.b16 %v5598_v12, %v5597_v2  ;;  %v4221_v54 = vrot.slane %v4220_v8, 4  ;;  %v3971_v6 = vrot.slane %v3969_v15, 7  ;;  %v12679_v38 = vshrl.u32 %v11489_v19, 16  ;;  %v3390_v2 = vld [vmem:[#allocation3 + $0xdc] sm:$0x1] }
 0x4a1   : >> { %v4226_v3 = vrot.slane %v4225_v20, 4  ;;  %v8918_v10 = vrot.slane %v3955_v9, 11  ;;  %v3965_v42 = vor.u32 %v3963_v18, %v3962_v5  ;;  %v3967_v44 = vrot.slane %v3962_v5, 4  ;;  %v2996_v12 = vld [vmem:[#allocation3 + $0x70] sm:$0x8] }
 0x4a2   : >> { %9253 = vmatmul.msk.bf16.gmra.mxu0 %vm226_vm5, %v5617_v61  ;;  %v4223_v31 = vsel %vm10347_vm14, %v4221_v54, %v4222_v53  ;;  %v3974_v7 = vor.u32 %v3972_v39, %v3971_v6  ;;  %v12677_v24 = vshll.u32 %v11489_v19, 16  ;;  %v12680_v15 = vshrl.u32 %v11493_v50, 16  ;;  %v11523_v54 = vpop.permute.xlu0 %5363 }
 0x4a3   : >> { %v4231_v23 = vsel %vm10347_vm14, %v4226_v3, %v4230_v14  ;;  %v5327_v45 = vunpack.c.l.b16 %v4223_v31  ;;  %v3966_v18 = vsel %vm10513_vm0, %v8918_v10, %v3965_v42  ;;  %v12678_v5 = vshll.u32 %v11493_v50, 16 }
 0x4a4   : >> { %v5328_v8 = vunpack.c.l.b16 %v4231_v23  ;;  %v3975_v53 = vsel %vm10513_vm0, %v3967_v44, %v3974_v7  ;;  %v5167_v39 = vunpack.c.l.b16 %v3966_v18  ;;  %v3578_v51 = vrot.slane %v12679_v38, 4  ;;  %v11527_v44 = vpop.permute.xlu2 %5203 }
 0x4a5   : >> { %v5168_v20 = vunpack.c.l.b16 %v3975_v53  ;;  %v3579_v14 = vrot.slane %v12677_v24, 5  ;;  %v3582_v9 = vrot.slane %v12678_v5, 5  ;;  %v3584_v61 = vrot.slane %v12680_v15, 4  ;;  %v4300_v53 = vld [vmem:[#allocation3 + $0xf0] sm:$0x8] }
 0x4a6   : >> { %v5346_v6 = vpack.c.b16 %v5328_v8, %v5327_v45  ;;  %v3588_v3 = vshll.u32 %v3390_v2, 16  ;;  %v5682_v10 = vsel %vm2168_vm10, %v5641_v30, %v11465_v57  ;;  %v3180_v42 = vshrl.u32 %v2996_v12, 16  ;;  %v4301_v24 = vld [vmem:[#allocation3 + $0xf4] sm:$0xf] }
 0x4a7   : >> { %v5186_v31 = vpack.c.b16 %v5168_v20, %v5167_v39  ;;  %v3580_v7 = vor.u32 %v3579_v14, %v3578_v51  ;;  %v3585_v23 = vor.u32 %v3584_v61, %v3582_v9  ;;  %v3187_v18 = vrot.slane %v3185_v27, 7  ;;  %v11539_v51 = vpop.f32.mrf.mxu3  ;;  %v4302_v61 = vld [vmem:[#allocation3 + $0xf8] sm:$0xf] }
 0x4a8   : >> { %5375 = vrot.lane.b32.xlu0 %v5346_v6, %s9575_s20  ;;  %v3590_v5 = vrot.slane %v3588_v3, 5  ;;  %v8896_v38 = vrot.slane %v3180_v42, 11  ;;  %v12722_v45 = vshrl.u32 %v11029_v13, 16  ;;  %v5720_v57 = vsel %vm2201_vm11, %v5682_v10, %v11454_v52  ;;  %v11543_v42 = vpop.permute.xlu1 %5123 }
 0x4a9   : >> { %5215 = vrot.lane.b32.xlu2 %v5186_v31, %s9576_s21  ;;  %v3581_v30 = vrot.slane %v3580_v7, 4  ;;  %v3586_v12 = vrot.slane %v3585_v23, 4  ;;  %v12723_v8 = vshll.u32 %v11025_v21, 16  ;;  %v3192_v27 = vrot.slane %v3187_v18, 4  ;;  %6115 = vmatmul.bf16.gmra.mxu3 %v5720_v57 }
 0x4aa   : >> { %v3196_v2 = vrot.slane %v12722_v45, 7  ;;  %v12724_v20 = vshll.u32 %v11029_v13, 16  ;;  %v4596_v6 = vshrl.u32 %v4300_v53, 16  ;;  %v4601_v3 = vshrl.u32 %v4301_v24, 16  ;;  %v9427_v53 = vld [vmem:[#allocation3 + $0x74] sm:$0xff] }
 0x4ab   : >> { %v3190_v39 = vor.u32 %v12723_v8, %v3187_v18  ;;  %v3583_v52 = vsel %vm10347_vm14, %v3581_v30, %v3582_v9  ;;  %v3591_v10 = vsel %vm10347_vm14, %v3586_v12, %v3590_v5  ;;  %v4604_v31 = vshll.u32 %v4301_v24, 16  ;;  %v9419_v30 = vld [vmem:[#allocation3 + $0xe4] sm:$0xff] }
 0x4ac   : >> { %v3199_v14 = vor.u32 %v12724_v20, %v3196_v2  ;;  %v5087_v7 = vunpack.c.l.b16 %v3583_v52  ;;  %v5088_v23 = vunpack.c.l.b16 %v3591_v10  ;;  %v8934_v2 = vrot.slane %v4596_v6, 11  ;;  %v4674_v20 = vld [vmem:[#allocation3 + $0xfc] sm:$0x1]  ;;  %v11557_v52 = vpop.permute.xlu0 %5045 }
 0x4ad   : >> { %v3191_v21 = vsel %vm10513_vm0, %v8896_v38, %v3190_v39  ;;  %v4603_v57 = vrot.slane %v4601_v3, 7  ;;  %v4610_v8 = vshrl.u32 %v4302_v61, 16  ;;  %v4613_v15 = vshll.u32 %v4302_v61, 16  ;;  %v9450_v39 = vld [vmem:[#allocation3 + $0xf4] sm:$0xff] }
 0x4ae   : >> { %v3200_v13 = vsel %vm10513_vm0, %v3192_v27, %v3199_v14  ;;  %v4915_v18 = vunpack.c.l.b16 %v3191_v21  ;;  %v5106_v9 = vpack.c.b16 %v5088_v23, %v5087_v7  ;;  %v4859_v5 = vrot.slane %v4601_v3, 4  ;;  %v11561_v21 = vld [vmem:[#allocation3 + $0xf8] sm:$0xf]  ;;  %v11563_v7 = vpop.f32.mrf.mxu0  ;;  %v11565_v23 = vpop.permute.xlu2 %5555 }
 0x4af   : >> { %v4916_v45 = vunpack.c.l.b16 %v3200_v13  ;;  %v4860_v12 = vrot.slane %v4604_v31, 5  ;;  %v5769_v38 = vsel %vm226_vm5, %v9427_v53, %v11448_v4  ;;  %v4606_v27 = vor.u32 %v4604_v31, %v4603_v57 }
 0x4b0   : >> { %v4612_v14 = vrot.slane %v4610_v8, 7  ;;  %5135 = vrot.lane.b32.xlu1 %v5106_v9, %s9577_s23  ;;  %5057 = vrot.lane.b32.xlu0 %v9419_v30, %s9575_s20  ;;  %v4863_v10 = vrot.slane %v4613_v15, 5  ;;  %v4865_v61 = vrot.slane %v4610_v8, 4  ;;  %v4869_v3 = vshll.u32 %v4674_v20, 16  ;;  %v11571_v20 = vpop.permute.xlu1 %5443 }
 0x4b1   : >> { %v4940_v24 = vpack.c.b16 %v4916_v45, %v4915_v18  ;;  %v4861_v6 = vor.u32 %v4860_v12, %v4859_v5  ;;  %5567 = vrot.lane.b32.xlu2 %v9450_v39, %s9576_s21  ;;  %v4607_v4 = vsel %vm10513_vm0, %v8934_v2, %v4606_v27  ;;  %v4608_v31 = vrot.slane %v4603_v57, 4  ;;  %v4034_v2 = vld [vmem:[#allocation3 + $0xfc] sm:$0x1]  ;;  %v11578_v57 = vpop.f32.mrf.mxu3 }
 0x4b2   : >> { %v4615_v13 = vor.u32 %v4613_v15, %v4612_v14  ;;  %v3982_v18 = vshrl.u32 %v11553_v60, 16  ;;  %v5407_v53 = vunpack.c.l.b16 %v4607_v4  ;;  %v4866_v9 = vor.u32 %v4865_v61, %v4863_v10 }
 0x4b3   : >> { %v4862_v45 = vrot.slane %v4861_v6, 4  ;;  %v4871_v8 = vrot.slane %v4869_v3, 5  ;;  %v3985_v5 = vshll.u32 %v11553_v60, 16  ;;  %v3991_v12 = vshrl.u32 %v11561_v21, 16  ;;  %v3662_v60 = vld [vmem:[#allocation3 + $0xf0] sm:$0x8] }
 0x4b4   : >> { %v4616_v30 = vsel %vm10513_vm0, %v4608_v31, %v4615_v13  ;;  %v3994_v39 = vshll.u32 %v11561_v21, 16  ;;  %v4867_v14 = vrot.slane %v4866_v9, 4  ;;  %v4232_v6 = vrot.slane %v3982_v18, 4 }
 0x4b5   : >> { %v5408_v15 = vunpack.c.l.b16 %v4616_v30  ;;  %v4864_v27 = vsel %vm10347_vm14, %v4862_v45, %v4863_v10  ;;  %v5644_v61 = vsel %vm226_vm5, %v4940_v24, %v11479_v56  ;;  %v4233_v3 = vrot.slane %v3985_v5, 5 }
 0x4b6   : >> { %v4236_v4 = vrot.slane %v3994_v39, 5  ;;  %v4238_v31 = vrot.slane %v3991_v12, 4  ;;  %v4872_v21 = vsel %vm10347_vm14, %v4867_v14, %v4871_v8  ;;  %v4242_v49 = vshll.u32 %v4034_v2, 16  ;;  %v11597_v14 = vpop.permute.xlu0 %5365 }
 0x4b7   : >> { %v5426_v13 = vpack.c.b16 %v5408_v15, %v5407_v53  ;;  %v5810_v30 = vsel %vm2168_vm10, %v5769_v38, %v11499_v62  ;;  %v5599_v1 = vunpack.c.l.b16 %v4864_v27  ;;  %v5600_v10 = vunpack.c.l.b16 %v4872_v21  ;;  %v11595_v27 = vld [vmem:[#allocation3 + $0xe8] sm:$0xf] }
 0x4b8   : >> { %v4234_v45 = vor.u32 %v4233_v3, %v4232_v6  ;;  %v4239_v9 = vor.u32 %v4238_v31, %v4236_v4  ;;  %v4244_v56 = vrot.slane %v4242_v49, 5  ;;  %v5772_v24 = vsel %vm226_vm5, %v9428_v47, %v11523_v54  ;;  %v11601_v47 = vpop.permute.xlu1 %5125  ;;  %v11603_v54 = vpop.f32.mrf.mxu2 }
 0x4b9   : >> { %5455 = vrot.lane.b32.xlu1 %v5426_v13, %s9577_s23  ;;  %v5848_v53 = vsel %vm2201_vm11, %v5810_v30, %v11483_v41  ;;  %v3977_v8 = vshrl.u32 %v3662_v60, 16  ;;  %v5618_v2 = vpack.c.b16 %v5600_v10, %v5599_v1  ;;  %v3984_v38 = vrot.slane %v3982_v18, 7  ;;  %v11605_v41 = vpop.f32.mrf.mxu0  ;;  %v11608_v1 = vpop.permute.xlu2 %5205 }
 0x4ba   : >> { %v4235_v15 = vrot.slane %v4234_v45, 4  ;;  %v4240_v62 = vrot.slane %v4239_v9, 4  ;;  %6204 = vmatmul.bf16.gmra.mxu2 %v5848_v53  ;;  %v3993_v3 = vrot.slane %v3991_v12, 7  ;;  %v3339_v49 = vshrl.u32 %v11588_v28, 16  ;;  %v3391_v9 = vld [vmem:[#allocation3 + $0xec] sm:$0x1] }
 0x4bb   : >> { %v8919_v6 = vrot.slane %v3977_v8, 11  ;;  %v12686_v31 = vshll.u32 %v11588_v28, 16  ;;  %9254 = vmatmul.msk.bf16.gmra.mxu0 %vm226_vm5, %v5618_v2  ;;  %v3987_v60 = vor.u32 %v3985_v5, %v3984_v38  ;;  %v3989_v13 = vrot.slane %v3984_v38, 4 }
 0x4bc   : >> { %v4237_v18 = vsel %vm10347_vm14, %v4235_v15, %v4236_v4  ;;  %v4245_v12 = vsel %vm10347_vm14, %v4240_v62, %v4244_v56  ;;  %v3996_v10 = vor.u32 %v3994_v39, %v3993_v3  ;;  %v3348_v45 = vshrl.u32 %v11595_v27, 16  ;;  %v2999_v56 = vld [vmem:[#allocation3 + $0x80] sm:$0x8]  ;;  %v6088_v15 = vpop.f32.mrf.mxu3 }
 0x4bd   : >> { %v5329_v21 = vunpack.c.l.b16 %v4237_v18  ;;  %v5330_v30 = vunpack.c.l.b16 %v4245_v12  ;;  %v3988_v53 = vsel %vm10513_vm0, %v8919_v6, %v3987_v60  ;;  %v3351_v8 = vshll.u32 %v11595_v27, 16 }
 0x4be   : >> { %v3592_v2 = vrot.slane %v3339_v49, 4  ;;  %v3593_v4 = vrot.slane %v12686_v31, 5  ;;  %v3997_v39 = vsel %vm10513_vm0, %v3989_v13, %v3996_v10  ;;  %v5169_v62 = vunpack.c.l.b16 %v3988_v53  ;;  %v2751_v10 = vpop.f32.mrf.mxu1  ;;  %v11648_v37 = vpop.permute.xlu0 %5047 }
 0x4bf   : >> { %v5347_v5 = vpack.c.b16 %v5330_v30, %v5329_v21  ;;  %v3598_v38 = vrot.slane %v3348_v45, 4  ;;  %v5170_v3 = vunpack.c.l.b16 %v3997_v39  ;;  %v3596_v18 = vrot.slane %v3351_v8, 5 }
 0x4c0   : >> { %v3594_v6 = vor.u32 %v3593_v4, %v3592_v2  ;;  %v3602_v12 = vshll.u32 %v3391_v9, 16  ;;  %v5684_v60 = vsel %vm2168_vm10, %v5644_v61, %v11543_v42  ;;  %v3202_v21 = vshrl.u32 %v2999_v56, 16  ;;  %v11639_v61 = vpop.permute.xlu1 %5445 }
 0x4c1   : >> { %5377 = vrot.lane.b32.xlu0 %v5347_v5, %s9575_s20  ;;  %v3209_v30 = vrot.slane %v3207_v25, 7  ;;  %v3218_v13 = vrot.slane %v3216_v55, 7  ;;  %v5187_v53 = vpack.c.b16 %v5170_v3, %v5169_v62  ;;  %v3599_v4 = vor.u32 %v3598_v38, %v3596_v18  ;;  %v6177_v38 = vpop.f32.mrf.mxu2 }
 0x4c2   : >> { %v3595_v2 = vrot.slane %v3594_v6, 4  ;;  %v3604_v39 = vrot.slane %v3602_v12, 5  ;;  %v8897_v31 = vrot.slane %v3202_v21, 11  ;;  %v5723_v56 = vsel %vm2201_vm11, %v5684_v60, %v11527_v44  ;;  %v11659_v44 = vpop.permute.xlu2 %5557 }
 0x4c3   : >> { %v3212_v9 = vor.u32 %v3210_v63, %v3209_v30  ;;  %v3214_v5 = vrot.slane %v3209_v30, 4  ;;  %v3221_v42 = vor.u32 %v3219_v16, %v3218_v13  ;;  %5217 = vrot.lane.b32.xlu2 %v5187_v53, %s9576_s21  ;;  %v3600_v55 = vrot.slane %v3599_v4, 4  ;;  %v11651_v63 = vld [vmem:[%s9980_s30 + $0x1] ss:$0 sm:$0xff]  ;;  %6120 = vmatmul.bf16.gmra.mxu3 %v5723_v56  ;;  %v3002_v4 = vld [vmem:[#allocation3 + $0x90] sm:$0x8] }
 0x4c4   : >> { %v3597_v25 = vsel %vm10347_vm14, %v3595_v2, %v3596_v18  ;;  %v5812_v62 = vsel %vm2168_vm10, %v5772_v24, %v11571_v20  ;;  %v9420_v24 = vld [vmem:[#allocation3 + $0xf4] sm:$0xff]  ;;  %v6091_v12 = vpop.f32.mrf.mxu3  ;;  %v12725_v30 = vld [vmem:[#allocation4_spill] sm:$0xff]  ;;  %v6087_v53 = vadd.f32 %v11651_v63, %v11578_v57  ;;  %v2942_v56 = vld [vmem:[#allocation2 + $0x28] sm:$0xff]  ;;  %v3240_v57 = vrot.slane %v3238_v0, 7 }
 0x4c5   : >> { %v3213_v17 = vsel %vm10513_vm0, %v8897_v31, %v3212_v9  ;;  %v3222_v16 = vsel %vm10513_vm0, %v3214_v5, %v3221_v42  ;;  %v3605_v3 = vsel %vm10347_vm14, %v3600_v55, %v3604_v39  ;;  %v5089_v6 = vunpack.c.l.b16 %v3597_v25  ;;  %v9554_v31 = vld [vmem:[%s9980_s30] ss:$0 sm:$0xff]  ;;  %v12726_v5 = vld [vmem:[#allocation5_spill] sm:$0xff] }
 0x4c6   : >> { %v5090_v20 = vunpack.c.l.b16 %v3605_v3  ;;  %v5851_v18 = vsel %vm2201_vm11, %v5812_v62, %v11565_v23  ;;  %v4917_v60 = vunpack.c.l.b16 %v3213_v17  ;;  %v4918_v21 = vunpack.c.l.b16 %v3222_v16  ;;  %v2753_v23 = vpop.f32.mrf.mxu1 }
 0x4c7   : >> { %v2663_v13 = vadd.f32 %v9554_v31, %v12725_v30  ;;  %v6176_v39 = vadd.f32 %v11603_v54, %v6087_v53  ;;  %v2665_v42 = vadd.f32 %v9554_v31, %v12726_v5  ;;  %v6089_v25 = vadd.f32 %v11651_v63, %v6088_v15  ;;  %v2944_v5 = vld [vmem:[#allocation2 + $0x48] sm:$0xff] }
 0x4c8   : >> { %v5107_v2 = vpack.c.b16 %v5090_v20, %v5089_v6  ;;  %v4941_v55 = vpack.c.b16 %v4918_v21, %v4917_v60  ;;  %v6092_v62 = vadd.f32 %v11651_v63, %v6091_v12  ;;  %v11677_v3 = vpop.permute.xlu1 %5127  ;;  %v3224_v6 = vshrl.u32 %v3002_v4, 16  ;;  %v11681_v20 = vpop.permute.xlu0 %5367  ;;  %v2943_v60 = vld [vmem:[#allocation2 + $0x30] sm:$0xff] }
 0x4c9   : >> { %5059 = vrot.lane.b32.xlu0 %v9420_v24, %s9575_s20  ;;  %v2752_v9 = vadd.f32 %v2751_v10, %v2663_v13  ;;  %v6265_v17 = vadd.f32 %v11467_v32, %v6176_v39  ;;  %v6180_v54 = vpop.f32.mrf.mxu2  ;;  %v6178_v15 = vadd.f32 %v6177_v38, %v6089_v25  ;;  %v2754_v24 = vadd.f32 %v2753_v23, %v2665_v42 }
 0x4ca   : >> { %6209 = vmatmul.bf16.gmra.mxu2 %v5851_v18  ;;  %5137 = vrot.lane.b32.xlu1 %v5107_v2, %s9577_s23  ;;  %v5647_v10 = vsel %vm226_vm5, %v4941_v55, %v11557_v52  ;;  %v9429_v18 = vld [vmem:[#allocation3 + $0x94] sm:$0xff]  ;;  %v3231_v0 = vrot.slane %v3229_v59, 7  ;;  %v11687_v21 = vpop.permute.xlu2 %5207  ;;  %v3243_v30 = vor.u32 %v3241_v34, %v3240_v57  ;;  %v3005_v59 = vld [vmem:[#allocation3 + $0xa0] sm:$0x8]  ;;  %v6181_v53 = vadd.f32 %v6180_v54, %v6092_v62 }
 0x4cb   : >> { %v2841_v16 = vadd.f32 %v11495_v26, %v2752_v9  ;;  %v5686_v12 = vsel %vm2168_vm10, %v5647_v10, %v11601_v47  ;;  %v6344_v32 = vadd.f32 %v6265_v17, %v2942_v56  ;;  %v6267_v31 = vadd.f32 %v11501_v29, %v6178_v15  ;;  %v6274_v9 = vpop.f32.mrf.mxu0 }
 0x4cc   : >> { %v2843_v52 = vadd.f32 %v11539_v51, %v2754_v24  ;;  %v5775_v38 = vsel %vm226_vm5, %v9429_v18, %v11597_v14  ;;  %v6093_v13 = vpop.f32.mrf.mxu3  ;;  %v8898_v2 = vrot.slane %v3224_v6, 11  ;;  %v5726_v4 = vsel %vm2201_vm11, %v5686_v12, %v11608_v1 }
 0x4cd   : >> { %v2875_v26 = vmax.f32 %v2841_v16, 0.0  ;;  %6376 = vst.msk [vmem:[#allocation2 + $0x28] sm:$0xff] %vm226_vm5, %v6344_v32  ;;  %v12727_v29 = vshrl.u32 %v11242_v40, 16  ;;  %v6345_v51 = vadd.f32 %v6267_v31, %v2943_v60  ;;  %v12728_v14 = vshll.u32 %v11161_v22, 16 }
 0x4ce   : >> { %v3236_v48 = vrot.slane %v3231_v0, 4  ;;  %v2876_v34 = vmax.f32 %v2843_v52, 0.0  ;;  %v6270_v42 = vadd.f32 %v11563_v7, %v6181_v53  ;;  %v5814_v25 = vsel %vm2168_vm10, %v5775_v38, %v11639_v61 }
 0x4cf   : >> { %v2907_v47 = vpack.c.bf16 %v2875_v26, %v2875_v26  ;;  %v3262_v39 = vrot.slane %v12727_v29, 7  ;;  %v3234_v23 = vor.u32 %v12728_v14, %v3231_v0  ;;  %v3246_v55 = vshrl.u32 %v3005_v59, 16  ;;  %6377 = vst.msk [vmem:[#allocation2 + $0x30] sm:$0xff] %vm226_vm5, %v6345_v51 }
 0x4d0   : >> { %v12729_v1 = vshrl.u32 %v11235_v36, 16  ;;  %v3244_v22 = vsel %vm10513_vm0, %v3236_v48, %v3243_v30  ;;  %v6094_v62 = vadd.f32 %v11651_v63, %v6093_v13  ;;  %v2908_v57 = vpack.c.bf16 %v2876_v34, %v2876_v34  ;;  %v5448_v6 = vpop.permute.xlu1 %5447  ;;  %v5050_v26 = vpop.permute.xlu0 %5049  ;;  %v3008_v30 = vld [vmem:[#allocation3 + $0xb0] sm:$0x8] }
 0x4d1   : >> { %2940 = vst.msk [vmem:[#allocation3 + $0x104] sm:$0xf] %vm273_vm7, %v2907_v47  ;;  %v6182_v17 = vpop.f32.mrf.mxu2  ;;  %v12730_v16 = vshll.u32 %v11242_v40, 16  ;;  %v6346_v54 = vadd.f32 %v6270_v42, %v2944_v5  ;;  %v3235_v61 = vsel %vm10513_vm0, %v8898_v2, %v3234_v23  ;;  %v5854_v10 = vsel %vm2201_vm11, %v5814_v25, %v11659_v44  ;;  %v2945_v40 = vld [vmem:[#allocation2 + $0x50] sm:$0xff]  ;;  %v9430_v25 = vld [vmem:[#allocation3 + $0xa4] sm:$0xff] }
 0x4d2   : >> { %v3253_v56 = vrot.slane %v12729_v1, 7  ;;  %2941 = vst.msk [vmem:[#allocation3 + $0x108] sm:$0xf] %vm273_vm7, %v2908_v57  ;;  %v6183_v15 = vadd.f32 %v6182_v17, %v6094_v62  ;;  %v4920_v24 = vunpack.c.l.b16 %v3244_v22  ;;  %v8899_v18 = vrot.slane %v3246_v55, 11  ;;  %v5560_v52 = vpop.permute.xlu2 %5559 }
 0x4d3   : >> { %6125 = vmatmul.bf16.gmra.mxu3 %v5726_v4  ;;  %v3265_v7 = vor.u32 %v12730_v16, %v3262_v39  ;;  %v12731_v12 = vshll.u32 %v11235_v36, 16  ;;  %6378 = vst.msk [vmem:[#allocation2 + $0x48] sm:$0xff] %vm226_vm5, %v6346_v54  ;;  %v4919_v38 = vunpack.c.l.b16 %v3235_v61  ;;  %v12732_v13 = vshrl.u32 %v11318_v35, 16  ;;  %v11732_v29 = vpop.f32.mrf.mxu0 }
 0x4d4   : >> { %v3258_v32 = vrot.slane %v3253_v56, 4  ;;  %v6096_v60 = vpop.f32.mrf.mxu3  ;;  %v6272_v31 = vadd.f32 %v11605_v41, %v6183_v15  ;;  %v12733_v2 = vshrl.u32 %v11314_v46, 16  ;;  %v3268_v51 = vshrl.u32 %v3008_v30, 16  ;;  %v9431_v15 = vld [vmem:[#allocation3 + $0xb4] sm:$0xff]  ;;  %v3665_v30 = vld [vmem:[#allocation3 + $0x100] sm:$0x8] }
 0x4d5   : >> { %v3256_v0 = vor.u32 %v12731_v12, %v3253_v56  ;;  %v3284_v47 = vrot.slane %v12732_v13, 7  ;;  %v4942_v59 = vpack.c.b16 %v4920_v24, %v4919_v38  ;;  %v6097_v41 = vadd.f32 %v11651_v63, %v6096_v60  ;;  %v2946_v56 = vld [vmem:[#allocation2 + $0x68] sm:$0xff] }
 0x4d6   : >> { %v3266_v44 = vsel %vm10513_vm0, %v3258_v32, %v3265_v7  ;;  %v6347_v36 = vadd.f32 %v6272_v31, %v2945_v40  ;;  %v3275_v4 = vrot.slane %v12733_v2, 7  ;;  %v12734_v48 = vshll.u32 %v11318_v35, 16  ;;  %v4303_v32 = vld [vmem:[#allocation3 + $0x100] sm:$0x8] }
 0x4d7   : >> { %v3257_v53 = vsel %vm10513_vm0, %v8899_v18, %v3256_v0  ;;  %v4922_v39 = vunpack.c.l.b16 %v3266_v44  ;;  %v5650_v23 = vsel %vm226_vm5, %v4942_v59, %v11648_v37  ;;  %v5778_v57 = vsel %vm226_vm5, %v9430_v25, %v11681_v20 }
 0x4d8   : >> { %6379 = vst.msk [vmem:[#allocation2 + $0x50] sm:$0xff] %vm226_vm5, %v6347_v36  ;;  %v3287_v34 = vor.u32 %v12734_v48, %v3284_v47  ;;  %v5688_v55 = vsel %vm2168_vm10, %v5650_v23, %v11677_v3  ;;  %v4921_v1 = vunpack.c.l.b16 %v3257_v53  ;;  %v3280_v22 = vrot.slane %v3275_v4, 4  ;;  %v5130_v37 = vpop.permute.xlu1 %5129  ;;  %v5370_v61 = vpop.permute.xlu0 %5369  ;;  %v3666_v59 = vld [vmem:[#allocation3 + $0x104] sm:$0xf] }
 0x4d9   : >> { %v6185_v14 = vpop.f32.mrf.mxu2  ;;  %v9451_v5 = vld [vmem:[#allocation3 + $0x104] sm:$0xff]  ;;  %v11744_v16 = vrot.slane %v3268_v51, 11  ;;  %v12735_v35 = vshll.u32 %v11314_v46, 16  ;;  %v5729_v3 = vsel %vm2201_vm11, %v5688_v55, %v11687_v21  ;;  %v5816_v54 = vsel %vm2168_vm10, %v5778_v57, %v5448_v6 }
 0x4da   : >> { %6214 = vmatmul.bf16.gmra.mxu2 %v5854_v10  ;;  %v6186_v42 = vadd.f32 %v6185_v14, %v6097_v41  ;;  %5569 = vrot.lane.b32.xlu2 %v9451_v5, %s9576_s21  ;;  %v4943_v17 = vpack.c.b16 %v4922_v39, %v4921_v1  ;;  %v5210_v24 = vpop.permute.xlu2 %5209  ;;  %v5781_v21 = vsel %vm226_vm5, %v9431_v15, %v5370_v61  ;;  %v4305_v40 = vld [vmem:[#allocation3 + $0x108] sm:$0xf]  ;;  %v4618_v60 = vshrl.u32 %v4303_v32, 16 }
 0x4db   : >> { %v11748_v7 = vor.u32 %v12735_v35, %v3275_v4  ;;  %v5857_v6 = vsel %vm2201_vm11, %v5816_v54, %v5560_v52  ;;  %v4632_v44 = vshrl.u32 %v4305_v40, 16  ;;  %v11767_v13 = vpop.f32.mrf.mxu0  ;;  %v4635_v36 = vshll.u32 %v4305_v40, 16  ;;  %v3667_v53 = vld [vmem:[#allocation3 + $0x108] sm:$0xf] }
 0x4dc   : >> { %v6275_v62 = vadd.f32 %v6274_v9, %v6186_v42  ;;  %v11755_v9 = vsel %vm10513_vm0, %v3280_v22, %v3287_v34  ;;  %v5653_v20 = vsel %vm226_vm5, %v4943_v17, %v5050_v26  ;;  %v6098_v46 = vpop.f32.mrf.mxu3  ;;  %v4304_v26 = vld [vmem:[#allocation3 + $0x104] sm:$0xf]  ;;  %v3999_v2 = vshrl.u32 %v3665_v30, 16  ;;  %v4675_v22 = vld [vmem:[#allocation3 + $0x10c] sm:$0x1] }
 0x4dd   : >> { %v5690_v18 = vsel %vm2168_vm10, %v5653_v20, %v5130_v37  ;;  %v3279_v12 = vsel %vm10513_vm0, %v11744_v16, %v11748_v7  ;;  %v4924_v0 = vunpack.c.l.b16 %v11755_v9  ;;  %v4623_v31 = vshrl.u32 %v4304_v26, 16 }
 0x4de   : >> { %v6348_v10 = vadd.f32 %v6275_v62, %v2946_v56  ;;  %v4626_v38 = vshll.u32 %v4304_v26, 16  ;;  %v11770_v47 = vsel %vm2201_vm11, %v5690_v18, %v5210_v24  ;;  %v11773_v52 = vadd.f32 %v11651_v63, %v6098_v46 }
 0x4df   : >> { %v8935_v4 = vrot.slane %v4618_v60, 11  ;;  %v4625_v41 = vrot.slane %v4623_v31, 7  ;;  %v4634_v39 = vrot.slane %v4632_v44, 7  ;;  %v4004_v51 = vshrl.u32 %v3666_v59, 16 }
 0x4e0   : >> { %6380 = vst.msk [vmem:[#allocation2 + $0x68] sm:$0xff] %vm226_vm5, %v6348_v10  ;;  %v8920_v14 = vrot.slane %v3999_v2, 11  ;;  %v4007_v23 = vshll.u32 %v3666_v59, 16  ;;  %v4013_v48 = vshrl.u32 %v3667_v53, 16  ;;  %v4016_v34 = vshll.u32 %v3667_v53, 16  ;;  %v5450_v1 = vpop.permute.xlu1 %5449 }
 0x4e1   : >> { %v4628_v5 = vor.u32 %v4626_v38, %v4625_v41  ;;  %v4630_v42 = vrot.slane %v4625_v41, 4  ;;  %v4637_v25 = vor.u32 %v4635_v36, %v4634_v39  ;;  %v4006_v55 = vrot.slane %v4004_v51, 7  ;;  %v6187_v61 = vpop.f32.mrf.mxu2 }
 0x4e2   : >> { %v4015_v56 = vrot.slane %v4013_v48, 7  ;;  %v4873_v62 = vrot.slane %v4623_v31, 4  ;;  %v4874_v57 = vrot.slane %v4626_v38, 5  ;;  %v4877_v17 = vrot.slane %v4635_v36, 5  ;;  %v5562_v18 = vpop.permute.xlu2 %5561 }
 0x4e3   : >> { %6130 = vmatmul.bf16.gmra.mxu3 %v5729_v3  ;;  %v4629_v37 = vsel %vm10513_vm0, %v8935_v4, %v4628_v5  ;;  %v4638_v35 = vsel %vm10513_vm0, %v4630_v42, %v4637_v25  ;;  %v4009_v3 = vor.u32 %v4007_v23, %v4006_v55  ;;  %v4011_v54 = vrot.slane %v4006_v55, 4  ;;  %v4035_v4 = vld [vmem:[#allocation3 + $0x10c] sm:$0x1]  ;;  %v11784_v41 = vpop.f32.mrf.mxu0  ;;  %v11788_v5 = vld [vmem:[#allocation3 + $0xf4] sm:$0xf]  ;;  %v11790_v42 = vpop.permute.xlu0 %5051 }
 0x4e4   : >> { %v5409_v10 = vunpack.c.l.b16 %v4629_v37  ;;  %v5410_v20 = vunpack.c.l.b16 %v4638_v35  ;;  %v4018_v15 = vor.u32 %v4016_v34, %v4015_v56  ;;  %v4875_v24 = vor.u32 %v4874_v57, %v4873_v62  ;;  %v6101_v30 = vpop.f32.mrf.mxu3  ;;  %v11795_v37 = vld [vmem:[#allocation3 + $0xf8] sm:$0xf] }
 0x4e5   : >> { %v5818_v46 = vsel %vm2168_vm10, %v5781_v21, %v5450_v1  ;;  %v4879_v32 = vrot.slane %v4632_v44, 4  ;;  %v4883_v26 = vshll.u32 %v4675_v22, 16  ;;  %v4246_v38 = vrot.slane %v4004_v51, 4 }
 0x4e6   : >> { %v5427_v40 = vpack.c.b16 %v5410_v20, %v5409_v10  ;;  %v4019_v60 = vsel %vm10513_vm0, %v4011_v54, %v4018_v15  ;;  %v4876_v59 = vrot.slane %v4875_v24, 4  ;;  %v5860_v21 = vsel %vm2201_vm11, %v5818_v46, %v5562_v18  ;;  %v2947_v20 = vld [vmem:[#allocation2 + $0x70] sm:$0xff]  ;;  %v3392_v46 = vld [vmem:[#allocation3 + $0xfc] sm:$0x1] }
 0x4e7   : >> { %v5172_v36 = vunpack.c.l.b16 %v4019_v60  ;;  %v4880_v53 = vor.u32 %v4879_v32, %v4877_v17  ;;  %v4885_v2 = vrot.slane %v4883_v26, 5  ;;  %v4247_v44 = vrot.slane %v4007_v23, 5  ;;  %v3011_v32 = vld [vmem:[#allocation3 + $0xc0] sm:$0x8] }
 0x4e8   : >> { %5457 = vrot.lane.b32.xlu1 %v5427_v40, %s9577_s23  ;;  %v4250_v39 = vrot.slane %v4016_v34, 5  ;;  %v4878_v25 = vsel %vm10347_vm14, %v4876_v59, %v4877_v17  ;;  %v6102_v1 = vadd.f32 %v11651_v63, %v6101_v30  ;;  %v4256_v57 = vshll.u32 %v4035_v4, 16 }
 0x4e9   : >> { %v4881_v55 = vrot.slane %v4880_v53, 4  ;;  %v5601_v56 = vunpack.c.l.b16 %v4878_v25  ;;  %v4248_v22 = vor.u32 %v4247_v44, %v4246_v38  ;;  %v3361_v34 = vshrl.u32 %v11788_v5, 16  ;;  %v4306_v25 = vld [vmem:[#allocation3 + $0x110] sm:$0x8] }
 0x4ea   : >> { %6219 = vmatmul.bf16.gmra.mxu2 %v5857_v6  ;;  %v4010_v6 = vsel %vm10513_vm0, %v8920_v14, %v4009_v3  ;;  %v4252_v14 = vrot.slane %v4013_v48, 4  ;;  %v6188_v48 = vadd.f32 %v6187_v61, %v11773_v52  ;;  %v3364_v17 = vshll.u32 %v11788_v5, 16  ;;  %v5212_v60 = vpop.permute.xlu2 %5211 }
 0x4eb   : >> { %v5171_v31 = vunpack.c.l.b16 %v4010_v6  ;;  %v4886_v23 = vsel %vm10347_vm14, %v4881_v55, %v4885_v2  ;;  %v4249_v3 = vrot.slane %v4248_v22, 4  ;;  %v4258_v10 = vrot.slane %v4256_v57, 5  ;;  %v11826_v55 = vld [vmem:[#allocation3 + $0x114] sm:$0xf]  ;;  %v5372_v7 = vpop.permute.xlu0 %5371 }
 0x4ec   : >> { %v4253_v62 = vor.u32 %v4252_v14, %v4250_v39  ;;  %v5602_v35 = vunpack.c.l.b16 %v4886_v23  ;;  %v6277_v15 = vadd.f32 %v11732_v29, %v6188_v48  ;;  %v3370_v24 = vshrl.u32 %v11795_v37, 16  ;;  %v6103_v14 = vpop.f32.mrf.mxu3  ;;  %v2948_v23 = vld [vmem:[#allocation2 + $0x88] sm:$0xff] }
 0x4ed   : >> { %v5188_v51 = vpack.c.b16 %v5172_v36, %v5171_v31  ;;  %v3373_v18 = vshll.u32 %v11795_v37, 16  ;;  %v3606_v52 = vrot.slane %v3361_v34, 4  ;;  %v6190_v61 = vpop.f32.mrf.mxu2  ;;  %v3607_v29 = vrot.slane %v3364_v17, 5 }
 0x4ee   : >> { %v4254_v54 = vrot.slane %v4253_v62, 4  ;;  %v5132_v6 = vpop.permute.xlu1 %5131  ;;  %v5619_v26 = vpack.c.b16 %v5602_v35, %v5601_v56  ;;  %v6349_v30 = vadd.f32 %v6277_v15, %v2947_v20  ;;  %v3612_v53 = vrot.slane %v3370_v24, 4  ;;  %v11828_v56 = vpop.f32.mrf.mxu0 }
 0x4ef   : >> { %5219 = vrot.lane.b32.xlu2 %v5188_v51, %s9576_s21  ;;  %v3610_v36 = vrot.slane %v3373_v18, 5  ;;  %v3608_v59 = vor.u32 %v3607_v29, %v3606_v52  ;;  %v3616_v2 = vshll.u32 %v3392_v46, 16  ;;  %v4923_v4 = vunpack.c.l.b16 %v3279_v12 }
 0x4f0   : >> { %v4259_v40 = vsel %vm10347_vm14, %v4254_v54, %v4258_v10  ;;  %9255 = vmatmul.msk.bf16.gmra.mxu0 %vm226_vm5, %v5619_v26  ;;  %v3290_v44 = vshrl.u32 %v3011_v32, 16  ;;  %6381 = vst.msk [vmem:[#allocation2 + $0x70] sm:$0xff] %vm226_vm5, %v6349_v30  ;;  %v6191_v51 = vadd.f32 %v6190_v61, %v6102_v1  ;;  %v12736_v12 = vshrl.u32 %v11399_v58, 16  ;;  %v11840_v10 = vld [vmem:[#allocation3 + $0x118] sm:$0xf] }
 0x4f1   : >> { %v5332_v38 = vunpack.c.l.b16 %v4259_v40  ;;  %v3609_v22 = vrot.slane %v3608_v59, 4  ;;  %v3613_v62 = vor.u32 %v3612_v53, %v3610_v36  ;;  %v3618_v57 = vrot.slane %v3616_v2, 5 }
 0x4f2   : >> { %v4944_v16 = vpack.c.b16 %v4924_v0, %v4923_v4  ;;  %v12737_v48 = vshrl.u32 %v11405_v33, 16  ;;  %v6280_v1 = vadd.f32 %v11767_v13, %v6191_v51  ;;  %v4640_v20 = vshrl.u32 %v4306_v25, 16  ;;  %v5564_v4 = vpop.permute.xlu2 %5563 }
 0x4f3   : >> { %6135 = vmatmul.bf16.gmra.mxu3 %v11770_v47  ;;  %v4251_v47 = vsel %vm10347_vm14, %v4249_v3, %v4250_v39  ;;  %v3611_v3 = vsel %vm10347_vm14, %v3609_v22, %v3610_v36  ;;  %v3614_v54 = vrot.slane %v3613_v62, 4  ;;  %v4645_v9 = vshrl.u32 %v11826_v55, 16 }
 0x4f4   : >> { %v5331_v31 = vunpack.c.l.b16 %v4251_v47  ;;  %v3306_v35 = vrot.slane %v12737_v48, 7  ;;  %v5656_v0 = vsel %vm226_vm5, %v4944_v16, %v11790_v42  ;;  %v8901_v15 = vrot.slane %v3290_v44, 11  ;;  %v5054_v48 = vpop.permute.xlu0 %5053 }
 0x4f5   : >> { %v6350_v46 = vadd.f32 %v6280_v1, %v2948_v23  ;;  %v5692_v52 = vsel %vm2168_vm10, %v5656_v0, %v5132_v6  ;;  %v3619_v61 = vsel %vm10347_vm14, %v3614_v54, %v3618_v57  ;;  %v5091_v13 = vunpack.c.l.b16 %v3611_v3  ;;  %v6192_v42 = vpop.f32.mrf.mxu2  ;;  %v3020_v1 = vld [vmem:[#allocation3 + $0xf0] sm:$0x8] }
 0x4f6   : >> { %v5348_v39 = vpack.c.b16 %v5332_v38, %v5331_v31  ;;  %v4647_v32 = vrot.slane %v4645_v9, 7  ;;  %v5092_v26 = vunpack.c.l.b16 %v3619_v61  ;;  %v8936_v47 = vrot.slane %v4640_v20, 11  ;;  %v9432_v31 = vld [vmem:[#allocation3 + $0xc4] sm:$0xff]  ;;  %v6286_v16 = vpop.f32.mrf.mxu0 }
 0x4f7   : >> { %6382 = vst.msk [vmem:[#allocation2 + $0x88] sm:$0xff] %vm226_vm5, %v6350_v46  ;;  %v4648_v40 = vshll.u32 %v11826_v55, 16  ;;  %v4654_v29 = vshrl.u32 %v11840_v10, 16  ;;  %v12738_v38 = vshll.u32 %v11399_v58, 16  ;;  %v12739_v30 = vshll.u32 %v11405_v33, 16  ;;  %v5452_v59 = vpop.permute.xlu1 %5451  ;;  %v6106_v23 = vpop.f32.mrf.mxu3 }
 0x4f8   : >> { %5379 = vrot.lane.b32.xlu0 %v5348_v39, %s9575_s20  ;;  %v6104_v53 = vadd.f32 %v11651_v63, %v6103_v14  ;;  %v4657_v2 = vshll.u32 %v11840_v10, 16  ;;  %v5735_v39 = vsel %vm2201_vm11, %v5692_v52, %v5212_v60  ;;  %v5108_v51 = vpack.c.b16 %v5092_v26, %v5091_v13  ;;  %v2949_v60 = vld [vmem:[#allocation2 + $0x90] sm:$0xff] }
 0x4f9   : >> { %v3309_v36 = vor.u32 %v12739_v30, %v3306_v35  ;;  %v4650_v25 = vor.u32 %v4648_v40, %v4647_v32  ;;  %v5784_v22 = vsel %vm226_vm5, %v9432_v31, %v5372_v7  ;;  %v4652_v58 = vrot.slane %v4647_v32, 4  ;;  %v2950_v30 = vld [vmem:[#allocation2 + $0xa8] sm:$0xff] }
 0x4fa   : >> { %6224 = vmatmul.bf16.gmra.mxu2 %v5860_v21  ;;  %v3297_v21 = vrot.slane %v12736_v12, 7  ;;  %v4656_v33 = vrot.slane %v4654_v29, 7  ;;  %v6193_v62 = vadd.f32 %v6192_v42, %v6104_v53  ;;  %v5820_v57 = vsel %vm2168_vm10, %v5784_v22, %v5452_v59  ;;  %5139 = vrot.lane.b32.xlu1 %v5108_v51, %s9577_s23  ;;  %v3014_v51 = vld [vmem:[#allocation3 + $0xd0] sm:$0x8] }
 0x4fb   : >> { %v4651_v14 = vsel %vm10513_vm0, %v8936_v47, %v4650_v25  ;;  %v5863_v54 = vsel %vm2201_vm11, %v5820_v57, %v5564_v4  ;;  %v3363_v61 = vrot.slane %v3361_v34, 7  ;;  %v6107_v13 = vadd.f32 %v11651_v63, %v6106_v23  ;;  %v9433_v25 = vld [vmem:[#allocation3 + $0xd4] sm:$0xff] }
 0x4fc   : >> { %v3300_v6 = vor.u32 %v12738_v38, %v3297_v21  ;;  %v3302_v44 = vrot.slane %v3297_v21, 4  ;;  %v4659_v7 = vor.u32 %v4657_v2, %v4656_v33  ;;  %v6282_v21 = vadd.f32 %v11784_v41, %v6193_v62  ;;  %v5214_v38 = vpop.permute.xlu2 %5213 }
 0x4fd   : >> { %v5411_v35 = vunpack.c.l.b16 %v4651_v14  ;;  %v3356_v41 = vshrl.u32 %v3020_v1, 16  ;;  %v3366_v47 = vor.u32 %v3364_v17, %v3363_v61  ;;  %v3372_v5 = vrot.slane %v3370_v24, 7  ;;  %v9452_v1 = vld [vmem:[#allocation3 + $0x114] sm:$0xff] }
 0x4fe   : >> { %v3310_v12 = vsel %vm10513_vm0, %v3302_v44, %v3309_v36  ;;  %v3301_v3 = vsel %vm10513_vm0, %v8901_v15, %v3300_v6  ;;  %v4660_v20 = vsel %vm10513_vm0, %v4652_v58, %v4659_v7  ;;  %v6351_v0 = vadd.f32 %v6282_v21, %v2949_v60  ;;  %v6289_v4 = vpop.f32.mrf.mxu0  ;;  %5571 = vrot.lane.b32.xlu2 %v9452_v1, %s9576_s21  ;;  %v2953_v1 = vld [vmem:[#allocation2 + $0xd0] sm:$0xff] }
 0x4ff   : >> { %v4926_v46 = vunpack.c.l.b16 %v3310_v12  ;;  %v5412_v52 = vunpack.c.l.b16 %v4660_v20  ;;  %v4925_v32 = vunpack.c.l.b16 %v3301_v3  ;;  %v8904_v36 = vrot.slane %v3356_v41, 11  ;;  %v6108_v53 = vpop.f32.mrf.mxu3 }
 0x500   : >> { %6383 = vst.msk [vmem:[#allocation2 + $0x90] sm:$0xff] %vm226_vm5, %v6351_v0  ;;  %v5374_v17 = vpop.permute.xlu0 %5373  ;;  %v6109_v22 = vadd.f32 %v11651_v63, %v6108_v53  ;;  %v3368_v58 = vrot.slane %v3363_v61, 4  ;;  %v3375_v33 = vor.u32 %v3373_v18, %v3372_v5  ;;  %v12740_v62 = vshrl.u32 %v11493_v50, 16  ;;  %v2951_v18 = vld [vmem:[#allocation2 + $0xb0] sm:$0xff] }
 0x501   : >> { %v5428_v26 = vpack.c.b16 %v5412_v52, %v5411_v35  ;;  %v4945_v6 = vpack.c.b16 %v4926_v46, %v4925_v32  ;;  %v5787_v23 = vsel %vm226_vm5, %v9433_v25, %v5374_v17  ;;  %v3312_v60 = vshrl.u32 %v3014_v51, 16  ;;  %v2952_v25 = vld [vmem:[#allocation2 + $0xc8] sm:$0xff] }
 0x502   : >> { %v3328_v57 = vrot.slane %v12740_v62, 7  ;;  %v3376_v21 = vsel %vm10513_vm0, %v3368_v58, %v3375_v33  ;;  %v12742_v46 = vshll.u32 %v11493_v50, 16  ;;  %v9434_v33 = vld [vmem:[#allocation3 + $0xe4] sm:$0xff] }
 0x503   : >> { %6140 = vmatmul.bf16.gmra.mxu3 %v5735_v39  ;;  %5459 = vrot.lane.b32.xlu1 %v5428_v26, %s9577_s23  ;;  %v5659_v59 = vsel %vm226_vm5, %v4945_v6, %v5054_v48  ;;  %v12741_v48 = vshrl.u32 %v11489_v19, 16  ;;  %v8902_v32 = vrot.slane %v3312_v60, 11  ;;  %v12743_v26 = vshll.u32 %v11489_v19, 16 }
 0x504   : >> { %v5566_v0 = vpop.permute.xlu2 %5565  ;;  %v3331_v52 = vor.u32 %v12742_v46, %v3328_v57 }
 0x505   : >> { %v3319_v35 = vrot.slane %v12741_v48, 7 }
 0x509   : >> { %v6195_v15 = vpop.f32.mrf.mxu2 }
 0x50a   : >> { %6229 = vmatmul.bf16.gmra.mxu2 %v5863_v54  ;;  %v5134_v42 = vpop.permute.xlu1 %5133  ;;  %v6196_v31 = vadd.f32 %v6195_v15, %v6107_v13  ;;  %v4932_v54 = vunpack.c.l.b16 %v3376_v21  ;;  %v3322_v15 = vor.u32 %v12743_v26, %v3319_v35 }
 0x50b   : >> { %v5694_v44 = vsel %vm2168_vm10, %v5659_v59, %v5134_v42  ;;  %v6291_v42 = vpop.f32.mrf.mxu0 }
 0x50c   : >> { %v6285_v34 = vadd.f32 %v11828_v56, %v6196_v31  ;;  %v3367_v56 = vsel %vm10513_vm0, %v8904_v36, %v3366_v47  ;;  %v5738_v14 = vsel %vm2201_vm11, %v5694_v44, %v5214_v38  ;;  %v3324_v47 = vrot.slane %v3319_v35, 4  ;;  %v5056_v38 = vpop.permute.xlu0 %5055  ;;  %v5216_v36 = vpop.permute.xlu2 %5215 }
 0x50d   : >> { %v4931_v3 = vunpack.c.l.b16 %v3367_v56  ;;  %v3323_v50 = vsel %vm10513_vm0, %v8902_v32, %v3322_v15 }
 0x50e   : >> { %v6352_v39 = vadd.f32 %v6285_v34, %v2950_v30  ;;  %v4927_v30 = vunpack.c.l.b16 %v3323_v50 }
 0x50f   : >> { %v11909_v61 = vpack.c.b16 %v4932_v54, %v4931_v3 }
 0x510   : >> { %6384 = vst.msk [vmem:[#allocation2 + $0xa8] sm:$0xff] %vm226_vm5, %v6352_v39 }
 0x511   : >> { %v6197_v24 = vpop.f32.mrf.mxu2 }
 0x512   : >> { %v5454_v12 = vpop.permute.xlu1 %5453  ;;  %v6198_v7 = vadd.f32 %v6197_v24, %v6109_v22 }
 0x513   : >> { %v5822_v37 = vsel %vm2168_vm10, %v5787_v23, %v5454_v12  ;;  %6145 = vmatmul.bf16.gmra.mxu3 %v5738_v14  ;;  %v6111_v6 = vpop.f32.mrf.mxu3  ;;  %v6294_v59 = vpop.f32.mrf.mxu0  ;;  %v3017_v14 = vld [vmem:[#allocation3 + $0xe0] sm:$0x8]  ;;  %v3350_v12 = vrot.slane %v3348_v45, 7  ;;  %v12744_v45 = vshll.u32 %v11588_v28, 16 }
 0x514   : >> { %v6287_v20 = vadd.f32 %v6286_v16, %v6198_v7  ;;  %v5866_v13 = vsel %vm2201_vm11, %v5822_v37, %v5566_v0  ;;  %v3332_v16 = vsel %vm10513_vm0, %v3324_v47, %v3331_v52  ;;  %v6112_v44 = vadd.f32 %v11651_v63, %v6111_v6  ;;  %v5568_v60 = vpop.permute.xlu2 %5567 }
 0x515   : >> { %v4928_v31 = vunpack.c.l.b16 %v3332_v16  ;;  %v3334_v37 = vshrl.u32 %v3017_v14, 16  ;;  %v3353_v54 = vor.u32 %v3351_v8, %v3350_v12 }
 0x516   : >> { %v6353_v41 = vadd.f32 %v6287_v20, %v2951_v18  ;;  %v3341_v18 = vrot.slane %v3339_v49, 7 }
 0x517   : >> { %v4946_v34 = vpack.c.b16 %v4928_v31, %v4927_v30  ;;  %v8903_v0 = vrot.slane %v3334_v37, 11 }
 0x518   : >> { %6385 = vst.msk [vmem:[#allocation2 + $0xb0] sm:$0xff] %vm226_vm5, %v6353_v41  ;;  %v3344_v46 = vor.u32 %v12744_v45, %v3341_v18  ;;  %v3346_v52 = vrot.slane %v3341_v18, 4  ;;  %v9435_v45 = vld [vmem:[#allocation3 + $0xf4] sm:$0xff] }
 0x519   : >> { %v5662_v19 = vsel %vm226_vm5, %v4946_v34, %v5056_v38 }
 0x51a   : >> { %6234 = vmatmul.bf16.gmra.mxu2 %v5866_v13  ;;  %v5376_v56 = vpop.permute.xlu0 %5375  ;;  %v3354_v13 = vsel %vm10513_vm0, %v3346_v52, %v3353_v54  ;;  %v3345_v49 = vsel %vm10513_vm0, %v8903_v0, %v3344_v46 }
 0x51b   : >> { %v6113_v58 = vpop.f32.mrf.mxu3  ;;  %v5790_v57 = vsel %vm226_vm5, %v9434_v33, %v5376_v56  ;;  %v4930_v26 = vunpack.c.l.b16 %v3354_v13  ;;  %v4929_v15 = vunpack.c.l.b16 %v3345_v49 }
 0x51c   : >> { %v6114_v23 = vadd.f32 %v11651_v63, %v6113_v58 }
 0x51d   : >> { %v4947_v8 = vpack.c.b16 %v4930_v26, %v4929_v15  ;;  %v5218_v50 = vpop.permute.xlu2 %5217 }
 0x522   : >> { %v5136_v53 = vpop.permute.xlu1 %5135  ;;  %v6200_v5 = vpop.f32.mrf.mxu2 }
 0x523   : >> { %v5696_v39 = vsel %vm2168_vm10, %v5662_v19, %v5136_v53  ;;  %v6201_v51 = vadd.f32 %v6200_v5, %v6112_v44  ;;  %v5058_v27 = vpop.permute.xlu0 %5057  ;;  %v2955_v5 = vld [vmem:[#allocation2 + $0xf0] sm:$0xff] }
 0x524   : >> { %v5741_v17 = vsel %vm2201_vm11, %v5696_v39, %v5216_v36  ;;  %v5665_v28 = vsel %vm226_vm5, %v4947_v8, %v5058_v27  ;;  %v2959_v8 = vld [vmem:[#allocation2 + $0x130] sm:$0xff] }
 0x525   : >> { %6150 = vmatmul.bf16.gmra.mxu3 %v5741_v17  ;;  %v6290_v22 = vadd.f32 %v6289_v4, %v6201_v51  ;;  %v6296_v4 = vpop.f32.mrf.mxu0 }
 0x527   : >> { %v6354_v62 = vadd.f32 %v6290_v22, %v2952_v25 }
 0x529   : >> { %6386 = vst.msk [vmem:[#allocation2 + $0xc8] sm:$0xff] %vm226_vm5, %v6354_v62 }
 0x52a   : >> { %v6202_v21 = vpop.f32.mrf.mxu2 }
 0x52b   : >> { %v5456_v24 = vpop.permute.xlu1 %5455  ;;  %v6203_v35 = vadd.f32 %v6202_v21, %v6114_v23 }
 0x52c   : >> { %v5824_v7 = vsel %vm2168_vm10, %v5790_v57, %v5456_v24  ;;  %v6116_v41 = vpop.f32.mrf.mxu3 }
 0x52d   : >> { %v5869_v48 = vsel %vm2201_vm11, %v5824_v7, %v5568_v60  ;;  %v6292_v3 = vadd.f32 %v6291_v42, %v6203_v35  ;;  %v6299_v32 = vpop.f32.mrf.mxu0  ;;  %v6117_v47 = vadd.f32 %v11651_v63, %v6116_v41  ;;  %v2957_v7 = vld [vmem:[#allocation2 + $0x110] sm:$0xff] }
 0x52e   : >> { %6239 = vmatmul.bf16.gmra.mxu2 %v5869_v48 }
 0x52f   : >> { %v6355_v20 = vadd.f32 %v6292_v3, %v2953_v1  ;;  %v2958_v3 = vld [vmem:[#allocation2 + $0x128] sm:$0xff] }
 0x531   : >> { %6387 = vst.msk [vmem:[#allocation2 + $0xd0] sm:$0xff] %vm226_vm5, %v6355_v20 }
 0x533   : >> { %v5378_v54 = vpop.permute.xlu0 %5377 }
 0x534   : >> { %v6118_v38 = vpop.f32.mrf.mxu3  ;;  %v5793_v52 = vsel %vm226_vm5, %v9435_v45, %v5378_v54  ;;  %v5570_v41 = vpop.permute.xlu2 %5569 }
 0x535   : >> { %v6301_v36 = vpop.f32.mrf.mxu0  ;;  %v6119_v53 = vadd.f32 %v11651_v63, %v6118_v38  ;;  %v4887_v38 = vrot.slane %v4645_v9, 4 }
 0x53c   : >> { %v5138_v42 = vpop.permute.xlu1 %5137 }
 0x53d   : >> { %v6205_v16 = vpop.f32.mrf.mxu2  ;;  %v5698_v31 = vsel %vm2168_vm10, %v5665_v28, %v5138_v42  ;;  %v6304_v22 = vpop.f32.mrf.mxu0 }
 0x53e   : >> { %v6206_v6 = vadd.f32 %v6205_v16, %v6117_v47  ;;  %v5744_v30 = vsel %vm2201_vm11, %v5698_v31, %v5218_v50  ;;  %v4676_v31 = vld [vmem:[#allocation3 + $0x11c] sm:$0x1] }
 0x53f   : >> { %6155 = vmatmul.bf16.gmra.mxu3 %v5744_v30  ;;  %v4891_v30 = vrot.slane %v4657_v2, 5  ;;  %v5060_v2 = vpop.permute.xlu0 %5059 }
 0x540   : >> { %v6295_v34 = vadd.f32 %v6294_v59, %v6206_v6  ;;  %v2956_v59 = vld [vmem:[#allocation2 + $0x108] sm:$0xff]  ;;  %v4888_v6 = vrot.slane %v4648_v40, 5 }
 0x542   : >> { %v6356_v19 = vadd.f32 %v6295_v34, %v2954_v11  ;;  %v4893_v34 = vrot.slane %v4654_v29, 4 }
 0x544   : >> { %6388 = vst.msk [vmem:[#allocation2 + $0xe8] sm:$0xff] %vm226_vm5, %v6356_v19 }
 0x545   : >> { %v6207_v44 = vpop.f32.mrf.mxu2  ;;  %v6306_v23 = vpop.f32.mrf.mxu0 }
 0x546   : >> { %v6208_v39 = vadd.f32 %v6207_v44, %v6119_v53  ;;  %v6121_v17 = vpop.f32.mrf.mxu3  ;;  %v2960_v53 = vld [vmem:[#allocation2 + $0x148] sm:$0xff]  ;;  %v4894_v44 = vor.u32 %v4893_v34, %v4891_v30 }
 0x547   : >> { %v6122_v56 = vadd.f32 %v11651_v63, %v6121_v17 }
 0x548   : >> { %v6297_v51 = vadd.f32 %v6296_v4, %v6208_v39 }
 0x54a   : >> { %v6357_v25 = vadd.f32 %v6297_v51, %v2955_v5  ;;  %v4895_v51 = vrot.slane %v4894_v44, 4 }
 0x54c   : >> { %6389 = vst.msk [vmem:[#allocation2 + $0xf0] sm:$0xff] %vm226_vm5, %v6357_v25 }
 0x54d   : >> { %v6210_v58 = vpop.f32.mrf.mxu2  ;;  %v6309_v1 = vpop.f32.mrf.mxu0 }
 0x54e   : >> { %v6211_v33 = vadd.f32 %v6210_v58, %v6122_v56  ;;  %v6123_v62 = vpop.f32.mrf.mxu3 }
 0x54f   : >> { %v6124_v24 = vadd.f32 %v11651_v63, %v6123_v62  ;;  %v5668_v62 = vsel %vm226_vm5, %v11909_v61, %v5060_v2  ;;  %v9436_v61 = vld [vmem:[#allocation3 + $0x104] sm:$0xff] }
 0x550   : >> { %v6300_v57 = vadd.f32 %v6299_v32, %v6211_v33  ;;  %v5220_v33 = vpop.permute.xlu2 %5219 }
 0x552   : >> { %v6358_v14 = vadd.f32 %v6300_v57, %v2956_v59 }
 0x554   : >> { %6390 = vst.msk [vmem:[#allocation2 + $0x108] sm:$0xff] %vm226_vm5, %v6358_v14 }
 0x555   : >> { %v6212_v60 = vpop.f32.mrf.mxu2  ;;  %v6311_v42 = vpop.f32.mrf.mxu0 }
 0x556   : >> { %v6213_v12 = vadd.f32 %v6212_v60, %v6124_v24  ;;  %v6126_v21 = vpop.f32.mrf.mxu3 }
 0x557   : >> { %v6127_v35 = vadd.f32 %v11651_v63, %v6126_v21 }
 0x558   : >> { %v6302_v4 = vadd.f32 %v6301_v36, %v6213_v12  ;;  %v4897_v36 = vshll.u32 %v4676_v31, 16 }
 0x55a   : >> { %v6359_v48 = vadd.f32 %v6302_v4, %v2957_v7  ;;  %v5458_v13 = vpop.permute.xlu1 %5457  ;;  %v4899_v39 = vrot.slane %v4897_v36, 5 }
 0x55b   : >> { %v5826_v32 = vsel %vm2168_vm10, %v5793_v52, %v5458_v13 }
 0x55c   : >> { %6391 = vst.msk [vmem:[#allocation2 + $0x110] sm:$0xff] %vm226_vm5, %v6359_v48  ;;  %v5872_v15 = vsel %vm2201_vm11, %v5826_v32, %v5570_v41  ;;  %v4900_v10 = vsel %vm10347_vm14, %v4895_v51, %v4899_v39  ;;  %v2966_v51 = vld [vmem:[#allocation2 + $0x1a8] sm:$0xff] }
 0x55d   : >> { %v6215_v37 = vpop.f32.mrf.mxu2  ;;  %6244 = vmatmul.bf16.gmra.mxu2 %v5872_v15  ;;  %v6314_v25 = vpop.f32.mrf.mxu0  ;;  %v5604_v58 = vunpack.c.l.b16 %v4900_v10 }
 0x55e   : >> { %v6216_v18 = vadd.f32 %v6215_v37, %v6127_v35  ;;  %v6128_v20 = vpop.f32.mrf.mxu3  ;;  %v5572_v37 = vpop.permute.xlu2 %5571 }
 0x55f   : >> { %v6129_v49 = vadd.f32 %v11651_v63, %v6128_v20  ;;  %v2962_v20 = vld [vmem:[#allocation2 + $0x168] sm:$0xff] }
 0x560   : >> { %v6305_v0 = vadd.f32 %v6304_v22, %v6216_v18  ;;  %v11973_v22 = vld [vmem:[%s9980_s30 + $0x1] ss:$0 sm:$0xff] }
 0x562   : >> { %v6360_v46 = vadd.f32 %v6305_v0, %v2958_v3 }
 0x564   : >> { %6392 = vst.msk [vmem:[#allocation2 + $0x128] sm:$0xff] %vm226_vm5, %v6360_v46 }
 0x565   : >> { %v6217_v26 = vpop.f32.mrf.mxu2  ;;  %v6316_v54 = vpop.f32.mrf.mxu0 }
 0x566   : >> { %v6218_v27 = vadd.f32 %v6217_v26, %v6129_v49  ;;  %v6131_v47 = vpop.f32.mrf.mxu3  ;;  %v2963_v26 = vld [vmem:[#allocation2 + $0x170] sm:$0xff] }
 0x567   : >> { %v6132_v50 = vadd.f32 %v11651_v63, %v6131_v47  ;;  %v4889_v63 = vor.u32 %v4888_v6, %v4887_v38 }
 0x568   : >> { %v6307_v28 = vadd.f32 %v6306_v23, %v6218_v27  ;;  %v2961_v23 = vld [vmem:[#allocation2 + $0x150] sm:$0xff] }
 0x569   : >> { %v4890_v9 = vrot.slane %v4889_v63, 4 }
 0x56a   : >> { %v6361_v16 = vadd.f32 %v6307_v28, %v2959_v8  ;;  %v5380_v4 = vpop.permute.xlu0 %5379 }
 0x56b   : >> { %v4892_v40 = vsel %vm10347_vm14, %v4890_v9, %v4891_v30  ;;  %v5796_v18 = vsel %vm226_vm5, %v9436_v61, %v5380_v4 }
 0x56c   : >> { %6393 = vst.msk [vmem:[#allocation2 + $0x130] sm:$0xff] %vm226_vm5, %v6361_v16  ;;  %v5603_v29 = vunpack.c.l.b16 %v4892_v40  ;;  %v5140_v14 = vpop.permute.xlu1 %5139 }
 0x56d   : >> { %v6220_v11 = vpop.f32.mrf.mxu2  ;;  %v5700_v43 = vsel %vm2168_vm10, %v5668_v62, %v5140_v14  ;;  %v6319_v8 = vpop.f32.mrf.mxu0 }
 0x56e   : >> { %v6221_v19 = vadd.f32 %v6220_v11, %v6132_v50  ;;  %v6133_v5 = vpop.f32.mrf.mxu3  ;;  %v5620_v24 = vpack.c.b16 %v5604_v58, %v5603_v29  ;;  %v5747_v7 = vsel %vm2201_vm11, %v5700_v43, %v5220_v33  ;;  %v2964_v50 = vld [vmem:[#allocation2 + $0x188] sm:$0xff]  ;;  %v2967_v58 = vld [vmem:[#allocation2 + $0x1b0] sm:$0xff] }
 0x56f   : >> { %v6134_v56 = vadd.f32 %v11973_v22, %v6133_v5  ;;  %6160 = vmatmul.bf16.gmra.mxu3 %v5747_v7  ;;  %v2968_v43 = vld [vmem:[#allocation2 + $0x1c8] sm:$0xff] }
 0x570   : >> { %v6310_v17 = vadd.f32 %v6309_v1, %v6221_v19  ;;  %9256 = vmatmul.msk.bf16.gmra.mxu0 %vm226_vm5, %v5620_v24  ;;  %v2965_v19 = vld [vmem:[#allocation2 + $0x190] sm:$0xff] }
 0x572   : >> { %v6362_v55 = vadd.f32 %v6310_v17, %v2960_v53 }
 0x574   : >> { %6394 = vst.msk [vmem:[#allocation2 + $0x148] sm:$0xff] %vm226_vm5, %v6362_v55 }
 0x575   : >> { %v6222_v59 = vpop.f32.mrf.mxu2  ;;  %v5460_v3 = vpop.permute.xlu1 %5459 }
 0x576   : >> { %v6223_v57 = vadd.f32 %v6222_v59, %v6134_v56  ;;  %v6136_v12 = vpop.f32.mrf.mxu3  ;;  %v5828_v0 = vsel %vm2168_vm10, %v5796_v18, %v5460_v3  ;;  %v6321_v30 = vpop.f32.mrf.mxu0 }
 0x577   : >> { %v6137_v48 = vadd.f32 %v11973_v22, %v6136_v12  ;;  %v5875_v52 = vsel %vm2201_vm11, %v5828_v0, %v5572_v37 }
 0x578   : >> { %v6312_v60 = vadd.f32 %v6311_v42, %v6223_v57  ;;  %6249 = vmatmul.bf16.gmra.mxu2 %v5875_v52 }
 0x57a   : >> { %v6363_v21 = vadd.f32 %v6312_v60, %v2961_v23 }
 0x57c   : >> { %6395 = vst.msk [vmem:[#allocation2 + $0x150] sm:$0xff] %vm226_vm5, %v6363_v21 }
 0x57d   : >> { %v6225_v35 = vpop.f32.mrf.mxu2 }
 0x57e   : >> { %v6226_v1 = vadd.f32 %v6225_v35, %v6137_v48  ;;  %v6138_v46 = vpop.f32.mrf.mxu3  ;;  %v6324_v5 = vpop.f32.mrf.mxu0  ;;  %v2969_v35 = vld [vmem:[#allocation2 + $0x1d0] sm:$0xff] }
 0x57f   : >> { %v6139_v41 = vadd.f32 %v11973_v22, %v6138_v46 }
 0x580   : >> { %v6315_v45 = vadd.f32 %v6314_v25, %v6226_v1 }
 0x582   : >> { %v6364_v13 = vadd.f32 %v6315_v45, %v2962_v20  ;;  %v2970_v45 = vld [vmem:[#allocation2 + $0x1e8] sm:$0xff] }
 0x584   : >> { %6396 = vst.msk [vmem:[#allocation2 + $0x168] sm:$0xff] %vm226_vm5, %v6364_v13 }
 0x585   : >> { %v6227_v49 = vpop.f32.mrf.mxu2 }
 0x586   : >> { %v6228_v32 = vadd.f32 %v6227_v49, %v6139_v41  ;;  %v6141_v27 = vpop.f32.mrf.mxu3  ;;  %v6326_v56 = vpop.f32.mrf.mxu0 }
 0x587   : >> { %v6142_v28 = vadd.f32 %v11973_v22, %v6141_v27 }
 0x588   : >> { %v6317_v15 = vadd.f32 %v6316_v54, %v6228_v32 }
 0x58a   : >> { %v6365_v47 = vadd.f32 %v6317_v15, %v2963_v26  ;;  %v2971_v15 = vld [vmem:[#allocation2 + $0x1f0] sm:$0xff] }
 0x58c   : >> { %6397 = vst.msk [vmem:[#allocation2 + $0x170] sm:$0xff] %vm226_vm5, %v6365_v47 }
 0x58d   : >> { %v6230_v42 = vpop.f32.mrf.mxu2 }
 0x58e   : >> { %v6231_v16 = vadd.f32 %v6230_v42, %v6142_v28  ;;  %v6143_v31 = vpop.f32.mrf.mxu3  ;;  %v6329_v14 = vpop.f32.mrf.mxu0 }
 0x58f   : >> { %v6144_v11 = vadd.f32 %v11973_v22, %v6143_v31  ;;  %v2972_v31 = vld [vmem:[#allocation2 + $0x208] sm:$0xff] }
 0x590   : >> { %v6320_v38 = vadd.f32 %v6319_v8, %v6231_v16 }
 0x592   : >> { %v6366_v6 = vadd.f32 %v6320_v38, %v2964_v50 }
 0x594   : >> { %6398 = vst.msk [vmem:[#allocation2 + $0x188] sm:$0xff] %vm226_vm5, %v6366_v6 }
 0x595   : >> { %v6232_v34 = vpop.f32.mrf.mxu2 }
 0x596   : >> { %v6233_v36 = vadd.f32 %v6232_v34, %v6144_v11  ;;  %v6146_v63 = vpop.f32.mrf.mxu3  ;;  %v6331_v61 = vpop.f32.mrf.mxu0 }
 0x597   : >> { %v6147_v39 = vadd.f32 %v11973_v22, %v6146_v63  ;;  %v2973_v63 = vld [vmem:[#allocation2 + $0x210] sm:$0xff] }
 0x598   : >> { %v6322_v53 = vadd.f32 %v6321_v30, %v6233_v36 }
 0x59a   : >> { %v6367_v44 = vadd.f32 %v6322_v53, %v2965_v19 }
 0x59c   : >> { %6399 = vst.msk [vmem:[#allocation2 + $0x190] sm:$0xff] %vm226_vm5, %v6367_v44 }
 0x59d   : >> { %v6235_v17 = vpop.f32.mrf.mxu2 }
 0x59e   : >> { %v6236_v9 = vadd.f32 %v6235_v17, %v6147_v39  ;;  %v6148_v40 = vpop.f32.mrf.mxu3  ;;  %v6334_v54 = vpop.f32.mrf.mxu0  ;;  %v6600_v39 = vld [vmem:[#allocation2 + $0x27] sm:$0xff] (%p626_p4) }
 0x59f   : >> { %v6149_v10 = vadd.f32 %v11973_v22, %v6148_v40  ;;  %v6472_v17 = vld [vmem:[#allocation2 + $0x8] sm:$0xff] (%p626_p4) }
 0x5a0   : >> { %v6325_v55 = vadd.f32 %v6324_v5, %v6236_v9  ;;  %v6601_v5 = vld [vmem:[#allocation2 + $0x2f] sm:$0xff] (%p626_p4) }
 0x5a1   : > { %v6633_v9 = vpack.c.bf16 (%p626_p4), %v6601_v5, %v6601_v5  ;;  %v6728_v40 = vld [vmem:[#allocation2 + $0x29] sm:$0xff] (%p626_p4) }
 0x5a2   : >> { %v6368_v2 = vadd.f32 %v6325_v55, %v2966_v51  ;;  %v6473_v51 = vld [vmem:[#allocation2 + $0x10] sm:$0xff] (%p626_p4)  ;;  %v6504_v55 = vpack.c.bf16 (%p626_p4), %v6472_v17, %v6472_v17 }
 0x5a4   : >> { %6400 = vst.msk [vmem:[#allocation2 + $0x1a8] sm:$0xff] %vm226_vm5, %v6368_v2  ;;  %v6729_v2 = vld [vmem:[#allocation2 + $0x31] sm:$0xff] (%p626_p4) }
 0x5a5   : >> { %v6237_v29 = vpop.f32.mrf.mxu2 }
 0x5a6   : >> { %v6238_v25 = vadd.f32 %v6237_v29, %v6149_v10  ;;  %v6336_v26 = vpop.f32.mrf.mxu0  ;;  %v6505_v10 = vpack.c.bf16 (%p626_p4), %v6473_v51, %v6473_v51  ;;  %v6760_v29 = vpack.c.bf16 (%p626_p4), %v6728_v40, %v6728_v40  ;;  %v6732_v51 = vld [vmem:[#allocation2 + $0x69] sm:$0xff] (%p626_p4) }
 0x5a8   : >> { %v6327_v33 = vadd.f32 %v6326_v56, %v6238_v25  ;;  %v6151_v62 = vpop.f32.mrf.mxu3  ;;  %v6536_v25 = vld [vmem:[#allocation2 + $0x9] sm:$0xff] (%p626_p4)  ;;  %v6537_v56 = vld [vmem:[#allocation2 + $0x11] sm:$0xff] (%p626_p4) }
 0x5a9   : >> { %v6152_v57 = vadd.f32 %v11973_v22, %v6151_v62  ;;  %v6761_v62 = vpack.c.bf16 (%p626_p4), %v6729_v2, %v6729_v2 }
 0x5aa   : >> { %v6369_v59 = vadd.f32 %v6327_v33, %v2967_v58  ;;  %v7322_v33 = vunpack.c.l.b16 (%p626_p4), %v6633_v9  ;;  %v6798_v9 = vld [vmem:[#allocation2 + $0x8f] sm:$0xff] (%p626_p4) }
 0x5ac   : >> { %6401 = vst.msk [vmem:[#allocation2 + $0x1b0] sm:$0xff] %vm226_vm5, %v6369_v59  ;;  %v7097_v59 = vunpack.c.l.b16 (%p626_p4), %v6504_v55  ;;  %v6733_v55 = vld [vmem:[#allocation2 + $0x71] sm:$0xff] (%p626_p4) }
 0x5b0   : >> { %v6153_v12 = vpop.f32.mrf.mxu3 }
 0x5b1   : >> { %v6240_v24 = vpop.f32.mrf.mxu2  ;;  %v6154_v21 = vadd.f32 %v11973_v22, %v6153_v12  ;;  %v6794_v12 = vld [vmem:[#allocation2 + $0x4f] sm:$0xff] (%p626_p4) }
 0x5b2   : >> { %v6241_v23 = vadd.f32 %v6240_v24, %v6152_v57  ;;  %v7098_v57 = vunpack.c.l.b16 (%p626_p4), %v6505_v10  ;;  %v6569_v24 = vpack.c.bf16 (%p626_p4), %v6537_v56, %v6537_v56  ;;  %v6765_v56 = vpack.c.bf16 (%p626_p4), %v6733_v55, %v6733_v55 }
 0x5b4   : >> { %v6330_v60 = vadd.f32 %v6329_v14, %v6241_v23  ;;  %v6568_v14 = vpack.c.bf16 (%p626_p4), %v6536_v25, %v6536_v25  ;;  %v6764_v25 = vpack.c.bf16 (%p626_p4), %v6732_v51, %v6732_v51 }
 0x5b6   : >> { %v6370_v7 = vadd.f32 %v6330_v60, %v2968_v43  ;;  %v6793_v43 = vld [vmem:[#allocation2 + $0x47] sm:$0xff] (%p626_p4)  ;;  %v7129_v60 = vpack.c.b16 (%p626_p4), %v7098_v57, %v7097_v59  ;;  %v7518_v57 = vunpack.c.l.b16 (%p626_p4), %v6765_v56 }
 0x5b8   : >> { %6402 = vst.msk [vmem:[#allocation2 + $0x1c8] sm:$0xff] %vm226_vm5, %v6370_v7  ;;  %v7513_v7 = vunpack.c.l.b16 (%p626_p4), %v6760_v29  ;;  %7145 = vrot.lane.b32.xlu0 (%p626_p4), %v7129_v60, %s9579_s7  ;;  %v6830_v29 = vpack.c.bf16 (%p626_p4), %v6798_v9, %v6798_v9  ;;  %v12083_v9 = vld [vmem:[%s12641_s3 + $0x2b8] sm:$0xff] (%p626_p4) }
 0x5b9   : >> { %v6242_v4 = vpop.f32.mrf.mxu2  ;;  %8442 = vmatpush.bf16.msra.mxu1 (%p626_p4), %v12083_v9 }
 0x5ba   : >> { %v6243_v48 = vadd.f32 %v6242_v4, %v6154_v21  ;;  %v7514_v21 = vunpack.c.l.b16 (%p626_p4), %v6761_v62  ;;  %v7209_v4 = vunpack.c.l.b16 (%p626_p4), %v6568_v14  ;;  %v7630_v59 = vunpack.c.l.b16 (%p626_p4), %v6830_v29  ;;  %v6861_v14 = vld [vmem:[#allocation2 + $0x88] sm:$0xff] (%p626_p4) }
 0x5bb   : > { %v7517_v62 = vunpack.c.l.b16 (%p626_p4), %v6764_v25  ;;  %v6893_v60 = vpack.c.bf16 (%p626_p4), %v6861_v14, %v6861_v14  ;;  %v6802_v29 = vld [vmem:[#allocation2 + $0xcf] sm:$0xff] (%p626_p4) }
 0x5bc   : >> { %v6332_v37 = vadd.f32 %v6331_v61, %v6243_v48  ;;  %v7210_v48 = vunpack.c.l.b16 (%p626_p4), %v6569_v24  ;;  %v6825_v61 = vpack.c.bf16 (%p626_p4), %v6793_v43, %v6793_v43  ;;  %v6862_v24 = vld [vmem:[#allocation2 + $0x90] sm:$0xff] (%p626_p4)  ;;  %v6834_v14 = vpack.c.bf16 (%p626_p4), %v6802_v29, %v6802_v29 }
 0x5be   : >> { %v6371_v18 = vadd.f32 %v6332_v37, %v2969_v35  ;;  %v6474_v35 = vld [vmem:[#allocation2 + $0x28] sm:$0xff] (%p626_p4)  ;;  %v6475_v37 = vld [vmem:[#allocation2 + $0x30] sm:$0xff] (%p626_p4) }
 0x5c0   : >> { %6403 = vst.msk [vmem:[#allocation2 + $0x1d0] sm:$0xff] %vm226_vm5, %v6371_v18  ;;  %v6826_v18 = vpack.c.bf16 (%p626_p4), %v6794_v12, %v6794_v12  ;;  %v6894_v12 = vpack.c.bf16 (%p626_p4), %v6862_v24, %v6862_v24  ;;  %v9476_v24 = vld [vmem:[%s12641_s3 + $0x268] sm:$0xff] (%p626_p4) }
 0x5c2   : >> { %v6156_v1 = vpop.f32.mrf.mxu3 }
 0x5c3   : >> { %v6157_v3 = vadd.f32 %v11973_v22, %v6156_v1  ;;  %v7625_v1 = vunpack.c.l.b16 (%p626_p4), %v6825_v61  ;;  %v7742_v61 = vunpack.c.l.b16 (%p626_p4), %v6894_v12 }
 0x5ca   : >> { %v6158_v52 = vpop.f32.mrf.mxu3 }
 0x5cb   : >> { %v6159_v41 = vadd.f32 %v11973_v22, %v6158_v52  ;;  %v6507_v52 = vpack.c.bf16 (%p626_p4), %v6475_v37, %v6475_v37  ;;  %v6735_v37 = vld [vmem:[#allocation2 + $0x91] sm:$0xff] (%p626_p4) }
 0x5e0   : >> { %v6245_v20 = vpop.f32.mrf.mxu2 }
 0x5e1   : >> { %v6246_v0 = vadd.f32 %v6245_v20, %v6157_v3  ;;  %v6476_v3 = vld [vmem:[#allocation2 + $0x48] sm:$0xff] (%p626_p4)  ;;  %v7545_v20 = vpack.c.b16 (%p626_p4), %v7514_v21, %v7513_v7  ;;  %v12041_v7 = vpack.c.b16 (%p626_p4), %v7518_v57, %v7517_v62  ;;  %v6737_v62 = vld [vmem:[#allocation2 + $0xb1] sm:$0xff] (%p626_p4) }
 0x5e2   : > { %v6799_v21 = vld [vmem:[#allocation2 + $0xa7] sm:$0xff] (%p626_p4) }
 0x5e3   : >> { %v6335_v46 = vadd.f32 %v6334_v54, %v6246_v0  ;;  %v6477_v54 = vld [vmem:[#allocation2 + $0x50] sm:$0xff] (%p626_p4)  ;;  %v7626_v0 = vunpack.c.l.b16 (%p626_p4), %v6826_v18  ;;  %v6831_v18 = vpack.c.bf16 (%p626_p4), %v6799_v21, %v6799_v21  ;;  %v6769_v21 = vpack.c.bf16 (%p626_p4), %v6737_v62, %v6737_v62 }
 0x5e5   : >> { %v6372_v13 = vadd.f32 %v6335_v46, %v2970_v45  ;;  %v7241_v45 = vpack.c.b16 (%p626_p4), %v7210_v48, %v7209_v4  ;;  %v6506_v46 = vpack.c.bf16 (%p626_p4), %v6474_v35, %v6474_v35  ;;  %v6800_v4 = vld [vmem:[#allocation2 + $0xaf] sm:$0xff] (%p626_p4)  ;;  %v7741_v48 = vunpack.c.l.b16 (%p626_p4), %v6893_v60 }
 0x5e6   : > { %v6734_v35 = vld [vmem:[#allocation2 + $0x89] sm:$0xff] (%p626_p4) }
 0x5e7   : >> { %6404 = vst.msk [vmem:[#allocation2 + $0x1e8] sm:$0xff] %vm226_vm5, %v6372_v13  ;;  %v7657_v13 = vpack.c.b16 (%p626_p4), %v7626_v0, %v7625_v1  ;;  %7257 = vrot.lane.b32.xlu0 (%p626_p4), %v7241_v45, %s9580_s8  ;;  %v6832_v1 = vpack.c.bf16 (%p626_p4), %v6800_v4, %v6800_v4  ;;  %v7631_v0 = vunpack.c.l.b16 (%p626_p4), %v6831_v18 }
 0x5e8   : >> { %v6247_v49 = vpop.f32.mrf.mxu2 }
 0x5e9   : >> { %v6248_v32 = vadd.f32 %v6247_v49, %v6159_v41  ;;  %v6508_v41 = vpack.c.bf16 (%p626_p4), %v6476_v3, %v6476_v3  ;;  %v6509_v49 = vpack.c.bf16 (%p626_p4), %v6477_v54, %v6477_v54  ;;  %7673 = vrot.lane.b32.xlu2 (%p626_p4), %v7657_v13, %s9580_s8  ;;  %v12047_v3 = vpack.c.b16 (%p626_p4), %v7742_v61, %v7741_v48  ;;  %v6562_v61 = vld [vmem:[#allocation2 + $0x1a9] sm:$0xff] (%p626_p4) }
 0x5ea   : > { %v6766_v54 = vpack.c.bf16 (%p626_p4), %v6734_v35, %v6734_v35  ;;  %v7632_v45 = vunpack.c.l.b16 (%p626_p4), %v6832_v1  ;;  %v7634_v48 = vunpack.c.l.b16 (%p626_p4), %v6834_v14  ;;  %v6563_v35 = vld [vmem:[#allocation2 + $0x1b1] sm:$0xff] (%p626_p4)  ;;  %v7522_v1 = vunpack.c.l.b16 (%p626_p4), %v6769_v21 }
 0x5eb   : >> { %v6337_v27 = vadd.f32 %v6336_v26, %v6248_v32  ;;  %v7099_v32 = vunpack.c.l.b16 (%p626_p4), %v6506_v46  ;;  %v7100_v26 = vunpack.c.l.b16 (%p626_p4), %v6507_v52  ;;  %v6560_v46 = vld [vmem:[#allocation2 + $0x189] sm:$0xff] (%p626_p4) }
 0x5ec   : > { %v12056_v52 = vld [vmem:[%s12641_s3 + $0x2c8] sm:$0xff] (%p626_p4) }
 0x5ed   : >> { %v6373_v8 = vadd.f32 %v6337_v27, %v2971_v15  ;;  %v6339_v42 = vpop.f32.mrf.mxu0  ;;  %v6795_v15 = vld [vmem:[#allocation2 + $0x67] sm:$0xff] (%p626_p4)  ;;  %v6796_v27 = vld [vmem:[#allocation2 + $0x6f] sm:$0xff] (%p626_p4)  ;;  %8537 = vmatpush.bf16.msra.mxu2 (%p626_p4), %v12056_v52 }
 0x5ef   : >> { %6405 = vst.msk [vmem:[#allocation2 + $0x1f0] sm:$0xff] %vm226_vm5, %v6373_v8  ;;  %v6730_v8 = vld [vmem:[#allocation2 + $0x49] sm:$0xff] (%p626_p4) }
 0x5f2   : >> { %v6161_v47 = vpop.f32.mrf.mxu3 }
 0x5f3   : >> { %v6162_v28 = vadd.f32 %v11973_v22, %v6161_v47  ;;  %v6731_v47 = vld [vmem:[#allocation2 + $0x51] sm:$0xff] (%p626_p4) }
 0x5f5   : >> { %v6341_v19 = vpop.f32.mrf.mxu0 }
 0x5fa   : >> { %v6163_v6 = vpop.f32.mrf.mxu3 }
 0x5fb   : >> { %v6250_v16 = vpop.f32.mrf.mxu2  ;;  %v6164_v11 = vadd.f32 %v11973_v22, %v6163_v6  ;;  %v6632_v22 = vpack.c.bf16 (%p626_p4), %v6600_v39, %v6600_v39  ;;  %v6763_v6 = vpack.c.bf16 (%p626_p4), %v6731_v47, %v6731_v47  ;;  %v12065_v47 = vpack.c.b16 (%p626_p4), %v7632_v45, %v7631_v0  ;;  %v12123_v0 = vld [vmem:[%s12641_s3 + $0x2a0] sm:$0xff] (%p626_p4)  ;;  %v6498_v45 = vld [vmem:[#allocation2 + $0x1a8] sm:$0xff] (%p626_p4) }
 0x5fc   : >> { %v6251_v50 = vadd.f32 %v6250_v16, %v6162_v28  ;;  %v7101_v28 = vunpack.c.l.b16 (%p626_p4), %v6508_v41  ;;  %v6827_v16 = vpack.c.bf16 (%p626_p4), %v6795_v15, %v6795_v15  ;;  %v6496_v15 = vld [vmem:[#allocation2 + $0x188] sm:$0xff] (%p626_p4) }
 0x5fd   : > { %v7321_v58 = vunpack.c.l.b16 (%p626_p4), %v6632_v22  ;;  %v6797_v22 = vld [vmem:[#allocation2 + $0x87] sm:$0xff] (%p626_p4) }
 0x5fe   : >> { %v6340_v38 = vadd.f32 %v6339_v42, %v6251_v50  ;;  %v7102_v42 = vunpack.c.l.b16 (%p626_p4), %v6509_v49  ;;  %v6828_v50 = vpack.c.bf16 (%p626_p4), %v6796_v27, %v6796_v27  ;;  %v6829_v10 = vpack.c.bf16 (%p626_p4), %v6797_v22, %v6797_v22  ;;  %v6561_v49 = vld [vmem:[#allocation2 + $0x191] sm:$0xff] (%p626_p4) }
 0x5ff   : > { %v12013_v23 = vpack.c.b16 (%p626_p4), %v7322_v33, %v7321_v58  ;;  %v6497_v27 = vld [vmem:[#allocation2 + $0x190] sm:$0xff] (%p626_p4)  ;;  %v9478_v22 = vld [vmem:[%s12641_s3 + $0x278] sm:$0xff] (%p626_p4) }
 0x600   : >> { %v6374_v30 = vadd.f32 %v6340_v38, %v2972_v31  ;;  %v12021_v31 = vpack.c.b16 (%p626_p4), %v7100_v26, %v7099_v32  ;;  %v6762_v38 = vpack.c.bf16 (%p626_p4), %v6730_v8, %v6730_v8  ;;  %v7629_v33 = vunpack.c.l.b16 (%p626_p4), %v6829_v10  ;;  %v6863_v32 = vld [vmem:[#allocation2 + $0xa8] sm:$0xff] (%p626_p4)  ;;  %v6864_v26 = vld [vmem:[#allocation2 + $0xb0] sm:$0xff] (%p626_p4)  ;;  %v12063_v8 = vld [vmem:[%s12641_s3 + $0x2c0] sm:$0xff] (%p626_p4)  ;;  %8353 = vmatpush.bf16.msra.mxu0 (%p626_p4), %v9478_v22  ;;  %9507 = vmatpush.bf16.msra.mxu3 (%p626_p4), %v9478_v22 }
 0x601   : > { %7369 = vrot.lane.b32.xlu1 (%p626_p4), %v12013_v23, %s9578_s6  ;;  %8538 = vmatpush.bf16.msra.mxu2 (%p626_p4), %v12063_v8  ;;  %v6801_v10 = vld [vmem:[#allocation2 + $0xc7] sm:$0xff] (%p626_p4) }
 0x602   : >> { %6406 = vst.msk [vmem:[#allocation2 + $0x208] sm:$0xff] %vm226_vm5, %v6374_v30  ;;  %v12023_v30 = vpack.c.b16 (%p626_p4), %v7102_v42, %v7101_v28  ;;  %7147 = vrot.lane.b32.xlu0 (%p626_p4), %v12021_v31, %s9579_s7  ;;  %v7659_v43 = vpack.c.b16 (%p626_p4), %v7630_v59, %v7629_v33  ;;  %v6592_v28 = vpack.c.bf16 (%p626_p4), %v6560_v46, %v6560_v46  ;;  %v12098_v33 = vld [vmem:[%s12641_s3 + $0x2b0] sm:$0xff] (%p626_p4)  ;;  %v9472_v22 = vld [vmem:[%s12641_s3 + $0x248] sm:$0xff] (%p626_p4) }
 0x603   : >> { %v6252_v34 = vpop.f32.mrf.mxu2  ;;  %v6593_v42 = vpack.c.bf16 (%p626_p4), %v6561_v49, %v6561_v49  ;;  %v6736_v59 = vld [vmem:[#allocation2 + $0xa9] sm:$0xff] (%p626_p4)  ;;  %v6833_v57 = vpack.c.bf16 (%p626_p4), %v6801_v10, %v6801_v10  ;;  %8443 = vmatpush.bf16.msra.mxu1 (%p626_p4), %v12098_v33  ;;  %v6595_v49 = vpack.c.bf16 (%p626_p4), %v6563_v35, %v6563_v35 }
 0x604   : >> { %v6253_v36 = vadd.f32 %v6252_v34, %v6164_v11  ;;  %v7627_v11 = vunpack.c.l.b16 (%p626_p4), %v6827_v16  ;;  %v7628_v34 = vunpack.c.l.b16 (%p626_p4), %v6828_v50  ;;  %7785 = vrot.lane.b32.xlu2 (%p626_p4), %v12023_v30, %s9578_s6  ;;  %v6895_v16 = vpack.c.bf16 (%p626_p4), %v6863_v32, %v6863_v32  ;;  %v6499_v46 = vld [vmem:[#allocation2 + $0x1b0] sm:$0xff] (%p626_p4)  ;;  %v6867_v35 = vld [vmem:[#allocation2 + $0xe8] sm:$0xff] (%p626_p4) }
 0x605   : > { %v6896_v50 = vpack.c.bf16 (%p626_p4), %v6864_v26, %v6864_v26  ;;  %v6768_v12 = vpack.c.bf16 (%p626_p4), %v6736_v59, %v6736_v59  ;;  %v7633_v4 = vunpack.c.l.b16 (%p626_p4), %v6833_v57  ;;  %v12180_v59 = vld [vmem:[%s12641_s3 + $0x280] sm:$0xff] (%p626_p4) }
 0x606   : >> { %v6342_v53 = vadd.f32 %v6341_v19, %v6253_v36  ;;  %628 = sbr.rel (!%p626_p4) target bundleno = 441 (0x1b9), region = 90  ;;  %v7515_v36 = vunpack.c.l.b16 (%p626_p4), %v6762_v38  ;;  %v7516_v19 = vunpack.c.l.b16 (%p626_p4), %v6763_v6  ;;  %v6528_v6 = vpack.c.bf16 (%p626_p4), %v6496_v15, %v6496_v15 }
 0x607   : > { %v7521_v18 = vunpack.c.l.b16 (%p626_p4), %v6768_v12 }
 0x608   : >> { %v6375_v44 = vadd.f32 %v6342_v53, %v2973_v63  ;;  %v6478_v63 = vld [vmem:[#allocation2 + $0x68] sm:$0xff] (%p626_p4)  ;;  %v6479_v53 = vld [vmem:[#allocation2 + $0x70] sm:$0xff] (%p626_p4)  ;;  %v12030_v39 = vpack.c.b16 (%p626_p4), %v7516_v19, %v7515_v36  ;;  %v7234_v36 = vunpack.c.l.b16 (%p626_p4), %v6593_v42  ;;  %v7743_v19 = vunpack.c.l.b16 (%p626_p4), %v6895_v16 }
 0x609   : > { %7561 = vrot.lane.b32.xlu1 (%p626_p4), %v7545_v20, %s9579_s7  ;;  %v6510_v5 = vpack.c.bf16 (%p626_p4), %v6478_v63, %v6478_v63  ;;  %v6511_v17 = vpack.c.bf16 (%p626_p4), %v6479_v53, %v6479_v53  ;;  %v7744_v63 = vunpack.c.l.b16 (%p626_p4), %v6896_v50  ;;  %v6624_v53 = vld [vmem:[#allocation2 + $0x1a7] sm:$0xff] (%p626_p4)  ;;  %v12136_v15 = vpack.c.b16 (%p626_p4), %v7522_v1, %v7521_v18  ;;  %v6501_v1 = vld [vmem:[#allocation2 + $0x1d0] sm:$0xff] (%p626_p4) }
 0x60a   : >> { %6407 = vst.msk [vmem:[#allocation2 + $0x210] sm:$0xff] %vm226_vm5, %v6375_v44  ;;  %v7658_v44 = vpack.c.b16 (%p626_p4), %v7628_v34, %v7627_v11  ;;  %7563 = vrot.lane.b32.xlu0 (%p626_p4), %v12030_v39, %s9579_s7  ;;  %v6529_v11 = vpack.c.bf16 (%p626_p4), %v6497_v27, %v6497_v27  ;;  %v7233_v34 = vunpack.c.l.b16 (%p626_p4), %v6592_v28  ;;  %9366 = vmatmul.msk.bf16.vlgmr.msra.gmra.mxu2 (%p626_p4), %vm226_vm5, %v12030_v39  ;;  %v7236_v16 = vunpack.c.l.b16 (%p626_p4), %v6595_v49  ;;  %v6500_v18 = vld [vmem:[#allocation2 + $0x1c8] sm:$0xff] (%p626_p4) }
 0x60b   : > { %v7103_v40 = vunpack.c.l.b16 %v6510_v5  ;;  %v7104_v2 = vunpack.c.l.b16 %v6511_v17  ;;  %v6625_v17 = vld [vmem:[#allocation2 + $0x1af] sm:$0xff]  ;;  %v12086_v55 = vpack.c.b16 %v7744_v63, %v7743_v19  ;;  %v6530_v27 = vpack.c.bf16 %v6498_v45, %v6498_v45  ;;  %v6626_v19 = vld [vmem:[#allocation2 + $0x1c7] sm:$0xff] }
 0x60c   : > { %7371 = vrot.lane.b32.xlu2 %v7657_v13, %s9578_s6  ;;  %v7519_v13 = vunpack.c.l.b16 %v6766_v54  ;;  %v7122_v5 = vunpack.c.l.b16 %v6529_v11  ;;  %v7253_v51 = vpack.c.b16 %v7234_v36, %v7233_v34  ;;  %v9475_v54 = vld [vmem:[%s12641_s3 + $0x260] sm:$0xff]  ;;  %v6531_v28 = vpack.c.bf16 %v6499_v46, %v6499_v46  ;;  %v9473_v36 = vld [vmem:[%s12641_s3 + $0x250] sm:$0xff] }
 0x60d   : > { %v7132_v58 = vpack.c.b16 %v7104_v2, %v7103_v40  ;;  %v6656_v40 = vpack.c.bf16 %v6624_v53, %v6624_v53  ;;  %v6657_v2 = vpack.c.bf16 %v6625_v17, %v6625_v17  ;;  %v7123_v11 = vunpack.c.l.b16 %v6530_v27  ;;  %v6627_v63 = vld [vmem:[#allocation2 + $0x1cf] sm:$0xff] }
 0x60e   : > { %v7124_v34 = vunpack.c.l.b16 %v6531_v28  ;;  %v12151_v53 = vld [vmem:[%s12641_s3 + $0x290] sm:$0xff]  ;;  %v6659_v17 = vpack.c.bf16 %v6627_v63, %v6627_v63  ;;  %v6899_v46 = vpack.c.bf16 %v6867_v35, %v6867_v35  ;;  %v6533_v49 = vpack.c.bf16 %v6501_v1, %v6501_v1 }
 0x60f   : > { %v7345_v25 = vunpack.c.l.b16 %v6656_v40  ;;  %v7346_v56 = vunpack.c.l.b16 %v6657_v2  ;;  %v12164_v40 = vld [vmem:[%s12641_s3 + $0x288] sm:$0xff]  ;;  %v6567_v35 = vld [vmem:[#allocation2 + $0x1f1] sm:$0xff] }
 0x610   : > { %v6803_v2 = vld [vmem:[#allocation2 + $0xe7] sm:$0xff]  ;;  %v7348_v29 = vunpack.c.l.b16 %v6659_v17  ;;  %v7747_v27 = vunpack.c.l.b16 %v6899_v46 }
 0x611   : > { %7259 = vrot.lane.b32.xlu1 %v7545_v20, %s9580_s8  ;;  %v6767_v20 = vpack.c.bf16 %v6735_v37, %v6735_v37  ;;  %v7365_v60 = vpack.c.b16 %v7346_v56, %v7345_v25  ;;  %v6865_v37 = vld [vmem:[#allocation2 + $0xc8] sm:$0xff]  ;;  %v9471_v25 = vld [vmem:[%s12641_s3 + $0x240] sm:$0xff]  ;;  %v6835_v62 = vpack.c.bf16 %v6803_v2, %v6803_v2 }
 0x612   : > { %7149 = vrot.lane.b32.xlu0 %v12023_v30, %s9579_s7  ;;  %v6897_v32 = vpack.c.bf16 %v6865_v37, %v6865_v37  ;;  %v6738_v56 = vld [vmem:[#allocation2 + $0xc9] sm:$0xff] }
 0x613   : > { %v7520_v41 = vunpack.c.l.b16 %v6767_v20  ;;  %v6866_v20 = vld [vmem:[#allocation2 + $0xd0] sm:$0xff]  ;;  %v7635_v12 = vunpack.c.l.b16 %v6835_v62  ;;  %v6805_v2 = vld [vmem:[#allocation2 + $0x107] sm:$0xff] }
 0x614   : > { %7787 = vrot.lane.b32.xlu2 %v7132_v58, %s9578_s6  ;;  %v6898_v26 = vpack.c.bf16 %v6866_v20, %v6866_v20  ;;  %v7745_v50 = vunpack.c.l.b16 %v6897_v32  ;;  %v6868_v37 = vld [vmem:[#allocation2 + $0xf0] sm:$0xff] }
 0x615   : > { %v12067_v38 = vpack.c.b16 %v7520_v41, %v7519_v13  ;;  %v12125_v13 = vpack.c.b16 %v7634_v48, %v7633_v4  ;;  %v6594_v41 = vpack.c.bf16 %v6562_v61, %v6562_v61  ;;  %v6565_v61 = vld [vmem:[#allocation2 + $0x1d1] sm:$0xff] }
 0x616   : > { %v6597_v45 = vpack.c.bf16 %v6565_v61, %v6565_v61  ;;  %v6566_v61 = vld [vmem:[#allocation2 + $0x1e9] sm:$0xff] }
 0x617   : > { %v7235_v42 = vunpack.c.l.b16 %v6594_v41 }
 0x619   : > { %7675 = vrot.lane.b32.xlu1 %v7658_v44, %s9580_s8 }
 0x61a   : > { %7565 = vrot.lane.b32.xlu0 %v12041_v7, %s9579_s7  ;;  %9367 = vmatmul.msk.bf16.gmra.mxu2 %vm226_vm5, %v12041_v7 }
 0x61c   : > { %7373 = vrot.lane.b32.xlu2 %v7658_v44, %s9578_s6  ;;  %v7121_v44 = vunpack.c.l.b16 %v6528_v6  ;;  %v7746_v6 = vunpack.c.l.b16 %v6898_v26  ;;  %v7238_v26 = vunpack.c.l.b16 %v6597_v45  ;;  %v6502_v45 = vld [vmem:[#allocation2 + $0x1e8] sm:$0xff] }
 0x621   : > { %7261 = vrot.lane.b32.xlu1 %v12030_v39, %s9580_s8  ;;  %v7141_v39 = vpack.c.b16 %v7122_v5, %v7121_v44  ;;  %v12155_v44 = vpack.c.b16 %v7746_v6, %v7745_v50  ;;  %v6658_v5 = vpack.c.bf16 %v6626_v19, %v6626_v19  ;;  %v6629_v50 = vld [vmem:[#allocation2 + $0x1ef] sm:$0xff] }
 0x622   : > { %7151 = vrot.lane.b32.xlu0 %v7132_v58, %s9579_s7  ;;  %v9477_v58 = vld [vmem:[%s12641_s3 + $0x270] sm:$0xff]  ;;  %v6661_v19 = vpack.c.bf16 %v6629_v50, %v6629_v50 }
 0x623   : > { %8354 = vmatpush.bf16.msra.mxu0 %v9477_v58  ;;  %9508 = vmatpush.bf16.msra.mxu3 %v9477_v58  ;;  %v7347_v10 = vunpack.c.l.b16 %v6658_v5  ;;  %v6739_v58 = vld [vmem:[#allocation2 + $0xd1] sm:$0xff]  ;;  %v6740_v5 = vld [vmem:[#allocation2 + $0xe9] sm:$0xff] }
 0x624   : > { %7789 = vrot.lane.b32.xlu2 %v12047_v3, %s9578_s6 }
 0x625   : > { %v12182_v14 = vpack.c.b16 %v7348_v29, %v7347_v10  ;;  %v6772_v29 = vpack.c.bf16 %v6740_v5, %v6740_v5 }
 0x627   : > { %8355 = vmatpush.bf16.msra.mxu0 %v9476_v24  ;;  %9509 = vmatpush.bf16.msra.mxu3 %v9476_v24  ;;  %v6770_v24 = vpack.c.bf16 %v6738_v56, %v6738_v56  ;;  %v6837_v56 = vpack.c.bf16 %v6805_v2, %v6805_v2 }
 0x629   : > { %7677 = vrot.lane.b32.xlu1 %v7659_v43, %s9580_s8  ;;  %v7523_v4 = vunpack.c.l.b16 %v6770_v24 }
 0x62a   : > { %7567 = vrot.lane.b32.xlu0 %v12067_v38, %s9579_s7  ;;  %9368 = vmatmul.msk.bf16.gmra.mxu2 %vm226_vm5, %v12067_v38 }
 0x62b   : > { %8356 = vmatpush.bf16.msra.mxu0 %v9475_v54  ;;  %9510 = vmatpush.bf16.msra.mxu3 %v9475_v54 }
 0x62c   : > { %7375 = vrot.lane.b32.xlu2 %v7659_v43, %s9578_s6  ;;  %v12107_v43 = vld [vmem:[%s12641_s3 + $0x2a8] sm:$0xff] }
 0x62d   : > { %8444 = vmatpush.bf16.msra.mxu1 %v12107_v43 }
 0x631   : > { %7263 = vrot.lane.b32.xlu1 %v12041_v7, %s9580_s8  ;;  %8445 = vmatpush.bf16.msra.mxu1 %v12123_v0  ;;  %v9474_v7 = vld [vmem:[%s12641_s3 + $0x258] sm:$0xff] }
 0x632   : > { %7169 = vrot.lane.b32.xlu0 %v7141_v39, %s9579_s7  ;;  %8357 = vmatpush.bf16.msra.mxu0 %v9474_v7  ;;  %v6804_v39 = vld [vmem:[#allocation2 + $0xef] sm:$0xff] }
 0x633   : > { %9511 = vmatpush.bf16.msra.mxu3 %v9474_v7  ;;  %v6836_v57 = vpack.c.bf16 %v6804_v39, %v6804_v39  ;;  %v6900_v7 = vpack.c.bf16 %v6868_v37, %v6868_v37  ;;  %v6806_v39 = vld [vmem:[#allocation2 + $0x10f] sm:$0xff] }
 0x634   : > { %7791 = vrot.lane.b32.xlu2 %v12086_v55, %s9578_s6  ;;  %v6870_v37 = vld [vmem:[#allocation2 + $0x110] sm:$0xff] }
 0x635   : > { %v7636_v21 = vunpack.c.l.b16 %v6836_v57  ;;  %v7146_v57 = vpop.permute.xlu0 %7145 }
 0x636   : > { %8358 = vmatpush.bf16.msra.mxu0 %v9473_v36 }
 0x637   : > { %9512 = vmatpush.bf16.msra.mxu3 %v9473_v36 }
 0x639   : > { %7679 = vrot.lane.b32.xlu1 %v12065_v47, %s9580_s8 }
 0x63a   : > { %7153 = vrot.lane.b32.xlu0 %v12047_v3, %s9579_s7  ;;  %v12134_v3 = vld [vmem:[%s12641_s3 + $0x298] sm:$0xff]  ;;  %8359 = vmatpush.bf16.msra.mxu0 %v9472_v22 }
 0x63b   : > { %8446 = vmatpush.bf16.msra.mxu1 %v12134_v3  ;;  %9513 = vmatpush.bf16.msra.mxu3 %v9472_v22 }
 0x63c   : > { %7393 = vrot.lane.b32.xlu2 %v7365_v60, %s9578_s6  ;;  %v6771_v60 = vpack.c.bf16 %v6739_v58, %v6739_v58  ;;  %9369 = vmatmul.msk.bf16.gmra.mxu2 %vm226_vm5, %v12136_v15  ;;  %v6838_v58 = vpack.c.bf16 %v6806_v39, %v6806_v39 }
 0x63e   : > { %8360 = vmatpush.bf16.msra.mxu0 %v9471_v25  ;;  %v7524_v48 = vunpack.c.l.b16 %v6771_v60 }
 0x63f   : > { %8447 = vmatpush.bf16.msra.mxu1 %v12151_v53  ;;  %9514 = vmatpush.bf16.msra.mxu3 %v9471_v25 }
 0x640   : > { %v12197_v41 = vpack.c.b16 %v7524_v48, %v7523_v4  ;;  %v7638_v4 = vunpack.c.l.b16 %v6838_v58 }
 0x641   : > { %7281 = vrot.lane.b32.xlu1 %v7253_v51, %s9580_s8  ;;  %v7142_v51 = vpack.c.b16 %v7124_v34, %v7123_v11  ;;  %v6408_v11 = vld [vmem:[#allocation2 + $0x7] sm:$0xff] }
 0x642   : > { %7569 = vrot.lane.b32.xlu0 %v12136_v15, %s9579_s7  ;;  %v6440_v17 = vpack.c.bf16 %v6408_v11, %v6408_v11 }
 0x643   : > { %8448 = vmatpush.bf16.msra.mxu1 %v12164_v40  ;;  %9515 = vmatpush.bf16.msrb.mxu3 %v12083_v9  ;;  %v12192_v54 = vpop.permute.xlu2 %7673  ;;  %v12194_v9 = vpack.c.b16 %v7636_v21, %v7635_v12  ;;  %v7525_v12 = vunpack.c.l.b16 %v6772_v29  ;;  %v6413_v29 = vld [vmem:[#allocation2 + $0x4f] sm:$0xff] }
 0x644   : > { %7377 = vrot.lane.b32.xlu2 %v12065_v47, %s9578_s6  ;;  %v12153_v47 = vpack.c.b16 %v7236_v16, %v7235_v42  ;;  %v7126_v42 = vunpack.c.l.b16 %v6533_v49  ;;  %v6628_v16 = vld [vmem:[#allocation2 + $0x1e7] sm:$0xff]  ;;  %v6598_v49 = vpack.c.bf16 %v6566_v61, %v6566_v61 }
 0x645   : > { %v6660_v36 = vpack.c.bf16 %v6628_v16, %v6628_v16  ;;  %v6534_v16 = vpack.c.bf16 %v6502_v45, %v6502_v45 }
 0x647   : > { %8449 = vmatpush.bf16.msra.mxu1 %v12180_v59  ;;  %9516 = vmatpush.bf16.msrb.mxu3 %v12098_v33  ;;  %v7748_v33 = vunpack.c.l.b16 %v6900_v7 }
 0x649   : > { %7265 = vrot.lane.b32.xlu1 %v12067_v38, %s9580_s8  ;;  %v6564_v38 = vld [vmem:[#allocation2 + $0x1c9] sm:$0xff]  ;;  %v12213_v34 = vpack.c.b16 %v7748_v33, %v7747_v27 }
 0x64a   : > { %7171 = vrot.lane.b32.xlu0 %v7142_v51, %s9579_s7  ;;  %v6596_v20 = vpack.c.bf16 %v6564_v38, %v6564_v38  ;;  %v6741_v51 = vld [vmem:[#allocation2 + $0xf1] sm:$0xff]  ;;  %v7637_v38 = vunpack.c.l.b16 %v6837_v56 }
 0x64b   : > { %9517 = vmatpush.bf16.msrb.mxu3 %v12107_v43  ;;  %v6773_v25 = vpack.c.bf16 %v6741_v51, %v6741_v51  ;;  %v6808_v56 = vld [vmem:[#allocation2 + $0x12f] sm:$0xff] }
 0x64c   : > { %7793 = vrot.lane.b32.xlu2 %v12155_v44, %s9578_s6  ;;  %v7237_v32 = vunpack.c.l.b16 %v6596_v20  ;;  %v12238_v20 = vpack.c.b16 %v7638_v4, %v7637_v38  ;;  %9370 = vmatmul.msk.bf16.gmra.mxu2 %vm226_vm5, %v12197_v41 }
 0x64d   : > { %v7526_v21 = vunpack.c.l.b16 %v6773_v25  ;;  %v6807_v25 = vld [vmem:[#allocation2 + $0x127] sm:$0xff] }
 0x64e   : > { %v12211_v43 = vpack.c.b16 %v7238_v26, %v7237_v32  ;;  %v6599_v32 = vpack.c.bf16 %v6567_v35, %v6567_v35  ;;  %v6839_v61 = vpack.c.bf16 %v6807_v25, %v6807_v25  ;;  %v6840_v35 = vpack.c.bf16 %v6808_v56, %v6808_v56 }
 0x64f   : > { %9518 = vmatpush.bf16.msrb.mxu3 %v12123_v0  ;;  %v7349_v0 = vunpack.c.l.b16 %v6660_v36  ;;  %v12236_v1 = vpack.c.b16 %v7526_v21, %v7525_v12  ;;  %v6742_v12 = vld [vmem:[#allocation2 + $0x109] sm:$0xff] }
 0x651   : > { %7681 = vrot.lane.b32.xlu1 %v12125_v13, %s9580_s8 }
 0x652   : > { %7155 = vrot.lane.b32.xlu0 %v12086_v55, %s9579_s7  ;;  %v6532_v55 = vpack.c.bf16 %v6500_v18, %v6500_v18 }
 0x653   : > { %9519 = vmatpush.bf16.msrb.mxu3 %v12134_v3  ;;  %v7017_v3 = vunpack.c.l.b16 %v6440_v17 }
 0x654   : > { %7395 = vrot.lane.b32.xlu2 %v12182_v14, %s9578_s6  ;;  %v7125_v28 = vunpack.c.l.b16 %v6532_v55 }
 0x656   : > { %v12215_v63 = vpack.c.b16 %v7126_v42, %v7125_v28  ;;  %v6902_v28 = vpack.c.bf16 %v6870_v37, %v6870_v37 }
 0x657   : > { %9520 = vmatpush.bf16.msrb.mxu3 %v12151_v53  ;;  %v6869_v53 = vld [vmem:[#allocation2 + $0x108] sm:$0xff] }
 0x658   : > { %v6901_v33 = vpack.c.bf16 %v6869_v53, %v6869_v53  ;;  %v7750_v11 = vunpack.c.l.b16 %v6902_v28 }
 0x659   : > { %7283 = vrot.lane.b32.xlu1 %v12153_v47, %s9580_s8 }
 0x65a   : > { %7571 = vrot.lane.b32.xlu0 %v12197_v41, %s9579_s7 }
 0x65b   : > { %9521 = vmatpush.bf16.msrb.mxu3 %v12164_v40  ;;  %v6503_v40 = vld [vmem:[#allocation2 + $0x1f0] sm:$0xff] }
 0x65c   : > { %7379 = vrot.lane.b32.xlu2 %v12125_v13, %s9578_s6  ;;  %v6409_v13 = vld [vmem:[#allocation2 + $0xf] sm:$0xff]  ;;  %v6535_v50 = vpack.c.bf16 %v6503_v40, %v6503_v40  ;;  %9371 = vmatmul.msk.bf16.gmra.mxu2 %vm226_vm5, %v12236_v1  ;;  %v6774_v40 = vpack.c.bf16 %v6742_v12, %v6742_v12 }
 0x65d   : > { %v6441_v22 = vpack.c.bf16 %v6409_v13, %v6409_v13  ;;  %v7127_v13 = vunpack.c.l.b16 %v6534_v16 }
 0x65e   : > { %v12206_v6 = vpop.permute.xlu2 %7785  ;;  %v7128_v36 = vunpack.c.l.b16 %v6535_v50 }
 0x65f   : > { %v7018_v24 = vunpack.c.l.b16 %v6441_v22  ;;  %9522 = vmatpush.bf16.msrb.mxu3 %v12180_v59  ;;  %v7240_v59 = vunpack.c.l.b16 %v6599_v32 }
 0x661   : > { %7267 = vrot.lane.b32.xlu1 %v12136_v15, %s9580_s8  ;;  %v7350_v15 = vunpack.c.l.b16 %v6661_v19  ;;  %v7049_v48 = vpack.c.b16 %v7018_v24, %v7017_v3  ;;  %v6631_v19 = vld [vmem:[#allocation2 + $0x20f] sm:$0xff] }
 0x662   : > { %7173 = vrot.lane.b32.xlu0 %v12215_v63, %s9579_s7 }
 0x663   : > { %v12227_v60 = vpack.c.b16 %v7350_v15, %v7349_v0  ;;  %v7899_v7 = vsel %vm226_vm5, %v7049_v48, %v7146_v57  ;;  %v6663_v0 = vpack.c.bf16 %v6631_v19, %v6631_v19  ;;  %v6445_v48 = vpack.c.bf16 %v6413_v29, %v6413_v29 }
 0x664   : > { %7795 = vrot.lane.b32.xlu2 %v12213_v34, %s9578_s6 }
 0x665   : > { %v7352_v57 = vunpack.c.l.b16 %v6663_v0 }
 0x666   : > { %v12224_v62 = vpop.permute.xlu2 %7371 }
 0x669   : > { %7683 = vrot.lane.b32.xlu1 %v12194_v9, %s9580_s8 }
 0x66a   : > { %7157 = vrot.lane.b32.xlu0 %v12155_v44, %s9579_s7  ;;  %v7258_v44 = vpop.permute.xlu0 %7257 }
 0x66b   : > { %v7947_v26 = vsel %vm2168_vm10, %v7899_v7, %v7258_v44  ;;  %v6669_v44 = vld [vmem:[#allocation2 + $0x70] sm:$0xff] }
 0x66c   : > { %7397 = vrot.lane.b32.xlu2 %v12227_v60, %s9578_s6  ;;  %v6701_v28 = vpack.c.bf16 %v6669_v44, %v6669_v44 }
 0x66e   : > { %v12240_v46 = vpop.permute.xlu2 %7787 }
 0x671   : > { %7285 = vrot.lane.b32.xlu1 %v12211_v43, %s9580_s8 }
 0x672   : > { %7573 = vrot.lane.b32.xlu0 %v12236_v1, %s9579_s7 }
 0x673   : > { %v7370_v10 = vpop.permute.xlu1 %7369 }
 0x674   : > { %v7980_v42 = vsel %vm2201_vm11, %v7947_v26, %v7370_v10  ;;  %7381 = vrot.lane.b32.xlu2 %v12194_v9, %s9578_s6  ;;  %v7148_v22 = vpop.permute.xlu0 %7147  ;;  %v12266_v9 = vpack.c.b16 %v7128_v36, %v7127_v13  ;;  %v6412_v10 = vld [vmem:[#allocation2 + $0x47] sm:$0xff]  ;;  %v7022_v26 = vunpack.c.l.b16 %v6445_v48 }
 0x675   : > { %8361 = vmatmul.bf16.vlgmr.msra.gmra.mxu0 %v7980_v42  ;;  %v7902_v15 = vsel %vm226_vm5, %v12013_v23, %v7148_v22  ;;  %v6743_v23 = vld [vmem:[#allocation2 + $0x111] sm:$0xff]  ;;  %v6444_v4 = vpack.c.bf16 %v6412_v10, %v6412_v10 }
 0x676   : > { %v12260_v17 = vpop.permute.xlu2 %7373  ;;  %v6775_v7 = vpack.c.bf16 %v6743_v23, %v6743_v23  ;;  %v6415_v22 = vld [vmem:[#allocation2 + $0x6f] sm:$0xff] }
 0x677   : > { %v7021_v32 = vunpack.c.l.b16 %v6444_v4  ;;  %v6745_v4 = vld [vmem:[#allocation2 + $0x131] sm:$0xff] }
 0x678   : > { %v7528_v42 = vunpack.c.l.b16 %v6775_v7  ;;  %v6810_v7 = vld [vmem:[#allocation2 + $0x14f] sm:$0xff] }
 0x679   : > { %7269 = vrot.lane.b32.xlu1 %v12197_v41, %s9580_s8 }
 0x67a   : > { %7175 = vrot.lane.b32.xlu0 %v12266_v9, %s9579_s7 }
 0x67b   : > { %v7562_v18 = vpop.permute.xlu1 %7561 }
 0x67c   : > { %v8029_v55 = vsel %vm226_vm5, %v12021_v31, %v7562_v18  ;;  %v7239_v31 = vunpack.c.l.b16 %v6598_v49  ;;  %v7564_v38 = vpop.permute.xlu0 %7563 }
 0x67d   : > { %v8076_v27 = vsel %vm2168_vm10, %v8029_v55, %v12192_v54  ;;  %v7749_v54 = vunpack.c.l.b16 %v6901_v33  ;;  %v8032_v53 = vsel %vm226_vm5, %v12023_v30, %v7564_v38  ;;  %v6668_v55 = vld [vmem:[#allocation2 + $0x68] sm:$0xff]  ;;  %v7640_v30 = vunpack.c.l.b16 %v6840_v35 }
 0x67e   : > { %v8108_v41 = vsel %vm2201_vm11, %v8076_v27, %v12206_v6  ;;  %v6630_v6 = vld [vmem:[#allocation2 + $0x207] sm:$0xff]  ;;  %v12262_v51 = vpack.c.b16 %v7240_v59, %v7239_v31  ;;  %v12277_v21 = vpop.permute.xlu2 %7789  ;;  %v7639_v27 = vunpack.c.l.b16 %v6839_v61  ;;  %v6700_v33 = vpack.c.bf16 %v6668_v55, %v6668_v55 }
 0x67f   : > { %8450 = vmatmul.bf16.vlgmr.msra.gmra.mxu1 %v8108_v41  ;;  %v12264_v2 = vpack.c.b16 %v7750_v11, %v7749_v54  ;;  %v6662_v39 = vpack.c.bf16 %v6630_v6, %v6630_v6  ;;  %v6871_v41 = vld [vmem:[#allocation2 + $0x128] sm:$0xff]  ;;  %v7051_v59 = vpack.c.b16 %v7022_v26, %v7021_v32  ;;  %v7438_v11 = vunpack.c.l.b16 %v6701_v28 }
 0x680   : > { %v12298_v54 = vpack.c.b16 %v7640_v30, %v7639_v27  ;;  %v6903_v13 = vpack.c.bf16 %v6871_v41, %v6871_v41  ;;  %v6744_v38 = vld [vmem:[#allocation2 + $0x129] sm:$0xff] }
 0x681   : > { %7685 = vrot.lane.b32.xlu1 %v12238_v20, %s9580_s8  ;;  %7797 = vrot.lane.b32.xlu2 %v12264_v2, %s9578_s6  ;;  %v7351_v58 = vunpack.c.l.b16 %v6662_v39  ;;  %v6432_v28 = vld [vmem:[#allocation2 + $0x187] sm:$0xff] }
 0x682   : > { %7159 = vrot.lane.b32.xlu0 %v12213_v34, %s9579_s7  ;;  %v7751_v39 = vunpack.c.l.b16 %v6903_v13  ;;  %v6464_v41 = vpack.c.bf16 %v6432_v28, %v6432_v28 }
 0x683   : > { %v7260_v5 = vpop.permute.xlu1 %7259  ;;  %v12283_v37 = vpack.c.b16 %v7352_v57, %v7351_v58  ;;  %v6447_v58 = vpack.c.bf16 %v6415_v22, %v6415_v22 }
 0x684   : > { %v7949_v3 = vsel %vm2168_vm10, %v7902_v15, %v7260_v5  ;;  %v7150_v31 = vpop.permute.xlu0 %7149  ;;  %v6414_v5 = vld [vmem:[#allocation2 + $0x67] sm:$0xff] }
 0x685   : > { %v7983_v45 = vsel %vm2201_vm11, %v7949_v3, %v12224_v62  ;;  %v7527_v62 = vunpack.c.l.b16 %v6774_v40  ;;  %v7905_v19 = vsel %vm226_vm5, %v7051_v59, %v7150_v31  ;;  %v6446_v56 = vpack.c.bf16 %v6414_v5, %v6414_v5  ;;  %v6670_v3 = vld [vmem:[#allocation2 + $0x88] sm:$0xff] }
 0x686   : > { %8366 = vmatmul.bf16.gmra.mxu0 %v7983_v45  ;;  %v12296_v50 = vpop.permute.xlu2 %7375  ;;  %v7024_v35 = vunpack.c.l.b16 %v6447_v58  ;;  %v6776_v45 = vpack.c.bf16 %v6744_v38, %v6744_v38  ;;  %v6777_v40 = vpack.c.bf16 %v6745_v4, %v6745_v4  ;;  %v6747_v58 = vld [vmem:[#allocation2 + $0x151] sm:$0xff] }
 0x687   : > { %v7552_v6 = vpack.c.b16 %v7528_v42, %v7527_v62  ;;  %v7023_v61 = vunpack.c.l.b16 %v6446_v56  ;;  %v6433_v62 = vld [vmem:[#allocation2 + $0x18f] sm:$0xff]  ;;  %v6779_v38 = vpack.c.bf16 %v6747_v58, %v6747_v58  ;;  %v6418_v58 = vld [vmem:[#allocation2 + $0xa7] sm:$0xff] }
 0x688   : > { %v7529_v27 = vunpack.c.l.b16 %v6776_v45  ;;  %v7530_v30 = vunpack.c.l.b16 %v6777_v40  ;;  %v6746_v56 = vld [vmem:[#allocation2 + $0x149] sm:$0xff] }
 0x689   : > { %7287 = vrot.lane.b32.xlu1 %v12262_v51, %s9580_s8  ;;  %7399 = vrot.lane.b32.xlu2 %v12283_v37, %s9578_s6  ;;  %v7532_v40 = vunpack.c.l.b16 %v6779_v38  ;;  %v6450_v38 = vpack.c.bf16 %v6418_v58, %v6418_v58  ;;  %v6759_v58 = vld [vmem:[#allocation2 + $0x211] sm:$0xff] }
 0x68a   : > { %7575 = vrot.lane.b32.xlu0 %v7552_v6, %s9579_s7  ;;  %9372 = vmatmul.msk.bf16.gmra.mxu2 %vm226_vm5, %v7552_v6 }
 0x68b   : > { %v7676_v24 = vpop.permute.xlu1 %7675 }
 0x68c   : > { %v8078_v18 = vsel %vm2168_vm10, %v8032_v53, %v7676_v24  ;;  %v7566_v25 = vpop.permute.xlu0 %7565  ;;  %v6671_v24 = vld [vmem:[#allocation2 + $0x90] sm:$0xff]  ;;  %v6702_v53 = vpack.c.bf16 %v6670_v3, %v6670_v3 }
 0x68d   : > { %v8111_v49 = vsel %vm2201_vm11, %v8078_v18, %v12240_v46  ;;  %v6872_v46 = vld [vmem:[#allocation2 + $0x130] sm:$0xff]  ;;  %v6703_v18 = vpack.c.bf16 %v6671_v24, %v6671_v24 }
 0x68e   : > { %v6904_v36 = vpack.c.bf16 %v6872_v46, %v6872_v46  ;;  %v12307_v29 = vpop.permute.xlu2 %7791  ;;  %v7439_v32 = vunpack.c.l.b16 %v6702_v53  ;;  %v6465_v46 = vpack.c.bf16 %v6433_v62, %v6433_v62 }
 0x68f   : > { %8455 = vmatmul.bf16.gmra.mxu1 %v8111_v49  ;;  %v7052_v49 = vpack.c.b16 %v7024_v35, %v7023_v61  ;;  %v7440_v26 = vunpack.c.l.b16 %v6703_v18 }
 0x690   : > { %v7752_v0 = vunpack.c.l.b16 %v6904_v36  ;;  %v7042_v5 = vunpack.c.l.b16 %v6465_v46 }
 0x691   : > { %7271 = vrot.lane.b32.xlu1 %v12236_v1, %s9580_s8  ;;  %v7437_v1 = vunpack.c.l.b16 %v6700_v33  ;;  %7383 = vrot.lane.b32.xlu2 %v12238_v20, %s9578_s6  ;;  %v6842_v33 = vpack.c.bf16 %v6810_v7, %v6810_v7  ;;  %v6672_v7 = vld [vmem:[#allocation2 + $0xa8] sm:$0xff] }
 0x692   : > { %v12311_v12 = vpack.c.b16 %v7752_v0, %v7751_v39  ;;  %7585 = vrot.lane.b32.xlu0 %v12153_v47, %s9579_s7  ;;  %v7468_v47 = vpack.c.b16 %v7440_v26, %v7439_v32  ;;  %v6417_v0 = vld [vmem:[#allocation2 + $0x8f] sm:$0xff]  ;;  %v6811_v32 = vld [vmem:[#allocation2 + $0x167] sm:$0xff]  ;;  %v6704_v26 = vpack.c.bf16 %v6672_v7, %v6672_v7 }
 0x693   : > { %v7262_v16 = vpop.permute.xlu1 %7261  ;;  %v7467_v34 = vpack.c.b16 %v7438_v11, %v7437_v1  ;;  %v7642_v59 = vunpack.c.l.b16 %v6842_v33  ;;  %v6873_v1 = vld [vmem:[#allocation2 + $0x148] sm:$0xff]  ;;  %v6874_v11 = vld [vmem:[#allocation2 + $0x150] sm:$0xff]  ;;  %v6843_v33 = vpack.c.bf16 %v6811_v32, %v6811_v32 }
 0x694   : > { %v7951_v15 = vsel %vm2168_vm10, %v7905_v19, %v7262_v16  ;;  %v7152_v44 = vpop.permute.xlu0 %7151  ;;  %v12328_v16 = vpack.c.b16 %v7530_v30, %v7529_v27 }
 0x695   : > { %v8035_v57 = vsel %vm226_vm5, %v7467_v34, %v7566_v25  ;;  %v7986_v23 = vsel %vm2201_vm11, %v7951_v15, %v12260_v17  ;;  %v6809_v17 = vld [vmem:[#allocation2 + $0x147] sm:$0xff]  ;;  %v7908_v42 = vsel %vm226_vm5, %v7052_v49, %v7152_v44  ;;  %v7041_v34 = vunpack.c.l.b16 %v6464_v41 }
 0x696   : > { %8371 = vmatmul.bf16.gmra.mxu0 %v7986_v23  ;;  %v6906_v15 = vpack.c.bf16 %v6874_v11, %v6874_v11  ;;  %v6778_v23 = vpack.c.bf16 %v6746_v56, %v6746_v56  ;;  %v7441_v41 = vunpack.c.l.b16 %v6704_v26  ;;  %v7643_v11 = vunpack.c.l.b16 %v6843_v33  ;;  %v6674_v26 = vld [vmem:[#allocation2 + $0xc8] sm:$0xff] }
 0x697   : > { %v12347_v3 = vpack.c.b16 %v7042_v5, %v7041_v34  ;;  %v6706_v33 = vpack.c.bf16 %v6674_v26, %v6674_v26 }
 0x698   : > { %v7754_v4 = vunpack.c.l.b16 %v6906_v15  ;;  %v7531_v45 = vunpack.c.l.b16 %v6778_v23 }
 0x699   : > { %7687 = vrot.lane.b32.xlu1 %v12298_v54, %s9580_s8  ;;  %7799 = vrot.lane.b32.xlu2 %v12311_v12, %s9578_s6 }
 0x69a   : > { %7161 = vrot.lane.b32.xlu0 %v12264_v2, %s9579_s7  ;;  %9373 = vmatmul.msk.bf16.gmra.mxu2 %vm226_vm5, %v12328_v16  ;;  %v6905_v2 = vpack.c.bf16 %v6873_v1, %v6873_v1  ;;  %v12366_v30 = vpack.c.b16 %v7532_v40, %v7531_v45  ;;  %v6749_v1 = vld [vmem:[#allocation2 + $0x171] sm:$0xff] }
 0x69b   : > { %v7678_v10 = vpop.permute.xlu1 %7677 }
 0x69c   : > { %v8080_v20 = vsel %vm2168_vm10, %v8035_v57, %v7678_v10 }
 0x69d   : > { %v8114_v48 = vsel %vm2201_vm11, %v8080_v20, %v12277_v21  ;;  %v12324_v21 = vpop.permute.xlu2 %7393  ;;  %v6449_v20 = vpack.c.bf16 %v6417_v0, %v6417_v0 }
 0x69f   : > { %8460 = vmatmul.bf16.gmra.mxu1 %v8114_v48  ;;  %v7026_v53 = vunpack.c.l.b16 %v6449_v20 }
 0x6a1   : > { %7697 = vrot.lane.b32.xlu1 %v12182_v14, %s9580_s8  ;;  %v6841_v14 = vpack.c.bf16 %v6809_v17, %v6809_v17  ;;  %7809 = vrot.lane.b32.xlu2 %v12215_v63, %s9578_s6  ;;  %v6416_v63 = vld [vmem:[#allocation2 + $0x87] sm:$0xff] }
 0x6a2   : > { %v6448_v24 = vpack.c.bf16 %v6416_v63, %v6416_v63  ;;  %7577 = vrot.lane.b32.xlu0 %v12328_v16, %s9579_s7  ;;  %v6876_v63 = vld [vmem:[#allocation2 + $0x170] sm:$0xff] }
 0x6a3   : > { %v7264_v55 = vpop.permute.xlu1 %7263  ;;  %v7641_v31 = vunpack.c.l.b16 %v6841_v14  ;;  %v6812_v14 = vld [vmem:[#allocation2 + $0x16f] sm:$0xff]  ;;  %v6908_v20 = vpack.c.bf16 %v6876_v63, %v6876_v63 }
 0x6a4   : > { %v7953_v13 = vsel %vm2168_vm10, %v7908_v42, %v7264_v55  ;;  %v7025_v35 = vunpack.c.l.b16 %v6448_v24  ;;  %v6673_v55 = vld [vmem:[#allocation2 + $0xb0] sm:$0xff]  ;;  %v6844_v62 = vpack.c.bf16 %v6812_v14, %v6812_v14 }
 0x6a5   : > { %v12335_v19 = vpop.permute.xlu2 %7377  ;;  %v12340_v39 = vpack.c.b16 %v7642_v59, %v7641_v31  ;;  %v7989_v25 = vsel %vm2201_vm11, %v7953_v13, %v12296_v50  ;;  %v7753_v50 = vunpack.c.l.b16 %v6905_v2  ;;  %v6705_v27 = vpack.c.bf16 %v6673_v55, %v6673_v55  ;;  %v6435_v31 = vld [vmem:[#allocation2 + $0x1af] sm:$0xff] }
 0x6a6   : > { %8376 = vmatmul.bf16.gmra.mxu0 %v7989_v25  ;;  %v7053_v49 = vpack.c.b16 %v7026_v53, %v7025_v35  ;;  %v6748_v59 = vld [vmem:[#allocation2 + $0x169] sm:$0xff]  ;;  %v7644_v13 = vunpack.c.l.b16 %v6844_v62  ;;  %v7756_v35 = vunpack.c.l.b16 %v6908_v20 }
 0x6a7   : > { %v12359_v17 = vpack.c.b16 %v7754_v4, %v7753_v50  ;;  %v7442_v46 = vunpack.c.l.b16 %v6705_v27  ;;  %v6780_v34 = vpack.c.bf16 %v6748_v59, %v6748_v59  ;;  %v6885_v53 = vld [vmem:[#allocation2 + $0x208] sm:$0xff]  ;;  %v6675_v27 = vld [vmem:[#allocation2 + $0xd0] sm:$0xff] }
 0x6a8   : > { %v12390_v15 = vpack.c.b16 %v7644_v13, %v7643_v11  ;;  %v6436_v11 = vld [vmem:[#allocation2 + $0x1c7] sm:$0xff]  ;;  %v6824_v63 = vld [vmem:[#allocation2 + $0x22f] sm:$0xff] }
 0x6a9   : > { %7273 = vrot.lane.b32.xlu1 %v7552_v6, %s9580_s8  ;;  %v7568_v6 = vpop.permute.xlu0 %7567  ;;  %7385 = vrot.lane.b32.xlu2 %v12298_v54, %s9578_s6  ;;  %v7469_v5 = vpack.c.b16 %v7442_v46, %v7441_v41  ;;  %v7533_v56 = vunpack.c.l.b16 %v6780_v34 }
 0x6aa   : > { %v8038_v22 = vsel %vm226_vm5, %v7468_v47, %v7568_v6  ;;  %7587 = vrot.lane.b32.xlu0 %v12211_v43, %s9579_s7  ;;  %9374 = vmatmul.msk.bf16.gmra.mxu2 %vm226_vm5, %v12366_v30  ;;  %v6434_v47 = vld [vmem:[#allocation2 + $0x1a7] sm:$0xff]  ;;  %v6467_v6 = vpack.c.bf16 %v6435_v31, %v6435_v31 }
 0x6ab   : > { %v7680_v36 = vpop.permute.xlu1 %7679 }
 0x6ac   : > { %v8082_v10 = vsel %vm2168_vm10, %v8038_v22, %v7680_v36  ;;  %v6466_v36 = vpack.c.bf16 %v6434_v47, %v6434_v47  ;;  %v6781_v22 = vpack.c.bf16 %v6749_v1, %v6749_v1  ;;  %v7044_v25 = vunpack.c.l.b16 %v6467_v6  ;;  %v6941_v47 = vld [vmem:[#allocation2 + $0x189] sm:$0xff] }
 0x6ad   : > { %v8117_v57 = vsel %vm2201_vm11, %v8082_v10, %v12307_v29  ;;  %v12355_v29 = vpop.permute.xlu2 %7793  ;;  %v6973_v59 = vpack.c.bf16 %v6941_v47, %v6941_v47  ;;  %v7443_v1 = vunpack.c.l.b16 %v6706_v33  ;;  %v6437_v6 = vld [vmem:[#allocation2 + $0x1cf] sm:$0xff] }
 0x6ae   : > { %v7043_v10 = vunpack.c.l.b16 %v6466_v36 }
 0x6af   : > { %8465 = vmatmul.bf16.gmra.mxu1 %v8117_v57  ;;  %v6419_v57 = vld [vmem:[#allocation2 + $0xaf] sm:$0xff]  ;;  %v7869_v34 = vunpack.c.l.b16 %v6973_v59 }
 0x6b0   : > { %v6451_v50 = vpack.c.bf16 %v6419_v57, %v6419_v57  ;;  %v12398_v4 = vpack.c.b16 %v7044_v25, %v7043_v10  ;;  %v6469_v10 = vpack.c.bf16 %v6437_v6, %v6437_v6  ;;  %v6877_v25 = vld [vmem:[#allocation2 + $0x188] sm:$0xff] }
 0x6b1   : > { %7689 = vrot.lane.b32.xlu1 %v12340_v39, %s9580_s8  ;;  %v7170_v61 = vpop.permute.xlu0 %7169  ;;  %7801 = vrot.lane.b32.xlu2 %v12359_v17, %s9578_s6  ;;  %v6676_v6 = vld [vmem:[#allocation2 + $0xe8] sm:$0xff] }
 0x6b2   : > { %v7935_v18 = vsel %vm226_vm5, %v12347_v3, %v7170_v61  ;;  %7163 = vrot.lane.b32.xlu0 %v12311_v12, %s9579_s7  ;;  %v7028_v7 = vunpack.c.l.b16 %v6451_v50  ;;  %v6421_v50 = vld [vmem:[#allocation2 + $0xcf] sm:$0xff] }
 0x6b3   : > { %v7282_v48 = vpop.permute.xlu1 %7281 }
 0x6b4   : > { %v7971_v54 = vsel %vm2168_vm10, %v7935_v18, %v7282_v48 }
 0x6b5   : > { %v8016_v44 = vsel %vm2201_vm11, %v7971_v54, %v12324_v21  ;;  %v12373_v28 = vpop.permute.xlu2 %7395  ;;  %v7027_v54 = vunpack.c.l.b16 %v6450_v38  ;;  %v6420_v38 = vld [vmem:[#allocation2 + $0xc7] sm:$0xff] }
 0x6b6   : > { %8421 = vmatmul.bf16.vlgmr.msra.gmra.mxu3 %v8016_v44  ;;  %v6917_v44 = vpack.c.bf16 %v6885_v53, %v6885_v53 }
 0x6b7   : > { %9523 = vmatpush.bf16.msra.mxu3 %v12056_v52 }
 0x6b8   : > { %v7765_v62 = vunpack.c.l.b16 %v6917_v44  ;;  %v6453_v44 = vpack.c.bf16 %v6421_v50, %v6421_v50  ;;  %v12475_v50 = vpop.f32.mrf.mxu2 }
 0x6b9   : > { %7699 = vrot.lane.b32.xlu1 %v12227_v60, %s9580_s8  ;;  %v7154_v60 = vpop.permute.xlu0 %7153  ;;  %7811 = vrot.lane.b32.xlu2 %v12266_v9, %s9578_s6  ;;  %v7534_v9 = vunpack.c.l.b16 %v6781_v22  ;;  %v6468_v22 = vpack.c.bf16 %v6436_v11, %v6436_v11 }
 0x6ba   : > { %v7911_v42 = vsel %vm226_vm5, %v7053_v49, %v7154_v60  ;;  %7579 = vrot.lane.b32.xlu0 %v12366_v30, %s9579_s7  ;;  %v6707_v60 = vpack.c.bf16 %v6675_v27, %v6675_v27 }
 0x6bb   : > { %v7266_v21 = vpop.permute.xlu1 %7265  ;;  %9524 = vmatpush.bf16.msra.mxu3 %v12063_v8  ;;  %v6875_v8 = vld [vmem:[#allocation2 + $0x168] sm:$0xff]  ;;  %v12402_v48 = vpack.c.b16 %v7534_v9, %v7533_v56  ;;  %v6878_v56 = vld [vmem:[#allocation2 + $0x190] sm:$0xff]  ;;  %v6856_v9 = vpack.c.bf16 %v6824_v63, %v6824_v63  ;;  %v7045_v20 = vunpack.c.l.b16 %v6468_v22 }
 0x6bc   : > { %v7955_v43 = vsel %vm2168_vm10, %v7911_v42, %v7266_v21  ;;  %v6907_v24 = vpack.c.bf16 %v6875_v8, %v6875_v8  ;;  %v7054_v21 = vpack.c.b16 %v7028_v7, %v7027_v54  ;;  %v6823_v8 = vld [vmem:[#allocation2 + $0x227] sm:$0xff] }
 0x6bd   : > { %v7992_v52 = vsel %vm2201_vm11, %v7955_v43, %v12335_v19  ;;  %v12388_v0 = vpop.permute.xlu2 %7379  ;;  %9375 = vmatmul.msk.bf16.gmra.mxu2 %vm226_vm5, %v12402_v48  ;;  %v6855_v57 = vpack.c.bf16 %v6823_v8, %v6823_v8  ;;  %v7656_v7 = vunpack.c.l.b16 %v6856_v9 }
 0x6be   : > { %8381 = vmatmul.bf16.gmra.mxu0 %v7992_v52  ;;  %v7755_v61 = vunpack.c.l.b16 %v6907_v24  ;;  %v7444_v52 = vunpack.c.l.b16 %v6707_v60 }
 0x6bf   : > { %v7655_v54 = vunpack.c.l.b16 %v6855_v57 }
 0x6c0   : > { %v12412_v55 = vpack.c.b16 %v7756_v35, %v7755_v61  ;;  %v6909_v61 = vpack.c.bf16 %v6877_v25, %v6877_v25  ;;  %v6910_v35 = vpack.c.bf16 %v6878_v56, %v6878_v56 }
 0x6c1   : > { %7275 = vrot.lane.b32.xlu1 %v12328_v16, %s9580_s8  ;;  %v7570_v2 = vpop.permute.xlu0 %7569  ;;  %7387 = vrot.lane.b32.xlu2 %v12340_v39, %s9578_s6  ;;  %v7672_v60 = vpack.c.b16 %v7656_v7, %v7655_v54  ;;  %v6945_v7 = vld [vmem:[#allocation2 + $0x1c9] sm:$0xff] }
 0x6c2   : > { %v8041_v16 = vsel %vm226_vm5, %v7469_v5, %v7570_v2  ;;  %7589 = vrot.lane.b32.xlu0 %v12262_v51, %s9579_s7  ;;  %v7470_v2 = vpack.c.b16 %v7444_v52, %v7443_v1  ;;  %v7758_v26 = vunpack.c.l.b16 %v6910_v35 }
 0x6c3   : > { %v7682_v19 = vpop.permute.xlu1 %7681 }
 0x6c4   : > { %v8084_v12 = vsel %vm2168_vm10, %v8041_v16, %v7682_v19  ;;  %v6758_v16 = vld [vmem:[#allocation2 + $0x209] sm:$0xff] }
 0x6c5   : > { %v8120_v23 = vsel %vm2201_vm11, %v8084_v12, %v12355_v29  ;;  %v6886_v29 = vld [vmem:[#allocation2 + $0x210] sm:$0xff]  ;;  %v12406_v45 = vpop.permute.xlu2 %7795 }
 0x6c6   : > { %8470 = vmatmul.bf16.gmra.mxu1 %v8120_v23  ;;  %v6918_v49 = vpack.c.bf16 %v6886_v29, %v6886_v29  ;;  %v7046_v23 = vunpack.c.l.b16 %v6469_v10  ;;  %v6790_v29 = vpack.c.bf16 %v6758_v16, %v6758_v16 }
 0x6c8   : > { %v7766_v42 = vunpack.c.l.b16 %v6918_v49  ;;  %v7063_v49 = vpack.c.b16 %v7046_v23, %v7045_v20  ;;  %v7543_v27 = vunpack.c.l.b16 %v6790_v29  ;;  %v6439_v20 = vld [vmem:[#allocation2 + $0x1ef] sm:$0xff] }
 0x6c9   : > { %7691 = vrot.lane.b32.xlu1 %v12390_v15, %s9580_s8  ;;  %v7172_v40 = vpop.permute.xlu0 %7171  ;;  %7803 = vrot.lane.b32.xlu2 %v12412_v55, %s9578_s6  ;;  %v6471_v35 = vpack.c.bf16 %v6439_v20, %v6439_v20  ;;  %v6879_v29 = vld [vmem:[#allocation2 + $0x1a8] sm:$0xff] }
 0x6ca   : > { %v7938_v39 = vsel %vm226_vm5, %v12398_v4, %v7172_v40  ;;  %v12426_v13 = vpack.c.b16 %v7766_v42, %v7765_v62  ;;  %7165 = vrot.lane.b32.xlu0 %v12359_v17, %s9579_s7  ;;  %v6943_v42 = vld [vmem:[#allocation2 + $0x1a9] sm:$0xff] }
 0x6cb   : > { %v7284_v18 = vpop.permute.xlu1 %7283  ;;  %v6975_v59 = vpack.c.bf16 %v6943_v42, %v6943_v42 }
 0x6cc   : > { %v7973_v32 = vsel %vm2168_vm10, %v7938_v39, %v7284_v18  ;;  %v6791_v18 = vpack.c.bf16 %v6759_v58, %v6759_v58  ;;  %v6452_v39 = vpack.c.bf16 %v6420_v38, %v6420_v38 }
 0x6cd   : > { %v8019_v14 = vsel %vm2201_vm11, %v7973_v32, %v12373_v28  ;;  %v12423_v46 = vpop.permute.xlu2 %7397  ;;  %v6942_v28 = vld [vmem:[#allocation2 + $0x191] sm:$0xff]  ;;  %v7757_v32 = vunpack.c.l.b16 %v6909_v61 }
 0x6ce   : > { %8426 = vmatmul.bf16.gmra.mxu3 %v8019_v14  ;;  %v6974_v43 = vpack.c.bf16 %v6942_v28, %v6942_v28  ;;  %v7544_v14 = vunpack.c.l.b16 %v6791_v18  ;;  %v7029_v28 = vunpack.c.l.b16 %v6452_v39  ;;  %v6880_v18 = vld [vmem:[#allocation2 + $0x1b0] sm:$0xff] }
 0x6d0   : > { %v7870_v51 = vunpack.c.l.b16 %v6974_v43 }
 0x6d1   : > { %7701 = vrot.lane.b32.xlu1 %v12283_v37, %s9580_s8  ;;  %v7156_v31 = vpop.permute.xlu0 %7155  ;;  %7813 = vrot.lane.b32.xlu2 %v12426_v13, %s9578_s6 }
 0x6d2   : > { %v7914_v37 = vsel %vm226_vm5, %v7054_v21, %v7156_v31  ;;  %v12431_v19 = vpack.c.b16 %v7870_v51, %v7869_v34  ;;  %7581 = vrot.lane.b32.xlu0 %v12402_v48, %s9579_s7  ;;  %v6888_v21 = vld [vmem:[#allocation2 + $0x230] sm:$0xff]  ;;  %v7030_v31 = vunpack.c.l.b16 %v6453_v44  ;;  %v7871_v51 = vunpack.c.l.b16 %v6975_v59 }
 0x6d3   : > { %v7268_v41 = vpop.permute.xlu1 %7267  ;;  %v6920_v52 = vpack.c.bf16 %v6888_v21, %v6888_v21  ;;  %v6677_v34 = vld [vmem:[#allocation2 + $0xf0] sm:$0xff]  ;;  %v6422_v21 = vld [vmem:[#allocation2 + $0xe7] sm:$0xff] }
 0x6d4   : > { %v7957_v36 = vsel %vm2168_vm10, %v7914_v37, %v7268_v41  ;;  %9376 = vmatmul.msk.bf16.gmra.mxu2 %vm226_vm5, %v12431_v19  ;;  %v6944_v41 = vld [vmem:[#allocation2 + $0x1b1] sm:$0xff]  ;;  %v12456_v37 = vpack.c.b16 %v7758_v26, %v7757_v32  ;;  %v7055_v8 = vpack.c.b16 %v7030_v31, %v7029_v28  ;;  %v6709_v10 = vpack.c.bf16 %v6677_v34, %v6677_v34 }
 0x6d5   : > { %v7995_v5 = vsel %vm2201_vm11, %v7957_v36, %v12388_v0  ;;  %v12439_v24 = vpop.permute.xlu2 %7381  ;;  %v12459_v36 = vpack.c.b16 %v7544_v14, %v7543_v27  ;;  %v7768_v56 = vunpack.c.l.b16 %v6920_v52  ;;  %v6977_v32 = vpack.c.bf16 %v6945_v7, %v6945_v7 }
 0x6d6   : > { %8386 = vmatmul.bf16.gmra.mxu0 %v7995_v5  ;;  %v7446_v9 = vunpack.c.l.b16 %v6709_v10  ;;  %v6912_v14 = vpack.c.bf16 %v6880_v18, %v6880_v18  ;;  %v6454_v31 = vpack.c.bf16 %v6422_v21, %v6422_v21 }
 0x6d8   : > { %v7031_v34 = vunpack.c.l.b16 %v6454_v31 }
 0x6d9   : > { %7277 = vrot.lane.b32.xlu1 %v12366_v30, %s9580_s8  ;;  %v7572_v30 = vpop.permute.xlu0 %7571  ;;  %7389 = vrot.lane.b32.xlu2 %v12390_v15, %s9578_s6  ;;  %v6976_v15 = vpack.c.bf16 %v6944_v41, %v6944_v41 }
 0x6da   : > { %v8044_v12 = vsel %vm226_vm5, %v7470_v2, %v7572_v30  ;;  %v6708_v2 = vpack.c.bf16 %v6676_v6, %v6676_v6  ;;  %7591 = vrot.lane.b32.xlu0 %v12459_v36, %s9579_s7  ;;  %v6438_v30 = vld [vmem:[#allocation2 + $0x1e7] sm:$0xff] }
 0x6db   : > { %v7684_v0 = vpop.permute.xlu1 %7683  ;;  %v7872_v5 = vunpack.c.l.b16 %v6976_v15  ;;  %v6470_v61 = vpack.c.bf16 %v6438_v30, %v6438_v30 }
 0x6dc   : > { %v8086_v53 = vsel %vm2168_vm10, %v8044_v12, %v7684_v0  ;;  %v7445_v57 = vunpack.c.l.b16 %v6708_v2 }
 0x6dd   : > { %v8123_v40 = vsel %vm2201_vm11, %v8086_v53, %v12406_v45  ;;  %v6887_v45 = vld [vmem:[#allocation2 + $0x228] sm:$0xff]  ;;  %v12453_v62 = vpop.permute.xlu2 %7797  ;;  %v7892_v63 = vpack.c.b16 %v7872_v5, %v7871_v51  ;;  %v7047_v44 = vunpack.c.l.b16 %v6470_v61 }
 0x6de   : > { %8475 = vmatmul.bf16.gmra.mxu1 %v8123_v40  ;;  %v6919_v1 = vpack.c.bf16 %v6887_v45, %v6887_v45  ;;  %v7471_v53 = vpack.c.b16 %v7446_v9, %v7445_v57 }
 0x6e0   : > { %v7767_v25 = vunpack.c.l.b16 %v6919_v1  ;;  %v12490_v1 = vpop.f32.mrf.mxu2 }
 0x6e1   : > { %7693 = vrot.lane.b32.xlu1 %v12347_v3, %s9580_s8  ;;  %v7174_v47 = vpop.permute.xlu0 %7173  ;;  %7805 = vrot.lane.b32.xlu2 %v12456_v37, %s9578_s6 }
 0x6e2   : > { %v7941_v43 = vsel %vm226_vm5, %v7063_v49, %v7174_v47  ;;  %v7784_v12 = vpack.c.b16 %v7768_v56, %v7767_v25  ;;  %7167 = vrot.lane.b32.xlu0 %v12412_v55, %s9579_s7  ;;  %v7048_v49 = vunpack.c.l.b16 %v6471_v35 }
 0x6e3   : > { %v7286_v33 = vpop.permute.xlu1 %7285 }
 0x6e4   : > { %v7975_v11 = vsel %vm2168_vm10, %v7941_v43, %v7286_v33  ;;  %9377 = vmatmul.msk.bf16.gmra.mxu2 %vm226_vm5, %v7892_v63  ;;  %v6423_v33 = vld [vmem:[#allocation2 + $0xef] sm:$0xff]  ;;  %v7064_v47 = vpack.c.b16 %v7048_v49, %v7047_v44  ;;  %v7760_v43 = vunpack.c.l.b16 %v6912_v14  ;;  %v6424_v44 = vld [vmem:[#allocation2 + $0x107] sm:$0xff] }
 0x6e5   : > { %v8022_v22 = vsel %vm2201_vm11, %v7975_v11, %v12423_v46  ;;  %v12468_v16 = vpop.permute.xlu2 %7399  ;;  %v6455_v59 = vpack.c.bf16 %v6423_v33, %v6423_v33  ;;  %v6425_v49 = vld [vmem:[#allocation2 + $0x10f] sm:$0xff] }
 0x6e6   : > { %8431 = vmatmul.bf16.gmra.mxu3 %v8022_v22  ;;  %v6678_v22 = vld [vmem:[#allocation2 + $0x108] sm:$0xff]  ;;  %v6457_v21 = vpack.c.bf16 %v6425_v49, %v6425_v49 }
 0x6e7   : > { %v7032_v51 = vunpack.c.l.b16 %v6455_v59  ;;  %v6710_v10 = vpack.c.bf16 %v6678_v22, %v6678_v22 }
 0x6e9   : > { %7703 = vrot.lane.b32.xlu1 %v7672_v60, %s9580_s8  ;;  %v7158_v46 = vpop.permute.xlu0 %7157  ;;  %7815 = vrot.lane.b32.xlu2 %v7784_v12, %s9578_s6  ;;  %v7873_v60 = vunpack.c.l.b16 %v6977_v32  ;;  %v7447_v9 = vunpack.c.l.b16 %v6710_v10 }
 0x6ea   : > { %v7917_v58 = vsel %vm226_vm5, %v7055_v8, %v7158_v46  ;;  %7583 = vrot.lane.b32.xlu0 %v12431_v19, %s9579_s7  ;;  %v6679_v8 = vld [vmem:[#allocation2 + $0x110] sm:$0xff]  ;;  %v7056_v19 = vpack.c.b16 %v7032_v51, %v7031_v34 }
 0x6eb   : > { %v7270_v0 = vpop.permute.xlu1 %7269  ;;  %v6711_v25 = vpack.c.bf16 %v6679_v8, %v6679_v8 }
 0x6ec   : > { %v7959_v23 = vsel %vm2168_vm10, %v7917_v58, %v7270_v0 }
 0x6ed   : > { %v7998_v38 = vsel %vm2201_vm11, %v7959_v23, %v12439_v24  ;;  %v7384_v54 = vpop.permute.xlu2 %7383  ;;  %v6946_v24 = vld [vmem:[#allocation2 + $0x1d1] sm:$0xff]  ;;  %v7448_v30 = vunpack.c.l.b16 %v6711_v25 }
 0x6ee   : > { %8391 = vmatmul.bf16.gmra.mxu0 %v7998_v38  ;;  %v6978_v26 = vpack.c.bf16 %v6946_v24, %v6946_v24 }
 0x6ef   : > { %v7472_v23 = vpack.c.b16 %v7448_v30, %v7447_v9 }
 0x6f0   : > { %v7874_v42 = vunpack.c.l.b16 %v6978_v26 }
 0x6f1   : > { %7279 = vrot.lane.b32.xlu1 %v12402_v48, %s9580_s8  ;;  %v7574_v39 = vpop.permute.xlu0 %7573  ;;  %v6911_v48 = vpack.c.bf16 %v6879_v29, %v6879_v29  ;;  %7391 = vrot.lane.b32.xlu2 %v12347_v3, %s9578_s6  ;;  %v6948_v29 = vld [vmem:[#allocation2 + $0x1f1] sm:$0xff] }
 0x6f2   : > { %v8047_v27 = vsel %vm226_vm5, %v7471_v53, %v7574_v39  ;;  %v7893_v28 = vpack.c.b16 %v7874_v42, %v7873_v60  ;;  %v8362_v6 = vpop.f32.mrf.mxu0  ;;  %v6947_v53 = vld [vmem:[#allocation2 + $0x1e9] sm:$0xff]  ;;  %v6980_v7 = vpack.c.bf16 %v6948_v29, %v6948_v29  ;;  %v12509_v39 = vld [vmem:[%s12642_s4 + $0x4] ss:$0 sm:$0xff] }
 0x6f3   : > { %v7686_v40 = vpop.permute.xlu1 %7685  ;;  %v7759_v15 = vunpack.c.l.b16 %v6911_v48  ;;  %v8363_v60 = vadd.f32 %v12509_v39, %v8362_v6 }
 0x6f4   : > { %v8088_v45 = vsel %vm2168_vm10, %v8047_v27, %v7686_v40  ;;  %9378 = vmatmul.msk.bf16.gmra.mxu2 %vm226_vm5, %v7893_v28  ;;  %v6979_v40 = vpack.c.bf16 %v6947_v53, %v6947_v53  ;;  %v7876_v26 = vunpack.c.l.b16 %v6980_v7 }
 0x6f5   : > { %v8126_v41 = vsel %vm2201_vm11, %v8088_v45, %v12453_v62  ;;  %v7800_v62 = vpop.permute.xlu2 %7799  ;;  %v7780_v5 = vpack.c.b16 %v7760_v43, %v7759_v15  ;;  %v6456_v45 = vpack.c.bf16 %v6424_v44, %v6424_v44  ;;  %v7034_v15 = vunpack.c.l.b16 %v6457_v21 }
 0x6f6   : > { %8480 = vmatmul.bf16.gmra.mxu1 %v8126_v41  ;;  %v7875_v32 = vunpack.c.l.b16 %v6979_v40 }
 0x6f7   : > { %v7033_v59 = vunpack.c.l.b16 %v6456_v45 }
 0x6f8   : > { %v7894_v14 = vpack.c.b16 %v7876_v26, %v7875_v32 }
 0x6f9   : > { %7695 = vrot.lane.b32.xlu1 %v12398_v4, %s9580_s8  ;;  %v7176_v11 = vpop.permute.xlu0 %7175  ;;  %7807 = vrot.lane.b32.xlu2 %v7780_v5, %s9578_s6  ;;  %v7057_v6 = vpack.c.b16 %v7034_v15, %v7033_v59 }
 0x6fa   : > { %v7944_v4 = vsel %vm226_vm5, %v7064_v47, %v7176_v11  ;;  %v8364_v57 = vpop.f32.mrf.mxu0  ;;  %v6681_v11 = vld [vmem:[#allocation2 + $0x130] sm:$0xff] }
 0x6fb   : > { %v7288_v52 = vpop.permute.xlu1 %7287  ;;  %v8365_v22 = vadd.f32 %v12509_v39, %v8364_v57 }
 0x6fc   : > { %v7977_v3 = vsel %vm2168_vm10, %v7944_v4, %v7288_v52  ;;  %v8451_v2 = vpop.f32.mrf.mxu1 }
 0x6fd   : > { %v8025_v63 = vsel %vm2201_vm11, %v7977_v3, %v12468_v16  ;;  %v7810_v0 = vpop.permute.xlu2 %7809  ;;  %v12503_v16 = vpop.f32.mrf.mxu2  ;;  %v8452_v43 = vadd.f32 %v8451_v2, %v8363_v60  ;;  %v6713_v3 = vpack.c.bf16 %v6681_v11, %v6681_v11 }
 0x6fe   : > { %8436 = vmatmul.bf16.gmra.mxu3 %v8025_v63 }
 0x6ff   : > { %v8541_v8 = vadd.f32 %v12475_v50, %v8452_v43  ;;  %v7450_v25 = vunpack.c.l.b16 %v6713_v3 }
 0x701   : > { %v7160_v46 = vpop.permute.xlu0 %7159 }
 0x702   : > { %v7920_v58 = vsel %vm226_vm5, %v7056_v19, %v7160_v46  ;;  %v6690_v46 = vld [vmem:[#allocation2 + $0x1c8] sm:$0xff] }
 0x703   : > { %v7272_v56 = vpop.permute.xlu1 %7271  ;;  %v8367_v27 = vpop.f32.mrf.mxu0 }
 0x704   : > { %v7961_v20 = vsel %vm2168_vm10, %v7920_v58, %v7272_v56  ;;  %v8453_v38 = vpop.f32.mrf.mxu1  ;;  %v6691_v58 = vld [vmem:[#allocation2 + $0x1d0] sm:$0xff] }
 0x705   : > { %v8001_v12 = vsel %vm2201_vm11, %v7961_v20, %v7384_v54  ;;  %v7386_v35 = vpop.permute.xlu2 %7385  ;;  %v12513_v33 = vpop.f32.mrf.mxu2  ;;  %9379 = vmatmul.msk.bf16.gmra.mxu2 %vm226_vm5, %v7894_v14  ;;  %v8454_v56 = vadd.f32 %v8453_v38, %v8365_v22  ;;  %v6722_v20 = vpack.c.bf16 %v6690_v46, %v6690_v46  ;;  %v6723_v50 = vpack.c.bf16 %v6691_v58, %v6691_v58 }
 0x706   : > { %8396 = vmatmul.bf16.gmra.mxu0 %v8001_v12 }
 0x707   : > { %v8543_v12 = vadd.f32 %v12490_v1, %v8454_v56  ;;  %v7460_v40 = vunpack.c.l.b16 %v6723_v50 }
 0x709   : > { %v7576_v18 = vpop.permute.xlu0 %7575 }
 0x70a   : > { %v8050_v24 = vsel %vm226_vm5, %v7472_v23, %v7576_v18  ;;  %v8368_v23 = vadd.f32 %v12509_v39, %v8367_v27  ;;  %v7459_v18 = vunpack.c.l.b16 %v6722_v20 }
 0x70b   : > { %v7688_v61 = vpop.permute.xlu1 %7687  ;;  %v8369_v34 = vpop.f32.mrf.mxu0 }
 0x70c   : > { %v8090_v54 = vsel %vm2168_vm10, %v8050_v24, %v7688_v61  ;;  %v8456_v28 = vpop.f32.mrf.mxu1  ;;  %8620 = vxpose.xlu0.b32.start [1/16] (narrow) %v8541_v8, 32  ;;  %v7478_v26 = vpack.c.b16 %v7460_v40, %v7459_v18  ;;  %v8370_v45 = vadd.f32 %v12509_v39, %v8369_v34  ;;  %v6692_v8 = vld [vmem:[#allocation2 + $0x1e8] sm:$0xff] }
 0x70d   : > { %v8129_v48 = vsel %vm2201_vm11, %v8090_v54, %v7800_v62  ;;  %v7802_v41 = vpop.permute.xlu2 %7801  ;;  %v6680_v62 = vld [vmem:[#allocation2 + $0x128] sm:$0xff]  ;;  %v8457_v7 = vadd.f32 %v8456_v28, %v8368_v23  ;;  %v8550_v49 = vpop.f32.mrf.mxu2 }
 0x70e   : > { %8485 = vmatmul.bf16.gmra.mxu1 %v8129_v48  ;;  %v6712_v51 = vpack.c.bf16 %v6680_v62, %v6680_v62  ;;  %v6427_v54 = vld [vmem:[#allocation2 + $0x12f] sm:$0xff]  ;;  %v6428_v23 = vld [vmem:[#allocation2 + $0x147] sm:$0xff] }
 0x70f   : > { %v6459_v48 = vpack.c.bf16 %v6427_v54, %v6427_v54  ;;  %v8546_v14 = vadd.f32 %v12503_v16, %v8457_v7  ;;  %v6460_v18 = vpack.c.bf16 %v6428_v23, %v6428_v23 }
 0x710   : > { %v7449_v10 = vunpack.c.l.b16 %v6712_v51 }
 0x711   : > { %v7586_v47 = vpop.permute.xlu0 %7585 }
 0x712   : > { %v8065_v31 = vsel %vm226_vm5, %v7780_v5, %v7586_v47  ;;  %v7473_v57 = vpack.c.b16 %v7450_v25, %v7449_v10 }
 0x713   : > { %v7698_v42 = vpop.permute.xlu1 %7697  ;;  %v8372_v61 = vpop.f32.mrf.mxu0 }
 0x714   : > { %v8100_v52 = vsel %vm2168_vm10, %v8065_v31, %v7698_v42  ;;  %v8458_v9 = vpop.f32.mrf.mxu1  ;;  %8621 = vxpose.xlu0.b32.cont [2/16] (narrow) %v8543_v12, 32  ;;  %v7036_v31 = vunpack.c.l.b16 %v6459_v48  ;;  %v8373_v11 = vadd.f32 %v12509_v39, %v8372_v61  ;;  %v6429_v61 = vld [vmem:[#allocation2 + $0x14f] sm:$0xff] }
 0x715   : > { %v8144_v4 = vsel %vm2201_vm11, %v8100_v52, %v7810_v0  ;;  %v7812_v19 = vpop.permute.xlu2 %7811  ;;  %v8459_v59 = vadd.f32 %v8458_v9, %v8370_v45  ;;  %v8552_v52 = vpop.f32.mrf.mxu2  ;;  %v6461_v40 = vpack.c.bf16 %v6429_v61, %v6429_v61 }
 0x716   : > { %8510 = vmatmul.bf16.vlgmr.msrb.gmra.mxu3 %v8144_v4 }
 0x717   : > { %v8548_v16 = vadd.f32 %v12513_v33, %v8459_v59 }
 0x719   : > { %v7162_v5 = vpop.permute.xlu0 %7161 }
 0x71a   : > { %v7923_v2 = vsel %vm226_vm5, %v7057_v6, %v7162_v5 }
 0x71b   : > { %v7274_v63 = vpop.permute.xlu1 %7273  ;;  %v8374_v42 = vpop.f32.mrf.mxu0 }
 0x71c   : > { %v7963_v0 = vsel %vm2168_vm10, %v7923_v2, %v7274_v63  ;;  %v8461_v1 = vpop.f32.mrf.mxu1  ;;  %8622 = vxpose.xlu0.b32.cont [3/16] (narrow) %v8546_v14, 32  ;;  %v6693_v63 = vld [vmem:[#allocation2 + $0x1f0] sm:$0xff]  ;;  %v6724_v2 = vpack.c.bf16 %v6692_v8, %v6692_v8  ;;  %v8375_v25 = vadd.f32 %v12509_v39, %v8374_v42  ;;  %v6430_v8 = vld [vmem:[#allocation2 + $0x167] sm:$0xff] }
 0x71d   : > { %v8004_v30 = vsel %vm2201_vm11, %v7963_v0, %v7386_v35  ;;  %v6426_v35 = vld [vmem:[#allocation2 + $0x127] sm:$0xff]  ;;  %v7388_v44 = vpop.permute.xlu2 %7387  ;;  %v8462_v3 = vadd.f32 %v8461_v1, %v8373_v11  ;;  %v6725_v10 = vpack.c.bf16 %v6693_v63, %v6693_v63  ;;  %v8555_v0 = vpop.f32.mrf.mxu2  ;;  %v7038_v1 = vunpack.c.l.b16 %v6461_v40  ;;  %v6431_v63 = vld [vmem:[#allocation2 + $0x16f] sm:$0xff] }
 0x71e   : > { %8401 = vmatmul.bf16.gmra.mxu0 %v8004_v30  ;;  %v6458_v27 = vpack.c.bf16 %v6426_v35, %v6426_v35 }
 0x71f   : > { %v8551_v33 = vadd.f32 %v8550_v49, %v8462_v3  ;;  %v7462_v20 = vunpack.c.l.b16 %v6725_v10 }
 0x720   : > { %v7035_v28 = vunpack.c.l.b16 %v6458_v27 }
 0x721   : > { %v7578_v29 = vpop.permute.xlu0 %7577 }
 0x722   : > { %v8053_v38 = vsel %vm226_vm5, %v7473_v57, %v7578_v29  ;;  %v7058_v62 = vpack.c.b16 %v7036_v31, %v7035_v28  ;;  %v7461_v57 = vunpack.c.l.b16 %v6724_v2 }
 0x723   : > { %v7690_v53 = vpop.permute.xlu1 %7689  ;;  %v8377_v5 = vpop.f32.mrf.mxu0 }
 0x724   : > { %v8092_v24 = vsel %vm2168_vm10, %v8053_v38, %v7690_v53  ;;  %v8463_v4 = vpop.f32.mrf.mxu1  ;;  %8623 = vxpose.xlu0.b32.cont [4/16] (narrow) %v8548_v16, 32  ;;  %v7479_v38 = vpack.c.b16 %v7462_v20, %v7461_v57 }
 0x725   : > { %v8132_v32 = vsel %vm2201_vm11, %v8092_v24, %v7802_v41  ;;  %v7804_v43 = vpop.permute.xlu2 %7803  ;;  %v8464_v50 = vadd.f32 %v8463_v4, %v8375_v25  ;;  %v8378_v24 = vadd.f32 %v12509_v39, %v8377_v5  ;;  %v6463_v25 = vpack.c.bf16 %v6431_v63, %v6431_v63 }
 0x726   : > { %8490 = vmatmul.bf16.gmra.mxu1 %v8132_v32  ;;  %v7037_v32 = vunpack.c.l.b16 %v6460_v18 }
 0x727   : > { %v8553_v7 = vadd.f32 %v8552_v52, %v8464_v50  ;;  %v7040_v57 = vunpack.c.l.b16 %v6463_v25 }
 0x728   : > { %v7059_v45 = vpack.c.b16 %v7038_v1, %v7037_v32 }
 0x729   : > { %v7588_v60 = vpop.permute.xlu0 %7587 }
 0x72a   : > { %v8068_v47 = vsel %vm226_vm5, %v7478_v26, %v7588_v60 }
 0x72b   : > { %v7700_v21 = vpop.permute.xlu1 %7699  ;;  %v8379_v29 = vpop.f32.mrf.mxu0 }
 0x72c   : > { %v8102_v41 = vsel %vm2168_vm10, %v8068_v47, %v7700_v21  ;;  %8624 = vxpose.xlu0.b32.cont [5/16] (narrow) %v8551_v33, 32  ;;  %v8466_v9 = vpop.f32.mrf.mxu1  ;;  %v8380_v60 = vadd.f32 %v12509_v39, %v8379_v29  ;;  %v6462_v33 = vpack.c.bf16 %v6430_v8, %v6430_v8 }
 0x72d   : > { %v8147_v15 = vsel %vm2201_vm11, %v8102_v41, %v7812_v19  ;;  %v7814_v56 = vpop.permute.xlu2 %7813  ;;  %v8467_v26 = vadd.f32 %v8466_v9, %v8378_v24 }
 0x72e   : > { %8515 = vmatmul.bf16.gmra.mxu3 %v8147_v15 }
 0x72f   : > { %v8556_v21 = vadd.f32 %v8555_v0, %v8467_v26 }
 0x731   : > { %v7164_v6 = vpop.permute.xlu0 %7163 }
 0x732   : > { %v7926_v51 = vsel %vm226_vm5, %v7058_v62, %v7164_v6 }
 0x733   : > { %v7276_v34 = vpop.permute.xlu1 %7275 }
 0x734   : > { %v7965_v22 = vsel %vm2168_vm10, %v7926_v51, %v7276_v34  ;;  %8625 = vxpose.xlu0.b32.cont [6/16] (narrow) %v8553_v7, 32  ;;  %v8468_v48 = vpop.f32.mrf.mxu1 }
 0x735   : > { %v8007_v19 = vsel %vm2201_vm11, %v7965_v22, %v7388_v44  ;;  %v8557_v44 = vpop.f32.mrf.mxu2  ;;  %v8469_v59 = vadd.f32 %v8468_v48, %v8380_v60 }
 0x736   : > { %8406 = vmatmul.bf16.gmra.mxu0 %v8007_v19 }
 0x737   : > { %v8558_v16 = vadd.f32 %v8557_v44, %v8469_v59 }
 0x739   : > { %v7580_v58 = vpop.permute.xlu0 %7579  ;;  %v12577_v8 = vpop.f32.mrf.mxu3 }
 0x73a   : > { %v8056_v30 = vsel %vm226_vm5, %v12359_v17, %v7580_v58  ;;  %v7390_v17 = vpop.permute.xlu2 %7389 }
 0x73b   : > { %v7692_v46 = vpop.permute.xlu1 %7691  ;;  %v8382_v42 = vpop.f32.mrf.mxu0 }
 0x73c   : > { %v8094_v12 = vsel %vm2168_vm10, %v8056_v30, %v7692_v46  ;;  %8626 = vxpose.xlu0.b32.cont [7/16] (narrow) %v8556_v21, 32  ;;  %v8383_v4 = vadd.f32 %v12509_v39, %v8382_v42  ;;  %v7039_v30 = vunpack.c.l.b16 %v6462_v33 }
 0x73d   : > { %v8135_v53 = vsel %vm2201_vm11, %v8094_v12, %v7804_v43  ;;  %v8560_v43 = vpop.f32.mrf.mxu2 }
 0x73e   : > { %8495 = vmatmul.bf16.gmra.mxu1 %v8135_v53  ;;  %v7060_v61 = vpack.c.b16 %v7040_v57, %v7039_v30 }
 0x741   : > { %v7590_v54 = vpop.permute.xlu0 %7589  ;;  %v12580_v33 = vpop.f32.mrf.mxu3 }
 0x742   : > { %v8071_v49 = vsel %vm226_vm5, %v7479_v38, %v7590_v54  ;;  %v7806_v15 = vpop.permute.xlu2 %7805 }
 0x743   : > { %v7702_v35 = vpop.permute.xlu1 %7701  ;;  %v8471_v52 = vpop.f32.mrf.mxu1 }
 0x744   : > { %v8104_v27 = vsel %vm2168_vm10, %v8071_v49, %v7702_v35  ;;  %8627 = vxpose.xlu0.b32.cont [8/16] (narrow) %v8558_v16, 32  ;;  %v8384_v6 = vpop.f32.mrf.mxu0  ;;  %v8472_v3 = vadd.f32 %v8471_v52, %v8383_v4 }
 0x745   : > { %v8150_v14 = vsel %vm2201_vm11, %v8104_v27, %v7814_v56  ;;  %v8562_v2 = vpop.f32.mrf.mxu2  ;;  %v8385_v46 = vadd.f32 %v12509_v39, %v8384_v6 }
 0x746   : > { %8520 = vmatmul.bf16.gmra.mxu3 %v8150_v14  ;;  %v8561_v56 = vadd.f32 %v8560_v43, %v8472_v3 }
 0x749   : > { %v7166_v28 = vpop.permute.xlu0 %7165 }
 0x74a   : > { %v7929_v31 = vsel %vm226_vm5, %v7059_v45, %v7166_v28  ;;  %v7816_v19 = vpop.permute.xlu2 %7815  ;;  %v6952_v28 = vld [vmem:[#allocation2 + $0x231] sm:$0xff] }
 0x74b   : > { %v7278_v47 = vpop.permute.xlu1 %7277  ;;  %v8473_v10 = vpop.f32.mrf.mxu1 }
 0x74c   : > { %v7967_v41 = vsel %vm2168_vm10, %v7929_v31, %v7278_v47  ;;  %8628 = vxpose.xlu0.b32.cont [9/16] (narrow) %v8561_v56, 32  ;;  %v8474_v20 = vadd.f32 %v8473_v10, %v8385_v46  ;;  %v6951_v47 = vld [vmem:[#allocation2 + $0x229] sm:$0xff] }
 0x74d   : > { %v8010_v62 = vsel %vm2201_vm11, %v7967_v41, %v7390_v17  ;;  %v8565_v38 = vpop.f32.mrf.mxu2  ;;  %v6983_v41 = vpack.c.bf16 %v6951_v47, %v6951_v47 }
 0x74e   : > { %8411 = vmatmul.bf16.gmra.mxu0 %v8010_v62  ;;  %v8563_v53 = vadd.f32 %v8562_v2, %v8474_v20 }
 0x74f   : > { %v7879_v62 = vunpack.c.l.b16 %v6983_v41 }
 0x751   : > { %v7582_v34 = vpop.permute.xlu0 %7581 }
 0x752   : > { %v8059_v51 = vsel %vm226_vm5, %v12412_v55, %v7582_v34  ;;  %v7392_v29 = vpop.permute.xlu2 %7391 }
 0x753   : > { %v7694_v11 = vpop.permute.xlu1 %7693  ;;  %v8387_v55 = vpop.f32.mrf.mxu0 }
 0x754   : > { %v8096_v22 = vsel %vm2168_vm10, %v8059_v51, %v7694_v11  ;;  %v8388_v40 = vadd.f32 %v12509_v39, %v8387_v55  ;;  %8629 = vxpose.xlu0.b32.cont [10/16] (narrow) %v8563_v53, 32  ;;  %v12583_v55 = vpop.f32.mrf.mxu3 }
 0x755   : > { %v8138_v5 = vsel %vm2201_vm11, %v8096_v22, %v7806_v15  ;;  %v8567_v48 = vpop.f32.mrf.mxu2  ;;  %v6984_v15 = vpack.c.bf16 %v6952_v28, %v6952_v28 }
 0x756   : > { %8500 = vmatmul.bf16.gmra.mxu1 %v8138_v5 }
 0x757   : > { %v7880_v16 = vunpack.c.l.b16 %v6984_v15 }
 0x759   : > { %v7592_v58 = vpop.permute.xlu0 %7591  ;;  %v7896_v6 = vpack.c.b16 %v7880_v16, %v7879_v62 }
 0x75a   : > { %v8074_v9 = vsel %vm226_vm5, %v12426_v13, %v7592_v58  ;;  %v7808_v27 = vpop.permute.xlu2 %7807 }
 0x75b   : > { %v7704_v0 = vpop.permute.xlu1 %7703  ;;  %v8476_v23 = vpop.f32.mrf.mxu1 }
 0x75c   : > { %v8106_v50 = vsel %vm2168_vm10, %v8074_v9, %v7704_v0  ;;  %v8477_v24 = vadd.f32 %v8476_v23, %v8388_v40  ;;  %v8389_v54 = vpop.f32.mrf.mxu0  ;;  %v12585_v20 = vpop.f32.mrf.mxu3 }
 0x75d   : > { %v8153_v12 = vsel %vm2201_vm11, %v8106_v50, %v7816_v19  ;;  %v8390_v1 = vadd.f32 %v12509_v39, %v8389_v54  ;;  %v8570_v52 = vpop.f32.mrf.mxu2 }
 0x75e   : > { %8525 = vmatmul.bf16.gmra.mxu3 %v8153_v12  ;;  %v8566_v44 = vadd.f32 %v8565_v38, %v8477_v24 }
 0x760   : > { %8630 = vxpose.xlu0.b32.cont [11/16] (narrow) %v8566_v44, 32 }
 0x761   : > { %v7168_v7 = vpop.permute.xlu0 %7167 }
 0x762   : > { %v7932_v13 = vsel %vm226_vm5, %v7060_v61, %v7168_v7 }
 0x763   : > { %v7280_v18 = vpop.permute.xlu1 %7279  ;;  %v8478_v49 = vpop.f32.mrf.mxu1 }
 0x764   : > { %v7969_v35 = vsel %vm2168_vm10, %v7932_v13, %v7280_v18  ;;  %v8479_v45 = vadd.f32 %v8478_v49, %v8390_v1 }
 0x765   : > { %v8013_v17 = vsel %vm2201_vm11, %v7969_v35, %v7392_v29  ;;  %v8572_v3 = vpop.f32.mrf.mxu2 }
 0x766   : > { %8416 = vmatmul.bf16.gmra.mxu0 %v8013_v17  ;;  %v8568_v31 = vadd.f32 %v8567_v48, %v8479_v45 }
 0x768   : > { %8631 = vxpose.xlu0.b32.cont [12/16] (narrow) %v8568_v31, 32 }
 0x769   : > { %v7584_v26 = vpop.permute.xlu0 %7583  ;;  %v12588_v29 = vpop.f32.mrf.mxu3 }
 0x76a   : > { %v8062_v14 = vsel %vm226_vm5, %v12456_v37, %v7584_v26 }
 0x76b   : > { %v7696_v32 = vpop.permute.xlu1 %7695  ;;  %v8392_v60 = vpop.f32.mrf.mxu0 }
 0x76c   : > { %v8098_v21 = vsel %vm2168_vm10, %v8062_v14, %v7696_v32  ;;  %v8393_v59 = vadd.f32 %v12509_v39, %v8392_v60 }
 0x76d   : > { %v8141_v42 = vsel %vm2201_vm11, %v8098_v21, %v7808_v27  ;;  %v8575_v19 = vpop.f32.mrf.mxu2 }
 0x76e   : > { %8505 = vmatmul.bf16.gmra.mxu1 %v8141_v42  ;;  %9380 = vmatmul.msk.bf16.vlgmr.msra.gmra.mxu3 %vm226_vm5, %v12459_v36 }
 0x771   : > { %v12591_v35 = vpop.f32.mrf.mxu3 }
 0x773   : > { %v8481_v43 = vpop.f32.mrf.mxu1  ;;  %v8394_v11 = vpop.f32.mrf.mxu0 }
 0x774   : > { %v8482_v37 = vadd.f32 %v8481_v43, %v8393_v59  ;;  %v8395_v34 = vadd.f32 %v12509_v39, %v8394_v11 }
 0x775   : > { %v8577_v9 = vpop.f32.mrf.mxu2 }
 0x776   : > { %v8571_v4 = vadd.f32 %v8570_v52, %v8482_v37 }
 0x778   : > { %8632 = vxpose.xlu0.b32.cont [13/16] (narrow) %v8571_v4, 32 }
 0x77b   : > { %v8483_v36 = vpop.f32.mrf.mxu1 }
 0x77c   : > { %v8484_v51 = vadd.f32 %v8483_v36, %v8395_v34 }
 0x77d   : > { %v8580_v12 = vpop.f32.mrf.mxu2 }
 0x77e   : > { %9381 = vmatmul.msk.bf16.gmra.mxu3 %vm226_vm5, %v7896_v6  ;;  %v8573_v22 = vadd.f32 %v8572_v3, %v8484_v51 }
 0x780   : > { %8633 = vxpose.xlu0.b32.cont [14/16] (narrow) %v8573_v22, 32 }
 0x781   : > { %v12593_v17 = vpop.f32.mrf.mxu3 }
 0x783   : > { %v8397_v63 = vpop.f32.mrf.mxu0 }
 0x784   : > { %v8398_v5 = vadd.f32 %v12509_v39, %v8397_v63 }
 0x785   : > { %v8582_v13 = vpop.f32.mrf.mxu2 }
 0x789   : > { %v12597_v14 = vpop.f32.mrf.mxu3 }
 0x78b   : > { %v8486_v2 = vpop.f32.mrf.mxu1  ;;  %v8399_v56 = vpop.f32.mrf.mxu0 }
 0x78c   : > { %v8487_v10 = vadd.f32 %v8486_v2, %v8398_v5  ;;  %v8400_v0 = vadd.f32 %v12509_v39, %v8399_v56 }
 0x78d   : > { %v8585_v49 = vpop.f32.mrf.mxu2 }
 0x78e   : > { %v8576_v25 = vadd.f32 %v8575_v19, %v8487_v10 }
 0x790   : > { %8634 = vxpose.xlu0.b32.cont [15/16] (narrow) %v8576_v25, 32 }
 0x793   : > { %v8488_v46 = vpop.f32.mrf.mxu1 }
 0x794   : > { %v8489_v58 = vadd.f32 %v8488_v46, %v8400_v0 }
 0x795   : > { %v8587_v60 = vpop.f32.mrf.mxu2 }
 0x796   : > { %v8578_v30 = vadd.f32 %v8577_v9, %v8489_v58 }
 0x798   : > { %8635 = vxpose.xlu0.b32.end [16/16] (narrow) %v8578_v30, 32  ;;  %v8423_v30 = vadd.f32 %v12509_v39, %v12577_v8 }
 0x799   : > { %v8511_v47 = vpop.f32.mrf.mxu3 }
 0x79b   : > { %v8402_v57 = vpop.f32.mrf.mxu0 }
 0x79c   : > { %v8403_v50 = vadd.f32 %v12509_v39, %v8402_v57 }
 0x79d   : > { %v8590_v31 = vpop.f32.mrf.mxu2 }
 0x7a1   : > { %v8513_v43 = vpop.f32.mrf.mxu3 }
 0x7a3   : > { %v8491_v23 = vpop.f32.mrf.mxu1  ;;  %v8404_v38 = vpop.f32.mrf.mxu0 }
 0x7a4   : > { %v8492_v61 = vadd.f32 %v8491_v23, %v8403_v50  ;;  %v8405_v18 = vadd.f32 %v12509_v39, %v8404_v38  ;;  %v8512_v50 = vadd.f32 %v8511_v47, %v8423_v30  ;;  %v8425_v23 = vadd.f32 %v12509_v39, %v12580_v33 }
 0x7a5   : > { %v8592_v62 = vpop.f32.mrf.mxu2  ;;  %v8440_v47 = vadd.f32 %v12509_v39, %v12597_v14 }
 0x7a6   : > { %v8581_v53 = vadd.f32 %v8580_v12, %v8492_v61  ;;  %v8514_v38 = vadd.f32 %v8513_v43, %v8425_v23 }
 0x7a8   : > { %8652 = vxpose.xlu1.b32.start [1/16] (narrow) %v8581_v53, 32 }
 0x7ab   : > { %v8493_v40 = vpop.f32.mrf.mxu1 }
 0x7ac   : > { %v8494_v7 = vadd.f32 %v8493_v40, %v8405_v18  ;;  %v8428_v40 = vadd.f32 %v12509_v39, %v12583_v55 }
 0x7ad   : > { %v8595_v36 = vpop.f32.mrf.mxu2 }
 0x7ae   : > { %v8583_v24 = vadd.f32 %v8582_v13, %v8494_v7 }
 0x7b0   : > { %8653 = vxpose.xlu1.b32.cont [2/16] (narrow) %v8583_v24, 32 }
 0x7b1   : > { %v8516_v34 = vpop.f32.mrf.mxu3 }
 0x7b2   : > { %v8517_v13 = vadd.f32 %v8516_v34, %v8428_v40 }
 0x7b3   : > { %v8407_v54 = vpop.f32.mrf.mxu0 }
 0x7b4   : > { %v8408_v44 = vadd.f32 %v12509_v39, %v8407_v54  ;;  %v8430_v54 = vadd.f32 %v12509_v39, %v12585_v20 }
 0x7b5   : > { %v8597_v19 = vpop.f32.mrf.mxu2 }
 0x7b9   : > { %v8518_v3 = vpop.f32.mrf.mxu3 }
 0x7bb   : > { %v8496_v32 = vpop.f32.mrf.mxu1  ;;  %v8409_v27 = vpop.f32.mrf.mxu0 }
 0x7bc   : > { %v8497_v1 = vadd.f32 %v8496_v32, %v8408_v44  ;;  %v8410_v48 = vadd.f32 %v12509_v39, %v8409_v27  ;;  %v8519_v44 = vadd.f32 %v8518_v3, %v8430_v54 }
 0x7bd   : > { %v8600_v9 = vpop.f32.mrf.mxu2 }
 0x7be   : > { %v8586_v26 = vadd.f32 %v8585_v49, %v8497_v1  ;;  %v8601_v12 = vadd.f32 %v8600_v9, %v8512_v50  ;;  %v8433_v1 = vadd.f32 %v12509_v39, %v12588_v29 }
 0x7c0   : > { %8654 = vxpose.xlu1.b32.cont [3/16] (narrow) %v8586_v26, 32 }
 0x7c3   : > { %v8498_v45 = vpop.f32.mrf.mxu1 }
 0x7c4   : > { %v8499_v21 = vadd.f32 %v8498_v45, %v8410_v48  ;;  %v8435_v48 = vadd.f32 %v12509_v39, %v12591_v35 }
 0x7c5   : > { %v8602_v61 = vpop.f32.mrf.mxu2 }
 0x7c6   : > { %v8588_v42 = vadd.f32 %v8587_v60, %v8499_v21  ;;  %v8603_v18 = vadd.f32 %v8602_v61, %v8514_v38  ;;  %v8438_v60 = vadd.f32 %v12509_v39, %v12593_v17  ;;  %v8686_v17 = vld [vmem:[%s9856_s17 + $0x10] sm:$0xff] }
 0x7c8   : > { %8655 = vxpose.xlu1.b32.cont [4/16] (narrow) %v8588_v42, 32 }
 0x7c9   : > { %v8521_v10 = vpop.f32.mrf.mxu3 }
 0x7ca   : > { %v8522_v26 = vadd.f32 %v8521_v10, %v8433_v1 }
 0x7cb   : > { %v8412_v28 = vpop.f32.mrf.mxu0 }
 0x7cc   : > { %v8413_v59 = vadd.f32 %v12509_v39, %v8412_v28 }
 0x7cd   : > { %v8605_v7 = vpop.f32.mrf.mxu2 }
 0x7ce   : > { %v8606_v8 = vadd.f32 %v8605_v7, %v8517_v13 }
 0x7d1   : > { %v8523_v57 = vpop.f32.mrf.mxu3 }
 0x7d2   : > { %v8524_v45 = vadd.f32 %v8523_v57, %v8435_v48 }
 0x7d3   : > { %v8501_v41 = vpop.f32.mrf.mxu1  ;;  %v8414_v52 = vpop.f32.mrf.mxu0 }
 0x7d4   : > { %v8502_v15 = vadd.f32 %v8501_v41, %v8413_v59  ;;  %v8415_v16 = vadd.f32 %v12509_v39, %v8414_v52  ;;  %v8684_v59 = vld [vmem:[%s9856_s17] sm:$0xff]  ;;  %v8636_v41 = vpop.trf.xlu0 }
 0x7d5   : > { %v8607_v49 = vpop.f32.mrf.mxu2 }
 0x7d6   : > { %v8591_v37 = vadd.f32 %v8590_v31, %v8502_v15  ;;  %v8608_v32 = vadd.f32 %v8607_v49, %v8519_v44  ;;  %v8692_v15 = vadd.f32 %v8684_v59, %v8636_v41 }
 0x7d8   : > { %8656 = vxpose.xlu1.b32.cont [5/16] (narrow) %v8591_v37, 32  ;;  %8700 = vst [vmem:[%s9856_s17] sm:$0xff] %v8692_v15 }
 0x7db   : > { %v8503_v11 = vpop.f32.mrf.mxu1 }
 0x7dc   : > { %v8504_v4 = vadd.f32 %v8503_v11, %v8415_v16  ;;  %v8637_v43 = vpop.trf.xlu0 }
 0x7dd   : > { %v8694_v37 = vadd.f32 %v8686_v17, %v8637_v43 }
 0x7de   : > { %v8593_v6 = vadd.f32 %v8592_v62, %v8504_v4  ;;  %v8690_v62 = vld [vmem:[%s9856_s17 + $0x30] sm:$0xff]  ;;  %v8685_v4 = vld [vmem:[%s9856_s17 + $0x8] sm:$0xff] }
 0x7df   : > { %8702 = vst [vmem:[%s9856_s17 + $0x10] sm:$0xff] %v8694_v37 }
 0x7e0   : > { %8657 = vxpose.xlu1.b32.cont [6/16] (narrow) %v8593_v6, 32 }
 0x7e1   : > { %v8526_v53 = vpop.f32.mrf.mxu3 }
 0x7e2   : > { %v8527_v42 = vadd.f32 %v8526_v53, %v8438_v60 }
 0x7e3   : > { %v8417_v51 = vpop.f32.mrf.mxu0 }
 0x7e4   : > { %v8418_v22 = vadd.f32 %v12509_v39, %v8417_v51  ;;  %v8638_v14 = vpop.trf.xlu0 }
 0x7e9   : > { %v8528_v24 = vpop.f32.mrf.mxu3 }
 0x7ea   : > { %v8529_v35 = vadd.f32 %v8528_v24, %v8440_v47 }
 0x7eb   : > { %v8506_v63 = vpop.f32.mrf.mxu1  ;;  %v8419_v25 = vpop.f32.mrf.mxu0 }
 0x7ec   : > { %v8507_v5 = vadd.f32 %v8506_v63, %v8418_v22  ;;  %v8420_v56 = vadd.f32 %v12509_v39, %v8419_v25  ;;  %v8688_v39 = vld [vmem:[%s9856_s17 + $0x20] sm:$0xff]  ;;  %v8639_v16 = vpop.trf.xlu0  ;;  %v8689_v22 = vld [vmem:[%s9856_s17 + $0x28] sm:$0xff] }
 0x7ed   : > { %v8696_v52 = vadd.f32 %v8688_v39, %v8638_v14  ;;  %v8698_v11 = vadd.f32 %v8690_v62, %v8639_v16 }
 0x7ee   : > { %v8596_v2 = vadd.f32 %v8595_v36, %v8507_v5  ;;  %v8687_v36 = vld [vmem:[%s9856_s17 + $0x18] sm:$0xff] }
 0x7ef   : > { %8704 = vst [vmem:[%s9856_s17 + $0x20] sm:$0xff] %v8696_v52 }
 0x7f0   : > { %8658 = vxpose.xlu1.b32.cont [7/16] (narrow) %v8596_v2, 32  ;;  %8706 = vst [vmem:[%s9856_s17 + $0x30] sm:$0xff] %v8698_v11 }
 0x7f1   : > { %v8610_v33 = vpop.f32.mrf.mxu3 }
 0x7f2   : > { %v8611_v27 = vadd.f32 %v8610_v33, %v8522_v26 }
 0x7f3   : > { %v8508_v0 = vpop.f32.mrf.mxu1 }
 0x7f4   : > { %v8509_v46 = vadd.f32 %v8508_v0, %v8420_v56 }
 0x7f6   : > { %v8598_v58 = vadd.f32 %v8597_v19, %v8509_v46  ;;  %v8691_v19 = vld [vmem:[%s9856_s17 + $0x38] sm:$0xff] }
 0x7f8   : > { %8659 = vxpose.xlu1.b32.cont [8/16] (narrow) %v8598_v58, 32 }
 0x7f9   : > { %v8612_v55 = vpop.f32.mrf.mxu3 }
 0x7fa   : > { %v8613_v20 = vadd.f32 %v8612_v55, %v8524_v45 }
 0x800   : > { %8660 = vxpose.xlu1.b32.cont [9/16] (narrow) %v8601_v12, 32 }
 0x801   : > { %v8615_v21 = vpop.f32.mrf.mxu3 }
 0x802   : > { %v8616_v29 = vadd.f32 %v8615_v21, %v8527_v42 }
 0x808   : > { %8661 = vxpose.xlu1.b32.cont [10/16] (narrow) %v8603_v18, 32 }
 0x809   : > { %v8617_v28 = vpop.f32.mrf.mxu3 }
 0x80a   : > { %v8618_v31 = vadd.f32 %v8617_v28, %v8529_v35 }
 0x810   : > { %8662 = vxpose.xlu1.b32.cont [11/16] (narrow) %v8606_v8, 32 }
 0x818   : > { %8663 = vxpose.xlu1.b32.cont [12/16] (narrow) %v8608_v32, 32 }
 0x820   : > { %8664 = vxpose.xlu1.b32.cont [13/16] (narrow) %v8611_v27, 32 }
 0x828   : > { %8665 = vxpose.xlu1.b32.cont [14/16] (narrow) %v8613_v20, 32 }
 0x830   : > { %8666 = vxpose.xlu1.b32.cont [15/16] (narrow) %v8616_v29, 32 }
 0x838   : > { %8667 = vxpose.xlu1.b32.end [16/16] (narrow) %v8618_v31, 32 }
 0x864   : > { %v8668_v34 = vpop.trf.xlu1 }
 0x865   : > { %v8693_v6 = vadd.f32 %v8685_v4, %v8668_v34 }
 0x867   : > { %8701 = vst [vmem:[%s9856_s17 + $0x8] sm:$0xff] %v8693_v6 }
 0x86c   : > { %v8669_v51 = vpop.trf.xlu1 }
 0x86d   : > { %v8695_v3 = vadd.f32 %v8687_v36, %v8669_v51 }
 0x86f   : > { %8703 = vst [vmem:[%s9856_s17 + $0x18] sm:$0xff] %v8695_v3 }
 0x874   : > { %v8670_v63 = vpop.trf.xlu1 }
 0x875   : > { %v8697_v5 = vadd.f32 %v8689_v22, %v8670_v63 }
 0x877   : > { %8705 = vst [vmem:[%s9856_s17 + $0x28] sm:$0xff] %v8697_v5 }
 0x87c   : > { %v8671_v2 = vpop.trf.xlu1 }
 0x87d   : > { %v8699_v10 = vadd.f32 %v8691_v19, %v8671_v2 }
 0x87f   : > { %8707 = vst [vmem:[%s9856_s17 + $0x38] sm:$0xff] %v8699_v10 }
 0x880 PF: > { %s15_s18 = sadd.s32 1, %s9567_s18  }
 0x881   : > { %p12_p5 = scmp.ge.s32.totalorder %s15_s18, 4  }
 0x883   :  { %14 = sbr.rel (!%p12_p5) target bundleno = 1 (0x1), region = 101 }

</bundles_post_ra>
